<compile_context>
chip_gen: v6e
topology: v6e:2x2x1
jax: 0.10.0
libtpu: 0.0.40
codegen_flags: <defaults>
</compile_context>

<pallas_src>
import jax
import jax.numpy as jnp
from jax.experimental import pallas as pl
from jax.experimental.pallas import tpu as pltpu


_LANE = 128
# 32 MiB scoped-VMEM budget is safe on v5e/v6e (128 MiB) and v7x (64 MiB physical).
_VMEM_LIMIT = 32 * 1024 * 1024


def _round_up(x, m):
    return ((x + m - 1) // m) * m


def _pick_row_block(ho, max_r=8):
    """Largest divisor of `ho` that is <= max_r (output rows per grid step)."""
    for r in range(min(max_r, ho), 0, -1):
        if ho % r == 0:
            return r
    return 1


# --------------------------- template-branch kernel --------------------------

def _conv3x3_bn_relu_kernel(x_ref, w_ref, scale_ref, shift_ref, o_ref):
    # x_ref: (1, H, W, Cin) bf16   w_ref: (3, 3, Cin, O) bf16
    # scale/shift: (1, O) f32      o_ref: (1, Ho, Wo, O) f32
    Ho, Wo, O = o_ref.shape[1], o_ref.shape[2], o_ref.shape[3]
    w = [[w_ref[u, v] for v in range(3)] for u in range(3)]
    sc = jnp.broadcast_to(scale_ref[...], (Wo, O))
    sh = jnp.broadcast_to(shift_ref[...], (Wo, O))
    # Template map is tiny (<= 7x7 output); keep the simple row-wise form.
    for p in range(Ho):
        acc = jnp.zeros((Wo, O), jnp.float32)
        for u in range(3):
            row = x_ref[0, p + u]                       # (W, Cin), bf16
            for v in range(3):
                acc = acc + jnp.dot(row[v:v + Wo, :], w[u][v],
                                    preferred_element_type=jnp.float32)
        o_ref[0, p] = jnp.maximum(acc * sc + sh, 0.0).astype(o_ref.dtype)


def conv3x3_bn_relu(x_nchw, w_oihw, scale, shift):
    """3x3 VALID conv (no bias) + eval-BN + ReLU.  Returns NHWC f32 features."""
    B, C, H, W = x_nchw.shape
    O = w_oihw.shape[0]
    Ho, Wo = H - 2, W - 2
    x = jnp.transpose(x_nchw, (0, 2, 3, 1)).astype(jnp.bfloat16)    # (B, H, W, Cin)
    w = jnp.transpose(w_oihw, (2, 3, 1, 0)).astype(jnp.bfloat16)    # (3, 3, Cin, O)
    return pl.pallas_call(
        _conv3x3_bn_relu_kernel,
        out_shape=jax.ShapeDtypeStruct((B, Ho, Wo, O), jnp.float32),
        grid=(B,),
        in_specs=[pl.BlockSpec((1, H, W, C), lambda b: (b, 0, 0, 0)),
                  pl.BlockSpec((3, 3, C, O), lambda b: (0, 0, 0, 0)),
                  pl.BlockSpec((1, O), lambda b: (0, 0)),
                  pl.BlockSpec((1, O), lambda b: (0, 0))],
        out_specs=pl.BlockSpec((1, Ho, Wo, O), lambda b: (b, 0, 0, 0)),
        compiler_params=pltpu.CompilerParams(
            dimension_semantics=("parallel",),
            vmem_limit_bytes=_VMEM_LIMIT),
    )(x, w, scale.reshape(1, O), shift.reshape(1, O))


# --------------- fused search-conv + depthwise-xcorr + head kernel -----------

def _make_fused_kernel(R, Hk, Wk, Wo_pad, Ws_pad, hidden):
    """Search conv + depthwise xcorr + head for one (batch, output-row-block)."""
    Rs = R + Hk - 1          # search-feature rows needed for R output rows
    nx = Rs + 2              # input rows needed for Rs conv rows

    def kernel(x_ref, w_ref, csc_ref, csh_ref, k_ref, w1c_ref, w1l_ref,
               hsc_ref, hsh_ref, w2c_ref, w2l_ref, b2_ref, o_ref):
        # x_ref   (1, H, W_pad, Cin) bf16      w_ref  (3, 3, Cin, C)  bf16
        # csc/csh (1, C) f32                   k_ref  (1, Hk, Wk, C)  f32
        # w1c/w1l (hidden, hidden) bf16        hsc/hsh(1, C) f32
        # w2c/w2l (hidden, OP) bf16            b2_ref (1, OP) f32
        # o_ref   (1, R, Wo_pad, OP) f32
        C = k_ref.shape[3]
        Cin = x_ref.shape[3]
        r0 = pl.program_id(1) * R          # first xcorr output row of this block

        # ---- search conv: 3x3 + BN + ReLU on just the Rs rows this block needs.
        # One big-M MXU dot per tap (the RHS tap weight is reused across every
        # row).  The f32 round trip is value-preserving (bf16 -> f32 -> bf16) and
        # keeps the row-merge reshape on 8-aligned sublane groups (copy-free).
        xs = x_ref[0, pl.ds(r0, nx)].astype(jnp.float32)      # (nx, W_pad, Cin)
        xv = [xs[:, v:v + Ws_pad, :] for v in range(3)]       # hoisted col shifts
        acc = jnp.zeros((Rs * Ws_pad, C), jnp.float32)
        for u in range(3):
            for v in range(3):
                lhs = xv[v][u:u + Rs].reshape(Rs * Ws_pad, Cin)
                acc = acc + jnp.dot(lhs.astype(jnp.bfloat16), w_ref[u, v],
                                    preferred_element_type=jnp.float32)
        s_all = jnp.maximum(acc * csc_ref[...] + csh_ref[...], 0.0)  # (Rs*Ws_pad, C)

        # ---- depthwise cross-correlation: row-fused f32 VPU accumulation.
        k = k_ref[0]                                           # (Hk, Wk, C)
        # column-shifted views of every conv row, hoisted out of the tap loop
        s_sh = [[s_all[i * Ws_pad + v:i * Ws_pad + v + Wo_pad, :]
                 for v in range(Wk)] for i in range(Rs)]
        feat_rows = []
        for r in range(R):
            a = jnp.zeros((Wo_pad, C), jnp.float32)            # fits in vregs
            for u in range(Hk):
                for v in range(Wk):
                    a = a + s_sh[r + u][v] * k[u, v, :]
            feat_rows.append(a)
        feat = jnp.concatenate(feat_rows, axis=0)              # (R*Wo_pad, C)

        # ---- head: 1x1 -> BN -> ReLU -> 1x1 (+bias); rows batched into MXU M,
        #      cls / loc halves applied as two half-size dots (no zero-block MACs).
        hsc = hsc_ref[...]
        hsh = hsh_ref[...]
        h_cls = jnp.dot(feat[:, :hidden].astype(jnp.bfloat16), w1c_ref[...],
                        preferred_element_type=jnp.float32)
        h_cls = jnp.maximum(h_cls * hsc[:, :hidden] + hsh[:, :hidden], 0.0)
        h_loc = jnp.dot(feat[:, hidden:].astype(jnp.bfloat16), w1l_ref[...],
                        preferred_element_type=jnp.float32)
        h_loc = jnp.maximum(h_loc * hsc[:, hidden:] + hsh[:, hidden:], 0.0)
        out = (jnp.dot(h_cls.astype(jnp.bfloat16), w2c_ref[...],
                       preferred_element_type=jnp.float32)
               + jnp.dot(h_loc.astype(jnp.bfloat16), w2l_ref[...],
                         preferred_element_type=jnp.float32)
               + b2_ref[...])                                   # (R*Wo_pad, OP)
        for r in range(R):                                      # aligned row stores
            o_ref[0, r] = out[r * Wo_pad:(r + 1) * Wo_pad, :].astype(o_ref.dtype)

    return kernel


def fused_search_xcorr_head(x_nchw, w_conv, cs_scale, cs_shift, k_feat,
                            w1c, w1l, h_scale, h_shift, w2c, w2l, b2,
                            o_total, hidden):
    """Fused search-branch conv + depthwise xcorr + head.  Returns NHWC output."""
    B, Cin, H, W = x_nchw.shape
    _, Hk, Wk, C = k_feat.shape
    Hs, Ws = H - 2, W - 2
    Ho, Wo = Hs - Hk + 1, Ws - Wk + 1
    R = _pick_row_block(Ho)                      # output rows per grid step
    nrb = Ho // R
    assert R * nrb == Ho
    Wo_pad = _round_up(Wo, 8)                    # 8-aligned output-width accumulator
    Ws_pad = _round_up(Wo_pad + Wk - 1, 8)       # 8-aligned conv-row width
    W_pad = Ws_pad + 2                           # input width incl. zero padding
    OP = _round_up(o_total, _LANE)               # lane-dense head output width

    x = jnp.transpose(x_nchw, (0, 2, 3, 1)).astype(jnp.bfloat16)    # (B, H, W, Cin)
    x = jnp.pad(x, ((0, 0), (0, 0), (0, W_pad - W), (0, 0)))

    w2c_p = jnp.zeros((hidden, OP), jnp.float32).at[:, :o_total].set(w2c)
    w2l_p = jnp.zeros((hidden, OP), jnp.float32).at[:, :o_total].set(w2l)
    b2_p = jnp.zeros((1, OP), jnp.float32).at[:, :o_total].set(b2.reshape(1, -1))

    kernel = _make_fused_kernel(R, Hk, Wk, Wo_pad, Ws_pad, hidden)
    const = lambda b, rb: (0, 0)
    out = pl.pallas_call(
        kernel,
        out_shape=jax.ShapeDtypeStruct((B, Ho, Wo_pad, OP), jnp.float32),
        grid=(B, nrb),
        in_specs=[
            pl.BlockSpec((1, H, W_pad, Cin), lambda b, rb: (b, 0, 0, 0)),
            pl.BlockSpec((3, 3, Cin, C), lambda b, rb: (0, 0, 0, 0)),
            pl.BlockSpec((1, C), const),
            pl.BlockSpec((1, C), const),
            pl.BlockSpec((1, Hk, Wk, C), lambda b, rb: (b, 0, 0, 0)),
            pl.BlockSpec((hidden, hidden), const),
            pl.BlockSpec((hidden, hidden), const),
            pl.BlockSpec((1, C), const),
            pl.BlockSpec((1, C), const),
            pl.BlockSpec((hidden, OP), const),
            pl.BlockSpec((hidden, OP), const),
            pl.BlockSpec((1, OP), const),
        ],
        out_specs=pl.BlockSpec((1, R, Wo_pad, OP), lambda b, rb: (b, rb, 0, 0)),
        compiler_params=pltpu.CompilerParams(
            dimension_semantics=("parallel", "parallel"),
            vmem_limit_bytes=_VMEM_LIMIT),
    )(x, w_conv,
      cs_scale.reshape(1, C), cs_shift.reshape(1, C), k_feat,
      w1c.astype(jnp.bfloat16), w1l.astype(jnp.bfloat16),
      h_scale.reshape(1, C), h_shift.reshape(1, C),
      w2c_p.astype(jnp.bfloat16), w2l_p.astype(jnp.bfloat16), b2_p)
    return out[:, :, :Wo, :o_total]


# ------------------------- module-level forward ------------------------------

def depthwise_rpn_forward(params, z_f, x_f):
    pc, plc = params["cls"], params["loc"]
    hidden = pc["w1"].shape[0]
    o_cls = pc["w2"].shape[0]
    o_loc = plc["w2"].shape[0]
    o_total = o_cls + o_loc

    # ---- fuse the cls and loc branches: stack the conv output channels ----
    wk = jnp.concatenate([pc["wk"], plc["wk"]], axis=0)          # (2h, Cin, 3, 3)
    ws = jnp.concatenate([pc["ws"], plc["ws"]], axis=0)
    bn_k_s = jnp.concatenate([pc["bn_k"][0], plc["bn_k"][0]])
    bn_k_b = jnp.concatenate([pc["bn_k"][1], plc["bn_k"][1]])
    bn_s_s = jnp.concatenate([pc["bn_s"][0], plc["bn_s"][0]])
    bn_s_b = jnp.concatenate([pc["bn_s"][1], plc["bn_s"][1]])
    bn_h_s = jnp.concatenate([pc["bn_h"][0], plc["bn_h"][0]])
    bn_h_b = jnp.concatenate([pc["bn_h"][1], plc["bn_h"][1]])

    # head 1x1 convs kept per-branch (two half-size dots inside the kernel)
    w1c = pc["w1"].reshape(hidden, hidden).T
    w1l = plc["w1"].reshape(hidden, hidden).T
    w2c = jnp.zeros((hidden, o_total), jnp.float32).at[:, :o_cls].set(
        pc["w2"].reshape(o_cls, hidden).T)
    w2l = jnp.zeros((hidden, o_total), jnp.float32).at[:, o_cls:].set(
        plc["w2"].reshape(o_loc, hidden).T)
    b2 = jnp.concatenate([pc["b2"], plc["b2"]])

    ws_search = jnp.transpose(ws, (2, 3, 1, 0)).astype(jnp.bfloat16)  # (3,3,Cin,2h)

    # ---- kernels ----
    k_feat = conv3x3_bn_relu(z_f, wk, bn_k_s, bn_k_b)            # template, NHWC f32
    out = fused_search_xcorr_head(x_f, ws_search, bn_s_s, bn_s_b, k_feat,
                                  w1c, w1l, bn_h_s, bn_h_b, w2c, w2l, b2,
                                  o_total, hidden)

    cls = jnp.transpose(out[..., :o_cls], (0, 3, 1, 2))          # back to NCHW
    loc = jnp.transpose(out[..., o_cls:], (0, 3, 1, 2))
    return cls, loc


# ------------------------------ parameters -----------------------------------

def _bn_params(key, c, eps=1e-5):
    k1, k2, k3, k4 = jax.random.split(key, 4)
    gamma = jax.random.uniform(k1, (c,), minval=0.5, maxval=1.5)
    beta = jax.random.normal(k2, (c,)) * 0.1
    mean = jax.random.normal(k3, (c,)) * 0.1
    var = jax.random.uniform(k4, (c,), minval=0.5, maxval=1.5)
    scale = (gamma / jnp.sqrt(var + eps)).astype(jnp.float32)
    shift = (beta - mean * scale).astype(jnp.float32)
    return scale, shift


def init_dwxcorr_params(key, in_ch, hidden, out_ch):
    ks = jax.random.split(key, 8)
    return {
        "wk": (jax.random.normal(ks[0], (hidden, in_ch, 3, 3)) * 0.1).astype(jnp.float32),
        "bn_k": _bn_params(ks[1], hidden),
        "ws": (jax.random.normal(ks[2], (hidden, in_ch, 3, 3)) * 0.1).astype(jnp.float32),
        "bn_s": _bn_params(ks[3], hidden),
        "w1": (jax.random.normal(ks[4], (hidden, hidden, 1, 1)) * 0.1).astype(jnp.float32),
        "bn_h": _bn_params(ks[5], hidden),
        "w2": (jax.random.normal(ks[6], (out_ch, hidden, 1, 1)) * 0.1).astype(jnp.float32),
        "b2": (jax.random.normal(ks[7], (out_ch,)) * 0.1).astype(jnp.float32),
    }


# ---------------------------- pure-JAX reference ------------------------------

def _round_to(x, dtype):
    return x.astype(dtype).astype(x.dtype) if dtype is not None else x


def _ref_conv_bn_relu(x, w, scale, shift, mxu_dtype=None):
    y = jax.lax.conv_general_dilated(
        _round_to(x, mxu_dtype), _round_to(w, mxu_dtype), (1, 1), "VALID",
        dimension_numbers=("NCHW", "OIHW", "NCHW"),
        precision=jax.lax.Precision.HIGHEST)
    return jnp.maximum(y * scale[None, :, None, None] + shift[None, :, None, None], 0.0)


def _ref_dwxcorr(p, z_f, x_f, mxu_dtype=None):
    k = _ref_conv_bn_relu(z_f, p["wk"], *p["bn_k"], mxu_dtype=mxu_dtype)
    s = _ref_conv_bn_relu(x_f, p["ws"], *p["bn_s"], mxu_dtype=mxu_dtype)
    B, C = k.shape[:2]
    xr = s.reshape(1, B * C, s.shape[2], s.shape[3])
    kr = k.reshape(B * C, 1, k.shape[2], k.shape[3])
    feat = jax.lax.conv_general_dilated(
        xr, kr, (1, 1), "VALID",
        dimension_numbers=("NCHW", "OIHW", "NCHW"),
        feature_group_count=B * C,
        precision=jax.lax.Precision.HIGHEST)
    feat = feat.reshape(B, C, feat.shape[2], feat.shape[3])
    sc, sh = p["bn_h"]
    hidden = p["w1"].shape[0]
    h = jnp.einsum("bchw,oc->bohw", _round_to(feat, mxu_dtype),
                   _round_to(p["w1"].reshape(hidden, hidden), mxu_dtype),
                   precision="highest")
    h = jnp.maximum(h * sc[None, :, None, None] + sh[None, :, None, None], 0.0)
    out_ch = p["w2"].shape[0]
    o = jnp.einsum("bchw,oc->bohw", _round_to(h, mxu_dtype),
                   _round_to(p["w2"].reshape(out_ch, hidden), mxu_dtype),
                   precision="highest")
    return o + p["b2"][None, :, None, None]


# --------------------------------- main ---------------------------------------

if __name__ == "__main__":
    key = jax.random.PRNGKey(0)
    k_z, k_x, k_cls, k_loc = jax.random.split(key, 4)

    # small shapes consistent with the module: anchor_num=2, in_channels=4, hidden=8
    anchor_num, in_channels, hidden = 2, 4, 8
    B = 2
    z_f = jax.random.normal(k_z, (B, in_channels, 8, 8), dtype=jnp.float32)    # template
    x_f = jax.random.normal(k_x, (B, in_channels, 16, 16), dtype=jnp.float32)  # search

    params = {
        "cls": init_dwxcorr_params(k_cls, in_channels, hidden, 2 * anchor_num),
        "loc": init_dwxcorr_params(k_loc, in_channels, hidden, 4 * anchor_num),
    }

    fwd = jax.jit(depthwise_rpn_forward)
    cls_out, loc_out = fwd(params, z_f, x_f)
    jax.block_until_ready((cls_out, loc_out))

    assert cls_out.shape == (B, 2 * anchor_num, 9, 9), cls_out.shape
    assert loc_out.shape == (B, 4 * anchor_num, 9, 9), loc_out.shape

    # Tight check vs a reference whose matmul operands are rounded to bf16 (same
    # operand dtype as the kernel's MXU path, f32 accumulation on both sides).
    cls_m = _ref_dwxcorr(params["cls"], z_f, x_f, mxu_dtype=jnp.bfloat16)
    loc_m = _ref_dwxcorr(params["loc"], z_f, x_f, mxu_dtype=jnp.bfloat16)
    assert jnp.allclose(cls_out, cls_m, atol=2e-3, rtol=2e-3)
    assert jnp.allclose(loc_out, loc_m, atol=2e-3, rtol=2e-3)

    # Loose check vs the exact f32 module semantics (bounds bf16 quantization error).
    cls_ref = _ref_dwxcorr(params["cls"], z_f, x_f)
    loc_ref = _ref_dwxcorr(params["loc"], z_f, x_f)
    assert jnp.allclose(cls_out, cls_ref, atol=1e-1, rtol=1e-1)
    assert jnp.allclose(loc_out, loc_ref, atol=1e-1, rtol=1e-1)

    print("KERNEL_OK")
</pallas_src>

<mosaic_0001>
module attributes {stable_mosaic.version = 11 : i64} {
  func.func @_conv3x3_bn_relu_kernel(%arg0: i32, %arg1: memref<1x8x8x4xbf16, #tpu.memory_space<vmem>>, %arg2: memref<3x3x4x16xbf16, #tpu.memory_space<vmem>>, %arg3: memref<1x16xf32, #tpu.memory_space<vmem>>, %arg4: memref<1x16xf32, #tpu.memory_space<vmem>>, %arg5: memref<1x6x6x16xf32, #tpu.memory_space<vmem>>) attributes {dimension_semantics = [#tpu.dimension_semantics<parallel>], iteration_bounds = array<i64: 2>, scalar_prefetch = 0 : i64, scratch_operands = 0 : i64, tpu.core_type = #tpu.core_type<tc>, window_params = [{transform_indices = @transform_0, window_bounds = array<i64: 1, 8, 8, 4>}, {pipeline_mode = #tpu.pipeline_mode<synchronous>, transform_indices = @transform_1, window_bounds = array<i64: 3, 3, 4, 16>}, {pipeline_mode = #tpu.pipeline_mode<synchronous>, transform_indices = @transform_2, window_bounds = array<i64: 1, 16>}, {pipeline_mode = #tpu.pipeline_mode<synchronous>, transform_indices = @transform_3, window_bounds = array<i64: 1, 16>}, {transform_indices = @transform_4, window_bounds = array<i64: 1, 6, 6, 16>}]} {
    %c0 = arith.constant 0 : index
    %c0_0 = arith.constant 0 : index
    %c0_1 = arith.constant 0 : index
    %c0_2 = arith.constant 0 : index
    %0 = vector.load %arg2[%c0, %c0_0, %c0_1, %c0_2] : memref<3x3x4x16xbf16, #tpu.memory_space<vmem>>, vector<1x1x4x16xbf16>
    %1 = vector.shape_cast %0 : vector<1x1x4x16xbf16> to vector<4x16xbf16>
    %c0_3 = arith.constant 0 : index
    %c1 = arith.constant 1 : index
    %c0_4 = arith.constant 0 : index
    %c0_5 = arith.constant 0 : index
    %2 = vector.load %arg2[%c0_3, %c1, %c0_4, %c0_5] : memref<3x3x4x16xbf16, #tpu.memory_space<vmem>>, vector<1x1x4x16xbf16>
    %3 = vector.shape_cast %2 : vector<1x1x4x16xbf16> to vector<4x16xbf16>
    %c0_6 = arith.constant 0 : index
    %c2 = arith.constant 2 : index
    %c0_7 = arith.constant 0 : index
    %c0_8 = arith.constant 0 : index
    %4 = vector.load %arg2[%c0_6, %c2, %c0_7, %c0_8] : memref<3x3x4x16xbf16, #tpu.memory_space<vmem>>, vector<1x1x4x16xbf16>
    %5 = vector.shape_cast %4 : vector<1x1x4x16xbf16> to vector<4x16xbf16>
    %c1_9 = arith.constant 1 : index
    %c0_10 = arith.constant 0 : index
    %c0_11 = arith.constant 0 : index
    %c0_12 = arith.constant 0 : index
    %6 = vector.load %arg2[%c1_9, %c0_10, %c0_11, %c0_12] : memref<3x3x4x16xbf16, #tpu.memory_space<vmem>>, vector<1x1x4x16xbf16>
    %7 = vector.shape_cast %6 : vector<1x1x4x16xbf16> to vector<4x16xbf16>
    %c1_13 = arith.constant 1 : index
    %c1_14 = arith.constant 1 : index
    %c0_15 = arith.constant 0 : index
    %c0_16 = arith.constant 0 : index
    %8 = vector.load %arg2[%c1_13, %c1_14, %c0_15, %c0_16] : memref<3x3x4x16xbf16, #tpu.memory_space<vmem>>, vector<1x1x4x16xbf16>
    %9 = vector.shape_cast %8 : vector<1x1x4x16xbf16> to vector<4x16xbf16>
    %c1_17 = arith.constant 1 : index
    %c2_18 = arith.constant 2 : index
    %c0_19 = arith.constant 0 : index
    %c0_20 = arith.constant 0 : index
    %10 = vector.load %arg2[%c1_17, %c2_18, %c0_19, %c0_20] : memref<3x3x4x16xbf16, #tpu.memory_space<vmem>>, vector<1x1x4x16xbf16>
    %11 = vector.shape_cast %10 : vector<1x1x4x16xbf16> to vector<4x16xbf16>
    %c2_21 = arith.constant 2 : index
    %c0_22 = arith.constant 0 : index
    %c0_23 = arith.constant 0 : index
    %c0_24 = arith.constant 0 : index
    %12 = vector.load %arg2[%c2_21, %c0_22, %c0_23, %c0_24] : memref<3x3x4x16xbf16, #tpu.memory_space<vmem>>, vector<1x1x4x16xbf16>
    %13 = vector.shape_cast %12 : vector<1x1x4x16xbf16> to vector<4x16xbf16>
    %c2_25 = arith.constant 2 : index
    %c1_26 = arith.constant 1 : index
    %c0_27 = arith.constant 0 : index
    %c0_28 = arith.constant 0 : index
    %14 = vector.load %arg2[%c2_25, %c1_26, %c0_27, %c0_28] : memref<3x3x4x16xbf16, #tpu.memory_space<vmem>>, vector<1x1x4x16xbf16>
    %15 = vector.shape_cast %14 : vector<1x1x4x16xbf16> to vector<4x16xbf16>
    %c2_29 = arith.constant 2 : index
    %c2_30 = arith.constant 2 : index
    %c0_31 = arith.constant 0 : index
    %c0_32 = arith.constant 0 : index
    %16 = vector.load %arg2[%c2_29, %c2_30, %c0_31, %c0_32] : memref<3x3x4x16xbf16, #tpu.memory_space<vmem>>, vector<1x1x4x16xbf16>
    %17 = vector.shape_cast %16 : vector<1x1x4x16xbf16> to vector<4x16xbf16>
    %c0_33 = arith.constant 0 : index
    %c0_34 = arith.constant 0 : index
    %18 = vector.load %arg3[%c0_33, %c0_34] : memref<1x16xf32, #tpu.memory_space<vmem>>, vector<1x16xf32>
    %19 = vector.shape_cast %18 : vector<1x16xf32> to vector<1x16xf32>
    %20 = vector.broadcast %19 : vector<1x16xf32> to vector<6x16xf32>
    %c0_35 = arith.constant 0 : index
    %c0_36 = arith.constant 0 : index
    %21 = vector.load %arg4[%c0_35, %c0_36] : memref<1x16xf32, #tpu.memory_space<vmem>>, vector<1x16xf32>
    %22 = vector.shape_cast %21 : vector<1x16xf32> to vector<1x16xf32>
    %23 = vector.broadcast %22 : vector<1x16xf32> to vector<6x16xf32>
    %cst = arith.constant 0.000000e+00 : f32
    %24 = vector.broadcast %cst : f32 to vector<6x16xf32>
    %c0_37 = arith.constant 0 : index
    %c0_38 = arith.constant 0 : index
    %c0_39 = arith.constant 0 : index
    %c0_40 = arith.constant 0 : index
    %25 = vector.load %arg1[%c0_37, %c0_38, %c0_39, %c0_40] : memref<1x8x8x4xbf16, #tpu.memory_space<vmem>>, vector<1x1x8x4xbf16>
    %26 = vector.shape_cast %25 : vector<1x1x8x4xbf16> to vector<8x4xbf16>
    %27 = vector.extract_strided_slice %26 {offsets = [0, 0], sizes = [6, 4], strides = [1, 1]} : vector<8x4xbf16> to vector<6x4xbf16>
    %cst_41 = arith.constant dense<0.000000e+00> : vector<6x16xf32>
    %28 = tpu.matmul %27, %1, %cst_41 {dimension_numbers = #tpu.dot_dimension_numbers<[1], [0], [0], [1], [0, 0, 1, 1], [], []>} : vector<6x4xbf16>, vector<4x16xbf16>, vector<6x16xf32> -> vector<6x16xf32>
    %29 = arith.addf %24, %28 : vector<6x16xf32>
    %30 = vector.extract_strided_slice %26 {offsets = [1, 0], sizes = [6, 4], strides = [1, 1]} : vector<8x4xbf16> to vector<6x4xbf16>
    %cst_42 = arith.constant dense<0.000000e+00> : vector<6x16xf32>
    %31 = tpu.matmul %30, %3, %cst_42 {dimension_numbers = #tpu.dot_dimension_numbers<[1], [0], [0], [1], [0, 0, 1, 1], [], []>} : vector<6x4xbf16>, vector<4x16xbf16>, vector<6x16xf32> -> vector<6x16xf32>
    %32 = arith.addf %29, %31 : vector<6x16xf32>
    %33 = vector.extract_strided_slice %26 {offsets = [2, 0], sizes = [6, 4], strides = [1, 1]} : vector<8x4xbf16> to vector<6x4xbf16>
    %cst_43 = arith.constant dense<0.000000e+00> : vector<6x16xf32>
    %34 = tpu.matmul %33, %5, %cst_43 {dimension_numbers = #tpu.dot_dimension_numbers<[1], [0], [0], [1], [0, 0, 1, 1], [], []>} : vector<6x4xbf16>, vector<4x16xbf16>, vector<6x16xf32> -> vector<6x16xf32>
    %35 = arith.addf %32, %34 : vector<6x16xf32>
    %c0_44 = arith.constant 0 : index
    %c1_45 = arith.constant 1 : index
    %c0_46 = arith.constant 0 : index
    %c0_47 = arith.constant 0 : index
    %36 = vector.load %arg1[%c0_44, %c1_45, %c0_46, %c0_47] : memref<1x8x8x4xbf16, #tpu.memory_space<vmem>>, vector<1x1x8x4xbf16>
    %37 = vector.shape_cast %36 : vector<1x1x8x4xbf16> to vector<8x4xbf16>
    %38 = vector.extract_strided_slice %37 {offsets = [0, 0], sizes = [6, 4], strides = [1, 1]} : vector<8x4xbf16> to vector<6x4xbf16>
    %cst_48 = arith.constant dense<0.000000e+00> : vector<6x16xf32>
    %39 = tpu.matmul %38, %7, %cst_48 {dimension_numbers = #tpu.dot_dimension_numbers<[1], [0], [0], [1], [0, 0, 1, 1], [], []>} : vector<6x4xbf16>, vector<4x16xbf16>, vector<6x16xf32> -> vector<6x16xf32>
    %40 = arith.addf %35, %39 : vector<6x16xf32>
    %41 = vector.extract_strided_slice %37 {offsets = [1, 0], sizes = [6, 4], strides = [1, 1]} : vector<8x4xbf16> to vector<6x4xbf16>
    %cst_49 = arith.constant dense<0.000000e+00> : vector<6x16xf32>
    %42 = tpu.matmul %41, %9, %cst_49 {dimension_numbers = #tpu.dot_dimension_numbers<[1], [0], [0], [1], [0, 0, 1, 1], [], []>} : vector<6x4xbf16>, vector<4x16xbf16>, vector<6x16xf32> -> vector<6x16xf32>
    %43 = arith.addf %40, %42 : vector<6x16xf32>
    %44 = vector.extract_strided_slice %37 {offsets = [2, 0], sizes = [6, 4], strides = [1, 1]} : vector<8x4xbf16> to vector<6x4xbf16>
    %cst_50 = arith.constant dense<0.000000e+00> : vector<6x16xf32>
    %45 = tpu.matmul %44, %11, %cst_50 {dimension_numbers = #tpu.dot_dimension_numbers<[1], [0], [0], [1], [0, 0, 1, 1], [], []>} : vector<6x4xbf16>, vector<4x16xbf16>, vector<6x16xf32> -> vector<6x16xf32>
    %46 = arith.addf %43, %45 : vector<6x16xf32>
    %c0_51 = arith.constant 0 : index
    %c2_52 = arith.constant 2 : index
    %c0_53 = arith.constant 0 : index
    %c0_54 = arith.constant 0 : index
    %47 = vector.load %arg1[%c0_51, %c2_52, %c0_53, %c0_54] : memref<1x8x8x4xbf16, #tpu.memory_space<vmem>>, vector<1x1x8x4xbf16>
    %48 = vector.shape_cast %47 : vector<1x1x8x4xbf16> to vector<8x4xbf16>
    %49 = vector.extract_strided_slice %48 {offsets = [0, 0], sizes = [6, 4], strides = [1, 1]} : vector<8x4xbf16> to vector<6x4xbf16>
    %cst_55 = arith.constant dense<0.000000e+00> : vector<6x16xf32>
    %50 = tpu.matmul %49, %13, %cst_55 {dimension_numbers = #tpu.dot_dimension_numbers<[1], [0], [0], [1], [0, 0, 1, 1], [], []>} : vector<6x4xbf16>, vector<4x16xbf16>, vector<6x16xf32> -> vector<6x16xf32>
    %51 = arith.addf %46, %50 : vector<6x16xf32>
    %52 = vector.extract_strided_slice %48 {offsets = [1, 0], sizes = [6, 4], strides = [1, 1]} : vector<8x4xbf16> to vector<6x4xbf16>
    %cst_56 = arith.constant dense<0.000000e+00> : vector<6x16xf32>
    %53 = tpu.matmul %52, %15, %cst_56 {dimension_numbers = #tpu.dot_dimension_numbers<[1], [0], [0], [1], [0, 0, 1, 1], [], []>} : vector<6x4xbf16>, vector<4x16xbf16>, vector<6x16xf32> -> vector<6x16xf32>
    %54 = arith.addf %51, %53 : vector<6x16xf32>
    %55 = vector.extract_strided_slice %48 {offsets = [2, 0], sizes = [6, 4], strides = [1, 1]} : vector<8x4xbf16> to vector<6x4xbf16>
    %cst_57 = arith.constant dense<0.000000e+00> : vector<6x16xf32>
    %56 = tpu.matmul %55, %17, %cst_57 {dimension_numbers = #tpu.dot_dimension_numbers<[1], [0], [0], [1], [0, 0, 1, 1], [], []>} : vector<6x4xbf16>, vector<4x16xbf16>, vector<6x16xf32> -> vector<6x16xf32>
    %57 = arith.addf %54, %56 : vector<6x16xf32>
    %58 = arith.mulf %57, %20 : vector<6x16xf32>
    %59 = arith.addf %58, %23 : vector<6x16xf32>
    %cst_58 = arith.constant 0.000000e+00 : f32
    %60 = vector.broadcast %cst_58 : f32 to vector<6x16xf32>
    %61 = arith.maximumf %59, %60 : vector<6x16xf32>
    %c0_59 = arith.constant 0 : index
    %c0_60 = arith.constant 0 : index
    %c0_61 = arith.constant 0 : index
    %c0_62 = arith.constant 0 : index
    %62 = vector.load %arg5[%c0_59, %c0_60, %c0_61, %c0_62] : memref<1x6x6x16xf32, #tpu.memory_space<vmem>>, vector<1x1x6x16xf32>
    %63 = vector.shape_cast %62 : vector<1x1x6x16xf32> to vector<6x16xf32>
    %64 = vector.shape_cast %61 : vector<6x16xf32> to vector<1x1x6x16xf32>
    tpu.vector_store %arg5[%c0_59, %c0_60, %c0_61, %c0_62], %64 {strides = array<i32>} : memref<1x6x6x16xf32, #tpu.memory_space<vmem>>, vector<1x1x6x16xf32>,
    %cst_63 = arith.constant 0.000000e+00 : f32
    %65 = vector.broadcast %cst_63 : f32 to vector<6x16xf32>
    %c0_64 = arith.constant 0 : index
    %c1_65 = arith.constant 1 : index
    %c0_66 = arith.constant 0 : index
    %c0_67 = arith.constant 0 : index
    %66 = vector.load %arg1[%c0_64, %c1_65, %c0_66, %c0_67] : memref<1x8x8x4xbf16, #tpu.memory_space<vmem>>, vector<1x1x8x4xbf16>
    %67 = vector.shape_cast %66 : vector<1x1x8x4xbf16> to vector<8x4xbf16>
    %68 = vector.extract_strided_slice %67 {offsets = [0, 0], sizes = [6, 4], strides = [1, 1]} : vector<8x4xbf16> to vector<6x4xbf16>
    %cst_68 = arith.constant dense<0.000000e+00> : vector<6x16xf32>
    %69 = tpu.matmul %68, %1, %cst_68 {dimension_numbers = #tpu.dot_dimension_numbers<[1], [0], [0], [1], [0, 0, 1, 1], [], []>} : vector<6x4xbf16>, vector<4x16xbf16>, vector<6x16xf32> -> vector<6x16xf32>
    %70 = arith.addf %65, %69 : vector<6x16xf32>
    %71 = vector.extract_strided_slice %67 {offsets = [1, 0], sizes = [6, 4], strides = [1, 1]} : vector<8x4xbf16> to vector<6x4xbf16>
    %cst_69 = arith.constant dense<0.000000e+00> : vector<6x16xf32>
    %72 = tpu.matmul %71, %3, %cst_69 {dimension_numbers = #tpu.dot_dimension_numbers<[1], [0], [0], [1], [0, 0, 1, 1], [], []>} : vector<6x4xbf16>, vector<4x16xbf16>, vector<6x16xf32> -> vector<6x16xf32>
    %73 = arith.addf %70, %72 : vector<6x16xf32>
    %74 = vector.extract_strided_slice %67 {offsets = [2, 0], sizes = [6, 4], strides = [1, 1]} : vector<8x4xbf16> to vector<6x4xbf16>
    %cst_70 = arith.constant dense<0.000000e+00> : vector<6x16xf32>
    %75 = tpu.matmul %74, %5, %cst_70 {dimension_numbers = #tpu.dot_dimension_numbers<[1], [0], [0], [1], [0, 0, 1, 1], [], []>} : vector<6x4xbf16>, vector<4x16xbf16>, vector<6x16xf32> -> vector<6x16xf32>
    %76 = arith.addf %73, %75 : vector<6x16xf32>
    %c0_71 = arith.constant 0 : index
    %c2_72 = arith.constant 2 : index
    %c0_73 = arith.constant 0 : index
    %c0_74 = arith.constant 0 : index
    %77 = vector.load %arg1[%c0_71, %c2_72, %c0_73, %c0_74] : memref<1x8x8x4xbf16, #tpu.memory_space<vmem>>, vector<1x1x8x4xbf16>
    %78 = vector.shape_cast %77 : vector<1x1x8x4xbf16> to vector<8x4xbf16>
    %79 = vector.extract_strided_slice %78 {offsets = [0, 0], sizes = [6, 4], strides = [1, 1]} : vector<8x4xbf16> to vector<6x4xbf16>
    %cst_75 = arith.constant dense<0.000000e+00> : vector<6x16xf32>
    %80 = tpu.matmul %79, %7, %cst_75 {dimension_numbers = #tpu.dot_dimension_numbers<[1], [0], [0], [1], [0, 0, 1, 1], [], []>} : vector<6x4xbf16>, vector<4x16xbf16>, vector<6x16xf32> -> vector<6x16xf32>
    %81 = arith.addf %76, %80 : vector<6x16xf32>
    %82 = vector.extract_strided_slice %78 {offsets = [1, 0], sizes = [6, 4], strides = [1, 1]} : vector<8x4xbf16> to vector<6x4xbf16>
    %cst_76 = arith.constant dense<0.000000e+00> : vector<6x16xf32>
    %83 = tpu.matmul %82, %9, %cst_76 {dimension_numbers = #tpu.dot_dimension_numbers<[1], [0], [0], [1], [0, 0, 1, 1], [], []>} : vector<6x4xbf16>, vector<4x16xbf16>, vector<6x16xf32> -> vector<6x16xf32>
    %84 = arith.addf %81, %83 : vector<6x16xf32>
    %85 = vector.extract_strided_slice %78 {offsets = [2, 0], sizes = [6, 4], strides = [1, 1]} : vector<8x4xbf16> to vector<6x4xbf16>
    %cst_77 = arith.constant dense<0.000000e+00> : vector<6x16xf32>
    %86 = tpu.matmul %85, %11, %cst_77 {dimension_numbers = #tpu.dot_dimension_numbers<[1], [0], [0], [1], [0, 0, 1, 1], [], []>} : vector<6x4xbf16>, vector<4x16xbf16>, vector<6x16xf32> -> vector<6x16xf32>
    %87 = arith.addf %84, %86 : vector<6x16xf32>
    %c0_78 = arith.constant 0 : index
    %c3 = arith.constant 3 : index
    %c0_79 = arith.constant 0 : index
    %c0_80 = arith.constant 0 : index
    %88 = vector.load %arg1[%c0_78, %c3, %c0_79, %c0_80] : memref<1x8x8x4xbf16, #tpu.memory_space<vmem>>, vector<1x1x8x4xbf16>
    %89 = vector.shape_cast %88 : vector<1x1x8x4xbf16> to vector<8x4xbf16>
    %90 = vector.extract_strided_slice %89 {offsets = [0, 0], sizes = [6, 4], strides = [1, 1]} : vector<8x4xbf16> to vector<6x4xbf16>
    %cst_81 = arith.constant dense<0.000000e+00> : vector<6x16xf32>
    %91 = tpu.matmul %90, %13, %cst_81 {dimension_numbers = #tpu.dot_dimension_numbers<[1], [0], [0], [1], [0, 0, 1, 1], [], []>} : vector<6x4xbf16>, vector<4x16xbf16>, vector<6x16xf32> -> vector<6x16xf32>
    %92 = arith.addf %87, %91 : vector<6x16xf32>
    %93 = vector.extract_strided_slice %89 {offsets = [1, 0], sizes = [6, 4], strides = [1, 1]} : vector<8x4xbf16> to vector<6x4xbf16>
    %cst_82 = arith.constant dense<0.000000e+00> : vector<6x16xf32>
    %94 = tpu.matmul %93, %15, %cst_82 {dimension_numbers = #tpu.dot_dimension_numbers<[1], [0], [0], [1], [0, 0, 1, 1], [], []>} : vector<6x4xbf16>, vector<4x16xbf16>, vector<6x16xf32> -> vector<6x16xf32>
    %95 = arith.addf %92, %94 : vector<6x16xf32>
    %96 = vector.extract_strided_slice %89 {offsets = [2, 0], sizes = [6, 4], strides = [1, 1]} : vector<8x4xbf16> to vector<6x4xbf16>
    %cst_83 = arith.constant dense<0.000000e+00> : vector<6x16xf32>
    %97 = tpu.matmul %96, %17, %cst_83 {dimension_numbers = #tpu.dot_dimension_numbers<[1], [0], [0], [1], [0, 0, 1, 1], [], []>} : vector<6x4xbf16>, vector<4x16xbf16>, vector<6x16xf32> -> vector<6x16xf32>
    %98 = arith.addf %95, %97 : vector<6x16xf32>
    %99 = arith.mulf %98, %20 : vector<6x16xf32>
    %100 = arith.addf %99, %23 : vector<6x16xf32>
    %cst_84 = arith.constant 0.000000e+00 : f32
    %101 = vector.broadcast %cst_84 : f32 to vector<6x16xf32>
    %102 = arith.maximumf %100, %101 : vector<6x16xf32>
    %c0_85 = arith.constant 0 : index
    %c1_86 = arith.constant 1 : index
    %c0_87 = arith.constant 0 : index
    %c0_88 = arith.constant 0 : index
    %103 = vector.load %arg5[%c0_85, %c1_86, %c0_87, %c0_88] : memref<1x6x6x16xf32, #tpu.memory_space<vmem>>, vector<1x1x6x16xf32>
    %104 = vector.shape_cast %103 : vector<1x1x6x16xf32> to vector<6x16xf32>
    %105 = vector.shape_cast %102 : vector<6x16xf32> to vector<1x1x6x16xf32>
    tpu.vector_store %arg5[%c0_85, %c1_86, %c0_87, %c0_88], %105 {strides = array<i32>} : memref<1x6x6x16xf32, #tpu.memory_space<vmem>>, vector<1x1x6x16xf32>,
    %cst_89 = arith.constant 0.000000e+00 : f32
    %106 = vector.broadcast %cst_89 : f32 to vector<6x16xf32>
    %c0_90 = arith.constant 0 : index
    %c2_91 = arith.constant 2 : index
    %c0_92 = arith.constant 0 : index
    %c0_93 = arith.constant 0 : index
    %107 = vector.load %arg1[%c0_90, %c2_91, %c0_92, %c0_93] : memref<1x8x8x4xbf16, #tpu.memory_space<vmem>>, vector<1x1x8x4xbf16>
    %108 = vector.shape_cast %107 : vector<1x1x8x4xbf16> to vector<8x4xbf16>
    %109 = vector.extract_strided_slice %108 {offsets = [0, 0], sizes = [6, 4], strides = [1, 1]} : vector<8x4xbf16> to vector<6x4xbf16>
    %cst_94 = arith.constant dense<0.000000e+00> : vector<6x16xf32>
    %110 = tpu.matmul %109, %1, %cst_94 {dimension_numbers = #tpu.dot_dimension_numbers<[1], [0], [0], [1], [0, 0, 1, 1], [], []>} : vector<6x4xbf16>, vector<4x16xbf16>, vector<6x16xf32> -> vector<6x16xf32>
    %111 = arith.addf %106, %110 : vector<6x16xf32>
    %112 = vector.extract_strided_slice %108 {offsets = [1, 0], sizes = [6, 4], strides = [1, 1]} : vector<8x4xbf16> to vector<6x4xbf16>
    %cst_95 = arith.constant dense<0.000000e+00> : vector<6x16xf32>
    %113 = tpu.matmul %112, %3, %cst_95 {dimension_numbers = #tpu.dot_dimension_numbers<[1], [0], [0], [1], [0, 0, 1, 1], [], []>} : vector<6x4xbf16>, vector<4x16xbf16>, vector<6x16xf32> -> vector<6x16xf32>
    %114 = arith.addf %111, %113 : vector<6x16xf32>
    %115 = vector.extract_strided_slice %108 {offsets = [2, 0], sizes = [6, 4], strides = [1, 1]} : vector<8x4xbf16> to vector<6x4xbf16>
    %cst_96 = arith.constant dense<0.000000e+00> : vector<6x16xf32>
    %116 = tpu.matmul %115, %5, %cst_96 {dimension_numbers = #tpu.dot_dimension_numbers<[1], [0], [0], [1], [0, 0, 1, 1], [], []>} : vector<6x4xbf16>, vector<4x16xbf16>, vector<6x16xf32> -> vector<6x16xf32>
    %117 = arith.addf %114, %116 : vector<6x16xf32>
    %c0_97 = arith.constant 0 : index
    %c3_98 = arith.constant 3 : index
    %c0_99 = arith.constant 0 : index
    %c0_100 = arith.constant 0 : index
    %118 = vector.load %arg1[%c0_97, %c3_98, %c0_99, %c0_100] : memref<1x8x8x4xbf16, #tpu.memory_space<vmem>>, vector<1x1x8x4xbf16>
    %119 = vector.shape_cast %118 : vector<1x1x8x4xbf16> to vector<8x4xbf16>
    %120 = vector.extract_strided_slice %119 {offsets = [0, 0], sizes = [6, 4], strides = [1, 1]} : vector<8x4xbf16> to vector<6x4xbf16>
    %cst_101 = arith.constant dense<0.000000e+00> : vector<6x16xf32>
    %121 = tpu.matmul %120, %7, %cst_101 {dimension_numbers = #tpu.dot_dimension_numbers<[1], [0], [0], [1], [0, 0, 1, 1], [], []>} : vector<6x4xbf16>, vector<4x16xbf16>, vector<6x16xf32> -> vector<6x16xf32>
    %122 = arith.addf %117, %121 : vector<6x16xf32>
    %123 = vector.extract_strided_slice %119 {offsets = [1, 0], sizes = [6, 4], strides = [1, 1]} : vector<8x4xbf16> to vector<6x4xbf16>
    %cst_102 = arith.constant dense<0.000000e+00> : vector<6x16xf32>
    %124 = tpu.matmul %123, %9, %cst_102 {dimension_numbers = #tpu.dot_dimension_numbers<[1], [0], [0], [1], [0, 0, 1, 1], [], []>} : vector<6x4xbf16>, vector<4x16xbf16>, vector<6x16xf32> -> vector<6x16xf32>
    %125 = arith.addf %122, %124 : vector<6x16xf32>
    %126 = vector.extract_strided_slice %119 {offsets = [2, 0], sizes = [6, 4], strides = [1, 1]} : vector<8x4xbf16> to vector<6x4xbf16>
    %cst_103 = arith.constant dense<0.000000e+00> : vector<6x16xf32>
    %127 = tpu.matmul %126, %11, %cst_103 {dimension_numbers = #tpu.dot_dimension_numbers<[1], [0], [0], [1], [0, 0, 1, 1], [], []>} : vector<6x4xbf16>, vector<4x16xbf16>, vector<6x16xf32> -> vector<6x16xf32>
    %128 = arith.addf %125, %127 : vector<6x16xf32>
    %c0_104 = arith.constant 0 : index
    %c4 = arith.constant 4 : index
    %c0_105 = arith.constant 0 : index
    %c0_106 = arith.constant 0 : index
    %129 = vector.load %arg1[%c0_104, %c4, %c0_105, %c0_106] : memref<1x8x8x4xbf16, #tpu.memory_space<vmem>>, vector<1x1x8x4xbf16>
    %130 = vector.shape_cast %129 : vector<1x1x8x4xbf16> to vector<8x4xbf16>
    %131 = vector.extract_strided_slice %130 {offsets = [0, 0], sizes = [6, 4], strides = [1, 1]} : vector<8x4xbf16> to vector<6x4xbf16>
    %cst_107 = arith.constant dense<0.000000e+00> : vector<6x16xf32>
    %132 = tpu.matmul %131, %13, %cst_107 {dimension_numbers = #tpu.dot_dimension_numbers<[1], [0], [0], [1], [0, 0, 1, 1], [], []>} : vector<6x4xbf16>, vector<4x16xbf16>, vector<6x16xf32> -> vector<6x16xf32>
    %133 = arith.addf %128, %132 : vector<6x16xf32>
    %134 = vector.extract_strided_slice %130 {offsets = [1, 0], sizes = [6, 4], strides = [1, 1]} : vector<8x4xbf16> to vector<6x4xbf16>
    %cst_108 = arith.constant dense<0.000000e+00> : vector<6x16xf32>
    %135 = tpu.matmul %134, %15, %cst_108 {dimension_numbers = #tpu.dot_dimension_numbers<[1], [0], [0], [1], [0, 0, 1, 1], [], []>} : vector<6x4xbf16>, vector<4x16xbf16>, vector<6x16xf32> -> vector<6x16xf32>
    %136 = arith.addf %133, %135 : vector<6x16xf32>
    %137 = vector.extract_strided_slice %130 {offsets = [2, 0], sizes = [6, 4], strides = [1, 1]} : vector<8x4xbf16> to vector<6x4xbf16>
    %cst_109 = arith.constant dense<0.000000e+00> : vector<6x16xf32>
    %138 = tpu.matmul %137, %17, %cst_109 {dimension_numbers = #tpu.dot_dimension_numbers<[1], [0], [0], [1], [0, 0, 1, 1], [], []>} : vector<6x4xbf16>, vector<4x16xbf16>, vector<6x16xf32> -> vector<6x16xf32>
    %139 = arith.addf %136, %138 : vector<6x16xf32>
    %140 = arith.mulf %139, %20 : vector<6x16xf32>
    %141 = arith.addf %140, %23 : vector<6x16xf32>
    %cst_110 = arith.constant 0.000000e+00 : f32
    %142 = vector.broadcast %cst_110 : f32 to vector<6x16xf32>
    %143 = arith.maximumf %141, %142 : vector<6x16xf32>
    %c0_111 = arith.constant 0 : index
    %c2_112 = arith.constant 2 : index
    %c0_113 = arith.constant 0 : index
    %c0_114 = arith.constant 0 : index
    %144 = vector.load %arg5[%c0_111, %c2_112, %c0_113, %c0_114] : memref<1x6x6x16xf32, #tpu.memory_space<vmem>>, vector<1x1x6x16xf32>
    %145 = vector.shape_cast %144 : vector<1x1x6x16xf32> to vector<6x16xf32>
    %146 = vector.shape_cast %143 : vector<6x16xf32> to vector<1x1x6x16xf32>
    tpu.vector_store %arg5[%c0_111, %c2_112, %c0_113, %c0_114], %146 {strides = array<i32>} : memref<1x6x6x16xf32, #tpu.memory_space<vmem>>, vector<1x1x6x16xf32>,
    %cst_115 = arith.constant 0.000000e+00 : f32
    %147 = vector.broadcast %cst_115 : f32 to vector<6x16xf32>
    %c0_116 = arith.constant 0 : index
    %c3_117 = arith.constant 3 : index
    %c0_118 = arith.constant 0 : index
    %c0_119 = arith.constant 0 : index
    %148 = vector.load %arg1[%c0_116, %c3_117, %c0_118, %c0_119] : memref<1x8x8x4xbf16, #tpu.memory_space<vmem>>, vector<1x1x8x4xbf16>
    %149 = vector.shape_cast %148 : vector<1x1x8x4xbf16> to vector<8x4xbf16>
    %150 = vector.extract_strided_slice %149 {offsets = [0, 0], sizes = [6, 4], strides = [1, 1]} : vector<8x4xbf16> to vector<6x4xbf16>
    %cst_120 = arith.constant dense<0.000000e+00> : vector<6x16xf32>
    %151 = tpu.matmul %150, %1, %cst_120 {dimension_numbers = #tpu.dot_dimension_numbers<[1], [0], [0], [1], [0, 0, 1, 1], [], []>} : vector<6x4xbf16>, vector<4x16xbf16>, vector<6x16xf32> -> vector<6x16xf32>
    %152 = arith.addf %147, %151 : vector<6x16xf32>
    %153 = vector.extract_strided_slice %149 {offsets = [1, 0], sizes = [6, 4], strides = [1, 1]} : vector<8x4xbf16> to vector<6x4xbf16>
    %cst_121 = arith.constant dense<0.000000e+00> : vector<6x16xf32>
    %154 = tpu.matmul %153, %3, %cst_121 {dimension_numbers = #tpu.dot_dimension_numbers<[1], [0], [0], [1], [0, 0, 1, 1], [], []>} : vector<6x4xbf16>, vector<4x16xbf16>, vector<6x16xf32> -> vector<6x16xf32>
    %155 = arith.addf %152, %154 : vector<6x16xf32>
    %156 = vector.extract_strided_slice %149 {offsets = [2, 0], sizes = [6, 4], strides = [1, 1]} : vector<8x4xbf16> to vector<6x4xbf16>
    %cst_122 = arith.constant dense<0.000000e+00> : vector<6x16xf32>
    %157 = tpu.matmul %156, %5, %cst_122 {dimension_numbers = #tpu.dot_dimension_numbers<[1], [0], [0], [1], [0, 0, 1, 1], [], []>} : vector<6x4xbf16>, vector<4x16xbf16>, vector<6x16xf32> -> vector<6x16xf32>
    %158 = arith.addf %155, %157 : vector<6x16xf32>
    %c0_123 = arith.constant 0 : index
    %c4_124 = arith.constant 4 : index
    %c0_125 = arith.constant 0 : index
    %c0_126 = arith.constant 0 : index
    %159 = vector.load %arg1[%c0_123, %c4_124, %c0_125, %c0_126] : memref<1x8x8x4xbf16, #tpu.memory_space<vmem>>, vector<1x1x8x4xbf16>
    %160 = vector.shape_cast %159 : vector<1x1x8x4xbf16> to vector<8x4xbf16>
    %161 = vector.extract_strided_slice %160 {offsets = [0, 0], sizes = [6, 4], strides = [1, 1]} : vector<8x4xbf16> to vector<6x4xbf16>
    %cst_127 = arith.constant dense<0.000000e+00> : vector<6x16xf32>
    %162 = tpu.matmul %161, %7, %cst_127 {dimension_numbers = #tpu.dot_dimension_numbers<[1], [0], [0], [1], [0, 0, 1, 1], [], []>} : vector<6x4xbf16>, vector<4x16xbf16>, vector<6x16xf32> -> vector<6x16xf32>
    %163 = arith.addf %158, %162 : vector<6x16xf32>
    %164 = vector.extract_strided_slice %160 {offsets = [1, 0], sizes = [6, 4], strides = [1, 1]} : vector<8x4xbf16> to vector<6x4xbf16>
    %cst_128 = arith.constant dense<0.000000e+00> : vector<6x16xf32>
    %165 = tpu.matmul %164, %9, %cst_128 {dimension_numbers = #tpu.dot_dimension_numbers<[1], [0], [0], [1], [0, 0, 1, 1], [], []>} : vector<6x4xbf16>, vector<4x16xbf16>, vector<6x16xf32> -> vector<6x16xf32>
    %166 = arith.addf %163, %165 : vector<6x16xf32>
    %167 = vector.extract_strided_slice %160 {offsets = [2, 0], sizes = [6, 4], strides = [1, 1]} : vector<8x4xbf16> to vector<6x4xbf16>
    %cst_129 = arith.constant dense<0.000000e+00> : vector<6x16xf32>
    %168 = tpu.matmul %167, %11, %cst_129 {dimension_numbers = #tpu.dot_dimension_numbers<[1], [0], [0], [1], [0, 0, 1, 1], [], []>} : vector<6x4xbf16>, vector<4x16xbf16>, vector<6x16xf32> -> vector<6x16xf32>
    %169 = arith.addf %166, %168 : vector<6x16xf32>
    %c0_130 = arith.constant 0 : index
    %c5 = arith.constant 5 : index
    %c0_131 = arith.constant 0 : index
    %c0_132 = arith.constant 0 : index
    %170 = vector.load %arg1[%c0_130, %c5, %c0_131, %c0_132] : memref<1x8x8x4xbf16, #tpu.memory_space<vmem>>, vector<1x1x8x4xbf16>
    %171 = vector.shape_cast %170 : vector<1x1x8x4xbf16> to vector<8x4xbf16>
    %172 = vector.extract_strided_slice %171 {offsets = [0, 0], sizes = [6, 4], strides = [1, 1]} : vector<8x4xbf16> to vector<6x4xbf16>
    %cst_133 = arith.constant dense<0.000000e+00> : vector<6x16xf32>
    %173 = tpu.matmul %172, %13, %cst_133 {dimension_numbers = #tpu.dot_dimension_numbers<[1], [0], [0], [1], [0, 0, 1, 1], [], []>} : vector<6x4xbf16>, vector<4x16xbf16>, vector<6x16xf32> -> vector<6x16xf32>
    %174 = arith.addf %169, %173 : vector<6x16xf32>
    %175 = vector.extract_strided_slice %171 {offsets = [1, 0], sizes = [6, 4], strides = [1, 1]} : vector<8x4xbf16> to vector<6x4xbf16>
    %cst_134 = arith.constant dense<0.000000e+00> : vector<6x16xf32>
    %176 = tpu.matmul %175, %15, %cst_134 {dimension_numbers = #tpu.dot_dimension_numbers<[1], [0], [0], [1], [0, 0, 1, 1], [], []>} : vector<6x4xbf16>, vector<4x16xbf16>, vector<6x16xf32> -> vector<6x16xf32>
    %177 = arith.addf %174, %176 : vector<6x16xf32>
    %178 = vector.extract_strided_slice %171 {offsets = [2, 0], sizes = [6, 4], strides = [1, 1]} : vector<8x4xbf16> to vector<6x4xbf16>
    %cst_135 = arith.constant dense<0.000000e+00> : vector<6x16xf32>
    %179 = tpu.matmul %178, %17, %cst_135 {dimension_numbers = #tpu.dot_dimension_numbers<[1], [0], [0], [1], [0, 0, 1, 1], [], []>} : vector<6x4xbf16>, vector<4x16xbf16>, vector<6x16xf32> -> vector<6x16xf32>
    %180 = arith.addf %177, %179 : vector<6x16xf32>
    %181 = arith.mulf %180, %20 : vector<6x16xf32>
    %182 = arith.addf %181, %23 : vector<6x16xf32>
    %cst_136 = arith.constant 0.000000e+00 : f32
    %183 = vector.broadcast %cst_136 : f32 to vector<6x16xf32>
    %184 = arith.maximumf %182, %183 : vector<6x16xf32>
    %c0_137 = arith.constant 0 : index
    %c3_138 = arith.constant 3 : index
    %c0_139 = arith.constant 0 : index
    %c0_140 = arith.constant 0 : index
    %185 = vector.load %arg5[%c0_137, %c3_138, %c0_139, %c0_140] : memref<1x6x6x16xf32, #tpu.memory_space<vmem>>, vector<1x1x6x16xf32>
    %186 = vector.shape_cast %185 : vector<1x1x6x16xf32> to vector<6x16xf32>
    %187 = vector.shape_cast %184 : vector<6x16xf32> to vector<1x1x6x16xf32>
    tpu.vector_store %arg5[%c0_137, %c3_138, %c0_139, %c0_140], %187 {strides = array<i32>} : memref<1x6x6x16xf32, #tpu.memory_space<vmem>>, vector<1x1x6x16xf32>,
    %cst_141 = arith.constant 0.000000e+00 : f32
    %188 = vector.broadcast %cst_141 : f32 to vector<6x16xf32>
    %c0_142 = arith.constant 0 : index
    %c4_143 = arith.constant 4 : index
    %c0_144 = arith.constant 0 : index
    %c0_145 = arith.constant 0 : index
    %189 = vector.load %arg1[%c0_142, %c4_143, %c0_144, %c0_145] : memref<1x8x8x4xbf16, #tpu.memory_space<vmem>>, vector<1x1x8x4xbf16>
    %190 = vector.shape_cast %189 : vector<1x1x8x4xbf16> to vector<8x4xbf16>
    %191 = vector.extract_strided_slice %190 {offsets = [0, 0], sizes = [6, 4], strides = [1, 1]} : vector<8x4xbf16> to vector<6x4xbf16>
    %cst_146 = arith.constant dense<0.000000e+00> : vector<6x16xf32>
    %192 = tpu.matmul %191, %1, %cst_146 {dimension_numbers = #tpu.dot_dimension_numbers<[1], [0], [0], [1], [0, 0, 1, 1], [], []>} : vector<6x4xbf16>, vector<4x16xbf16>, vector<6x16xf32> -> vector<6x16xf32>
    %193 = arith.addf %188, %192 : vector<6x16xf32>
    %194 = vector.extract_strided_slice %190 {offsets = [1, 0], sizes = [6, 4], strides = [1, 1]} : vector<8x4xbf16> to vector<6x4xbf16>
    %cst_147 = arith.constant dense<0.000000e+00> : vector<6x16xf32>
    %195 = tpu.matmul %194, %3, %cst_147 {dimension_numbers = #tpu.dot_dimension_numbers<[1], [0], [0], [1], [0, 0, 1, 1], [], []>} : vector<6x4xbf16>, vector<4x16xbf16>, vector<6x16xf32> -> vector<6x16xf32>
    %196 = arith.addf %193, %195 : vector<6x16xf32>
    %197 = vector.extract_strided_slice %190 {offsets = [2, 0], sizes = [6, 4], strides = [1, 1]} : vector<8x4xbf16> to vector<6x4xbf16>
    %cst_148 = arith.constant dense<0.000000e+00> : vector<6x16xf32>
    %198 = tpu.matmul %197, %5, %cst_148 {dimension_numbers = #tpu.dot_dimension_numbers<[1], [0], [0], [1], [0, 0, 1, 1], [], []>} : vector<6x4xbf16>, vector<4x16xbf16>, vector<6x16xf32> -> vector<6x16xf32>
    %199 = arith.addf %196, %198 : vector<6x16xf32>
    %c0_149 = arith.constant 0 : index
    %c5_150 = arith.constant 5 : index
    %c0_151 = arith.constant 0 : index
    %c0_152 = arith.constant 0 : index
    %200 = vector.load %arg1[%c0_149, %c5_150, %c0_151, %c0_152] : memref<1x8x8x4xbf16, #tpu.memory_space<vmem>>, vector<1x1x8x4xbf16>
    %201 = vector.shape_cast %200 : vector<1x1x8x4xbf16> to vector<8x4xbf16>
    %202 = vector.extract_strided_slice %201 {offsets = [0, 0], sizes = [6, 4], strides = [1, 1]} : vector<8x4xbf16> to vector<6x4xbf16>
    %cst_153 = arith.constant dense<0.000000e+00> : vector<6x16xf32>
    %203 = tpu.matmul %202, %7, %cst_153 {dimension_numbers = #tpu.dot_dimension_numbers<[1], [0], [0], [1], [0, 0, 1, 1], [], []>} : vector<6x4xbf16>, vector<4x16xbf16>, vector<6x16xf32> -> vector<6x16xf32>
    %204 = arith.addf %199, %203 : vector<6x16xf32>
    %205 = vector.extract_strided_slice %201 {offsets = [1, 0], sizes = [6, 4], strides = [1, 1]} : vector<8x4xbf16> to vector<6x4xbf16>
    %cst_154 = arith.constant dense<0.000000e+00> : vector<6x16xf32>
    %206 = tpu.matmul %205, %9, %cst_154 {dimension_numbers = #tpu.dot_dimension_numbers<[1], [0], [0], [1], [0, 0, 1, 1], [], []>} : vector<6x4xbf16>, vector<4x16xbf16>, vector<6x16xf32> -> vector<6x16xf32>
    %207 = arith.addf %204, %206 : vector<6x16xf32>
    %208 = vector.extract_strided_slice %201 {offsets = [2, 0], sizes = [6, 4], strides = [1, 1]} : vector<8x4xbf16> to vector<6x4xbf16>
    %cst_155 = arith.constant dense<0.000000e+00> : vector<6x16xf32>
    %209 = tpu.matmul %208, %11, %cst_155 {dimension_numbers = #tpu.dot_dimension_numbers<[1], [0], [0], [1], [0, 0, 1, 1], [], []>} : vector<6x4xbf16>, vector<4x16xbf16>, vector<6x16xf32> -> vector<6x16xf32>
    %210 = arith.addf %207, %209 : vector<6x16xf32>
    %c0_156 = arith.constant 0 : index
    %c6 = arith.constant 6 : index
    %c0_157 = arith.constant 0 : index
    %c0_158 = arith.constant 0 : index
    %211 = vector.load %arg1[%c0_156, %c6, %c0_157, %c0_158] : memref<1x8x8x4xbf16, #tpu.memory_space<vmem>>, vector<1x1x8x4xbf16>
    %212 = vector.shape_cast %211 : vector<1x1x8x4xbf16> to vector<8x4xbf16>
    %213 = vector.extract_strided_slice %212 {offsets = [0, 0], sizes = [6, 4], strides = [1, 1]} : vector<8x4xbf16> to vector<6x4xbf16>
    %cst_159 = arith.constant dense<0.000000e+00> : vector<6x16xf32>
    %214 = tpu.matmul %213, %13, %cst_159 {dimension_numbers = #tpu.dot_dimension_numbers<[1], [0], [0], [1], [0, 0, 1, 1], [], []>} : vector<6x4xbf16>, vector<4x16xbf16>, vector<6x16xf32> -> vector<6x16xf32>
    %215 = arith.addf %210, %214 : vector<6x16xf32>
    %216 = vector.extract_strided_slice %212 {offsets = [1, 0], sizes = [6, 4], strides = [1, 1]} : vector<8x4xbf16> to vector<6x4xbf16>
    %cst_160 = arith.constant dense<0.000000e+00> : vector<6x16xf32>
    %217 = tpu.matmul %216, %15, %cst_160 {dimension_numbers = #tpu.dot_dimension_numbers<[1], [0], [0], [1], [0, 0, 1, 1], [], []>} : vector<6x4xbf16>, vector<4x16xbf16>, vector<6x16xf32> -> vector<6x16xf32>
    %218 = arith.addf %215, %217 : vector<6x16xf32>
    %219 = vector.extract_strided_slice %212 {offsets = [2, 0], sizes = [6, 4], strides = [1, 1]} : vector<8x4xbf16> to vector<6x4xbf16>
    %cst_161 = arith.constant dense<0.000000e+00> : vector<6x16xf32>
    %220 = tpu.matmul %219, %17, %cst_161 {dimension_numbers = #tpu.dot_dimension_numbers<[1], [0], [0], [1], [0, 0, 1, 1], [], []>} : vector<6x4xbf16>, vector<4x16xbf16>, vector<6x16xf32> -> vector<6x16xf32>
    %221 = arith.addf %218, %220 : vector<6x16xf32>
    %222 = arith.mulf %221, %20 : vector<6x16xf32>
    %223 = arith.addf %222, %23 : vector<6x16xf32>
    %cst_162 = arith.constant 0.000000e+00 : f32
    %224 = vector.broadcast %cst_162 : f32 to vector<6x16xf32>
    %225 = arith.maximumf %223, %224 : vector<6x16xf32>
    %c0_163 = arith.constant 0 : index
    %c4_164 = arith.constant 4 : index
    %c0_165 = arith.constant 0 : index
    %c0_166 = arith.constant 0 : index
    %226 = vector.load %arg5[%c0_163, %c4_164, %c0_165, %c0_166] : memref<1x6x6x16xf32, #tpu.memory_space<vmem>>, vector<1x1x6x16xf32>
    %227 = vector.shape_cast %226 : vector<1x1x6x16xf32> to vector<6x16xf32>
    %228 = vector.shape_cast %225 : vector<6x16xf32> to vector<1x1x6x16xf32>
    tpu.vector_store %arg5[%c0_163, %c4_164, %c0_165, %c0_166], %228 {strides = array<i32>} : memref<1x6x6x16xf32, #tpu.memory_space<vmem>>, vector<1x1x6x16xf32>,
    %cst_167 = arith.constant 0.000000e+00 : f32
    %229 = vector.broadcast %cst_167 : f32 to vector<6x16xf32>
    %c0_168 = arith.constant 0 : index
    %c5_169 = arith.constant 5 : index
    %c0_170 = arith.constant 0 : index
    %c0_171 = arith.constant 0 : index
    %230 = vector.load %arg1[%c0_168, %c5_169, %c0_170, %c0_171] : memref<1x8x8x4xbf16, #tpu.memory_space<vmem>>, vector<1x1x8x4xbf16>
    %231 = vector.shape_cast %230 : vector<1x1x8x4xbf16> to vector<8x4xbf16>
    %232 = vector.extract_strided_slice %231 {offsets = [0, 0], sizes = [6, 4], strides = [1, 1]} : vector<8x4xbf16> to vector<6x4xbf16>
    %cst_172 = arith.constant dense<0.000000e+00> : vector<6x16xf32>
    %233 = tpu.matmul %232, %1, %cst_172 {dimension_numbers = #tpu.dot_dimension_numbers<[1], [0], [0], [1], [0, 0, 1, 1], [], []>} : vector<6x4xbf16>, vector<4x16xbf16>, vector<6x16xf32> -> vector<6x16xf32>
    %234 = arith.addf %229, %233 : vector<6x16xf32>
    %235 = vector.extract_strided_slice %231 {offsets = [1, 0], sizes = [6, 4], strides = [1, 1]} : vector<8x4xbf16> to vector<6x4xbf16>
    %cst_173 = arith.constant dense<0.000000e+00> : vector<6x16xf32>
    %236 = tpu.matmul %235, %3, %cst_173 {dimension_numbers = #tpu.dot_dimension_numbers<[1], [0], [0], [1], [0, 0, 1, 1], [], []>} : vector<6x4xbf16>, vector<4x16xbf16>, vector<6x16xf32> -> vector<6x16xf32>
    %237 = arith.addf %234, %236 : vector<6x16xf32>
    %238 = vector.extract_strided_slice %231 {offsets = [2, 0], sizes = [6, 4], strides = [1, 1]} : vector<8x4xbf16> to vector<6x4xbf16>
    %cst_174 = arith.constant dense<0.000000e+00> : vector<6x16xf32>
    %239 = tpu.matmul %238, %5, %cst_174 {dimension_numbers = #tpu.dot_dimension_numbers<[1], [0], [0], [1], [0, 0, 1, 1], [], []>} : vector<6x4xbf16>, vector<4x16xbf16>, vector<6x16xf32> -> vector<6x16xf32>
    %240 = arith.addf %237, %239 : vector<6x16xf32>
    %c0_175 = arith.constant 0 : index
    %c6_176 = arith.constant 6 : index
    %c0_177 = arith.constant 0 : index
    %c0_178 = arith.constant 0 : index
    %241 = vector.load %arg1[%c0_175, %c6_176, %c0_177, %c0_178] : memref<1x8x8x4xbf16, #tpu.memory_space<vmem>>, vector<1x1x8x4xbf16>
    %242 = vector.shape_cast %241 : vector<1x1x8x4xbf16> to vector<8x4xbf16>
    %243 = vector.extract_strided_slice %242 {offsets = [0, 0], sizes = [6, 4], strides = [1, 1]} : vector<8x4xbf16> to vector<6x4xbf16>
    %cst_179 = arith.constant dense<0.000000e+00> : vector<6x16xf32>
    %244 = tpu.matmul %243, %7, %cst_179 {dimension_numbers = #tpu.dot_dimension_numbers<[1], [0], [0], [1], [0, 0, 1, 1], [], []>} : vector<6x4xbf16>, vector<4x16xbf16>, vector<6x16xf32> -> vector<6x16xf32>
    %245 = arith.addf %240, %244 : vector<6x16xf32>
    %246 = vector.extract_strided_slice %242 {offsets = [1, 0], sizes = [6, 4], strides = [1, 1]} : vector<8x4xbf16> to vector<6x4xbf16>
    %cst_180 = arith.constant dense<0.000000e+00> : vector<6x16xf32>
    %247 = tpu.matmul %246, %9, %cst_180 {dimension_numbers = #tpu.dot_dimension_numbers<[1], [0], [0], [1], [0, 0, 1, 1], [], []>} : vector<6x4xbf16>, vector<4x16xbf16>, vector<6x16xf32> -> vector<6x16xf32>
    %248 = arith.addf %245, %247 : vector<6x16xf32>
    %249 = vector.extract_strided_slice %242 {offsets = [2, 0], sizes = [6, 4], strides = [1, 1]} : vector<8x4xbf16> to vector<6x4xbf16>
    %cst_181 = arith.constant dense<0.000000e+00> : vector<6x16xf32>
    %250 = tpu.matmul %249, %11, %cst_181 {dimension_numbers = #tpu.dot_dimension_numbers<[1], [0], [0], [1], [0, 0, 1, 1], [], []>} : vector<6x4xbf16>, vector<4x16xbf16>, vector<6x16xf32> -> vector<6x16xf32>
    %251 = arith.addf %248, %250 : vector<6x16xf32>
    %c0_182 = arith.constant 0 : index
    %c7 = arith.constant 7 : index
    %c0_183 = arith.constant 0 : index
    %c0_184 = arith.constant 0 : index
    %252 = vector.load %arg1[%c0_182, %c7, %c0_183, %c0_184] : memref<1x8x8x4xbf16, #tpu.memory_space<vmem>>, vector<1x1x8x4xbf16>
    %253 = vector.shape_cast %252 : vector<1x1x8x4xbf16> to vector<8x4xbf16>
    %254 = vector.extract_strided_slice %253 {offsets = [0, 0], sizes = [6, 4], strides = [1, 1]} : vector<8x4xbf16> to vector<6x4xbf16>
    %cst_185 = arith.constant dense<0.000000e+00> : vector<6x16xf32>
    %255 = tpu.matmul %254, %13, %cst_185 {dimension_numbers = #tpu.dot_dimension_numbers<[1], [0], [0], [1], [0, 0, 1, 1], [], []>} : vector<6x4xbf16>, vector<4x16xbf16>, vector<6x16xf32> -> vector<6x16xf32>
    %256 = arith.addf %251, %255 : vector<6x16xf32>
    %257 = vector.extract_strided_slice %253 {offsets = [1, 0], sizes = [6, 4], strides = [1, 1]} : vector<8x4xbf16> to vector<6x4xbf16>
    %cst_186 = arith.constant dense<0.000000e+00> : vector<6x16xf32>
    %258 = tpu.matmul %257, %15, %cst_186 {dimension_numbers = #tpu.dot_dimension_numbers<[1], [0], [0], [1], [0, 0, 1, 1], [], []>} : vector<6x4xbf16>, vector<4x16xbf16>, vector<6x16xf32> -> vector<6x16xf32>
    %259 = arith.addf %256, %258 : vector<6x16xf32>
    %260 = vector.extract_strided_slice %253 {offsets = [2, 0], sizes = [6, 4], strides = [1, 1]} : vector<8x4xbf16> to vector<6x4xbf16>
    %cst_187 = arith.constant dense<0.000000e+00> : vector<6x16xf32>
    %261 = tpu.matmul %260, %17, %cst_187 {dimension_numbers = #tpu.dot_dimension_numbers<[1], [0], [0], [1], [0, 0, 1, 1], [], []>} : vector<6x4xbf16>, vector<4x16xbf16>, vector<6x16xf32> -> vector<6x16xf32>
    %262 = arith.addf %259, %261 : vector<6x16xf32>
    %263 = arith.mulf %262, %20 : vector<6x16xf32>
    %264 = arith.addf %263, %23 : vector<6x16xf32>
    %cst_188 = arith.constant 0.000000e+00 : f32
    %265 = vector.broadcast %cst_188 : f32 to vector<6x16xf32>
    %266 = arith.maximumf %264, %265 : vector<6x16xf32>
    %c0_189 = arith.constant 0 : index
    %c5_190 = arith.constant 5 : index
    %c0_191 = arith.constant 0 : index
    %c0_192 = arith.constant 0 : index
    %267 = vector.load %arg5[%c0_189, %c5_190, %c0_191, %c0_192] : memref<1x6x6x16xf32, #tpu.memory_space<vmem>>, vector<1x1x6x16xf32>
    %268 = vector.shape_cast %267 : vector<1x1x6x16xf32> to vector<6x16xf32>
    %269 = vector.shape_cast %266 : vector<6x16xf32> to vector<1x1x6x16xf32>
    tpu.vector_store %arg5[%c0_189, %c5_190, %c0_191, %c0_192], %269 {strides = array<i32>} : memref<1x6x6x16xf32, #tpu.memory_space<vmem>>, vector<1x1x6x16xf32>,
    return
  }
  func.func @transform_0(%arg0: i32) -> (i32, i32, i32, i32) {
    %c0_i32 = arith.constant 0 : i32
    %c0_i32_0 = arith.constant 0 : i32
    %c0_i32_1 = arith.constant 0 : i32
    %c0_i32_2 = arith.constant 0 : i32
    return %arg0, %c0_i32, %c0_i32_0, %c0_i32_1 : i32, i32, i32, i32
  }
  func.func @transform_1(%arg0: i32) -> (i32, i32, i32, i32) {
    %c0_i32 = arith.constant 0 : i32
    %c0_i32_0 = arith.constant 0 : i32
    %c0_i32_1 = arith.constant 0 : i32
    %c0_i32_2 = arith.constant 0 : i32
    %c0_i32_3 = arith.constant 0 : i32
    return %c0_i32, %c0_i32_0, %c0_i32_1, %c0_i32_2 : i32, i32, i32, i32
  }
  func.func @transform_2(%arg0: i32) -> (i32, i32) {
    %c0_i32 = arith.constant 0 : i32
    %c0_i32_0 = arith.constant 0 : i32
    %c0_i32_1 = arith.constant 0 : i32
    return %c0_i32, %c0_i32_0 : i32, i32
  }
  func.func @transform_3(%arg0: i32) -> (i32, i32) {
    %c0_i32 = arith.constant 0 : i32
    %c0_i32_0 = arith.constant 0 : i32
    %c0_i32_1 = arith.constant 0 : i32
    return %c0_i32, %c0_i32_0 : i32, i32
  }
  func.func @transform_4(%arg0: i32) -> (i32, i32, i32, i32) {
    %c0_i32 = arith.constant 0 : i32
    %c0_i32_0 = arith.constant 0 : i32
    %c0_i32_1 = arith.constant 0 : i32
    %c0_i32_2 = arith.constant 0 : i32
    return %arg0, %c0_i32, %c0_i32_0, %c0_i32_1 : i32, i32, i32, i32
  }
}

module attributes {stable_mosaic.version = 11 : i64} {
  func.func @kernel(%arg0: i32, %arg1: i32, %arg2: memref<1x16x26x4xbf16, #tpu.memory_space<vmem>>, %arg3: memref<3x3x4x16xbf16, #tpu.memory_space<vmem>>, %arg4: memref<1x16xf32, #tpu.memory_space<vmem>>, %arg5: memref<1x16xf32, #tpu.memory_space<vmem>>, %arg6: memref<1x6x6x16xf32, #tpu.memory_space<vmem>>, %arg7: memref<8x8xbf16, #tpu.memory_space<vmem>>, %arg8: memref<8x8xbf16, #tpu.memory_space<vmem>>, %arg9: memref<1x16xf32, #tpu.memory_space<vmem>>, %arg10: memref<1x16xf32, #tpu.memory_space<vmem>>, %arg11: memref<8x128xbf16, #tpu.memory_space<vmem>>, %arg12: memref<8x128xbf16, #tpu.memory_space<vmem>>, %arg13: memref<1x128xf32, #tpu.memory_space<vmem>>, %arg14: memref<1x3x16x128xf32, #tpu.memory_space<vmem>>) attributes {dimension_semantics = [#tpu.dimension_semantics<parallel>, #tpu.dimension_semantics<parallel>], iteration_bounds = array<i64: 2, 3>, scalar_prefetch = 0 : i64, scratch_operands = 0 : i64, tpu.core_type = #tpu.core_type<tc>, window_params = [{transform_indices = @transform_0, window_bounds = array<i64: 1, 16, 26, 4>}, {pipeline_mode = #tpu.pipeline_mode<synchronous>, transform_indices = @transform_1, window_bounds = array<i64: 3, 3, 4, 16>}, {pipeline_mode = #tpu.pipeline_mode<synchronous>, transform_indices = @transform_2, window_bounds = array<i64: 1, 16>}, {pipeline_mode = #tpu.pipeline_mode<synchronous>, transform_indices = @transform_3, window_bounds = array<i64: 1, 16>}, {transform_indices = @transform_4, window_bounds = array<i64: 1, 6, 6, 16>}, {pipeline_mode = #tpu.pipeline_mode<synchronous>, transform_indices = @transform_5, window_bounds = array<i64: 8, 8>}, {pipeline_mode = #tpu.pipeline_mode<synchronous>, transform_indices = @transform_6, window_bounds = array<i64: 8, 8>}, {pipeline_mode = #tpu.pipeline_mode<synchronous>, transform_indices = @transform_7, window_bounds = array<i64: 1, 16>}, {pipeline_mode = #tpu.pipeline_mode<synchronous>, transform_indices = @transform_8, window_bounds = array<i64: 1, 16>}, {pipeline_mode = #tpu.pipeline_mode<synchronous>, transform_indices = @transform_9, window_bounds = array<i64: 8, 128>}, {pipeline_mode = #tpu.pipeline_mode<synchronous>, transform_indices = @transform_10, window_bounds = array<i64: 8, 128>}, {pipeline_mode = #tpu.pipeline_mode<synchronous>, transform_indices = @transform_11, window_bounds = array<i64: 1, 128>}, {transform_indices = @transform_12, window_bounds = array<i64: 1, 3, 16, 128>}]} {
    %c3_i32 = arith.constant 3 : i32
    %0 = arith.muli %arg1, %c3_i32 : i32
    %c0 = arith.constant 0 : index
    %1 = arith.index_cast %0 : i32 to index
    %c0_0 = arith.constant 0 : index
    %c0_1 = arith.constant 0 : index
    %2 = vector.load %arg2[%c0, %1, %c0_0, %c0_1] : memref<1x16x26x4xbf16, #tpu.memory_space<vmem>>, vector<1x10x26x4xbf16>
    %3 = vector.shape_cast %2 : vector<1x10x26x4xbf16> to vector<10x26x4xbf16>
    %4 = arith.extf %3 : vector<10x26x4xbf16> to vector<10x26x4xf32>
    %5 = vector.extract_strided_slice %4 {offsets = [0, 0, 0], sizes = [10, 24, 4], strides = [1, 1, 1]} : vector<10x26x4xf32> to vector<10x24x4xf32>
    %6 = vector.extract_strided_slice %4 {offsets = [0, 1, 0], sizes = [10, 24, 4], strides = [1, 1, 1]} : vector<10x26x4xf32> to vector<10x24x4xf32>
    %7 = vector.extract_strided_slice %4 {offsets = [0, 2, 0], sizes = [10, 24, 4], strides = [1, 1, 1]} : vector<10x26x4xf32> to vector<10x24x4xf32>
    %cst = arith.constant 0.000000e+00 : f32
    %8 = vector.broadcast %cst : f32 to vector<192x16xf32>
    %9 = vector.extract_strided_slice %5 {offsets = [0, 0, 0], sizes = [8, 24, 4], strides = [1, 1, 1]} : vector<10x24x4xf32> to vector<8x24x4xf32>
    %10 = vector.shape_cast %9 : vector<8x24x4xf32> to vector<192x4xf32>
    %11 = arith.truncf %10 : vector<192x4xf32> to vector<192x4xbf16>
    %c0_2 = arith.constant 0 : index
    %c0_3 = arith.constant 0 : index
    %c0_4 = arith.constant 0 : index
    %c0_5 = arith.constant 0 : index
    %12 = vector.load %arg3[%c0_2, %c0_3, %c0_4, %c0_5] : memref<3x3x4x16xbf16, #tpu.memory_space<vmem>>, vector<1x1x4x16xbf16>
    %13 = vector.shape_cast %12 : vector<1x1x4x16xbf16> to vector<4x16xbf16>
    %cst_6 = arith.constant dense<0.000000e+00> : vector<192x16xf32>
    %14 = tpu.matmul %11, %13, %cst_6 {dimension_numbers = #tpu.dot_dimension_numbers<[1], [0], [0], [1], [0, 0, 1, 1], [], []>} : vector<192x4xbf16>, vector<4x16xbf16>, vector<192x16xf32> -> vector<192x16xf32>
    %15 = arith.addf %8, %14 : vector<192x16xf32>
    %16 = vector.extract_strided_slice %6 {offsets = [0, 0, 0], sizes = [8, 24, 4], strides = [1, 1, 1]} : vector<10x24x4xf32> to vector<8x24x4xf32>
    %17 = vector.shape_cast %16 : vector<8x24x4xf32> to vector<192x4xf32>
    %18 = arith.truncf %17 : vector<192x4xf32> to vector<192x4xbf16>
    %c0_7 = arith.constant 0 : index
    %c1 = arith.constant 1 : index
    %c0_8 = arith.constant 0 : index
    %c0_9 = arith.constant 0 : index
    %19 = vector.load %arg3[%c0_7, %c1, %c0_8, %c0_9] : memref<3x3x4x16xbf16, #tpu.memory_space<vmem>>, vector<1x1x4x16xbf16>
    %20 = vector.shape_cast %19 : vector<1x1x4x16xbf16> to vector<4x16xbf16>
    %cst_10 = arith.constant dense<0.000000e+00> : vector<192x16xf32>
    %21 = tpu.matmul %18, %20, %cst_10 {dimension_numbers = #tpu.dot_dimension_numbers<[1], [0], [0], [1], [0, 0, 1, 1], [], []>} : vector<192x4xbf16>, vector<4x16xbf16>, vector<192x16xf32> -> vector<192x16xf32>
    %22 = arith.addf %15, %21 : vector<192x16xf32>
    %23 = vector.extract_strided_slice %7 {offsets = [0, 0, 0], sizes = [8, 24, 4], strides = [1, 1, 1]} : vector<10x24x4xf32> to vector<8x24x4xf32>
    %24 = vector.shape_cast %23 : vector<8x24x4xf32> to vector<192x4xf32>
    %25 = arith.truncf %24 : vector<192x4xf32> to vector<192x4xbf16>
    %c0_11 = arith.constant 0 : index
    %c2 = arith.constant 2 : index
    %c0_12 = arith.constant 0 : index
    %c0_13 = arith.constant 0 : index
    %26 = vector.load %arg3[%c0_11, %c2, %c0_12, %c0_13] : memref<3x3x4x16xbf16, #tpu.memory_space<vmem>>, vector<1x1x4x16xbf16>
    %27 = vector.shape_cast %26 : vector<1x1x4x16xbf16> to vector<4x16xbf16>
    %cst_14 = arith.constant dense<0.000000e+00> : vector<192x16xf32>
    %28 = tpu.matmul %25, %27, %cst_14 {dimension_numbers = #tpu.dot_dimension_numbers<[1], [0], [0], [1], [0, 0, 1, 1], [], []>} : vector<192x4xbf16>, vector<4x16xbf16>, vector<192x16xf32> -> vector<192x16xf32>
    %29 = arith.addf %22, %28 : vector<192x16xf32>
    %30 = vector.extract_strided_slice %5 {offsets = [1, 0, 0], sizes = [8, 24, 4], strides = [1, 1, 1]} : vector<10x24x4xf32> to vector<8x24x4xf32>
    %31 = vector.shape_cast %30 : vector<8x24x4xf32> to vector<192x4xf32>
    %32 = arith.truncf %31 : vector<192x4xf32> to vector<192x4xbf16>
    %c1_15 = arith.constant 1 : index
    %c0_16 = arith.constant 0 : index
    %c0_17 = arith.constant 0 : index
    %c0_18 = arith.constant 0 : index
    %33 = vector.load %arg3[%c1_15, %c0_16, %c0_17, %c0_18] : memref<3x3x4x16xbf16, #tpu.memory_space<vmem>>, vector<1x1x4x16xbf16>
    %34 = vector.shape_cast %33 : vector<1x1x4x16xbf16> to vector<4x16xbf16>
    %cst_19 = arith.constant dense<0.000000e+00> : vector<192x16xf32>
    %35 = tpu.matmul %32, %34, %cst_19 {dimension_numbers = #tpu.dot_dimension_numbers<[1], [0], [0], [1], [0, 0, 1, 1], [], []>} : vector<192x4xbf16>, vector<4x16xbf16>, vector<192x16xf32> -> vector<192x16xf32>
    %36 = arith.addf %29, %35 : vector<192x16xf32>
    %37 = vector.extract_strided_slice %6 {offsets = [1, 0, 0], sizes = [8, 24, 4], strides = [1, 1, 1]} : vector<10x24x4xf32> to vector<8x24x4xf32>
    %38 = vector.shape_cast %37 : vector<8x24x4xf32> to vector<192x4xf32>
    %39 = arith.truncf %38 : vector<192x4xf32> to vector<192x4xbf16>
    %c1_20 = arith.constant 1 : index
    %c1_21 = arith.constant 1 : index
    %c0_22 = arith.constant 0 : index
    %c0_23 = arith.constant 0 : index
    %40 = vector.load %arg3[%c1_20, %c1_21, %c0_22, %c0_23] : memref<3x3x4x16xbf16, #tpu.memory_space<vmem>>, vector<1x1x4x16xbf16>
    %41 = vector.shape_cast %40 : vector<1x1x4x16xbf16> to vector<4x16xbf16>
    %cst_24 = arith.constant dense<0.000000e+00> : vector<192x16xf32>
    %42 = tpu.matmul %39, %41, %cst_24 {dimension_numbers = #tpu.dot_dimension_numbers<[1], [0], [0], [1], [0, 0, 1, 1], [], []>} : vector<192x4xbf16>, vector<4x16xbf16>, vector<192x16xf32> -> vector<192x16xf32>
    %43 = arith.addf %36, %42 : vector<192x16xf32>
    %44 = vector.extract_strided_slice %7 {offsets = [1, 0, 0], sizes = [8, 24, 4], strides = [1, 1, 1]} : vector<10x24x4xf32> to vector<8x24x4xf32>
    %45 = vector.shape_cast %44 : vector<8x24x4xf32> to vector<192x4xf32>
    %46 = arith.truncf %45 : vector<192x4xf32> to vector<192x4xbf16>
    %c1_25 = arith.constant 1 : index
    %c2_26 = arith.constant 2 : index
    %c0_27 = arith.constant 0 : index
    %c0_28 = arith.constant 0 : index
    %47 = vector.load %arg3[%c1_25, %c2_26, %c0_27, %c0_28] : memref<3x3x4x16xbf16, #tpu.memory_space<vmem>>, vector<1x1x4x16xbf16>
    %48 = vector.shape_cast %47 : vector<1x1x4x16xbf16> to vector<4x16xbf16>
    %cst_29 = arith.constant dense<0.000000e+00> : vector<192x16xf32>
    %49 = tpu.matmul %46, %48, %cst_29 {dimension_numbers = #tpu.dot_dimension_numbers<[1], [0], [0], [1], [0, 0, 1, 1], [], []>} : vector<192x4xbf16>, vector<4x16xbf16>, vector<192x16xf32> -> vector<192x16xf32>
    %50 = arith.addf %43, %49 : vector<192x16xf32>
    %51 = vector.extract_strided_slice %5 {offsets = [2, 0, 0], sizes = [8, 24, 4], strides = [1, 1, 1]} : vector<10x24x4xf32> to vector<8x24x4xf32>
    %52 = vector.shape_cast %51 : vector<8x24x4xf32> to vector<192x4xf32>
    %53 = arith.truncf %52 : vector<192x4xf32> to vector<192x4xbf16>
    %c2_30 = arith.constant 2 : index
    %c0_31 = arith.constant 0 : index
    %c0_32 = arith.constant 0 : index
    %c0_33 = arith.constant 0 : index
    %54 = vector.load %arg3[%c2_30, %c0_31, %c0_32, %c0_33] : memref<3x3x4x16xbf16, #tpu.memory_space<vmem>>, vector<1x1x4x16xbf16>
    %55 = vector.shape_cast %54 : vector<1x1x4x16xbf16> to vector<4x16xbf16>
    %cst_34 = arith.constant dense<0.000000e+00> : vector<192x16xf32>
    %56 = tpu.matmul %53, %55, %cst_34 {dimension_numbers = #tpu.dot_dimension_numbers<[1], [0], [0], [1], [0, 0, 1, 1], [], []>} : vector<192x4xbf16>, vector<4x16xbf16>, vector<192x16xf32> -> vector<192x16xf32>
    %57 = arith.addf %50, %56 : vector<192x16xf32>
    %58 = vector.extract_strided_slice %6 {offsets = [2, 0, 0], sizes = [8, 24, 4], strides = [1, 1, 1]} : vector<10x24x4xf32> to vector<8x24x4xf32>
    %59 = vector.shape_cast %58 : vector<8x24x4xf32> to vector<192x4xf32>
    %60 = arith.truncf %59 : vector<192x4xf32> to vector<192x4xbf16>
    %c2_35 = arith.constant 2 : index
    %c1_36 = arith.constant 1 : index
    %c0_37 = arith.constant 0 : index
    %c0_38 = arith.constant 0 : index
    %61 = vector.load %arg3[%c2_35, %c1_36, %c0_37, %c0_38] : memref<3x3x4x16xbf16, #tpu.memory_space<vmem>>, vector<1x1x4x16xbf16>
    %62 = vector.shape_cast %61 : vector<1x1x4x16xbf16> to vector<4x16xbf16>
    %cst_39 = arith.constant dense<0.000000e+00> : vector<192x16xf32>
    %63 = tpu.matmul %60, %62, %cst_39 {dimension_numbers = #tpu.dot_dimension_numbers<[1], [0], [0], [1], [0, 0, 1, 1], [], []>} : vector<192x4xbf16>, vector<4x16xbf16>, vector<192x16xf32> -> vector<192x16xf32>
    %64 = arith.addf %57, %63 : vector<192x16xf32>
    %65 = vector.extract_strided_slice %7 {offsets = [2, 0, 0], sizes = [8, 24, 4], strides = [1, 1, 1]} : vector<10x24x4xf32> to vector<8x24x4xf32>
    %66 = vector.shape_cast %65 : vector<8x24x4xf32> to vector<192x4xf32>
    %67 = arith.truncf %66 : vector<192x4xf32> to vector<192x4xbf16>
    %c2_40 = arith.constant 2 : index
    %c2_41 = arith.constant 2 : index
    %c0_42 = arith.constant 0 : index
    %c0_43 = arith.constant 0 : index
    %68 = vector.load %arg3[%c2_40, %c2_41, %c0_42, %c0_43] : memref<3x3x4x16xbf16, #tpu.memory_space<vmem>>, vector<1x1x4x16xbf16>
    %69 = vector.shape_cast %68 : vector<1x1x4x16xbf16> to vector<4x16xbf16>
    %cst_44 = arith.constant dense<0.000000e+00> : vector<192x16xf32>
    %70 = tpu.matmul %67, %69, %cst_44 {dimension_numbers = #tpu.dot_dimension_numbers<[1], [0], [0], [1], [0, 0, 1, 1], [], []>} : vector<192x4xbf16>, vector<4x16xbf16>, vector<192x16xf32> -> vector<192x16xf32>
    %71 = arith.addf %64, %70 : vector<192x16xf32>
    %c0_45 = arith.constant 0 : index
    %c0_46 = arith.constant 0 : index
    %72 = vector.load %arg4[%c0_45, %c0_46] : memref<1x16xf32, #tpu.memory_space<vmem>>, vector<1x16xf32>
    %73 = vector.broadcast %72 : vector<1x16xf32> to vector<192x16xf32>
    %74 = arith.mulf %71, %73 : vector<192x16xf32>
    %c0_47 = arith.constant 0 : index
    %c0_48 = arith.constant 0 : index
    %75 = vector.load %arg5[%c0_47, %c0_48] : memref<1x16xf32, #tpu.memory_space<vmem>>, vector<1x16xf32>
    %76 = vector.broadcast %75 : vector<1x16xf32> to vector<192x16xf32>
    %77 = arith.addf %74, %76 : vector<192x16xf32>
    %cst_49 = arith.constant 0.000000e+00 : f32
    %78 = vector.broadcast %cst_49 : f32 to vector<192x16xf32>
    %79 = arith.maximumf %77, %78 : vector<192x16xf32>
    %c0_50 = arith.constant 0 : index
    %c0_51 = arith.constant 0 : index
    %c0_52 = arith.constant 0 : index
    %c0_53 = arith.constant 0 : index
    %80 = vector.load %arg6[%c0_50, %c0_51, %c0_52, %c0_53] : memref<1x6x6x16xf32, #tpu.memory_space<vmem>>, vector<1x6x6x16xf32>
    %81 = vector.shape_cast %80 : vector<1x6x6x16xf32> to vector<6x6x16xf32>
    %82 = vector.extract_strided_slice %79 {offsets = [0, 0], sizes = [16, 16], strides = [1, 1]} : vector<192x16xf32> to vector<16x16xf32>
    %83 = vector.extract_strided_slice %79 {offsets = [1, 0], sizes = [16, 16], strides = [1, 1]} : vector<192x16xf32> to vector<16x16xf32>
    %84 = vector.extract_strided_slice %79 {offsets = [2, 0], sizes = [16, 16], strides = [1, 1]} : vector<192x16xf32> to vector<16x16xf32>
    %85 = vector.extract_strided_slice %79 {offsets = [3, 0], sizes = [16, 16], strides = [1, 1]} : vector<192x16xf32> to vector<16x16xf32>
    %86 = vector.extract_strided_slice %79 {offsets = [4, 0], sizes = [16, 16], strides = [1, 1]} : vector<192x16xf32> to vector<16x16xf32>
    %87 = vector.extract_strided_slice %79 {offsets = [5, 0], sizes = [16, 16], strides = [1, 1]} : vector<192x16xf32> to vector<16x16xf32>
    %88 = vector.extract_strided_slice %79 {offsets = [24, 0], sizes = [16, 16], strides = [1, 1]} : vector<192x16xf32> to vector<16x16xf32>
    %89 = vector.extract_strided_slice %79 {offsets = [25, 0], sizes = [16, 16], strides = [1, 1]} : vector<192x16xf32> to vector<16x16xf32>
    %90 = vector.extract_strided_slice %79 {offsets = [26, 0], sizes = [16, 16], strides = [1, 1]} : vector<192x16xf32> to vector<16x16xf32>
    %91 = vector.extract_strided_slice %79 {offsets = [27, 0], sizes = [16, 16], strides = [1, 1]} : vector<192x16xf32> to vector<16x16xf32>
    %92 = vector.extract_strided_slice %79 {offsets = [28, 0], sizes = [16, 16], strides = [1, 1]} : vector<192x16xf32> to vector<16x16xf32>
    %93 = vector.extract_strided_slice %79 {offsets = [29, 0], sizes = [16, 16], strides = [1, 1]} : vector<192x16xf32> to vector<16x16xf32>
    %94 = vector.extract_strided_slice %79 {offsets = [48, 0], sizes = [16, 16], strides = [1, 1]} : vector<192x16xf32> to vector<16x16xf32>
    %95 = vector.extract_strided_slice %79 {offsets = [49, 0], sizes = [16, 16], strides = [1, 1]} : vector<192x16xf32> to vector<16x16xf32>
    %96 = vector.extract_strided_slice %79 {offsets = [50, 0], sizes = [16, 16], strides = [1, 1]} : vector<192x16xf32> to vector<16x16xf32>
    %97 = vector.extract_strided_slice %79 {offsets = [51, 0], sizes = [16, 16], strides = [1, 1]} : vector<192x16xf32> to vector<16x16xf32>
    %98 = vector.extract_strided_slice %79 {offsets = [52, 0], sizes = [16, 16], strides = [1, 1]} : vector<192x16xf32> to vector<16x16xf32>
    %99 = vector.extract_strided_slice %79 {offsets = [53, 0], sizes = [16, 16], strides = [1, 1]} : vector<192x16xf32> to vector<16x16xf32>
    %100 = vector.extract_strided_slice %79 {offsets = [72, 0], sizes = [16, 16], strides = [1, 1]} : vector<192x16xf32> to vector<16x16xf32>
    %101 = vector.extract_strided_slice %79 {offsets = [73, 0], sizes = [16, 16], strides = [1, 1]} : vector<192x16xf32> to vector<16x16xf32>
    %102 = vector.extract_strided_slice %79 {offsets = [74, 0], sizes = [16, 16], strides = [1, 1]} : vector<192x16xf32> to vector<16x16xf32>
    %103 = vector.extract_strided_slice %79 {offsets = [75, 0], sizes = [16, 16], strides = [1, 1]} : vector<192x16xf32> to vector<16x16xf32>
    %104 = vector.extract_strided_slice %79 {offsets = [76, 0], sizes = [16, 16], strides = [1, 1]} : vector<192x16xf32> to vector<16x16xf32>
    %105 = vector.extract_strided_slice %79 {offsets = [77, 0], sizes = [16, 16], strides = [1, 1]} : vector<192x16xf32> to vector<16x16xf32>
    %106 = vector.extract_strided_slice %79 {offsets = [96, 0], sizes = [16, 16], strides = [1, 1]} : vector<192x16xf32> to vector<16x16xf32>
    %107 = vector.extract_strided_slice %79 {offsets = [97, 0], sizes = [16, 16], strides = [1, 1]} : vector<192x16xf32> to vector<16x16xf32>
    %108 = vector.extract_strided_slice %79 {offsets = [98, 0], sizes = [16, 16], strides = [1, 1]} : vector<192x16xf32> to vector<16x16xf32>
    %109 = vector.extract_strided_slice %79 {offsets = [99, 0], sizes = [16, 16], strides = [1, 1]} : vector<192x16xf32> to vector<16x16xf32>
    %110 = vector.extract_strided_slice %79 {offsets = [100, 0], sizes = [16, 16], strides = [1, 1]} : vector<192x16xf32> to vector<16x16xf32>
    %111 = vector.extract_strided_slice %79 {offsets = [101, 0], sizes = [16, 16], strides = [1, 1]} : vector<192x16xf32> to vector<16x16xf32>
    %112 = vector.extract_strided_slice %79 {offsets = [120, 0], sizes = [16, 16], strides = [1, 1]} : vector<192x16xf32> to vector<16x16xf32>
    %113 = vector.extract_strided_slice %79 {offsets = [121, 0], sizes = [16, 16], strides = [1, 1]} : vector<192x16xf32> to vector<16x16xf32>
    %114 = vector.extract_strided_slice %79 {offsets = [122, 0], sizes = [16, 16], strides = [1, 1]} : vector<192x16xf32> to vector<16x16xf32>
    %115 = vector.extract_strided_slice %79 {offsets = [123, 0], sizes = [16, 16], strides = [1, 1]} : vector<192x16xf32> to vector<16x16xf32>
    %116 = vector.extract_strided_slice %79 {offsets = [124, 0], sizes = [16, 16], strides = [1, 1]} : vector<192x16xf32> to vector<16x16xf32>
    %117 = vector.extract_strided_slice %79 {offsets = [125, 0], sizes = [16, 16], strides = [1, 1]} : vector<192x16xf32> to vector<16x16xf32>
    %118 = vector.extract_strided_slice %79 {offsets = [144, 0], sizes = [16, 16], strides = [1, 1]} : vector<192x16xf32> to vector<16x16xf32>
    %119 = vector.extract_strided_slice %79 {offsets = [145, 0], sizes = [16, 16], strides = [1, 1]} : vector<192x16xf32> to vector<16x16xf32>
    %120 = vector.extract_strided_slice %79 {offsets = [146, 0], sizes = [16, 16], strides = [1, 1]} : vector<192x16xf32> to vector<16x16xf32>
    %121 = vector.extract_strided_slice %79 {offsets = [147, 0], sizes = [16, 16], strides = [1, 1]} : vector<192x16xf32> to vector<16x16xf32>
    %122 = vector.extract_strided_slice %79 {offsets = [148, 0], sizes = [16, 16], strides = [1, 1]} : vector<192x16xf32> to vector<16x16xf32>
    %123 = vector.extract_strided_slice %79 {offsets = [149, 0], sizes = [16, 16], strides = [1, 1]} : vector<192x16xf32> to vector<16x16xf32>
    %124 = vector.extract_strided_slice %79 {offsets = [168, 0], sizes = [16, 16], strides = [1, 1]} : vector<192x16xf32> to vector<16x16xf32>
    %125 = vector.extract_strided_slice %79 {offsets = [169, 0], sizes = [16, 16], strides = [1, 1]} : vector<192x16xf32> to vector<16x16xf32>
    %126 = vector.extract_strided_slice %79 {offsets = [170, 0], sizes = [16, 16], strides = [1, 1]} : vector<192x16xf32> to vector<16x16xf32>
    %127 = vector.extract_strided_slice %79 {offsets = [171, 0], sizes = [16, 16], strides = [1, 1]} : vector<192x16xf32> to vector<16x16xf32>
    %128 = vector.extract_strided_slice %79 {offsets = [172, 0], sizes = [16, 16], strides = [1, 1]} : vector<192x16xf32> to vector<16x16xf32>
    %129 = vector.extract_strided_slice %79 {offsets = [173, 0], sizes = [16, 16], strides = [1, 1]} : vector<192x16xf32> to vector<16x16xf32>
    %cst_54 = arith.constant 0.000000e+00 : f32
    %130 = vector.broadcast %cst_54 : f32 to vector<16x16xf32>
    %131 = vector.extract_strided_slice %81 {offsets = [0, 0, 0], sizes = [1, 1, 16], strides = [1, 1, 1]} : vector<6x6x16xf32> to vector<1x1x16xf32>
    %132 = vector.shape_cast %131 : vector<1x1x16xf32> to vector<16xf32>
    %133 = vector.shape_cast %132 : vector<16xf32> to vector<1x16xf32>
    %134 = vector.broadcast %133 : vector<1x16xf32> to vector<16x16xf32>
    %135 = arith.mulf %82, %134 : vector<16x16xf32>
    %136 = arith.addf %130, %135 : vector<16x16xf32>
    %137 = vector.extract_strided_slice %81 {offsets = [0, 1, 0], sizes = [1, 1, 16], strides = [1, 1, 1]} : vector<6x6x16xf32> to vector<1x1x16xf32>
    %138 = vector.shape_cast %137 : vector<1x1x16xf32> to vector<16xf32>
    %139 = vector.shape_cast %138 : vector<16xf32> to vector<1x16xf32>
    %140 = vector.broadcast %139 : vector<1x16xf32> to vector<16x16xf32>
    %141 = arith.mulf %83, %140 : vector<16x16xf32>
    %142 = arith.addf %136, %141 : vector<16x16xf32>
    %143 = vector.extract_strided_slice %81 {offsets = [0, 2, 0], sizes = [1, 1, 16], strides = [1, 1, 1]} : vector<6x6x16xf32> to vector<1x1x16xf32>
    %144 = vector.shape_cast %143 : vector<1x1x16xf32> to vector<16xf32>
    %145 = vector.shape_cast %144 : vector<16xf32> to vector<1x16xf32>
    %146 = vector.broadcast %145 : vector<1x16xf32> to vector<16x16xf32>
    %147 = arith.mulf %84, %146 : vector<16x16xf32>
    %148 = arith.addf %142, %147 : vector<16x16xf32>
    %149 = vector.extract_strided_slice %81 {offsets = [0, 3, 0], sizes = [1, 1, 16], strides = [1, 1, 1]} : vector<6x6x16xf32> to vector<1x1x16xf32>
    %150 = vector.shape_cast %149 : vector<1x1x16xf32> to vector<16xf32>
    %151 = vector.shape_cast %150 : vector<16xf32> to vector<1x16xf32>
    %152 = vector.broadcast %151 : vector<1x16xf32> to vector<16x16xf32>
    %153 = arith.mulf %85, %152 : vector<16x16xf32>
    %154 = arith.addf %148, %153 : vector<16x16xf32>
    %155 = vector.extract_strided_slice %81 {offsets = [0, 4, 0], sizes = [1, 1, 16], strides = [1, 1, 1]} : vector<6x6x16xf32> to vector<1x1x16xf32>
    %156 = vector.shape_cast %155 : vector<1x1x16xf32> to vector<16xf32>
    %157 = vector.shape_cast %156 : vector<16xf32> to vector<1x16xf32>
    %158 = vector.broadcast %157 : vector<1x16xf32> to vector<16x16xf32>
    %159 = arith.mulf %86, %158 : vector<16x16xf32>
    %160 = arith.addf %154, %159 : vector<16x16xf32>
    %161 = vector.extract_strided_slice %81 {offsets = [0, 5, 0], sizes = [1, 1, 16], strides = [1, 1, 1]} : vector<6x6x16xf32> to vector<1x1x16xf32>
    %162 = vector.shape_cast %161 : vector<1x1x16xf32> to vector<16xf32>
    %163 = vector.shape_cast %162 : vector<16xf32> to vector<1x16xf32>
    %164 = vector.broadcast %163 : vector<1x16xf32> to vector<16x16xf32>
    %165 = arith.mulf %87, %164 : vector<16x16xf32>
    %166 = arith.addf %160, %165 : vector<16x16xf32>
    %167 = vector.extract_strided_slice %81 {offsets = [1, 0, 0], sizes = [1, 1, 16], strides = [1, 1, 1]} : vector<6x6x16xf32> to vector<1x1x16xf32>
    %168 = vector.shape_cast %167 : vector<1x1x16xf32> to vector<16xf32>
    %169 = vector.shape_cast %168 : vector<16xf32> to vector<1x16xf32>
    %170 = vector.broadcast %169 : vector<1x16xf32> to vector<16x16xf32>
    %171 = arith.mulf %88, %170 : vector<16x16xf32>
    %172 = arith.addf %166, %171 : vector<16x16xf32>
    %173 = vector.extract_strided_slice %81 {offsets = [1, 1, 0], sizes = [1, 1, 16], strides = [1, 1, 1]} : vector<6x6x16xf32> to vector<1x1x16xf32>
    %174 = vector.shape_cast %173 : vector<1x1x16xf32> to vector<16xf32>
    %175 = vector.shape_cast %174 : vector<16xf32> to vector<1x16xf32>
    %176 = vector.broadcast %175 : vector<1x16xf32> to vector<16x16xf32>
    %177 = arith.mulf %89, %176 : vector<16x16xf32>
    %178 = arith.addf %172, %177 : vector<16x16xf32>
    %179 = vector.extract_strided_slice %81 {offsets = [1, 2, 0], sizes = [1, 1, 16], strides = [1, 1, 1]} : vector<6x6x16xf32> to vector<1x1x16xf32>
    %180 = vector.shape_cast %179 : vector<1x1x16xf32> to vector<16xf32>
    %181 = vector.shape_cast %180 : vector<16xf32> to vector<1x16xf32>
    %182 = vector.broadcast %181 : vector<1x16xf32> to vector<16x16xf32>
    %183 = arith.mulf %90, %182 : vector<16x16xf32>
    %184 = arith.addf %178, %183 : vector<16x16xf32>
    %185 = vector.extract_strided_slice %81 {offsets = [1, 3, 0], sizes = [1, 1, 16], strides = [1, 1, 1]} : vector<6x6x16xf32> to vector<1x1x16xf32>
    %186 = vector.shape_cast %185 : vector<1x1x16xf32> to vector<16xf32>
    %187 = vector.shape_cast %186 : vector<16xf32> to vector<1x16xf32>
    %188 = vector.broadcast %187 : vector<1x16xf32> to vector<16x16xf32>
    %189 = arith.mulf %91, %188 : vector<16x16xf32>
    %190 = arith.addf %184, %189 : vector<16x16xf32>
    %191 = vector.extract_strided_slice %81 {offsets = [1, 4, 0], sizes = [1, 1, 16], strides = [1, 1, 1]} : vector<6x6x16xf32> to vector<1x1x16xf32>
    %192 = vector.shape_cast %191 : vector<1x1x16xf32> to vector<16xf32>
    %193 = vector.shape_cast %192 : vector<16xf32> to vector<1x16xf32>
    %194 = vector.broadcast %193 : vector<1x16xf32> to vector<16x16xf32>
    %195 = arith.mulf %92, %194 : vector<16x16xf32>
    %196 = arith.addf %190, %195 : vector<16x16xf32>
    %197 = vector.extract_strided_slice %81 {offsets = [1, 5, 0], sizes = [1, 1, 16], strides = [1, 1, 1]} : vector<6x6x16xf32> to vector<1x1x16xf32>
    %198 = vector.shape_cast %197 : vector<1x1x16xf32> to vector<16xf32>
    %199 = vector.shape_cast %198 : vector<16xf32> to vector<1x16xf32>
    %200 = vector.broadcast %199 : vector<1x16xf32> to vector<16x16xf32>
    %201 = arith.mulf %93, %200 : vector<16x16xf32>
    %202 = arith.addf %196, %201 : vector<16x16xf32>
    %203 = vector.extract_strided_slice %81 {offsets = [2, 0, 0], sizes = [1, 1, 16], strides = [1, 1, 1]} : vector<6x6x16xf32> to vector<1x1x16xf32>
    %204 = vector.shape_cast %203 : vector<1x1x16xf32> to vector<16xf32>
    %205 = vector.shape_cast %204 : vector<16xf32> to vector<1x16xf32>
    %206 = vector.broadcast %205 : vector<1x16xf32> to vector<16x16xf32>
    %207 = arith.mulf %94, %206 : vector<16x16xf32>
    %208 = arith.addf %202, %207 : vector<16x16xf32>
    %209 = vector.extract_strided_slice %81 {offsets = [2, 1, 0], sizes = [1, 1, 16], strides = [1, 1, 1]} : vector<6x6x16xf32> to vector<1x1x16xf32>
    %210 = vector.shape_cast %209 : vector<1x1x16xf32> to vector<16xf32>
    %211 = vector.shape_cast %210 : vector<16xf32> to vector<1x16xf32>
    %212 = vector.broadcast %211 : vector<1x16xf32> to vector<16x16xf32>
    %213 = arith.mulf %95, %212 : vector<16x16xf32>
    %214 = arith.addf %208, %213 : vector<16x16xf32>
    %215 = vector.extract_strided_slice %81 {offsets = [2, 2, 0], sizes = [1, 1, 16], strides = [1, 1, 1]} : vector<6x6x16xf32> to vector<1x1x16xf32>
    %216 = vector.shape_cast %215 : vector<1x1x16xf32> to vector<16xf32>
    %217 = vector.shape_cast %216 : vector<16xf32> to vector<1x16xf32>
    %218 = vector.broadcast %217 : vector<1x16xf32> to vector<16x16xf32>
    %219 = arith.mulf %96, %218 : vector<16x16xf32>
    %220 = arith.addf %214, %219 : vector<16x16xf32>
    %221 = vector.extract_strided_slice %81 {offsets = [2, 3, 0], sizes = [1, 1, 16], strides = [1, 1, 1]} : vector<6x6x16xf32> to vector<1x1x16xf32>
    %222 = vector.shape_cast %221 : vector<1x1x16xf32> to vector<16xf32>
    %223 = vector.shape_cast %222 : vector<16xf32> to vector<1x16xf32>
    %224 = vector.broadcast %223 : vector<1x16xf32> to vector<16x16xf32>
    %225 = arith.mulf %97, %224 : vector<16x16xf32>
    %226 = arith.addf %220, %225 : vector<16x16xf32>
    %227 = vector.extract_strided_slice %81 {offsets = [2, 4, 0], sizes = [1, 1, 16], strides = [1, 1, 1]} : vector<6x6x16xf32> to vector<1x1x16xf32>
    %228 = vector.shape_cast %227 : vector<1x1x16xf32> to vector<16xf32>
    %229 = vector.shape_cast %228 : vector<16xf32> to vector<1x16xf32>
    %230 = vector.broadcast %229 : vector<1x16xf32> to vector<16x16xf32>
    %231 = arith.mulf %98, %230 : vector<16x16xf32>
    %232 = arith.addf %226, %231 : vector<16x16xf32>
    %233 = vector.extract_strided_slice %81 {offsets = [2, 5, 0], sizes = [1, 1, 16], strides = [1, 1, 1]} : vector<6x6x16xf32> to vector<1x1x16xf32>
    %234 = vector.shape_cast %233 : vector<1x1x16xf32> to vector<16xf32>
    %235 = vector.shape_cast %234 : vector<16xf32> to vector<1x16xf32>
    %236 = vector.broadcast %235 : vector<1x16xf32> to vector<16x16xf32>
    %237 = arith.mulf %99, %236 : vector<16x16xf32>
    %238 = arith.addf %232, %237 : vector<16x16xf32>
    %239 = vector.extract_strided_slice %81 {offsets = [3, 0, 0], sizes = [1, 1, 16], strides = [1, 1, 1]} : vector<6x6x16xf32> to vector<1x1x16xf32>
    %240 = vector.shape_cast %239 : vector<1x1x16xf32> to vector<16xf32>
    %241 = vector.shape_cast %240 : vector<16xf32> to vector<1x16xf32>
    %242 = vector.broadcast %241 : vector<1x16xf32> to vector<16x16xf32>
    %243 = arith.mulf %100, %242 : vector<16x16xf32>
    %244 = arith.addf %238, %243 : vector<16x16xf32>
    %245 = vector.extract_strided_slice %81 {offsets = [3, 1, 0], sizes = [1, 1, 16], strides = [1, 1, 1]} : vector<6x6x16xf32> to vector<1x1x16xf32>
    %246 = vector.shape_cast %245 : vector<1x1x16xf32> to vector<16xf32>
    %247 = vector.shape_cast %246 : vector<16xf32> to vector<1x16xf32>
    %248 = vector.broadcast %247 : vector<1x16xf32> to vector<16x16xf32>
    %249 = arith.mulf %101, %248 : vector<16x16xf32>
    %250 = arith.addf %244, %249 : vector<16x16xf32>
    %251 = vector.extract_strided_slice %81 {offsets = [3, 2, 0], sizes = [1, 1, 16], strides = [1, 1, 1]} : vector<6x6x16xf32> to vector<1x1x16xf32>
    %252 = vector.shape_cast %251 : vector<1x1x16xf32> to vector<16xf32>
    %253 = vector.shape_cast %252 : vector<16xf32> to vector<1x16xf32>
    %254 = vector.broadcast %253 : vector<1x16xf32> to vector<16x16xf32>
    %255 = arith.mulf %102, %254 : vector<16x16xf32>
    %256 = arith.addf %250, %255 : vector<16x16xf32>
    %257 = vector.extract_strided_slice %81 {offsets = [3, 3, 0], sizes = [1, 1, 16], strides = [1, 1, 1]} : vector<6x6x16xf32> to vector<1x1x16xf32>
    %258 = vector.shape_cast %257 : vector<1x1x16xf32> to vector<16xf32>
    %259 = vector.shape_cast %258 : vector<16xf32> to vector<1x16xf32>
    %260 = vector.broadcast %259 : vector<1x16xf32> to vector<16x16xf32>
    %261 = arith.mulf %103, %260 : vector<16x16xf32>
    %262 = arith.addf %256, %261 : vector<16x16xf32>
    %263 = vector.extract_strided_slice %81 {offsets = [3, 4, 0], sizes = [1, 1, 16], strides = [1, 1, 1]} : vector<6x6x16xf32> to vector<1x1x16xf32>
    %264 = vector.shape_cast %263 : vector<1x1x16xf32> to vector<16xf32>
    %265 = vector.shape_cast %264 : vector<16xf32> to vector<1x16xf32>
    %266 = vector.broadcast %265 : vector<1x16xf32> to vector<16x16xf32>
    %267 = arith.mulf %104, %266 : vector<16x16xf32>
    %268 = arith.addf %262, %267 : vector<16x16xf32>
    %269 = vector.extract_strided_slice %81 {offsets = [3, 5, 0], sizes = [1, 1, 16], strides = [1, 1, 1]} : vector<6x6x16xf32> to vector<1x1x16xf32>
    %270 = vector.shape_cast %269 : vector<1x1x16xf32> to vector<16xf32>
    %271 = vector.shape_cast %270 : vector<16xf32> to vector<1x16xf32>
    %272 = vector.broadcast %271 : vector<1x16xf32> to vector<16x16xf32>
    %273 = arith.mulf %105, %272 : vector<16x16xf32>
    %274 = arith.addf %268, %273 : vector<16x16xf32>
    %275 = vector.extract_strided_slice %81 {offsets = [4, 0, 0], sizes = [1, 1, 16], strides = [1, 1, 1]} : vector<6x6x16xf32> to vector<1x1x16xf32>
    %276 = vector.shape_cast %275 : vector<1x1x16xf32> to vector<16xf32>
    %277 = vector.shape_cast %276 : vector<16xf32> to vector<1x16xf32>
    %278 = vector.broadcast %277 : vector<1x16xf32> to vector<16x16xf32>
    %279 = arith.mulf %106, %278 : vector<16x16xf32>
    %280 = arith.addf %274, %279 : vector<16x16xf32>
    %281 = vector.extract_strided_slice %81 {offsets = [4, 1, 0], sizes = [1, 1, 16], strides = [1, 1, 1]} : vector<6x6x16xf32> to vector<1x1x16xf32>
    %282 = vector.shape_cast %281 : vector<1x1x16xf32> to vector<16xf32>
    %283 = vector.shape_cast %282 : vector<16xf32> to vector<1x16xf32>
    %284 = vector.broadcast %283 : vector<1x16xf32> to vector<16x16xf32>
    %285 = arith.mulf %107, %284 : vector<16x16xf32>
    %286 = arith.addf %280, %285 : vector<16x16xf32>
    %287 = vector.extract_strided_slice %81 {offsets = [4, 2, 0], sizes = [1, 1, 16], strides = [1, 1, 1]} : vector<6x6x16xf32> to vector<1x1x16xf32>
    %288 = vector.shape_cast %287 : vector<1x1x16xf32> to vector<16xf32>
    %289 = vector.shape_cast %288 : vector<16xf32> to vector<1x16xf32>
    %290 = vector.broadcast %289 : vector<1x16xf32> to vector<16x16xf32>
    %291 = arith.mulf %108, %290 : vector<16x16xf32>
    %292 = arith.addf %286, %291 : vector<16x16xf32>
    %293 = vector.extract_strided_slice %81 {offsets = [4, 3, 0], sizes = [1, 1, 16], strides = [1, 1, 1]} : vector<6x6x16xf32> to vector<1x1x16xf32>
    %294 = vector.shape_cast %293 : vector<1x1x16xf32> to vector<16xf32>
    %295 = vector.shape_cast %294 : vector<16xf32> to vector<1x16xf32>
    %296 = vector.broadcast %295 : vector<1x16xf32> to vector<16x16xf32>
    %297 = arith.mulf %109, %296 : vector<16x16xf32>
    %298 = arith.addf %292, %297 : vector<16x16xf32>
    %299 = vector.extract_strided_slice %81 {offsets = [4, 4, 0], sizes = [1, 1, 16], strides = [1, 1, 1]} : vector<6x6x16xf32> to vector<1x1x16xf32>
    %300 = vector.shape_cast %299 : vector<1x1x16xf32> to vector<16xf32>
    %301 = vector.shape_cast %300 : vector<16xf32> to vector<1x16xf32>
    %302 = vector.broadcast %301 : vector<1x16xf32> to vector<16x16xf32>
    %303 = arith.mulf %110, %302 : vector<16x16xf32>
    %304 = arith.addf %298, %303 : vector<16x16xf32>
    %305 = vector.extract_strided_slice %81 {offsets = [4, 5, 0], sizes = [1, 1, 16], strides = [1, 1, 1]} : vector<6x6x16xf32> to vector<1x1x16xf32>
    %306 = vector.shape_cast %305 : vector<1x1x16xf32> to vector<16xf32>
    %307 = vector.shape_cast %306 : vector<16xf32> to vector<1x16xf32>
    %308 = vector.broadcast %307 : vector<1x16xf32> to vector<16x16xf32>
    %309 = arith.mulf %111, %308 : vector<16x16xf32>
    %310 = arith.addf %304, %309 : vector<16x16xf32>
    %311 = vector.extract_strided_slice %81 {offsets = [5, 0, 0], sizes = [1, 1, 16], strides = [1, 1, 1]} : vector<6x6x16xf32> to vector<1x1x16xf32>
    %312 = vector.shape_cast %311 : vector<1x1x16xf32> to vector<16xf32>
    %313 = vector.shape_cast %312 : vector<16xf32> to vector<1x16xf32>
    %314 = vector.broadcast %313 : vector<1x16xf32> to vector<16x16xf32>
    %315 = arith.mulf %112, %314 : vector<16x16xf32>
    %316 = arith.addf %310, %315 : vector<16x16xf32>
    %317 = vector.extract_strided_slice %81 {offsets = [5, 1, 0], sizes = [1, 1, 16], strides = [1, 1, 1]} : vector<6x6x16xf32> to vector<1x1x16xf32>
    %318 = vector.shape_cast %317 : vector<1x1x16xf32> to vector<16xf32>
    %319 = vector.shape_cast %318 : vector<16xf32> to vector<1x16xf32>
    %320 = vector.broadcast %319 : vector<1x16xf32> to vector<16x16xf32>
    %321 = arith.mulf %113, %320 : vector<16x16xf32>
    %322 = arith.addf %316, %321 : vector<16x16xf32>
    %323 = vector.extract_strided_slice %81 {offsets = [5, 2, 0], sizes = [1, 1, 16], strides = [1, 1, 1]} : vector<6x6x16xf32> to vector<1x1x16xf32>
    %324 = vector.shape_cast %323 : vector<1x1x16xf32> to vector<16xf32>
    %325 = vector.shape_cast %324 : vector<16xf32> to vector<1x16xf32>
    %326 = vector.broadcast %325 : vector<1x16xf32> to vector<16x16xf32>
    %327 = arith.mulf %114, %326 : vector<16x16xf32>
    %328 = arith.addf %322, %327 : vector<16x16xf32>
    %329 = vector.extract_strided_slice %81 {offsets = [5, 3, 0], sizes = [1, 1, 16], strides = [1, 1, 1]} : vector<6x6x16xf32> to vector<1x1x16xf32>
    %330 = vector.shape_cast %329 : vector<1x1x16xf32> to vector<16xf32>
    %331 = vector.shape_cast %330 : vector<16xf32> to vector<1x16xf32>
    %332 = vector.broadcast %331 : vector<1x16xf32> to vector<16x16xf32>
    %333 = arith.mulf %115, %332 : vector<16x16xf32>
    %334 = arith.addf %328, %333 : vector<16x16xf32>
    %335 = vector.extract_strided_slice %81 {offsets = [5, 4, 0], sizes = [1, 1, 16], strides = [1, 1, 1]} : vector<6x6x16xf32> to vector<1x1x16xf32>
    %336 = vector.shape_cast %335 : vector<1x1x16xf32> to vector<16xf32>
    %337 = vector.shape_cast %336 : vector<16xf32> to vector<1x16xf32>
    %338 = vector.broadcast %337 : vector<1x16xf32> to vector<16x16xf32>
    %339 = arith.mulf %116, %338 : vector<16x16xf32>
    %340 = arith.addf %334, %339 : vector<16x16xf32>
    %341 = vector.extract_strided_slice %81 {offsets = [5, 5, 0], sizes = [1, 1, 16], strides = [1, 1, 1]} : vector<6x6x16xf32> to vector<1x1x16xf32>
    %342 = vector.shape_cast %341 : vector<1x1x16xf32> to vector<16xf32>
    %343 = vector.shape_cast %342 : vector<16xf32> to vector<1x16xf32>
    %344 = vector.broadcast %343 : vector<1x16xf32> to vector<16x16xf32>
    %345 = arith.mulf %117, %344 : vector<16x16xf32>
    %346 = arith.addf %340, %345 : vector<16x16xf32>
    %cst_55 = arith.constant 0.000000e+00 : f32
    %347 = vector.broadcast %cst_55 : f32 to vector<16x16xf32>
    %348 = vector.extract_strided_slice %81 {offsets = [0, 0, 0], sizes = [1, 1, 16], strides = [1, 1, 1]} : vector<6x6x16xf32> to vector<1x1x16xf32>
    %349 = vector.shape_cast %348 : vector<1x1x16xf32> to vector<16xf32>
    %350 = vector.shape_cast %349 : vector<16xf32> to vector<1x16xf32>
    %351 = vector.broadcast %350 : vector<1x16xf32> to vector<16x16xf32>
    %352 = arith.mulf %88, %351 : vector<16x16xf32>
    %353 = arith.addf %347, %352 : vector<16x16xf32>
    %354 = vector.extract_strided_slice %81 {offsets = [0, 1, 0], sizes = [1, 1, 16], strides = [1, 1, 1]} : vector<6x6x16xf32> to vector<1x1x16xf32>
    %355 = vector.shape_cast %354 : vector<1x1x16xf32> to vector<16xf32>
    %356 = vector.shape_cast %355 : vector<16xf32> to vector<1x16xf32>
    %357 = vector.broadcast %356 : vector<1x16xf32> to vector<16x16xf32>
    %358 = arith.mulf %89, %357 : vector<16x16xf32>
    %359 = arith.addf %353, %358 : vector<16x16xf32>
    %360 = vector.extract_strided_slice %81 {offsets = [0, 2, 0], sizes = [1, 1, 16], strides = [1, 1, 1]} : vector<6x6x16xf32> to vector<1x1x16xf32>
    %361 = vector.shape_cast %360 : vector<1x1x16xf32> to vector<16xf32>
    %362 = vector.shape_cast %361 : vector<16xf32> to vector<1x16xf32>
    %363 = vector.broadcast %362 : vector<1x16xf32> to vector<16x16xf32>
    %364 = arith.mulf %90, %363 : vector<16x16xf32>
    %365 = arith.addf %359, %364 : vector<16x16xf32>
    %366 = vector.extract_strided_slice %81 {offsets = [0, 3, 0], sizes = [1, 1, 16], strides = [1, 1, 1]} : vector<6x6x16xf32> to vector<1x1x16xf32>
    %367 = vector.shape_cast %366 : vector<1x1x16xf32> to vector<16xf32>
    %368 = vector.shape_cast %367 : vector<16xf32> to vector<1x16xf32>
    %369 = vector.broadcast %368 : vector<1x16xf32> to vector<16x16xf32>
    %370 = arith.mulf %91, %369 : vector<16x16xf32>
    %371 = arith.addf %365, %370 : vector<16x16xf32>
    %372 = vector.extract_strided_slice %81 {offsets = [0, 4, 0], sizes = [1, 1, 16], strides = [1, 1, 1]} : vector<6x6x16xf32> to vector<1x1x16xf32>
    %373 = vector.shape_cast %372 : vector<1x1x16xf32> to vector<16xf32>
    %374 = vector.shape_cast %373 : vector<16xf32> to vector<1x16xf32>
    %375 = vector.broadcast %374 : vector<1x16xf32> to vector<16x16xf32>
    %376 = arith.mulf %92, %375 : vector<16x16xf32>
    %377 = arith.addf %371, %376 : vector<16x16xf32>
    %378 = vector.extract_strided_slice %81 {offsets = [0, 5, 0], sizes = [1, 1, 16], strides = [1, 1, 1]} : vector<6x6x16xf32> to vector<1x1x16xf32>
    %379 = vector.shape_cast %378 : vector<1x1x16xf32> to vector<16xf32>
    %380 = vector.shape_cast %379 : vector<16xf32> to vector<1x16xf32>
    %381 = vector.broadcast %380 : vector<1x16xf32> to vector<16x16xf32>
    %382 = arith.mulf %93, %381 : vector<16x16xf32>
    %383 = arith.addf %377, %382 : vector<16x16xf32>
    %384 = vector.extract_strided_slice %81 {offsets = [1, 0, 0], sizes = [1, 1, 16], strides = [1, 1, 1]} : vector<6x6x16xf32> to vector<1x1x16xf32>
    %385 = vector.shape_cast %384 : vector<1x1x16xf32> to vector<16xf32>
    %386 = vector.shape_cast %385 : vector<16xf32> to vector<1x16xf32>
    %387 = vector.broadcast %386 : vector<1x16xf32> to vector<16x16xf32>
    %388 = arith.mulf %94, %387 : vector<16x16xf32>
    %389 = arith.addf %383, %388 : vector<16x16xf32>
    %390 = vector.extract_strided_slice %81 {offsets = [1, 1, 0], sizes = [1, 1, 16], strides = [1, 1, 1]} : vector<6x6x16xf32> to vector<1x1x16xf32>
    %391 = vector.shape_cast %390 : vector<1x1x16xf32> to vector<16xf32>
    %392 = vector.shape_cast %391 : vector<16xf32> to vector<1x16xf32>
    %393 = vector.broadcast %392 : vector<1x16xf32> to vector<16x16xf32>
    %394 = arith.mulf %95, %393 : vector<16x16xf32>
    %395 = arith.addf %389, %394 : vector<16x16xf32>
    %396 = vector.extract_strided_slice %81 {offsets = [1, 2, 0], sizes = [1, 1, 16], strides = [1, 1, 1]} : vector<6x6x16xf32> to vector<1x1x16xf32>
    %397 = vector.shape_cast %396 : vector<1x1x16xf32> to vector<16xf32>
    %398 = vector.shape_cast %397 : vector<16xf32> to vector<1x16xf32>
    %399 = vector.broadcast %398 : vector<1x16xf32> to vector<16x16xf32>
    %400 = arith.mulf %96, %399 : vector<16x16xf32>
    %401 = arith.addf %395, %400 : vector<16x16xf32>
    %402 = vector.extract_strided_slice %81 {offsets = [1, 3, 0], sizes = [1, 1, 16], strides = [1, 1, 1]} : vector<6x6x16xf32> to vector<1x1x16xf32>
    %403 = vector.shape_cast %402 : vector<1x1x16xf32> to vector<16xf32>
    %404 = vector.shape_cast %403 : vector<16xf32> to vector<1x16xf32>
    %405 = vector.broadcast %404 : vector<1x16xf32> to vector<16x16xf32>
    %406 = arith.mulf %97, %405 : vector<16x16xf32>
    %407 = arith.addf %401, %406 : vector<16x16xf32>
    %408 = vector.extract_strided_slice %81 {offsets = [1, 4, 0], sizes = [1, 1, 16], strides = [1, 1, 1]} : vector<6x6x16xf32> to vector<1x1x16xf32>
    %409 = vector.shape_cast %408 : vector<1x1x16xf32> to vector<16xf32>
    %410 = vector.shape_cast %409 : vector<16xf32> to vector<1x16xf32>
    %411 = vector.broadcast %410 : vector<1x16xf32> to vector<16x16xf32>
    %412 = arith.mulf %98, %411 : vector<16x16xf32>
    %413 = arith.addf %407, %412 : vector<16x16xf32>
    %414 = vector.extract_strided_slice %81 {offsets = [1, 5, 0], sizes = [1, 1, 16], strides = [1, 1, 1]} : vector<6x6x16xf32> to vector<1x1x16xf32>
    %415 = vector.shape_cast %414 : vector<1x1x16xf32> to vector<16xf32>
    %416 = vector.shape_cast %415 : vector<16xf32> to vector<1x16xf32>
    %417 = vector.broadcast %416 : vector<1x16xf32> to vector<16x16xf32>
    %418 = arith.mulf %99, %417 : vector<16x16xf32>
    %419 = arith.addf %413, %418 : vector<16x16xf32>
    %420 = vector.extract_strided_slice %81 {offsets = [2, 0, 0], sizes = [1, 1, 16], strides = [1, 1, 1]} : vector<6x6x16xf32> to vector<1x1x16xf32>
    %421 = vector.shape_cast %420 : vector<1x1x16xf32> to vector<16xf32>
    %422 = vector.shape_cast %421 : vector<16xf32> to vector<1x16xf32>
    %423 = vector.broadcast %422 : vector<1x16xf32> to vector<16x16xf32>
    %424 = arith.mulf %100, %423 : vector<16x16xf32>
    %425 = arith.addf %419, %424 : vector<16x16xf32>
    %426 = vector.extract_strided_slice %81 {offsets = [2, 1, 0], sizes = [1, 1, 16], strides = [1, 1, 1]} : vector<6x6x16xf32> to vector<1x1x16xf32>
    %427 = vector.shape_cast %426 : vector<1x1x16xf32> to vector<16xf32>
    %428 = vector.shape_cast %427 : vector<16xf32> to vector<1x16xf32>
    %429 = vector.broadcast %428 : vector<1x16xf32> to vector<16x16xf32>
    %430 = arith.mulf %101, %429 : vector<16x16xf32>
    %431 = arith.addf %425, %430 : vector<16x16xf32>
    %432 = vector.extract_strided_slice %81 {offsets = [2, 2, 0], sizes = [1, 1, 16], strides = [1, 1, 1]} : vector<6x6x16xf32> to vector<1x1x16xf32>
    %433 = vector.shape_cast %432 : vector<1x1x16xf32> to vector<16xf32>
    %434 = vector.shape_cast %433 : vector<16xf32> to vector<1x16xf32>
    %435 = vector.broadcast %434 : vector<1x16xf32> to vector<16x16xf32>
    %436 = arith.mulf %102, %435 : vector<16x16xf32>
    %437 = arith.addf %431, %436 : vector<16x16xf32>
    %438 = vector.extract_strided_slice %81 {offsets = [2, 3, 0], sizes = [1, 1, 16], strides = [1, 1, 1]} : vector<6x6x16xf32> to vector<1x1x16xf32>
    %439 = vector.shape_cast %438 : vector<1x1x16xf32> to vector<16xf32>
    %440 = vector.shape_cast %439 : vector<16xf32> to vector<1x16xf32>
    %441 = vector.broadcast %440 : vector<1x16xf32> to vector<16x16xf32>
    %442 = arith.mulf %103, %441 : vector<16x16xf32>
    %443 = arith.addf %437, %442 : vector<16x16xf32>
    %444 = vector.extract_strided_slice %81 {offsets = [2, 4, 0], sizes = [1, 1, 16], strides = [1, 1, 1]} : vector<6x6x16xf32> to vector<1x1x16xf32>
    %445 = vector.shape_cast %444 : vector<1x1x16xf32> to vector<16xf32>
    %446 = vector.shape_cast %445 : vector<16xf32> to vector<1x16xf32>
    %447 = vector.broadcast %446 : vector<1x16xf32> to vector<16x16xf32>
    %448 = arith.mulf %104, %447 : vector<16x16xf32>
    %449 = arith.addf %443, %448 : vector<16x16xf32>
    %450 = vector.extract_strided_slice %81 {offsets = [2, 5, 0], sizes = [1, 1, 16], strides = [1, 1, 1]} : vector<6x6x16xf32> to vector<1x1x16xf32>
    %451 = vector.shape_cast %450 : vector<1x1x16xf32> to vector<16xf32>
    %452 = vector.shape_cast %451 : vector<16xf32> to vector<1x16xf32>
    %453 = vector.broadcast %452 : vector<1x16xf32> to vector<16x16xf32>
    %454 = arith.mulf %105, %453 : vector<16x16xf32>
    %455 = arith.addf %449, %454 : vector<16x16xf32>
    %456 = vector.extract_strided_slice %81 {offsets = [3, 0, 0], sizes = [1, 1, 16], strides = [1, 1, 1]} : vector<6x6x16xf32> to vector<1x1x16xf32>
    %457 = vector.shape_cast %456 : vector<1x1x16xf32> to vector<16xf32>
    %458 = vector.shape_cast %457 : vector<16xf32> to vector<1x16xf32>
    %459 = vector.broadcast %458 : vector<1x16xf32> to vector<16x16xf32>
    %460 = arith.mulf %106, %459 : vector<16x16xf32>
    %461 = arith.addf %455, %460 : vector<16x16xf32>
    %462 = vector.extract_strided_slice %81 {offsets = [3, 1, 0], sizes = [1, 1, 16], strides = [1, 1, 1]} : vector<6x6x16xf32> to vector<1x1x16xf32>
    %463 = vector.shape_cast %462 : vector<1x1x16xf32> to vector<16xf32>
    %464 = vector.shape_cast %463 : vector<16xf32> to vector<1x16xf32>
    %465 = vector.broadcast %464 : vector<1x16xf32> to vector<16x16xf32>
    %466 = arith.mulf %107, %465 : vector<16x16xf32>
    %467 = arith.addf %461, %466 : vector<16x16xf32>
    %468 = vector.extract_strided_slice %81 {offsets = [3, 2, 0], sizes = [1, 1, 16], strides = [1, 1, 1]} : vector<6x6x16xf32> to vector<1x1x16xf32>
    %469 = vector.shape_cast %468 : vector<1x1x16xf32> to vector<16xf32>
    %470 = vector.shape_cast %469 : vector<16xf32> to vector<1x16xf32>
    %471 = vector.broadcast %470 : vector<1x16xf32> to vector<16x16xf32>
    %472 = arith.mulf %108, %471 : vector<16x16xf32>
    %473 = arith.addf %467, %472 : vector<16x16xf32>
    %474 = vector.extract_strided_slice %81 {offsets = [3, 3, 0], sizes = [1, 1, 16], strides = [1, 1, 1]} : vector<6x6x16xf32> to vector<1x1x16xf32>
    %475 = vector.shape_cast %474 : vector<1x1x16xf32> to vector<16xf32>
    %476 = vector.shape_cast %475 : vector<16xf32> to vector<1x16xf32>
    %477 = vector.broadcast %476 : vector<1x16xf32> to vector<16x16xf32>
    %478 = arith.mulf %109, %477 : vector<16x16xf32>
    %479 = arith.addf %473, %478 : vector<16x16xf32>
    %480 = vector.extract_strided_slice %81 {offsets = [3, 4, 0], sizes = [1, 1, 16], strides = [1, 1, 1]} : vector<6x6x16xf32> to vector<1x1x16xf32>
    %481 = vector.shape_cast %480 : vector<1x1x16xf32> to vector<16xf32>
    %482 = vector.shape_cast %481 : vector<16xf32> to vector<1x16xf32>
    %483 = vector.broadcast %482 : vector<1x16xf32> to vector<16x16xf32>
    %484 = arith.mulf %110, %483 : vector<16x16xf32>
    %485 = arith.addf %479, %484 : vector<16x16xf32>
    %486 = vector.extract_strided_slice %81 {offsets = [3, 5, 0], sizes = [1, 1, 16], strides = [1, 1, 1]} : vector<6x6x16xf32> to vector<1x1x16xf32>
    %487 = vector.shape_cast %486 : vector<1x1x16xf32> to vector<16xf32>
    %488 = vector.shape_cast %487 : vector<16xf32> to vector<1x16xf32>
    %489 = vector.broadcast %488 : vector<1x16xf32> to vector<16x16xf32>
    %490 = arith.mulf %111, %489 : vector<16x16xf32>
    %491 = arith.addf %485, %490 : vector<16x16xf32>
    %492 = vector.extract_strided_slice %81 {offsets = [4, 0, 0], sizes = [1, 1, 16], strides = [1, 1, 1]} : vector<6x6x16xf32> to vector<1x1x16xf32>
    %493 = vector.shape_cast %492 : vector<1x1x16xf32> to vector<16xf32>
    %494 = vector.shape_cast %493 : vector<16xf32> to vector<1x16xf32>
    %495 = vector.broadcast %494 : vector<1x16xf32> to vector<16x16xf32>
    %496 = arith.mulf %112, %495 : vector<16x16xf32>
    %497 = arith.addf %491, %496 : vector<16x16xf32>
    %498 = vector.extract_strided_slice %81 {offsets = [4, 1, 0], sizes = [1, 1, 16], strides = [1, 1, 1]} : vector<6x6x16xf32> to vector<1x1x16xf32>
    %499 = vector.shape_cast %498 : vector<1x1x16xf32> to vector<16xf32>
    %500 = vector.shape_cast %499 : vector<16xf32> to vector<1x16xf32>
    %501 = vector.broadcast %500 : vector<1x16xf32> to vector<16x16xf32>
    %502 = arith.mulf %113, %501 : vector<16x16xf32>
    %503 = arith.addf %497, %502 : vector<16x16xf32>
    %504 = vector.extract_strided_slice %81 {offsets = [4, 2, 0], sizes = [1, 1, 16], strides = [1, 1, 1]} : vector<6x6x16xf32> to vector<1x1x16xf32>
    %505 = vector.shape_cast %504 : vector<1x1x16xf32> to vector<16xf32>
    %506 = vector.shape_cast %505 : vector<16xf32> to vector<1x16xf32>
    %507 = vector.broadcast %506 : vector<1x16xf32> to vector<16x16xf32>
    %508 = arith.mulf %114, %507 : vector<16x16xf32>
    %509 = arith.addf %503, %508 : vector<16x16xf32>
    %510 = vector.extract_strided_slice %81 {offsets = [4, 3, 0], sizes = [1, 1, 16], strides = [1, 1, 1]} : vector<6x6x16xf32> to vector<1x1x16xf32>
    %511 = vector.shape_cast %510 : vector<1x1x16xf32> to vector<16xf32>
    %512 = vector.shape_cast %511 : vector<16xf32> to vector<1x16xf32>
    %513 = vector.broadcast %512 : vector<1x16xf32> to vector<16x16xf32>
    %514 = arith.mulf %115, %513 : vector<16x16xf32>
    %515 = arith.addf %509, %514 : vector<16x16xf32>
    %516 = vector.extract_strided_slice %81 {offsets = [4, 4, 0], sizes = [1, 1, 16], strides = [1, 1, 1]} : vector<6x6x16xf32> to vector<1x1x16xf32>
    %517 = vector.shape_cast %516 : vector<1x1x16xf32> to vector<16xf32>
    %518 = vector.shape_cast %517 : vector<16xf32> to vector<1x16xf32>
    %519 = vector.broadcast %518 : vector<1x16xf32> to vector<16x16xf32>
    %520 = arith.mulf %116, %519 : vector<16x16xf32>
    %521 = arith.addf %515, %520 : vector<16x16xf32>
    %522 = vector.extract_strided_slice %81 {offsets = [4, 5, 0], sizes = [1, 1, 16], strides = [1, 1, 1]} : vector<6x6x16xf32> to vector<1x1x16xf32>
    %523 = vector.shape_cast %522 : vector<1x1x16xf32> to vector<16xf32>
    %524 = vector.shape_cast %523 : vector<16xf32> to vector<1x16xf32>
    %525 = vector.broadcast %524 : vector<1x16xf32> to vector<16x16xf32>
    %526 = arith.mulf %117, %525 : vector<16x16xf32>
    %527 = arith.addf %521, %526 : vector<16x16xf32>
    %528 = vector.extract_strided_slice %81 {offsets = [5, 0, 0], sizes = [1, 1, 16], strides = [1, 1, 1]} : vector<6x6x16xf32> to vector<1x1x16xf32>
    %529 = vector.shape_cast %528 : vector<1x1x16xf32> to vector<16xf32>
    %530 = vector.shape_cast %529 : vector<16xf32> to vector<1x16xf32>
    %531 = vector.broadcast %530 : vector<1x16xf32> to vector<16x16xf32>
    %532 = arith.mulf %118, %531 : vector<16x16xf32>
    %533 = arith.addf %527, %532 : vector<16x16xf32>
    %534 = vector.extract_strided_slice %81 {offsets = [5, 1, 0], sizes = [1, 1, 16], strides = [1, 1, 1]} : vector<6x6x16xf32> to vector<1x1x16xf32>
    %535 = vector.shape_cast %534 : vector<1x1x16xf32> to vector<16xf32>
    %536 = vector.shape_cast %535 : vector<16xf32> to vector<1x16xf32>
    %537 = vector.broadcast %536 : vector<1x16xf32> to vector<16x16xf32>
    %538 = arith.mulf %119, %537 : vector<16x16xf32>
    %539 = arith.addf %533, %538 : vector<16x16xf32>
    %540 = vector.extract_strided_slice %81 {offsets = [5, 2, 0], sizes = [1, 1, 16], strides = [1, 1, 1]} : vector<6x6x16xf32> to vector<1x1x16xf32>
    %541 = vector.shape_cast %540 : vector<1x1x16xf32> to vector<16xf32>
    %542 = vector.shape_cast %541 : vector<16xf32> to vector<1x16xf32>
    %543 = vector.broadcast %542 : vector<1x16xf32> to vector<16x16xf32>
    %544 = arith.mulf %120, %543 : vector<16x16xf32>
    %545 = arith.addf %539, %544 : vector<16x16xf32>
    %546 = vector.extract_strided_slice %81 {offsets = [5, 3, 0], sizes = [1, 1, 16], strides = [1, 1, 1]} : vector<6x6x16xf32> to vector<1x1x16xf32>
    %547 = vector.shape_cast %546 : vector<1x1x16xf32> to vector<16xf32>
    %548 = vector.shape_cast %547 : vector<16xf32> to vector<1x16xf32>
    %549 = vector.broadcast %548 : vector<1x16xf32> to vector<16x16xf32>
    %550 = arith.mulf %121, %549 : vector<16x16xf32>
    %551 = arith.addf %545, %550 : vector<16x16xf32>
    %552 = vector.extract_strided_slice %81 {offsets = [5, 4, 0], sizes = [1, 1, 16], strides = [1, 1, 1]} : vector<6x6x16xf32> to vector<1x1x16xf32>
    %553 = vector.shape_cast %552 : vector<1x1x16xf32> to vector<16xf32>
    %554 = vector.shape_cast %553 : vector<16xf32> to vector<1x16xf32>
    %555 = vector.broadcast %554 : vector<1x16xf32> to vector<16x16xf32>
    %556 = arith.mulf %122, %555 : vector<16x16xf32>
    %557 = arith.addf %551, %556 : vector<16x16xf32>
    %558 = vector.extract_strided_slice %81 {offsets = [5, 5, 0], sizes = [1, 1, 16], strides = [1, 1, 1]} : vector<6x6x16xf32> to vector<1x1x16xf32>
    %559 = vector.shape_cast %558 : vector<1x1x16xf32> to vector<16xf32>
    %560 = vector.shape_cast %559 : vector<16xf32> to vector<1x16xf32>
    %561 = vector.broadcast %560 : vector<1x16xf32> to vector<16x16xf32>
    %562 = arith.mulf %123, %561 : vector<16x16xf32>
    %563 = arith.addf %557, %562 : vector<16x16xf32>
    %cst_56 = arith.constant 0.000000e+00 : f32
    %564 = vector.broadcast %cst_56 : f32 to vector<16x16xf32>
    %565 = vector.extract_strided_slice %81 {offsets = [0, 0, 0], sizes = [1, 1, 16], strides = [1, 1, 1]} : vector<6x6x16xf32> to vector<1x1x16xf32>
    %566 = vector.shape_cast %565 : vector<1x1x16xf32> to vector<16xf32>
    %567 = vector.shape_cast %566 : vector<16xf32> to vector<1x16xf32>
    %568 = vector.broadcast %567 : vector<1x16xf32> to vector<16x16xf32>
    %569 = arith.mulf %94, %568 : vector<16x16xf32>
    %570 = arith.addf %564, %569 : vector<16x16xf32>
    %571 = vector.extract_strided_slice %81 {offsets = [0, 1, 0], sizes = [1, 1, 16], strides = [1, 1, 1]} : vector<6x6x16xf32> to vector<1x1x16xf32>
    %572 = vector.shape_cast %571 : vector<1x1x16xf32> to vector<16xf32>
    %573 = vector.shape_cast %572 : vector<16xf32> to vector<1x16xf32>
    %574 = vector.broadcast %573 : vector<1x16xf32> to vector<16x16xf32>
    %575 = arith.mulf %95, %574 : vector<16x16xf32>
    %576 = arith.addf %570, %575 : vector<16x16xf32>
    %577 = vector.extract_strided_slice %81 {offsets = [0, 2, 0], sizes = [1, 1, 16], strides = [1, 1, 1]} : vector<6x6x16xf32> to vector<1x1x16xf32>
    %578 = vector.shape_cast %577 : vector<1x1x16xf32> to vector<16xf32>
    %579 = vector.shape_cast %578 : vector<16xf32> to vector<1x16xf32>
    %580 = vector.broadcast %579 : vector<1x16xf32> to vector<16x16xf32>
    %581 = arith.mulf %96, %580 : vector<16x16xf32>
    %582 = arith.addf %576, %581 : vector<16x16xf32>
    %583 = vector.extract_strided_slice %81 {offsets = [0, 3, 0], sizes = [1, 1, 16], strides = [1, 1, 1]} : vector<6x6x16xf32> to vector<1x1x16xf32>
    %584 = vector.shape_cast %583 : vector<1x1x16xf32> to vector<16xf32>
    %585 = vector.shape_cast %584 : vector<16xf32> to vector<1x16xf32>
    %586 = vector.broadcast %585 : vector<1x16xf32> to vector<16x16xf32>
    %587 = arith.mulf %97, %586 : vector<16x16xf32>
    %588 = arith.addf %582, %587 : vector<16x16xf32>
    %589 = vector.extract_strided_slice %81 {offsets = [0, 4, 0], sizes = [1, 1, 16], strides = [1, 1, 1]} : vector<6x6x16xf32> to vector<1x1x16xf32>
    %590 = vector.shape_cast %589 : vector<1x1x16xf32> to vector<16xf32>
    %591 = vector.shape_cast %590 : vector<16xf32> to vector<1x16xf32>
    %592 = vector.broadcast %591 : vector<1x16xf32> to vector<16x16xf32>
    %593 = arith.mulf %98, %592 : vector<16x16xf32>
    %594 = arith.addf %588, %593 : vector<16x16xf32>
    %595 = vector.extract_strided_slice %81 {offsets = [0, 5, 0], sizes = [1, 1, 16], strides = [1, 1, 1]} : vector<6x6x16xf32> to vector<1x1x16xf32>
    %596 = vector.shape_cast %595 : vector<1x1x16xf32> to vector<16xf32>
    %597 = vector.shape_cast %596 : vector<16xf32> to vector<1x16xf32>
    %598 = vector.broadcast %597 : vector<1x16xf32> to vector<16x16xf32>
    %599 = arith.mulf %99, %598 : vector<16x16xf32>
    %600 = arith.addf %594, %599 : vector<16x16xf32>
    %601 = vector.extract_strided_slice %81 {offsets = [1, 0, 0], sizes = [1, 1, 16], strides = [1, 1, 1]} : vector<6x6x16xf32> to vector<1x1x16xf32>
    %602 = vector.shape_cast %601 : vector<1x1x16xf32> to vector<16xf32>
    %603 = vector.shape_cast %602 : vector<16xf32> to vector<1x16xf32>
    %604 = vector.broadcast %603 : vector<1x16xf32> to vector<16x16xf32>
    %605 = arith.mulf %100, %604 : vector<16x16xf32>
    %606 = arith.addf %600, %605 : vector<16x16xf32>
    %607 = vector.extract_strided_slice %81 {offsets = [1, 1, 0], sizes = [1, 1, 16], strides = [1, 1, 1]} : vector<6x6x16xf32> to vector<1x1x16xf32>
    %608 = vector.shape_cast %607 : vector<1x1x16xf32> to vector<16xf32>
    %609 = vector.shape_cast %608 : vector<16xf32> to vector<1x16xf32>
    %610 = vector.broadcast %609 : vector<1x16xf32> to vector<16x16xf32>
    %611 = arith.mulf %101, %610 : vector<16x16xf32>
    %612 = arith.addf %606, %611 : vector<16x16xf32>
    %613 = vector.extract_strided_slice %81 {offsets = [1, 2, 0], sizes = [1, 1, 16], strides = [1, 1, 1]} : vector<6x6x16xf32> to vector<1x1x16xf32>
    %614 = vector.shape_cast %613 : vector<1x1x16xf32> to vector<16xf32>
    %615 = vector.shape_cast %614 : vector<16xf32> to vector<1x16xf32>
    %616 = vector.broadcast %615 : vector<1x16xf32> to vector<16x16xf32>
    %617 = arith.mulf %102, %616 : vector<16x16xf32>
    %618 = arith.addf %612, %617 : vector<16x16xf32>
    %619 = vector.extract_strided_slice %81 {offsets = [1, 3, 0], sizes = [1, 1, 16], strides = [1, 1, 1]} : vector<6x6x16xf32> to vector<1x1x16xf32>
    %620 = vector.shape_cast %619 : vector<1x1x16xf32> to vector<16xf32>
    %621 = vector.shape_cast %620 : vector<16xf32> to vector<1x16xf32>
    %622 = vector.broadcast %621 : vector<1x16xf32> to vector<16x16xf32>
    %623 = arith.mulf %103, %622 : vector<16x16xf32>
    %624 = arith.addf %618, %623 : vector<16x16xf32>
    %625 = vector.extract_strided_slice %81 {offsets = [1, 4, 0], sizes = [1, 1, 16], strides = [1, 1, 1]} : vector<6x6x16xf32> to vector<1x1x16xf32>
    %626 = vector.shape_cast %625 : vector<1x1x16xf32> to vector<16xf32>
    %627 = vector.shape_cast %626 : vector<16xf32> to vector<1x16xf32>
    %628 = vector.broadcast %627 : vector<1x16xf32> to vector<16x16xf32>
    %629 = arith.mulf %104, %628 : vector<16x16xf32>
    %630 = arith.addf %624, %629 : vector<16x16xf32>
    %631 = vector.extract_strided_slice %81 {offsets = [1, 5, 0], sizes = [1, 1, 16], strides = [1, 1, 1]} : vector<6x6x16xf32> to vector<1x1x16xf32>
    %632 = vector.shape_cast %631 : vector<1x1x16xf32> to vector<16xf32>
    %633 = vector.shape_cast %632 : vector<16xf32> to vector<1x16xf32>
    %634 = vector.broadcast %633 : vector<1x16xf32> to vector<16x16xf32>
    %635 = arith.mulf %105, %634 : vector<16x16xf32>
    %636 = arith.addf %630, %635 : vector<16x16xf32>
    %637 = vector.extract_strided_slice %81 {offsets = [2, 0, 0], sizes = [1, 1, 16], strides = [1, 1, 1]} : vector<6x6x16xf32> to vector<1x1x16xf32>
    %638 = vector.shape_cast %637 : vector<1x1x16xf32> to vector<16xf32>
    %639 = vector.shape_cast %638 : vector<16xf32> to vector<1x16xf32>
    %640 = vector.broadcast %639 : vector<1x16xf32> to vector<16x16xf32>
    %641 = arith.mulf %106, %640 : vector<16x16xf32>
    %642 = arith.addf %636, %641 : vector<16x16xf32>
    %643 = vector.extract_strided_slice %81 {offsets = [2, 1, 0], sizes = [1, 1, 16], strides = [1, 1, 1]} : vector<6x6x16xf32> to vector<1x1x16xf32>
    %644 = vector.shape_cast %643 : vector<1x1x16xf32> to vector<16xf32>
    %645 = vector.shape_cast %644 : vector<16xf32> to vector<1x16xf32>
    %646 = vector.broadcast %645 : vector<1x16xf32> to vector<16x16xf32>
    %647 = arith.mulf %107, %646 : vector<16x16xf32>
    %648 = arith.addf %642, %647 : vector<16x16xf32>
    %649 = vector.extract_strided_slice %81 {offsets = [2, 2, 0], sizes = [1, 1, 16], strides = [1, 1, 1]} : vector<6x6x16xf32> to vector<1x1x16xf32>
    %650 = vector.shape_cast %649 : vector<1x1x16xf32> to vector<16xf32>
    %651 = vector.shape_cast %650 : vector<16xf32> to vector<1x16xf32>
    %652 = vector.broadcast %651 : vector<1x16xf32> to vector<16x16xf32>
    %653 = arith.mulf %108, %652 : vector<16x16xf32>
    %654 = arith.addf %648, %653 : vector<16x16xf32>
    %655 = vector.extract_strided_slice %81 {offsets = [2, 3, 0], sizes = [1, 1, 16], strides = [1, 1, 1]} : vector<6x6x16xf32> to vector<1x1x16xf32>
    %656 = vector.shape_cast %655 : vector<1x1x16xf32> to vector<16xf32>
    %657 = vector.shape_cast %656 : vector<16xf32> to vector<1x16xf32>
    %658 = vector.broadcast %657 : vector<1x16xf32> to vector<16x16xf32>
    %659 = arith.mulf %109, %658 : vector<16x16xf32>
    %660 = arith.addf %654, %659 : vector<16x16xf32>
    %661 = vector.extract_strided_slice %81 {offsets = [2, 4, 0], sizes = [1, 1, 16], strides = [1, 1, 1]} : vector<6x6x16xf32> to vector<1x1x16xf32>
    %662 = vector.shape_cast %661 : vector<1x1x16xf32> to vector<16xf32>
    %663 = vector.shape_cast %662 : vector<16xf32> to vector<1x16xf32>
    %664 = vector.broadcast %663 : vector<1x16xf32> to vector<16x16xf32>
    %665 = arith.mulf %110, %664 : vector<16x16xf32>
    %666 = arith.addf %660, %665 : vector<16x16xf32>
    %667 = vector.extract_strided_slice %81 {offsets = [2, 5, 0], sizes = [1, 1, 16], strides = [1, 1, 1]} : vector<6x6x16xf32> to vector<1x1x16xf32>
    %668 = vector.shape_cast %667 : vector<1x1x16xf32> to vector<16xf32>
    %669 = vector.shape_cast %668 : vector<16xf32> to vector<1x16xf32>
    %670 = vector.broadcast %669 : vector<1x16xf32> to vector<16x16xf32>
    %671 = arith.mulf %111, %670 : vector<16x16xf32>
    %672 = arith.addf %666, %671 : vector<16x16xf32>
    %673 = vector.extract_strided_slice %81 {offsets = [3, 0, 0], sizes = [1, 1, 16], strides = [1, 1, 1]} : vector<6x6x16xf32> to vector<1x1x16xf32>
    %674 = vector.shape_cast %673 : vector<1x1x16xf32> to vector<16xf32>
    %675 = vector.shape_cast %674 : vector<16xf32> to vector<1x16xf32>
    %676 = vector.broadcast %675 : vector<1x16xf32> to vector<16x16xf32>
    %677 = arith.mulf %112, %676 : vector<16x16xf32>
    %678 = arith.addf %672, %677 : vector<16x16xf32>
    %679 = vector.extract_strided_slice %81 {offsets = [3, 1, 0], sizes = [1, 1, 16], strides = [1, 1, 1]} : vector<6x6x16xf32> to vector<1x1x16xf32>
    %680 = vector.shape_cast %679 : vector<1x1x16xf32> to vector<16xf32>
    %681 = vector.shape_cast %680 : vector<16xf32> to vector<1x16xf32>
    %682 = vector.broadcast %681 : vector<1x16xf32> to vector<16x16xf32>
    %683 = arith.mulf %113, %682 : vector<16x16xf32>
    %684 = arith.addf %678, %683 : vector<16x16xf32>
    %685 = vector.extract_strided_slice %81 {offsets = [3, 2, 0], sizes = [1, 1, 16], strides = [1, 1, 1]} : vector<6x6x16xf32> to vector<1x1x16xf32>
    %686 = vector.shape_cast %685 : vector<1x1x16xf32> to vector<16xf32>
    %687 = vector.shape_cast %686 : vector<16xf32> to vector<1x16xf32>
    %688 = vector.broadcast %687 : vector<1x16xf32> to vector<16x16xf32>
    %689 = arith.mulf %114, %688 : vector<16x16xf32>
    %690 = arith.addf %684, %689 : vector<16x16xf32>
    %691 = vector.extract_strided_slice %81 {offsets = [3, 3, 0], sizes = [1, 1, 16], strides = [1, 1, 1]} : vector<6x6x16xf32> to vector<1x1x16xf32>
    %692 = vector.shape_cast %691 : vector<1x1x16xf32> to vector<16xf32>
    %693 = vector.shape_cast %692 : vector<16xf32> to vector<1x16xf32>
    %694 = vector.broadcast %693 : vector<1x16xf32> to vector<16x16xf32>
    %695 = arith.mulf %115, %694 : vector<16x16xf32>
    %696 = arith.addf %690, %695 : vector<16x16xf32>
    %697 = vector.extract_strided_slice %81 {offsets = [3, 4, 0], sizes = [1, 1, 16], strides = [1, 1, 1]} : vector<6x6x16xf32> to vector<1x1x16xf32>
    %698 = vector.shape_cast %697 : vector<1x1x16xf32> to vector<16xf32>
    %699 = vector.shape_cast %698 : vector<16xf32> to vector<1x16xf32>
    %700 = vector.broadcast %699 : vector<1x16xf32> to vector<16x16xf32>
    %701 = arith.mulf %116, %700 : vector<16x16xf32>
    %702 = arith.addf %696, %701 : vector<16x16xf32>
    %703 = vector.extract_strided_slice %81 {offsets = [3, 5, 0], sizes = [1, 1, 16], strides = [1, 1, 1]} : vector<6x6x16xf32> to vector<1x1x16xf32>
    %704 = vector.shape_cast %703 : vector<1x1x16xf32> to vector<16xf32>
    %705 = vector.shape_cast %704 : vector<16xf32> to vector<1x16xf32>
    %706 = vector.broadcast %705 : vector<1x16xf32> to vector<16x16xf32>
    %707 = arith.mulf %117, %706 : vector<16x16xf32>
    %708 = arith.addf %702, %707 : vector<16x16xf32>
    %709 = vector.extract_strided_slice %81 {offsets = [4, 0, 0], sizes = [1, 1, 16], strides = [1, 1, 1]} : vector<6x6x16xf32> to vector<1x1x16xf32>
    %710 = vector.shape_cast %709 : vector<1x1x16xf32> to vector<16xf32>
    %711 = vector.shape_cast %710 : vector<16xf32> to vector<1x16xf32>
    %712 = vector.broadcast %711 : vector<1x16xf32> to vector<16x16xf32>
    %713 = arith.mulf %118, %712 : vector<16x16xf32>
    %714 = arith.addf %708, %713 : vector<16x16xf32>
    %715 = vector.extract_strided_slice %81 {offsets = [4, 1, 0], sizes = [1, 1, 16], strides = [1, 1, 1]} : vector<6x6x16xf32> to vector<1x1x16xf32>
    %716 = vector.shape_cast %715 : vector<1x1x16xf32> to vector<16xf32>
    %717 = vector.shape_cast %716 : vector<16xf32> to vector<1x16xf32>
    %718 = vector.broadcast %717 : vector<1x16xf32> to vector<16x16xf32>
    %719 = arith.mulf %119, %718 : vector<16x16xf32>
    %720 = arith.addf %714, %719 : vector<16x16xf32>
    %721 = vector.extract_strided_slice %81 {offsets = [4, 2, 0], sizes = [1, 1, 16], strides = [1, 1, 1]} : vector<6x6x16xf32> to vector<1x1x16xf32>
    %722 = vector.shape_cast %721 : vector<1x1x16xf32> to vector<16xf32>
    %723 = vector.shape_cast %722 : vector<16xf32> to vector<1x16xf32>
    %724 = vector.broadcast %723 : vector<1x16xf32> to vector<16x16xf32>
    %725 = arith.mulf %120, %724 : vector<16x16xf32>
    %726 = arith.addf %720, %725 : vector<16x16xf32>
    %727 = vector.extract_strided_slice %81 {offsets = [4, 3, 0], sizes = [1, 1, 16], strides = [1, 1, 1]} : vector<6x6x16xf32> to vector<1x1x16xf32>
    %728 = vector.shape_cast %727 : vector<1x1x16xf32> to vector<16xf32>
    %729 = vector.shape_cast %728 : vector<16xf32> to vector<1x16xf32>
    %730 = vector.broadcast %729 : vector<1x16xf32> to vector<16x16xf32>
    %731 = arith.mulf %121, %730 : vector<16x16xf32>
    %732 = arith.addf %726, %731 : vector<16x16xf32>
    %733 = vector.extract_strided_slice %81 {offsets = [4, 4, 0], sizes = [1, 1, 16], strides = [1, 1, 1]} : vector<6x6x16xf32> to vector<1x1x16xf32>
    %734 = vector.shape_cast %733 : vector<1x1x16xf32> to vector<16xf32>
    %735 = vector.shape_cast %734 : vector<16xf32> to vector<1x16xf32>
    %736 = vector.broadcast %735 : vector<1x16xf32> to vector<16x16xf32>
    %737 = arith.mulf %122, %736 : vector<16x16xf32>
    %738 = arith.addf %732, %737 : vector<16x16xf32>
    %739 = vector.extract_strided_slice %81 {offsets = [4, 5, 0], sizes = [1, 1, 16], strides = [1, 1, 1]} : vector<6x6x16xf32> to vector<1x1x16xf32>
    %740 = vector.shape_cast %739 : vector<1x1x16xf32> to vector<16xf32>
    %741 = vector.shape_cast %740 : vector<16xf32> to vector<1x16xf32>
    %742 = vector.broadcast %741 : vector<1x16xf32> to vector<16x16xf32>
    %743 = arith.mulf %123, %742 : vector<16x16xf32>
    %744 = arith.addf %738, %743 : vector<16x16xf32>
    %745 = vector.extract_strided_slice %81 {offsets = [5, 0, 0], sizes = [1, 1, 16], strides = [1, 1, 1]} : vector<6x6x16xf32> to vector<1x1x16xf32>
    %746 = vector.shape_cast %745 : vector<1x1x16xf32> to vector<16xf32>
    %747 = vector.shape_cast %746 : vector<16xf32> to vector<1x16xf32>
    %748 = vector.broadcast %747 : vector<1x16xf32> to vector<16x16xf32>
    %749 = arith.mulf %124, %748 : vector<16x16xf32>
    %750 = arith.addf %744, %749 : vector<16x16xf32>
    %751 = vector.extract_strided_slice %81 {offsets = [5, 1, 0], sizes = [1, 1, 16], strides = [1, 1, 1]} : vector<6x6x16xf32> to vector<1x1x16xf32>
    %752 = vector.shape_cast %751 : vector<1x1x16xf32> to vector<16xf32>
    %753 = vector.shape_cast %752 : vector<16xf32> to vector<1x16xf32>
    %754 = vector.broadcast %753 : vector<1x16xf32> to vector<16x16xf32>
    %755 = arith.mulf %125, %754 : vector<16x16xf32>
    %756 = arith.addf %750, %755 : vector<16x16xf32>
    %757 = vector.extract_strided_slice %81 {offsets = [5, 2, 0], sizes = [1, 1, 16], strides = [1, 1, 1]} : vector<6x6x16xf32> to vector<1x1x16xf32>
    %758 = vector.shape_cast %757 : vector<1x1x16xf32> to vector<16xf32>
    %759 = vector.shape_cast %758 : vector<16xf32> to vector<1x16xf32>
    %760 = vector.broadcast %759 : vector<1x16xf32> to vector<16x16xf32>
    %761 = arith.mulf %126, %760 : vector<16x16xf32>
    %762 = arith.addf %756, %761 : vector<16x16xf32>
    %763 = vector.extract_strided_slice %81 {offsets = [5, 3, 0], sizes = [1, 1, 16], strides = [1, 1, 1]} : vector<6x6x16xf32> to vector<1x1x16xf32>
    %764 = vector.shape_cast %763 : vector<1x1x16xf32> to vector<16xf32>
    %765 = vector.shape_cast %764 : vector<16xf32> to vector<1x16xf32>
    %766 = vector.broadcast %765 : vector<1x16xf32> to vector<16x16xf32>
    %767 = arith.mulf %127, %766 : vector<16x16xf32>
    %768 = arith.addf %762, %767 : vector<16x16xf32>
    %769 = vector.extract_strided_slice %81 {offsets = [5, 4, 0], sizes = [1, 1, 16], strides = [1, 1, 1]} : vector<6x6x16xf32> to vector<1x1x16xf32>
    %770 = vector.shape_cast %769 : vector<1x1x16xf32> to vector<16xf32>
    %771 = vector.shape_cast %770 : vector<16xf32> to vector<1x16xf32>
    %772 = vector.broadcast %771 : vector<1x16xf32> to vector<16x16xf32>
    %773 = arith.mulf %128, %772 : vector<16x16xf32>
    %774 = arith.addf %768, %773 : vector<16x16xf32>
    %775 = vector.extract_strided_slice %81 {offsets = [5, 5, 0], sizes = [1, 1, 16], strides = [1, 1, 1]} : vector<6x6x16xf32> to vector<1x1x16xf32>
    %776 = vector.shape_cast %775 : vector<1x1x16xf32> to vector<16xf32>
    %777 = vector.shape_cast %776 : vector<16xf32> to vector<1x16xf32>
    %778 = vector.broadcast %777 : vector<1x16xf32> to vector<16x16xf32>
    %779 = arith.mulf %129, %778 : vector<16x16xf32>
    %780 = arith.addf %774, %779 : vector<16x16xf32>
    %781 = tpu.concatenate %346, %563, %780 in 0 : vector<16x16xf32>, vector<16x16xf32>, vector<16x16xf32> -> vector<48x16xf32>
    %c0_57 = arith.constant 0 : index
    %c0_58 = arith.constant 0 : index
    %782 = vector.load %arg9[%c0_57, %c0_58] : memref<1x16xf32, #tpu.memory_space<vmem>>, vector<1x16xf32>
    %c0_59 = arith.constant 0 : index
    %c0_60 = arith.constant 0 : index
    %783 = vector.load %arg10[%c0_59, %c0_60] : memref<1x16xf32, #tpu.memory_space<vmem>>, vector<1x16xf32>
    %784 = vector.extract_strided_slice %781 {offsets = [0, 0], sizes = [48, 8], strides = [1, 1]} : vector<48x16xf32> to vector<48x8xf32>
    %785 = arith.truncf %784 : vector<48x8xf32> to vector<48x8xbf16>
    %c0_61 = arith.constant 0 : index
    %c0_62 = arith.constant 0 : index
    %786 = vector.load %arg7[%c0_61, %c0_62] : memref<8x8xbf16, #tpu.memory_space<vmem>>, vector<8x8xbf16>
    %cst_63 = arith.constant dense<0.000000e+00> : vector<48x8xf32>
    %787 = tpu.matmul %785, %786, %cst_63 {dimension_numbers = #tpu.dot_dimension_numbers<[1], [0], [0], [1], [0, 0, 1, 1], [], []>} : vector<48x8xbf16>, vector<8x8xbf16>, vector<48x8xf32> -> vector<48x8xf32>
    %788 = vector.extract_strided_slice %782 {offsets = [0, 0], sizes = [1, 8], strides = [1, 1]} : vector<1x16xf32> to vector<1x8xf32>
    %789 = vector.broadcast %788 : vector<1x8xf32> to vector<48x8xf32>
    %790 = arith.mulf %787, %789 : vector<48x8xf32>
    %791 = vector.extract_strided_slice %783 {offsets = [0, 0], sizes = [1, 8], strides = [1, 1]} : vector<1x16xf32> to vector<1x8xf32>
    %792 = vector.broadcast %791 : vector<1x8xf32> to vector<48x8xf32>
    %793 = arith.addf %790, %792 : vector<48x8xf32>
    %cst_64 = arith.constant 0.000000e+00 : f32
    %794 = vector.broadcast %cst_64 : f32 to vector<48x8xf32>
    %795 = arith.maximumf %793, %794 : vector<48x8xf32>
    %796 = vector.extract_strided_slice %781 {offsets = [0, 8], sizes = [48, 8], strides = [1, 1]} : vector<48x16xf32> to vector<48x8xf32>
    %797 = arith.truncf %796 : vector<48x8xf32> to vector<48x8xbf16>
    %c0_65 = arith.constant 0 : index
    %c0_66 = arith.constant 0 : index
    %798 = vector.load %arg8[%c0_65, %c0_66] : memref<8x8xbf16, #tpu.memory_space<vmem>>, vector<8x8xbf16>
    %cst_67 = arith.constant dense<0.000000e+00> : vector<48x8xf32>
    %799 = tpu.matmul %797, %798, %cst_67 {dimension_numbers = #tpu.dot_dimension_numbers<[1], [0], [0], [1], [0, 0, 1, 1], [], []>} : vector<48x8xbf16>, vector<8x8xbf16>, vector<48x8xf32> -> vector<48x8xf32>
    %800 = vector.extract_strided_slice %782 {offsets = [0, 8], sizes = [1, 8], strides = [1, 1]} : vector<1x16xf32> to vector<1x8xf32>
    %801 = vector.broadcast %800 : vector<1x8xf32> to vector<48x8xf32>
    %802 = arith.mulf %799, %801 : vector<48x8xf32>
    %803 = vector.extract_strided_slice %783 {offsets = [0, 8], sizes = [1, 8], strides = [1, 1]} : vector<1x16xf32> to vector<1x8xf32>
    %804 = vector.broadcast %803 : vector<1x8xf32> to vector<48x8xf32>
    %805 = arith.addf %802, %804 : vector<48x8xf32>
    %cst_68 = arith.constant 0.000000e+00 : f32
    %806 = vector.broadcast %cst_68 : f32 to vector<48x8xf32>
    %807 = arith.maximumf %805, %806 : vector<48x8xf32>
    %808 = arith.truncf %795 : vector<48x8xf32> to vector<48x8xbf16>
    %c0_69 = arith.constant 0 : index
    %c0_70 = arith.constant 0 : index
    %809 = vector.load %arg11[%c0_69, %c0_70] : memref<8x128xbf16, #tpu.memory_space<vmem>>, vector<8x128xbf16>
    %cst_71 = arith.constant dense<0.000000e+00> : vector<48x128xf32>
    %810 = tpu.matmul %808, %809, %cst_71 {dimension_numbers = #tpu.dot_dimension_numbers<[1], [0], [0], [1], [0, 0, 1, 1], [], []>} : vector<48x8xbf16>, vector<8x128xbf16>, vector<48x128xf32> -> vector<48x128xf32>
    %811 = arith.truncf %807 : vector<48x8xf32> to vector<48x8xbf16>
    %c0_72 = arith.constant 0 : index
    %c0_73 = arith.constant 0 : index
    %812 = vector.load %arg12[%c0_72, %c0_73] : memref<8x128xbf16, #tpu.memory_space<vmem>>, vector<8x128xbf16>
    %cst_74 = arith.constant dense<0.000000e+00> : vector<48x128xf32>
    %813 = tpu.matmul %811, %812, %cst_74 {dimension_numbers = #tpu.dot_dimension_numbers<[1], [0], [0], [1], [0, 0, 1, 1], [], []>} : vector<48x8xbf16>, vector<8x128xbf16>, vector<48x128xf32> -> vector<48x128xf32>
    %814 = arith.addf %810, %813 : vector<48x128xf32>
    %c0_75 = arith.constant 0 : index
    %c0_76 = arith.constant 0 : index
    %815 = vector.load %arg13[%c0_75, %c0_76] : memref<1x128xf32, #tpu.memory_space<vmem>>, vector<1x128xf32>
    %816 = vector.broadcast %815 : vector<1x128xf32> to vector<48x128xf32>
    %817 = arith.addf %814, %816 : vector<48x128xf32>
    %818 = vector.extract_strided_slice %817 {offsets = [0, 0], sizes = [16, 128], strides = [1, 1]} : vector<48x128xf32> to vector<16x128xf32>
    %c0_77 = arith.constant 0 : index
    %c0_78 = arith.constant 0 : index
    %c0_79 = arith.constant 0 : index
    %c0_80 = arith.constant 0 : index
    %819 = vector.load %arg14[%c0_77, %c0_78, %c0_79, %c0_80] : memref<1x3x16x128xf32, #tpu.memory_space<vmem>>, vector<1x1x16x128xf32>
    %820 = vector.shape_cast %819 : vector<1x1x16x128xf32> to vector<16x128xf32>
    %821 = vector.shape_cast %818 : vector<16x128xf32> to vector<1x1x16x128xf32>
    tpu.vector_store %arg14[%c0_77, %c0_78, %c0_79, %c0_80], %821 {strides = array<i32>} : memref<1x3x16x128xf32, #tpu.memory_space<vmem>>, vector<1x1x16x128xf32>,
    %822 = vector.extract_strided_slice %817 {offsets = [16, 0], sizes = [16, 128], strides = [1, 1]} : vector<48x128xf32> to vector<16x128xf32>
    %c0_81 = arith.constant 0 : index
    %c1_82 = arith.constant 1 : index
    %c0_83 = arith.constant 0 : index
    %c0_84 = arith.constant 0 : index
    %823 = vector.load %arg14[%c0_81, %c1_82, %c0_83, %c0_84] : memref<1x3x16x128xf32, #tpu.memory_space<vmem>>, vector<1x1x16x128xf32>
    %824 = vector.shape_cast %823 : vector<1x1x16x128xf32> to vector<16x128xf32>
    %825 = vector.shape_cast %822 : vector<16x128xf32> to vector<1x1x16x128xf32>
    tpu.vector_store %arg14[%c0_81, %c1_82, %c0_83, %c0_84], %825 {strides = array<i32>} : memref<1x3x16x128xf32, #tpu.memory_space<vmem>>, vector<1x1x16x128xf32>,
    %826 = vector.extract_strided_slice %817 {offsets = [32, 0], sizes = [16, 128], strides = [1, 1]} : vector<48x128xf32> to vector<16x128xf32>
    %c0_85 = arith.constant 0 : index
    %c2_86 = arith.constant 2 : index
    %c0_87 = arith.constant 0 : index
    %c0_88 = arith.constant 0 : index
    %827 = vector.load %arg14[%c0_85, %c2_86, %c0_87, %c0_88] : memref<1x3x16x128xf32, #tpu.memory_space<vmem>>, vector<1x1x16x128xf32>
    %828 = vector.shape_cast %827 : vector<1x1x16x128xf32> to vector<16x128xf32>
    %829 = vector.shape_cast %826 : vector<16x128xf32> to vector<1x1x16x128xf32>
    tpu.vector_store %arg14[%c0_85, %c2_86, %c0_87, %c0_88], %829 {strides = array<i32>} : memref<1x3x16x128xf32, #tpu.memory_space<vmem>>, vector<1x1x16x128xf32>,
    return
  }
  func.func @transform_0(%arg0: i32, %arg1: i32) -> (i32, i32, i32, i32) {
    %c0_i32 = arith.constant 0 : i32
    %c0_i32_0 = arith.constant 0 : i32
    %c0_i32_1 = arith.constant 0 : i32
    %c0_i32_2 = arith.constant 0 : i32
    return %arg0, %c0_i32, %c0_i32_0, %c0_i32_1 : i32, i32, i32, i32
  }
  func.func @transform_1(%arg0: i32, %arg1: i32) -> (i32, i32, i32, i32) {
    %c0_i32 = arith.constant 0 : i32
    %c0_i32_0 = arith.constant 0 : i32
    %c0_i32_1 = arith.constant 0 : i32
    %c0_i32_2 = arith.constant 0 : i32
    %c0_i32_3 = arith.constant 0 : i32
    return %c0_i32, %c0_i32_0, %c0_i32_1, %c0_i32_2 : i32, i32, i32, i32
  }
  func.func @transform_2(%arg0: i32, %arg1: i32) -> (i32, i32) {
    %c0_i32 = arith.constant 0 : i32
    %c0_i32_0 = arith.constant 0 : i32
    %c0_i32_1 = arith.constant 0 : i32
    return %c0_i32, %c0_i32_0 : i32, i32
  }
  func.func @transform_3(%arg0: i32, %arg1: i32) -> (i32, i32) {
    %c0_i32 = arith.constant 0 : i32
    %c0_i32_0 = arith.constant 0 : i32
    %c0_i32_1 = arith.constant 0 : i32
    return %c0_i32, %c0_i32_0 : i32, i32
  }
  func.func @transform_4(%arg0: i32, %arg1: i32) -> (i32, i32, i32, i32) {
    %c0_i32 = arith.constant 0 : i32
    %c0_i32_0 = arith.constant 0 : i32
    %c0_i32_1 = arith.constant 0 : i32
    %c0_i32_2 = arith.constant 0 : i32
    return %arg0, %c0_i32, %c0_i32_0, %c0_i32_1 : i32, i32, i32, i32
  }
  func.func @transform_5(%arg0: i32, %arg1: i32) -> (i32, i32) {
    %c0_i32 = arith.constant 0 : i32
    %c0_i32_0 = arith.constant 0 : i32
    %c0_i32_1 = arith.constant 0 : i32
    return %c0_i32, %c0_i32_0 : i32, i32
  }
  func.func @transform_6(%arg0: i32, %arg1: i32) -> (i32, i32) {
    %c0_i32 = arith.constant 0 : i32
    %c0_i32_0 = arith.constant 0 : i32
    %c0_i32_1 = arith.constant 0 : i32
    return %c0_i32, %c0_i32_0 : i32, i32
  }
  func.func @transform_7(%arg0: i32, %arg1: i32) -> (i32, i32) {
    %c0_i32 = arith.constant 0 : i32
    %c0_i32_0 = arith.constant 0 : i32
    %c0_i32_1 = arith.constant 0 : i32
    return %c0_i32, %c0_i32_0 : i32, i32
  }
  func.func @transform_8(%arg0: i32, %arg1: i32) -> (i32, i32) {
    %c0_i32 = arith.constant 0 : i32
    %c0_i32_0 = arith.constant 0 : i32
    %c0_i32_1 = arith.constant 0 : i32
    return %c0_i32, %c0_i32_0 : i32, i32
  }
  func.func @transform_9(%arg0: i32, %arg1: i32) -> (i32, i32) {
    %c0_i32 = arith.constant 0 : i32
    %c0_i32_0 = arith.constant 0 : i32
    %c0_i32_1 = arith.constant 0 : i32
    return %c0_i32, %c0_i32_0 : i32, i32
  }
  func.func @transform_10(%arg0: i32, %arg1: i32) -> (i32, i32) {
    %c0_i32 = arith.constant 0 : i32
    %c0_i32_0 = arith.constant 0 : i32
    %c0_i32_1 = arith.constant 0 : i32
    return %c0_i32, %c0_i32_0 : i32, i32
  }
  func.func @transform_11(%arg0: i32, %arg1: i32) -> (i32, i32) {
    %c0_i32 = arith.constant 0 : i32
    %c0_i32_0 = arith.constant 0 : i32
    %c0_i32_1 = arith.constant 0 : i32
    return %c0_i32, %c0_i32_0 : i32, i32
  }
  func.func @transform_12(%arg0: i32, %arg1: i32) -> (i32, i32, i32, i32) {
    %c0_i32 = arith.constant 0 : i32
    %c0_i32_0 = arith.constant 0 : i32
    %c0_i32_1 = arith.constant 0 : i32
    return %arg0, %arg1, %c0_i32, %c0_i32_0 : i32, i32, i32, i32
  }
}

</mosaic_0001>

<bundles_post_ra>
// kernel: depthwise_rpn_forward.2
= control target key start
LH: loop header
LB: loop body
LE: loop exit
PB: predicated region body
PF: predicated region fallthrough
CT: control target
= control target key end

     0   :  { %s3542_s15 = smov 0   ;;  %s3943_s0 = inlined_call_operand.vmem [shape: bf16[2,8,8,4], index: 0, kind: input, shape index: {}]   ;;  %s3944_s1 = inlined_call_operand.vmem [shape: bf16[3,3,4,16], index: 1, kind: input, shape index: {}]   ;;  %s3945_s2 = inlined_call_operand.vmem [shape: f32[1,16], index: 2, kind: input, shape index: {}]   ;;  %s3946_s3 = inlined_call_operand.vmem [shape: f32[1,16], index: 3, kind: input, shape index: {}]   ;;  %s3947_s4 = inlined_call_operand.vmem [shape: f32[2,6,6,16], index: 4, kind: output, shape index: {}]  }
   0x1 LB: > { %s2931_s16 = sadd.s32 4294967295, %s3513_s15   ;;  %p2935_p0 = scmp.ge.s32.totalorder %s3513_s15, 1  ;;  %s3513_s15 = sphi %s3542_s15, %s14_s15  }
   0x2   : > { %p162_p1 = scmp.lt.s32.totalorder %s3513_s15, 3 }
   0x4   : > { %p163_p2 = pnand %p2935_p0, %p162_p1 }
   0x5   : > { %p188_p3 = scmp.lt.s32.totalorder (!%p163_p2), %s2931_s16, 1 }
   0x6   : > { %166 = sbr.rel (%p163_p2) target bundleno = 436 (0x1b4), region = 36 }
   0xb   : > { %v199_v0 = vld [vmem:[%s3944_s1] sm:$0x3]  ;;  %vm245_vm0 = vcmask 1041408   ;;  %v3515_v1 = vmov 0.0   ;;  %v2939_v3 = vld [vmem:[%s3944_s1 + $0x2] sm:$0x3] }
   0xc   : > { %3160 = vmatprep.subr.bf16.mxu1 %v3515_v1  ;;  %v3555_v2 = vsel %vm245_vm0, %v199_v0, 0  ;;  %3154 = vmatprep.subr.bf16.mxu0 %v3515_v1  ;;  %vm3516_vm1 = vmmov 0   ;;  %v3565_v4 = vsel %vm245_vm0, %v2939_v3, 0  ;;  %s3949_s16 = smov (!%p188_p3, %s2931_s16), 1  ;;  %v2941_v5 = vld [vmem:[%s3944_s1 + $0x6] sm:$0x3] }
   0xd   : > { %3161 = vmatpush3.bf16.msra.mxu1 %v3555_v2  ;;  %3162 = vmatprep.mubr.msk.bf16.mxu1 %vm3516_vm1, %v3515_v1  ;;  %s3045_s23 = sshll.u32 %s3949_s16, 5  ;;  %vm241_vm2 = vcmask 31744   ;;  %v3584_v6 = vsel %vm245_vm0, %v2941_v5, 0  ;;  %v2940_v11 = vld [vmem:[%s3944_s1 + $0x4] sm:$0x3]  ;;  %s3478_s17 = smul.u32 48, %s3949_s16 }
   0xe   : > { %3155 = vmatpush3.bf16.msra.mxu0 %v3565_v4  ;;  %3156 = vmatprep.mubr.msk.bf16.mxu0 %vm3516_vm1, %v3515_v1  ;;  %s3581_s26 = scalar_lea.vmem %s3943_s0, %s3045_s23  ;;  %v2943_v13 = vld [vmem:[%s3944_s1 + $0xa] sm:$0x3]  ;;  %v3601_v17 = vsel %vm245_vm0, %v2940_v11, 0  ;;  %v2942_v21 = vld [vmem:[%s3944_s1 + $0x8] sm:$0x3]  ;;  %vm694_vm3 = vcmask 128000  }
   0xf   : > { %3166 = vmatprep.subr.bf16.mxu0 %v3515_v1  ;;  %3172 = vmatprep.subr.bf16.mxu1 %v3515_v1  ;;  %v230_v7 = vld [vmem:[%s3581_s26] sm:$0xf]  ;;  %v2953_v14 = vld [vmem:[%s3581_s26 + $0x4] sm:$0xf]  ;;  %v2958_v15 = vld [vmem:[%s3581_s26 + $0x8] sm:$0xf]  ;;  %s3916_s22 = scalar_lea.vmem %s3947_s4, %s3478_s17 }
  0x10   : > { %v2949_v8 = vcombine.low %v230_v7, %v230_v7  ;;  %3163 = vmatmul.mubr.msk.bf16.vlgmr.msra.gmra.mxu1 %vm241_vm2, %v230_v7  ;;  %v3604_v18 = vsel %vm245_vm0, %v2943_v13, 0  ;;  %v2955_v19 = vcombine.low %v2953_v14, %v2953_v14  ;;  %v2960_v20 = vcombine.low %v2958_v15, %v2958_v15  ;;  %v2945_v22 = vld [vmem:[%s3944_s1 + $0xe] sm:$0x3]  ;;  %v2963_v27 = vld [vmem:[%s3581_s26 + $0x4] sm:$0xf] }
  0x11   : > { %3173 = vmatpush3.bf16.msra.mxu1 %v3584_v6  ;;  %3174 = vmatprep.mubr.msk.bf16.mxu1 %vm3516_vm1, %v3515_v1  ;;  %v3624_v28 = vsel %vm245_vm0, %v2942_v21, 0  ;;  %v3627_v29 = vsel %vm245_vm0, %v2945_v22, 0  ;;  %v2964_v30 = vcombine.low %v2963_v27, %v2963_v27  ;;  %v2944_v35 = vld [vmem:[%s3944_s1 + $0xc] sm:$0x3]  ;;  %v2946_v42 = vld [vmem:[%s3944_s1 + $0x10] sm:$0x3] }
  0x12   : > { %v235_v9 = vshrl.u32 %v2949_v8, 16  ;;  %v237_v10 = vshll.u32 %v2949_v8, 16  ;;  %3184 = vmatprep.subr.bf16.mxu1 %v3515_v1  ;;  %v335_v23 = vrot.slane %v2949_v8, 1  ;;  %v438_v24 = vshll.u32 %v2955_v19, 16  ;;  %v2968_v44 = vld [vmem:[%s3581_s26 + $0x8] sm:$0xf] }
  0x13   : > { %v489_v25 = vrot.slane %v2955_v19, 1  ;;  %v592_v26 = vshll.u32 %v2960_v20, 16  ;;  %v436_v31 = vshrl.u32 %v2955_v19, 16  ;;  %v590_v33 = vshrl.u32 %v2960_v20, 16  ;;  %v2973_v53 = vld [vmem:[%s3581_s26 + $0xc] sm:$0xf] }
  0x14   : > { %v239_v12 = vrot.slane %v237_v10, 1  ;;  %v440_v32 = vrot.slane %v438_v24, 1  ;;  %v703_v38 = vshll.u32 %v2964_v30, 16  ;;  %v3643_v39 = vsel %vm245_vm0, %v2944_v35, 0  ;;  %v2979_v58 = vld [vmem:[%s3581_s26 + $0x8] sm:$0xf] }
  0x15   : > { %v594_v34 = vrot.slane %v592_v26, 1  ;;  %v701_v40 = vshrl.u32 %v2964_v30, 16  ;;  %v3660_v45 = vsel %vm245_vm0, %v2946_v42, 0  ;;  %v2970_v46 = vcombine.low %v2968_v44, %v2968_v44  ;;  %v2984_v7 = vld [vmem:[%s3581_s26 + $0xc] sm:$0xf] }
  0x16   : > { %v240_v16 = vor.u32 %v239_v12, %v235_v9  ;;  %v441_v36 = vor.u32 %v440_v32, %v436_v31  ;;  %v705_v41 = vrot.slane %v703_v38, 1  ;;  %v643_v47 = vrot.slane %v2960_v20, 1  ;;  %v2989_v8 = vld [vmem:[%s3581_s26 + $0x10] sm:$0xf] }
  0x17   : > { %v595_v37 = vor.u32 %v594_v34, %v590_v33  ;;  %v793_v48 = vrot.slane %v2964_v30, 1  ;;  %v889_v49 = vshll.u32 %v2970_v46, 16  ;;  %v887_v50 = vshrl.u32 %v2970_v46, 16  ;;  %v3000_v31 = vld [vmem:[%s3581_s26 + $0x10] sm:$0xf] }
  0x18   : > { %3157 = vmatmul.mubr.msk.bf16.vlgmr.msra.gmra.mxu0 %vm241_vm2, %v240_v16  ;;  %3175 = vmatmul.mubr.msk.bf16.vlgmr.msra.gmra.mxu1 %vm241_vm2, %v2953_v14  ;;  %v706_v43 = vor.u32 %v705_v41, %v701_v40  ;;  %v2975_v54 = vcombine.low %v2973_v53, %v2973_v53  ;;  %v937_v57 = vrot.slane %v2970_v46, 1  ;;  %v2980_v61 = vcombine.low %v2979_v58, %v2979_v58  ;;  %v3005_v40 = vld [vmem:[%s3581_s26 + $0x14] sm:$0xf]  ;;  %v3011_v46 = vld [vmem:[%s3581_s26 + $0x10] sm:$0xf] }
  0x19   : > { %3167 = vmatpush3.bf16.msra.mxu0 %v3601_v17  ;;  %3168 = vmatprep.mubr.msk.bf16.mxu0 %vm3516_vm1, %v3515_v1  ;;  %v891_v51 = vrot.slane %v889_v49, 1  ;;  %v2986_v9 = vcombine.low %v2984_v7, %v2984_v7  ;;  %v2991_v10 = vcombine.low %v2989_v8, %v2989_v8  ;;  %v3002_v32 = vcombine.low %v3000_v31, %v3000_v31 }
  0x1a   : > { %3178 = vmatprep.subr.bf16.mxu0 %v3515_v1  ;;  %3185 = vmatpush3.bf16.msra.mxu1 %v3604_v18  ;;  %v1034_v55 = vshll.u32 %v2975_v54, 16  ;;  %v1082_v56 = vrot.slane %v2975_v54, 1  ;;  %v1032_v59 = vshrl.u32 %v2975_v54, 16  ;;  %v1139_v63 = vshll.u32 %v2980_v61, 16 }
  0x1b   : > { %3186 = vmatprep.mubr.msk.bf16.mxu1 %vm3516_vm1, %v3515_v1  ;;  %3196 = vmatprep.subr.bf16.mxu1 %v3515_v1  ;;  %v892_v52 = vor.u32 %v891_v51, %v887_v50  ;;  %v1137_v0 = vshrl.u32 %v2980_v61, 16  ;;  %v1229_v11 = vrot.slane %v2980_v61, 1  ;;  %v1325_v12 = vshll.u32 %v2986_v9, 16 }
  0x1c   : > { %v1036_v60 = vrot.slane %v1034_v55, 1  ;;  %v1141_v3 = vrot.slane %v1139_v63, 1  ;;  %v1373_v13 = vrot.slane %v2986_v9, 1  ;;  %v1470_v14 = vshll.u32 %v2991_v10, 16  ;;  %v3016_v55 = vld [vmem:[%s3581_s26 + $0x14] sm:$0xf] }
  0x1d   : > { %v1323_v19 = vshrl.u32 %v2986_v9, 16  ;;  %v1327_v20 = vrot.slane %v1325_v12, 1  ;;  %v1468_v21 = vshrl.u32 %v2991_v10, 16  ;;  %v1518_v33 = vrot.slane %v2991_v10, 1  ;;  %v3027_v63 = vld [vmem:[%s3581_s26 + $0x14] sm:$0xf] }
  0x1e   : > { %v1037_v62 = vor.u32 %v1036_v60, %v1032_v59  ;;  %v1142_v5 = vor.u32 %v1141_v3, %v1137_v0  ;;  %v1472_v22 = vrot.slane %v1470_v14, 1  ;;  %v1761_v35 = vshll.u32 %v3002_v32, 16 }
  0x1f   : > { %v3007_v41 = vcombine.low %v3005_v40, %v3005_v40  ;;  %v3012_v49 = vcombine.low %v3011_v46, %v3011_v46 }
  0x20   : > { %3169 = vmatmul.mubr.msk.bf16.vlgmr.msra.gmra.mxu0 %vm241_vm2, %v335_v23  ;;  %3187 = vmatmul.mubr.msk.bf16.vlgmr.msra.gmra.mxu1 %vm241_vm2, %v489_v25  ;;  %v1328_v23 = vor.u32 %v1327_v20, %v1323_v19  ;;  %v1473_v24 = vor.u32 %v1472_v22, %v1468_v21 }
  0x21   : > { %3179 = vmatpush3.bf16.msra.mxu0 %v3624_v28  ;;  %3180 = vmatprep.mubr.msk.bf16.mxu0 %vm3516_vm1, %v3515_v1  ;;  %v1906_v42 = vshll.u32 %v3007_v41, 16  ;;  %v2011_v51 = vshll.u32 %v3012_v49, 16  ;;  %v2101_v59 = vrot.slane %v3012_v49, 1 }
  0x22   : > { %3190 = vmatprep.subr.bf16.mxu0 %v3515_v1  ;;  %3197 = vmatpush3.bf16.msra.mxu1 %v3627_v29 }
  0x23   : > { %3198 = vmatprep.mubr.msk.bf16.mxu1 %vm3516_vm1, %v3515_v1  ;;  %3208 = vmatprep.subr.bf16.mxu1 %v3515_v1 }
  0x28   : > { %3181 = vmatmul.mubr.msk.bf16.vlgmr.msra.gmra.mxu0 %vm241_vm2, %v441_v36  ;;  %3199 = vmatmul.mubr.msk.bf16.vlgmr.msra.gmra.mxu1 %vm241_vm2, %v595_v37  ;;  %v1759_v36 = vshrl.u32 %v3002_v32, 16  ;;  %v1763_v37 = vrot.slane %v1761_v35, 1 }
  0x29   : > { %3191 = vmatpush3.bf16.msra.mxu0 %v3643_v39  ;;  %3192 = vmatprep.mubr.msk.bf16.mxu0 %vm3516_vm1, %v3515_v1 }
  0x2a   : > { %3202 = vmatprep.subr.bf16.mxu0 %v3515_v1  ;;  %3209 = vmatpush3.bf16.msra.mxu1 %v3565_v4  ;;  %v1764_v38 = vor.u32 %v1763_v37, %v1759_v36 }
  0x2b   : > { %3210 = vmatprep.mubr.msk.bf16.mxu1 %vm3516_vm1, %v3515_v1  ;;  %3220 = vmatprep.subr.bf16.mxu1 %v3515_v1 }
  0x30   : > { %3193 = vmatmul.mubr.msk.bf16.vlgmr.msra.gmra.mxu0 %vm241_vm2, %v2958_v15  ;;  %3211 = vmatmul.mubr.msk.bf16.vlgmr.msra.gmra.mxu1 %vm241_vm2, %v706_v43  ;;  %v2995_v15 = vld [vmem:[%s3581_s26 + $0xc] sm:$0xf]  ;;  %v1954_v43 = vrot.slane %v3007_v41, 1 }
  0x31   : > { %3203 = vmatpush3.bf16.msra.mxu0 %v3660_v45  ;;  %3204 = vmatprep.mubr.msk.bf16.mxu0 %vm3516_vm1, %v3515_v1  ;;  %v2996_v16 = vcombine.low %v2995_v15, %v2995_v15 }
  0x32   : > { %3214 = vmatprep.subr.bf16.mxu0 %v3515_v1  ;;  %3221 = vmatpush3.bf16.msra.mxu1 %v3601_v17 }
  0x33   : > { %3222 = vmatprep.mubr.msk.bf16.mxu1 %vm3516_vm1, %v3515_v1  ;;  %3232 = vmatprep.subr.bf16.mxu1 %v3515_v1  ;;  %v1575_v25 = vshll.u32 %v2996_v16, 16  ;;  %v1573_v26 = vshrl.u32 %v2996_v16, 16  ;;  %v1665_v34 = vrot.slane %v2996_v16, 1 }
  0x38   : > { %3205 = vmatmul.mubr.msk.bf16.vlgmr.msra.gmra.mxu0 %vm241_vm2, %v643_v47  ;;  %3223 = vmatmul.mubr.msk.bf16.vlgmr.msra.gmra.mxu1 %vm241_vm2, %v793_v48  ;;  %v1904_v47 = vshrl.u32 %v3007_v41, 16  ;;  %v1908_v48 = vrot.slane %v1906_v42, 1 }
  0x39   : > { %3215 = vmatpush3.bf16.msra.mxu0 %v3555_v2  ;;  %3216 = vmatprep.mubr.msk.bf16.mxu0 %vm3516_vm1, %v3515_v1 }
  0x3a   : > { %3226 = vmatprep.subr.bf16.mxu0 %v3515_v1  ;;  %3233 = vmatpush3.bf16.msra.mxu1 %v3624_v28  ;;  %v1909_v50 = vor.u32 %v1908_v48, %v1904_v47 }
  0x3b   : > { %3234 = vmatprep.mubr.msk.bf16.mxu1 %vm3516_vm1, %v3515_v1  ;;  %3244 = vmatprep.subr.bf16.mxu1 %v3515_v1 }
  0x40   : > { %3217 = vmatmul.mubr.msk.bf16.vlgmr.msra.gmra.mxu0 %vm241_vm2, %v2963_v27  ;;  %3235 = vmatmul.mubr.msk.bf16.vlgmr.msra.gmra.mxu1 %vm241_vm2, %v892_v52  ;;  %v1577_v27 = vrot.slane %v1575_v25, 1  ;;  %v2009_v52 = vshrl.u32 %v3012_v49, 16 }
  0x41   : > { %3227 = vmatpush3.bf16.msra.mxu0 %v3584_v6  ;;  %3228 = vmatprep.mubr.msk.bf16.mxu0 %vm3516_vm1, %v3515_v1 }
  0x42   : > { %3238 = vmatprep.subr.bf16.mxu0 %v3515_v1  ;;  %3245 = vmatpush3.bf16.msra.mxu1 %v3643_v39  ;;  %v1578_v30 = vor.u32 %v1577_v27, %v1573_v26 }
  0x43   : > { %3246 = vmatprep.mubr.msk.bf16.mxu1 %vm3516_vm1, %v3515_v1  ;;  %3256 = vmatprep.subr.bf16.mxu1 %v3515_v1 }
  0x48   : > { %3229 = vmatmul.mubr.msk.bf16.vlgmr.msra.gmra.mxu0 %vm241_vm2, %v2968_v44  ;;  %3247 = vmatmul.mubr.msk.bf16.vlgmr.msra.gmra.mxu1 %vm241_vm2, %v2973_v53  ;;  %v1809_v44 = vrot.slane %v3002_v32, 1  ;;  %v2013_v53 = vrot.slane %v2011_v51, 1 }
  0x49   : > { %3239 = vmatpush3.bf16.msra.mxu0 %v3604_v18  ;;  %3240 = vmatprep.mubr.msk.bf16.mxu0 %vm3516_vm1, %v3515_v1 }
  0x4a   : > { %3250 = vmatprep.subr.bf16.mxu0 %v3515_v1  ;;  %3257 = vmatpush3.bf16.msra.mxu1 %v3660_v45  ;;  %v2014_v54 = vor.u32 %v2013_v53, %v2009_v52 }
  0x4b   : > { %3258 = vmatprep.mubr.msk.bf16.mxu1 %vm3516_vm1, %v3515_v1  ;;  %3268 = vmatprep.subr.bf16.mxu1 %v3515_v1 }
  0x50   : > { %3241 = vmatmul.mubr.msk.bf16.vlgmr.msra.gmra.mxu0 %vm241_vm2, %v937_v57  ;;  %3259 = vmatmul.mubr.msk.bf16.vlgmr.msra.gmra.mxu1 %vm241_vm2, %v1082_v56  ;;  %v3021_v56 = vld [vmem:[%s3581_s26 + $0x18] sm:$0xf]  ;;  %v3018_v57 = vcombine.low %v3016_v55, %v3016_v55 }
  0x51   : > { %3251 = vmatpush3.bf16.msra.mxu0 %v3627_v29  ;;  %3252 = vmatprep.mubr.msk.bf16.mxu0 %vm3516_vm1, %v3515_v1 }
  0x52   : > { %3262 = vmatprep.subr.bf16.mxu0 %v3515_v1  ;;  %3269 = vmatpush3.bf16.msra.mxu1 %v3555_v2  ;;  %v2197_v60 = vshll.u32 %v3018_v57, 16  ;;  %v2245_v61 = vrot.slane %v3018_v57, 1  ;;  %v2195_v0 = vshrl.u32 %v3018_v57, 16 }
  0x53   : > { %3270 = vmatprep.mubr.msk.bf16.mxu1 %vm3516_vm1, %v3515_v1  ;;  %3280 = vmatprep.subr.bf16.mxu1 %v3515_v1 }
  0x54   : > { %v2199_v3 = vrot.slane %v2197_v60, 1 }
  0x56   : > { %v2200_v9 = vor.u32 %v2199_v3, %v2195_v0 }
  0x58   : > { %3253 = vmatmul.mubr.msk.bf16.vlgmr.msra.gmra.mxu0 %vm241_vm2, %v1037_v62  ;;  %3271 = vmatmul.mubr.msk.bf16.vlgmr.msra.gmra.mxu1 %vm241_vm2, %v2979_v58  ;;  %v3023_v58 = vcombine.low %v3021_v56, %v3021_v56 }
  0x59   : > { %3263 = vmatpush3.bf16.msra.mxu0 %v3565_v4  ;;  %3264 = vmatprep.mubr.msk.bf16.mxu0 %vm3516_vm1, %v3515_v1 }
  0x5a   : > { %3274 = vmatprep.subr.bf16.mxu0 %v3515_v1  ;;  %3281 = vmatpush3.bf16.msra.mxu1 %v3584_v6  ;;  %v2342_v62 = vshll.u32 %v3023_v58, 16 }
  0x5b   : > { %3282 = vmatprep.mubr.msk.bf16.mxu1 %vm3516_vm1, %v3515_v1  ;;  %3292 = vmatprep.subr.bf16.mxu1 %v3515_v1 }
  0x60   : > { %3265 = vmatmul.mubr.msk.bf16.vlgmr.msra.gmra.mxu0 %vm241_vm2, %v1142_v5  ;;  %3283 = vmatmul.mubr.msk.bf16.vlgmr.msra.gmra.mxu1 %vm241_vm2, %v2984_v7  ;;  %v2340_v5 = vshrl.u32 %v3023_v58, 16  ;;  %v2344_v7 = vrot.slane %v2342_v62, 1 }
  0x61   : > { %3275 = vmatpush3.bf16.msra.mxu0 %v3601_v17  ;;  %3276 = vmatprep.mubr.msk.bf16.mxu0 %vm3516_vm1, %v3515_v1 }
  0x62   : > { %3286 = vmatprep.subr.bf16.mxu0 %v3515_v1  ;;  %3293 = vmatpush3.bf16.msra.mxu1 %v3604_v18  ;;  %v2345_v10 = vor.u32 %v2344_v7, %v2340_v5 }
  0x63   : > { %3294 = vmatprep.mubr.msk.bf16.mxu1 %vm3516_vm1, %v3515_v1  ;;  %3304 = vmatprep.subr.bf16.mxu1 %v3515_v1 }
  0x68   : > { %3277 = vmatmul.mubr.msk.bf16.vlgmr.msra.gmra.mxu0 %vm241_vm2, %v1229_v11  ;;  %3295 = vmatmul.mubr.msk.bf16.vlgmr.msra.gmra.mxu1 %vm241_vm2, %v1373_v13 }
  0x69   : > { %3287 = vmatpush3.bf16.msra.mxu0 %v3624_v28  ;;  %3288 = vmatprep.mubr.msk.bf16.mxu0 %vm3516_vm1, %v3515_v1 }
  0x6a   : > { %3298 = vmatprep.subr.bf16.mxu0 %v3515_v1  ;;  %3305 = vmatpush3.bf16.msra.mxu1 %v3627_v29 }
  0x6b   : > { %3306 = vmatprep.mubr.msk.bf16.mxu1 %vm3516_vm1, %v3515_v1  ;;  %3316 = vmatprep.subr.bf16.mxu1 %v3515_v1 }
  0x70   : > { %3289 = vmatmul.mubr.msk.bf16.vlgmr.msra.gmra.mxu0 %vm241_vm2, %v1328_v23  ;;  %3307 = vmatmul.mubr.msk.bf16.vlgmr.msra.gmra.mxu1 %vm241_vm2, %v1473_v24  ;;  %v3037_v24 = vld [vmem:[%s3581_s26 + $0x1c] sm:$0xf] }
  0x71   : > { %3299 = vmatpush3.bf16.msra.mxu0 %v3643_v39  ;;  %3300 = vmatprep.mubr.msk.bf16.mxu0 %vm3516_vm1, %v3515_v1  ;;  %v3039_v27 = vcombine.low %v3037_v24, %v3037_v24 }
  0x72   : > { %3310 = vmatprep.subr.bf16.mxu0 %v3515_v1  ;;  %3317 = vmatpush3.bf16.msra.mxu1 %v3565_v4 }
  0x73   : > { %3318 = vmatprep.mubr.msk.bf16.mxu1 %vm3516_vm1, %v3515_v1  ;;  %3328 = vmatprep.subr.bf16.mxu1 %v3515_v1  ;;  %v2778_v32 = vshll.u32 %v3039_v27, 16 }
  0x78   : > { %3301 = vmatmul.mubr.msk.bf16.vlgmr.msra.gmra.mxu0 %vm241_vm2, %v2989_v8  ;;  %3319 = vmatmul.mubr.msk.bf16.vlgmr.msra.gmra.mxu1 %vm241_vm2, %v1578_v30  ;;  %v3028_v8 = vcombine.low %v3027_v63, %v3027_v63 }
  0x79   : > { %3311 = vmatpush3.bf16.msra.mxu0 %v3660_v45  ;;  %3312 = vmatprep.mubr.msk.bf16.mxu0 %vm3516_vm1, %v3515_v1 }
  0x7a   : > { %3322 = vmatprep.subr.bf16.mxu0 %v3515_v1  ;;  %3329 = vmatpush3.bf16.msra.mxu1 %v3601_v17  ;;  %v2447_v11 = vshll.u32 %v3028_v8, 16  ;;  %v2445_v12 = vshrl.u32 %v3028_v8, 16  ;;  %v2537_v19 = vrot.slane %v3028_v8, 1 }
  0x7b   : > { %3330 = vmatprep.mubr.msk.bf16.mxu1 %vm3516_vm1, %v3515_v1  ;;  %3340 = vmatprep.subr.bf16.mxu1 %v3515_v1 }
  0x7c   : > { %v2449_v13 = vrot.slane %v2447_v11, 1 }
  0x7e   : > { %v2450_v14 = vor.u32 %v2449_v13, %v2445_v12 }
  0x80   : > { %3313 = vmatmul.mubr.msk.bf16.vlgmr.msra.gmra.mxu0 %vm241_vm2, %v1518_v33  ;;  %3331 = vmatmul.mubr.msk.bf16.vlgmr.msra.gmra.mxu1 %vm241_vm2, %v1665_v34  ;;  %v2826_v33 = vrot.slane %v3039_v27, 1 }
  0x81   : > { %3323 = vmatpush3.bf16.msra.mxu0 %v3555_v2  ;;  %3324 = vmatprep.mubr.msk.bf16.mxu0 %vm3516_vm1, %v3515_v1 }
  0x82   : > { %3334 = vmatprep.subr.bf16.mxu0 %v3515_v1  ;;  %3341 = vmatpush3.bf16.msra.mxu1 %v3624_v28 }
  0x83   : > { %3342 = vmatprep.mubr.msk.bf16.mxu1 %vm3516_vm1, %v3515_v1  ;;  %3352 = vmatprep.subr.bf16.mxu1 %v3515_v1 }
  0x88   : > { %3325 = vmatmul.mubr.msk.bf16.vlgmr.msra.gmra.mxu0 %vm241_vm2, %v2995_v15  ;;  %3343 = vmatmul.mubr.msk.bf16.vlgmr.msra.gmra.mxu1 %vm241_vm2, %v1764_v38  ;;  %v3032_v15 = vld [vmem:[%s3581_s26 + $0x18] sm:$0xf]  ;;  %v2780_v38 = vrot.slane %v2778_v32, 1 }
  0x89   : > { %3335 = vmatpush3.bf16.msra.mxu0 %v3584_v6  ;;  %3336 = vmatprep.mubr.msk.bf16.mxu0 %vm3516_vm1, %v3515_v1  ;;  %v3034_v16 = vcombine.low %v3032_v15, %v3032_v15 }
  0x8a   : > { %3346 = vmatprep.subr.bf16.mxu0 %v3515_v1  ;;  %3353 = vmatpush3.bf16.msra.mxu1 %v3643_v39 }
  0x8b   : > { %3354 = vmatprep.mubr.msk.bf16.mxu1 %vm3516_vm1, %v3515_v1  ;;  %3364 = vmatprep.subr.bf16.mxu1 %v3515_v1  ;;  %v2633_v20 = vshll.u32 %v3034_v16, 16  ;;  %v2631_v21 = vshrl.u32 %v3034_v16, 16  ;;  %v2681_v35 = vrot.slane %v3034_v16, 1 }
  0x8d   : > { %v2635_v22 = vrot.slane %v2633_v20, 1 }
  0x90   : > { %3337 = vmatmul.mubr.msk.bf16.vlgmr.msra.gmra.mxu0 %vm241_vm2, %v3000_v31  ;;  %3355 = vmatmul.mubr.msk.bf16.vlgmr.msra.gmra.mxu1 %vm241_vm2, %v3005_v40 }
  0x91   : > { %3347 = vmatpush3.bf16.msra.mxu0 %v3604_v18  ;;  %3348 = vmatprep.mubr.msk.bf16.mxu0 %vm3516_vm1, %v3515_v1 }
  0x92   : > { %3358 = vmatprep.subr.bf16.mxu0 %v3515_v1  ;;  %3365 = vmatpush3.bf16.msra.mxu1 %v3660_v45 }
  0x93   : > { %3366 = vmatprep.mubr.msk.bf16.mxu1 %vm3516_vm1, %v3515_v1  ;;  %3376 = vmatprep.subr.bf16.mxu1 %v3515_v1 }
  0x98   : > { %3349 = vmatmul.mubr.msk.bf16.vlgmr.msra.gmra.mxu0 %vm241_vm2, %v1809_v44  ;;  %3367 = vmatmul.mubr.msk.bf16.vlgmr.msra.gmra.mxu1 %vm241_vm2, %v1954_v43 }
  0x99   : > { %3359 = vmatpush3.bf16.msra.mxu0 %v3627_v29  ;;  %3360 = vmatprep.mubr.msk.bf16.mxu0 %vm3516_vm1, %v3515_v1 }
  0x9a   : > { %3370 = vmatprep.subr.bf16.mxu0 %v3515_v1  ;;  %3377 = vmatpush3.bf16.msra.mxu1 %v3555_v2 }
  0x9b   : > { %3378 = vmatprep.mubr.msk.bf16.mxu1 %vm3516_vm1, %v3515_v1  ;;  %3388 = vmatprep.subr.bf16.mxu1 %v3515_v1 }
  0xa0   : > { %3361 = vmatmul.mubr.msk.bf16.vlgmr.msra.gmra.mxu0 %vm241_vm2, %v1909_v50  ;;  %3379 = vmatmul.mubr.msk.bf16.vlgmr.msra.gmra.mxu1 %vm241_vm2, %v3011_v46 }
  0xa1   : > { %3371 = vmatpush3.bf16.msra.mxu0 %v3565_v4  ;;  %3372 = vmatprep.mubr.msk.bf16.mxu0 %vm3516_vm1, %v3515_v1 }
  0xa2   : > { %3382 = vmatprep.subr.bf16.mxu0 %v3515_v1  ;;  %3389 = vmatpush3.bf16.msra.mxu1 %v3584_v6 }
  0xa3   : > { %3390 = vmatprep.mubr.msk.bf16.mxu1 %vm3516_vm1, %v3515_v1  ;;  %3400 = vmatprep.subr.bf16.mxu1 %v3515_v1 }
  0xa8   : > { %3373 = vmatmul.mubr.msk.bf16.vlgmr.msra.gmra.mxu0 %vm241_vm2, %v2014_v54  ;;  %3391 = vmatmul.mubr.msk.bf16.vlgmr.msra.gmra.mxu1 %vm241_vm2, %v3016_v55 }
  0xa9   : > { %3383 = vmatpush3.bf16.msra.mxu0 %v3601_v17  ;;  %3384 = vmatprep.mubr.msk.bf16.mxu0 %vm3516_vm1, %v3515_v1 }
  0xaa   : > { %3394 = vmatprep.subr.bf16.mxu0 %v3515_v1  ;;  %3401 = vmatpush3.bf16.msra.mxu1 %v3604_v18 }
  0xab   : > { %3402 = vmatprep.mubr.msk.bf16.mxu1 %vm3516_vm1, %v3515_v1  ;;  %3412 = vmatprep.subr.bf16.mxu1 %v3515_v1 }
  0xb0   : > { %3385 = vmatmul.mubr.msk.bf16.vlgmr.msra.gmra.mxu0 %vm241_vm2, %v2101_v59  ;;  %3403 = vmatmul.mubr.msk.bf16.vlgmr.msra.gmra.mxu1 %vm241_vm2, %v2245_v61 }
  0xb1   : > { %3395 = vmatpush3.bf16.msra.mxu0 %v3624_v28  ;;  %3396 = vmatprep.mubr.msk.bf16.mxu0 %vm3516_vm1, %v3515_v1 }
  0xb2   : > { %3406 = vmatprep.subr.bf16.mxu0 %v3515_v1  ;;  %3413 = vmatpush3.bf16.msra.mxu1 %v3627_v29 }
  0xb3   : > { %3414 = vmatprep.mubr.msk.bf16.mxu1 %vm3516_vm1, %v3515_v1  ;;  %3424 = vmatprep.subr.bf16.mxu1 %v3515_v1 }
  0xb8   : > { %3397 = vmatmul.mubr.msk.bf16.vlgmr.msra.gmra.mxu0 %vm241_vm2, %v2200_v9  ;;  %3415 = vmatmul.mubr.msk.bf16.vlgmr.msra.gmra.mxu1 %vm241_vm2, %v2345_v10  ;;  %v3903_v10 = vld [vmem:[%s3945_s2] ss:$0 sm:$0xff] }
  0xb9   : > { %3407 = vmatpush3.bf16.msra.mxu0 %v3643_v39  ;;  %3408 = vmatprep.mubr.msk.bf16.mxu0 %vm3516_vm1, %v3515_v1 }
  0xba   : > { %3418 = vmatprep.subr.bf16.mxu0 %v3515_v1  ;;  %3425 = vmatpush3.bf16.msra.mxu1 %v3565_v4  ;;  %v2390_v4 = vrot.slane %v3023_v58, 1 }
  0xbb   : > { %3426 = vmatprep.mubr.msk.bf16.mxu1 %vm3516_vm1, %v3515_v1  ;;  %3436 = vmatprep.subr.bf16.mxu1 %v3515_v1 }
  0xc0   : > { %3409 = vmatmul.mubr.msk.bf16.vlgmr.msra.gmra.mxu0 %vm241_vm2, %v3021_v56  ;;  %3427 = vmatmul.mubr.msk.bf16.vlgmr.msra.gmra.mxu1 %vm241_vm2, %v2450_v14  ;;  %v3909_v14 = vld [vmem:[%s3946_s3] ss:$0 sm:$0xff] }
  0xc1   : > { %3419 = vmatpush3.bf16.msra.mxu0 %v3660_v45  ;;  %3420 = vmatprep.mubr.msk.bf16.mxu0 %vm3516_vm1, %v3515_v1 }
  0xc2   : > { %3430 = vmatprep.subr.bf16.mxu0 %v3515_v1  ;;  %3437 = vmatpush3.bf16.msra.mxu1 %v3601_v17  ;;  %v2636_v17 = vor.u32 %v2635_v22, %v2631_v21 }
  0xc3   : > { %3438 = vmatprep.mubr.msk.bf16.mxu1 %vm3516_vm1, %v3515_v1  ;;  %3448 = vmatprep.subr.bf16.mxu1 %v3515_v1 }
  0xc8   : > { %3421 = vmatmul.mubr.msk.bf16.vlgmr.msra.gmra.mxu0 %vm241_vm2, %v2390_v4  ;;  %3439 = vmatmul.mubr.msk.bf16.vlgmr.msra.gmra.mxu1 %vm241_vm2, %v2537_v19 }
  0xc9   : > { %3431 = vmatpush3.bf16.msra.mxu0 %v3555_v2  ;;  %3432 = vmatprep.mubr.msk.bf16.mxu0 %vm3516_vm1, %v3515_v1 }
  0xca   : > { %3442 = vmatprep.subr.bf16.mxu0 %v3515_v1  ;;  %3449 = vmatpush3.bf16.msra.mxu1 %v3624_v28 }
  0xcb   : > { %3450 = vmatprep.mubr.msk.bf16.mxu1 %vm3516_vm1, %v3515_v1  ;;  %3460 = vmatprep.subr.bf16.mxu1 %v3515_v1 }
  0xd0   : > { %3433 = vmatmul.mubr.msk.bf16.vlgmr.msra.gmra.mxu0 %vm241_vm2, %v3027_v63  ;;  %v329_v23 = vpop.f32.mrf.mxu1  ;;  %3451 = vmatmul.mubr.msk.bf16.vlgmr.msra.gmra.mxu1 %vm241_vm2, %v2636_v17 }
  0xd1   : > { %3443 = vmatpush3.bf16.msra.mxu0 %v3584_v6  ;;  %3444 = vmatprep.mubr.msk.bf16.mxu0 %vm3516_vm1, %v3515_v1 }
  0xd2   : > { %v3164_v2 = vpop.f32.mrf.mxu1  ;;  %3454 = vmatprep.subr.bf16.mxu0 %v3515_v1  ;;  %3461 = vmatpush3.bf16.msra.mxu1 %v3643_v39 }
  0xd3   : > { %3462 = vmatprep.mubr.msk.bf16.mxu1 %vm3516_vm1, %v3515_v1  ;;  %3472 = vmatprep.subr.bf16.mxu1 %v3515_v1 }
  0xd4   : > { %v332_v28 = vpop.f32.mrf.mxu1 }
  0xd6   : > { %v3165_v25 = vpop.f32.mrf.mxu1 }
  0xd8   : > { %v283_v26 = vpop.f32.mrf.mxu0  ;;  %3445 = vmatmul.mubr.msk.bf16.vlgmr.msra.gmra.mxu0 %vm241_vm2, %v3032_v15  ;;  %v425_v6 = vpop.f32.mrf.mxu1  ;;  %3463 = vmatmul.mubr.msk.bf16.vlgmr.msra.gmra.mxu1 %vm241_vm2, %v3037_v24 }
  0xd9   : > { %3455 = vmatpush3.bf16.msra.mxu0 %v3604_v18  ;;  %3456 = vmatprep.mubr.msk.bf16.mxu0 %vm3516_vm1, %v3515_v1  ;;  %v2776_v18 = vshrl.u32 %v3039_v27, 16  ;;  %v330_v47 = vadd.f32 %v329_v23, %v283_v26 }
  0xda   : > { %v3158_v39 = vpop.f32.mrf.mxu0  ;;  %v3176_v30 = vpop.f32.mrf.mxu1  ;;  %3466 = vmatprep.subr.bf16.mxu0 %v3515_v1  ;;  %3473 = vmatpush3.bf16.msra.mxu1 %v3660_v45 }
  0xdb   : > { %3474 = vmatprep.mubr.msk.bf16.mxu1 %vm3516_vm1, %v3515_v1  ;;  %v2781_v46 = vor.u32 %v2780_v38, %v2776_v18 }
  0xdc   : > { %v286_v31 = vpop.f32.mrf.mxu0  ;;  %v428_v34 = vpop.f32.mrf.mxu1 }
  0xde   : > { %v3159_v36 = vpop.f32.mrf.mxu0  ;;  %v3177_v37 = vpop.f32.mrf.mxu1 }
  0xe0   : > { %v376_v40 = vpop.f32.mrf.mxu0  ;;  %3457 = vmatmul.mubr.msk.bf16.vlgmr.msra.gmra.mxu0 %vm241_vm2, %v2681_v35  ;;  %v530_v41 = vpop.f32.mrf.mxu1  ;;  %3475 = vmatmul.mubr.msk.bf16.vlgmr.msra.gmra.mxu1 %vm241_vm2, %v2826_v33 }
  0xe1   : > { %3467 = vmatpush3.bf16.msra.mxu0 %v3627_v29  ;;  %3468 = vmatprep.mubr.msk.bf16.mxu0 %vm3516_vm1, %v3515_v1  ;;  %v382_v50 = vadd.f32 %v376_v40, %v330_v47 }
  0xe2   : > { %v3170_v45 = vpop.f32.mrf.mxu0  ;;  %v3188_v42 = vpop.f32.mrf.mxu1 }
  0xe3   : > { %v431_v55 = vadd.f32 %v425_v6, %v382_v50 }
  0xe4   : > { %v379_v43 = vpop.f32.mrf.mxu0  ;;  %v533_v44 = vpop.f32.mrf.mxu1 }
  0xe6   : > { %v3171_v48 = vpop.f32.mrf.mxu0  ;;  %v3189_v49 = vpop.f32.mrf.mxu1 }
  0xe8   : > { %v482_v51 = vpop.f32.mrf.mxu0  ;;  %3469 = vmatmul.mubr.msk.bf16.vlgmr.msra.gmra.mxu0 %vm241_vm2, %v2781_v46  ;;  %v636_v52 = vpop.f32.mrf.mxu1 }
  0xe9   : > { %v488_v57 = vadd.f32 %v482_v51, %v431_v55 }
  0xea   : > { %v3182_v53 = vpop.f32.mrf.mxu0  ;;  %v3200_v54 = vpop.f32.mrf.mxu1 }
  0xeb   : > { %v536_v61 = vadd.f32 %v530_v41, %v488_v57 }
  0xec   : > { %v485_v29 = vpop.f32.mrf.mxu0  ;;  %v639_v56 = vpop.f32.mrf.mxu1 }
  0xee   : > { %v3183_v1 = vpop.f32.mrf.mxu0  ;;  %v3201_v58 = vpop.f32.mrf.mxu1 }
  0xf0   : > { %v579_v59 = vpop.f32.mrf.mxu0  ;;  %v744_v60 = vpop.f32.mrf.mxu1 }
  0xf1   : > { %v585_v0 = vadd.f32 %v579_v59, %v536_v61 }
  0xf2   : > { %v3194_v62 = vpop.f32.mrf.mxu0  ;;  %v3212_v63 = vpop.f32.mrf.mxu1 }
  0xf3   : > { %v642_v9 = vadd.f32 %v636_v52, %v585_v0 }
  0xf4   : > { %v582_v3 = vpop.f32.mrf.mxu0  ;;  %v747_v5 = vpop.f32.mrf.mxu1 }
  0xf6   : > { %v3195_v7 = vpop.f32.mrf.mxu0  ;;  %v3213_v8 = vpop.f32.mrf.mxu1 }
  0xf8   : > { %v684_v11 = vpop.f32.mrf.mxu0  ;;  %v831_v12 = vpop.f32.mrf.mxu1 }
  0xf9   : > { %v690_v13 = vadd.f32 %v684_v11, %v642_v9 }
  0xfa   : > { %v3206_v15 = vpop.f32.mrf.mxu0  ;;  %v3224_v16 = vpop.f32.mrf.mxu1 }
  0xfb   : > { %v691_v4 = vmul.f32 %v3903_v10, %v690_v13 }
  0xfc   : > { %v687_v19 = vpop.f32.mrf.mxu0  ;;  %v834_v20 = vpop.f32.mrf.mxu1 }
  0xfd   : > { %v692_v21 = vadd.f32 %v3909_v14, %v691_v4 }
  0xfe   : > { %v3207_v22 = vpop.f32.mrf.mxu0  ;;  %v3225_v17 = vpop.f32.mrf.mxu1 }
  0xff   : > { %v693_v23 = vmax.f32 %v692_v21, 0.0 }
 0x100   : > { %v787_v2 = vpop.f32.mrf.mxu0  ;;  %v930_v28 = vpop.f32.mrf.mxu1 }
 0x101   : > { %695 = vst.msk [vmem:[%s3916_s22] sm:$0x3f] %vm694_vm3, %v693_v23  ;;  %v788_v30 = vadd.f32 %v787_v2, %v744_v60 }
 0x102   : > { %v3218_v24 = vpop.f32.mrf.mxu0  ;;  %v3236_v25 = vpop.f32.mrf.mxu1 }
 0x103   : > { %v837_v35 = vadd.f32 %v831_v12, %v788_v30 }
 0x104   : > { %v790_v26 = vpop.f32.mrf.mxu0  ;;  %v933_v6 = vpop.f32.mrf.mxu1 }
 0x106   : > { %v3219_v27 = vpop.f32.mrf.mxu0  ;;  %v3237_v39 = vpop.f32.mrf.mxu1 }
 0x108   : > { %v876_v31 = vpop.f32.mrf.mxu0  ;;  %v1021_v32 = vpop.f32.mrf.mxu1 }
 0x109   : > { %v882_v18 = vadd.f32 %v876_v31, %v837_v35 }
 0x10a   : > { %v3230_v33 = vpop.f32.mrf.mxu0  ;;  %v3248_v34 = vpop.f32.mrf.mxu1 }
 0x10b   : > { %v936_v42 = vadd.f32 %v930_v28, %v882_v18 }
 0x10c   : > { %v879_v36 = vpop.f32.mrf.mxu0  ;;  %v1024_v37 = vpop.f32.mrf.mxu1 }
 0x10e   : > { %v3231_v38 = vpop.f32.mrf.mxu0  ;;  %v3249_v40 = vpop.f32.mrf.mxu1 }
 0x110   : > { %v975_v41 = vpop.f32.mrf.mxu0  ;;  %v1120_v45 = vpop.f32.mrf.mxu1 }
 0x111   : > { %v981_v46 = vadd.f32 %v975_v41, %v936_v42 }
 0x112   : > { %v3242_v43 = vpop.f32.mrf.mxu0  ;;  %v3260_v44 = vpop.f32.mrf.mxu1 }
 0x113   : > { %v1027_v51 = vadd.f32 %v1021_v32, %v981_v46 }
 0x114   : > { %v978_v47 = vpop.f32.mrf.mxu0  ;;  %v1123_v48 = vpop.f32.mrf.mxu1 }
 0x116   : > { %v3243_v49 = vpop.f32.mrf.mxu0  ;;  %v3261_v50 = vpop.f32.mrf.mxu1 }
 0x118   : > { %v1075_v52 = vpop.f32.mrf.mxu0  ;;  %v1223_v53 = vpop.f32.mrf.mxu1 }
 0x119   : > { %v1081_v54 = vadd.f32 %v1075_v52, %v1027_v51 }
 0x11a   : > { %v3254_v55 = vpop.f32.mrf.mxu0  ;;  %v3272_v29 = vpop.f32.mrf.mxu1 }
 0x11b   : > { %v1126_v56 = vadd.f32 %v1120_v45, %v1081_v54 }
 0x11c   : > { %v1078_v57 = vpop.f32.mrf.mxu0  ;;  %v1226_v1 = vpop.f32.mrf.mxu1 }
 0x11d   : > { %v1127_v58 = vmul.f32 %v3903_v10, %v1126_v56 }
 0x11e   : > { %v3255_v59 = vpop.f32.mrf.mxu0  ;;  %v3273_v60 = vpop.f32.mrf.mxu1 }
 0x11f   : > { %v1128_v61 = vadd.f32 %v3909_v14, %v1127_v58 }
 0x120   : > { %v1180_v62 = vpop.f32.mrf.mxu0  ;;  %v1312_v63 = vpop.f32.mrf.mxu1 }
 0x121   : > { %v1129_v0 = vmax.f32 %v1128_v61, 0.0  ;;  %v1224_v20 = vadd.f32 %v1223_v53, %v1180_v62 }
 0x122   : > { %v3266_v3 = vpop.f32.mrf.mxu0  ;;  %v3284_v5 = vpop.f32.mrf.mxu1 }
 0x123   : > { %2978 = vst.msk [vmem:[%s3916_s22 + $0x8] sm:$0x3f] %vm694_vm3, %v1129_v0 }
 0x124   : > { %v1183_v7 = vpop.f32.mrf.mxu0  ;;  %v1315_v8 = vpop.f32.mrf.mxu1 }
 0x126   : > { %v3267_v9 = vpop.f32.mrf.mxu0  ;;  %v3285_v11 = vpop.f32.mrf.mxu1 }
 0x128   : > { %v1267_v12 = vpop.f32.mrf.mxu0  ;;  %v1411_v13 = vpop.f32.mrf.mxu1 }
 0x129   : > { %v1273_v17 = vadd.f32 %v1267_v12, %v1224_v20 }
 0x12a   : > { %v3278_v15 = vpop.f32.mrf.mxu0  ;;  %v3296_v16 = vpop.f32.mrf.mxu1 }
 0x12b   : > { %v1318_v25 = vadd.f32 %v1312_v63, %v1273_v17 }
 0x12c   : > { %v1270_v4 = vpop.f32.mrf.mxu0  ;;  %v1414_v19 = vpop.f32.mrf.mxu1 }
 0x12e   : > { %v3279_v21 = vpop.f32.mrf.mxu0  ;;  %v3297_v22 = vpop.f32.mrf.mxu1 }
 0x130   : > { %v1366_v23 = vpop.f32.mrf.mxu0  ;;  %v1511_v2 = vpop.f32.mrf.mxu1 }
 0x131   : > { %v1372_v27 = vadd.f32 %v1366_v23, %v1318_v25 }
 0x132   : > { %v3290_v28 = vpop.f32.mrf.mxu0  ;;  %v3308_v24 = vpop.f32.mrf.mxu1 }
 0x133   : > { %v1417_v33 = vadd.f32 %v1411_v13, %v1372_v27 }
 0x134   : > { %v1369_v26 = vpop.f32.mrf.mxu0  ;;  %v1514_v6 = vpop.f32.mrf.mxu1 }
 0x136   : > { %v3291_v39 = vpop.f32.mrf.mxu0  ;;  %v3309_v30 = vpop.f32.mrf.mxu1 }
 0x138   : > { %v1457_v31 = vpop.f32.mrf.mxu0  ;;  %v1616_v32 = vpop.f32.mrf.mxu1 }
 0x139   : > { %v1463_v36 = vadd.f32 %v1457_v31, %v1417_v33 }
 0x13a   : > { %v3302_v34 = vpop.f32.mrf.mxu0  ;;  %v3320_v35 = vpop.f32.mrf.mxu1 }
 0x13b   : > { %v1517_v41 = vadd.f32 %v1511_v2, %v1463_v36 }
 0x13c   : > { %v1460_v37 = vpop.f32.mrf.mxu0  ;;  %v1619_v18 = vpop.f32.mrf.mxu1 }
 0x13e   : > { %v3303_v38 = vpop.f32.mrf.mxu0  ;;  %v3321_v40 = vpop.f32.mrf.mxu1 }
 0x140   : > { %v1556_v45 = vpop.f32.mrf.mxu0  ;;  %v1703_v42 = vpop.f32.mrf.mxu1 }
 0x141   : > { %v1562_v43 = vadd.f32 %v1556_v45, %v1517_v41 }
 0x142   : > { %v3314_v44 = vpop.f32.mrf.mxu0  ;;  %v3332_v46 = vpop.f32.mrf.mxu1 }
 0x143   : > { %v1563_v47 = vmul.f32 %v3903_v10, %v1562_v43 }
 0x144   : > { %v1559_v48 = vpop.f32.mrf.mxu0  ;;  %v1706_v49 = vpop.f32.mrf.mxu1 }
 0x145   : > { %v1564_v50 = vadd.f32 %v3909_v14, %v1563_v47 }
 0x146   : > { %v3315_v51 = vpop.f32.mrf.mxu0  ;;  %v3333_v52 = vpop.f32.mrf.mxu1 }
 0x147   : > { %v1565_v53 = vmax.f32 %v1564_v50, 0.0 }
 0x148   : > { %v1659_v54 = vpop.f32.mrf.mxu0  ;;  %v1802_v55 = vpop.f32.mrf.mxu1 }
 0x149   : > { %2994 = vst.msk [vmem:[%s3916_s22 + $0x10] sm:$0x3f] %vm694_vm3, %v1565_v53  ;;  %v1660_v60 = vadd.f32 %v1659_v54, %v1616_v32 }
 0x14a   : > { %v3326_v29 = vpop.f32.mrf.mxu0  ;;  %v3344_v56 = vpop.f32.mrf.mxu1 }
 0x14b   : > { %v1709_v3 = vadd.f32 %v1703_v42, %v1660_v60 }
 0x14c   : > { %v1662_v57 = vpop.f32.mrf.mxu0  ;;  %v1805_v1 = vpop.f32.mrf.mxu1 }
 0x14e   : > { %v3327_v58 = vpop.f32.mrf.mxu0  ;;  %v3345_v59 = vpop.f32.mrf.mxu1 }
 0x150   : > { %v1748_v61 = vpop.f32.mrf.mxu0  ;;  %v1893_v62 = vpop.f32.mrf.mxu1 }
 0x151   : > { %v1754_v8 = vadd.f32 %v1748_v61, %v1709_v3 }
 0x152   : > { %v3338_v63 = vpop.f32.mrf.mxu0  ;;  %v3356_v0 = vpop.f32.mrf.mxu1 }
 0x153   : > { %v1808_v15 = vadd.f32 %v1802_v55, %v1754_v8 }
 0x154   : > { %v1751_v5 = vpop.f32.mrf.mxu0  ;;  %v1896_v7 = vpop.f32.mrf.mxu1 }
 0x156   : > { %v3339_v9 = vpop.f32.mrf.mxu0  ;;  %v3357_v11 = vpop.f32.mrf.mxu1 }
 0x158   : > { %v1847_v12 = vpop.f32.mrf.mxu0  ;;  %v1992_v13 = vpop.f32.mrf.mxu1 }
 0x159   : > { %v1853_v19 = vadd.f32 %v1847_v12, %v1808_v15 }
 0x15a   : > { %v3350_v16 = vpop.f32.mrf.mxu0  ;;  %v3368_v4 = vpop.f32.mrf.mxu1 }
 0x15b   : > { %v1899_v23 = vadd.f32 %v1893_v62, %v1853_v19 }
 0x15c   : > { %v1850_v20 = vpop.f32.mrf.mxu0  ;;  %v1995_v21 = vpop.f32.mrf.mxu1 }
 0x15e   : > { %v3351_v22 = vpop.f32.mrf.mxu0  ;;  %v3369_v17 = vpop.f32.mrf.mxu1 }
 0x160   : > { %v1947_v2 = vpop.f32.mrf.mxu0  ;;  %v2095_v28 = vpop.f32.mrf.mxu1 }
 0x161   : > { %v1953_v24 = vadd.f32 %v1947_v2, %v1899_v23 }
 0x162   : > { %v3362_v25 = vpop.f32.mrf.mxu0  ;;  %v3380_v26 = vpop.f32.mrf.mxu1 }
 0x163   : > { %v1998_v6 = vadd.f32 %v1992_v13, %v1953_v24 }
 0x164   : > { %v1950_v27 = vpop.f32.mrf.mxu0  ;;  %v2098_v39 = vpop.f32.mrf.mxu1 }
 0x165   : > { %v1999_v30 = vmul.f32 %v3903_v10, %v1998_v6 }
 0x166   : > { %v3363_v31 = vpop.f32.mrf.mxu0  ;;  %v3381_v32 = vpop.f32.mrf.mxu1 }
 0x167   : > { %v2000_v33 = vadd.f32 %v3909_v14, %v1999_v30 }
 0x168   : > { %v2052_v34 = vpop.f32.mrf.mxu0  ;;  %v2184_v35 = vpop.f32.mrf.mxu1 }
 0x169   : > { %v2001_v36 = vmax.f32 %v2000_v33, 0.0  ;;  %v2096_v49 = vadd.f32 %v2095_v28, %v2052_v34 }
 0x16a   : > { %v3374_v37 = vpop.f32.mrf.mxu0  ;;  %v3392_v18 = vpop.f32.mrf.mxu1 }
 0x16b   : > { %3010 = vst.msk [vmem:[%s3916_s22 + $0x18] sm:$0x3f] %vm694_vm3, %v2001_v36 }
 0x16c   : > { %v2055_v38 = vpop.f32.mrf.mxu0  ;;  %v2187_v40 = vpop.f32.mrf.mxu1 }
 0x16e   : > { %v3375_v41 = vpop.f32.mrf.mxu0  ;;  %v3393_v45 = vpop.f32.mrf.mxu1 }
 0x170   : > { %v2139_v42 = vpop.f32.mrf.mxu0  ;;  %v2283_v43 = vpop.f32.mrf.mxu1 }
 0x171   : > { %v2145_v52 = vadd.f32 %v2139_v42, %v2096_v49 }
 0x172   : > { %v3386_v44 = vpop.f32.mrf.mxu0  ;;  %v3404_v46 = vpop.f32.mrf.mxu1 }
 0x173   : > { %v2190_v56 = vadd.f32 %v2184_v35, %v2145_v52 }
 0x174   : > { %v2142_v47 = vpop.f32.mrf.mxu0  ;;  %v2286_v48 = vpop.f32.mrf.mxu1 }
 0x176   : > { %v3387_v50 = vpop.f32.mrf.mxu0  ;;  %v3405_v51 = vpop.f32.mrf.mxu1 }
 0x178   : > { %v2238_v53 = vpop.f32.mrf.mxu0  ;;  %v2383_v54 = vpop.f32.mrf.mxu1 }
 0x179   : > { %v2244_v58 = vadd.f32 %v2238_v53, %v2190_v56 }
 0x17a   : > { %v3398_v55 = vpop.f32.mrf.mxu0  ;;  %v3416_v29 = vpop.f32.mrf.mxu1 }
 0x17b   : > { %v2289_v63 = vadd.f32 %v2283_v43, %v2244_v58 }
 0x17c   : > { %v2241_v57 = vpop.f32.mrf.mxu0  ;;  %v2386_v1 = vpop.f32.mrf.mxu1 }
 0x17e   : > { %v3399_v59 = vpop.f32.mrf.mxu0  ;;  %v3417_v60 = vpop.f32.mrf.mxu1 }
 0x180   : > { %v2329_v61 = vpop.f32.mrf.mxu0  ;;  %v2488_v62 = vpop.f32.mrf.mxu1 }
 0x181   : > { %v2335_v5 = vadd.f32 %v2329_v61, %v2289_v63 }
 0x182   : > { %v3410_v0 = vpop.f32.mrf.mxu0  ;;  %v3428_v3 = vpop.f32.mrf.mxu1 }
 0x183   : > { %v2389_v12 = vadd.f32 %v2383_v54, %v2335_v5 }
 0x184   : > { %v2332_v7 = vpop.f32.mrf.mxu0  ;;  %v2491_v8 = vpop.f32.mrf.mxu1 }
 0x186   : > { %v3411_v9 = vpop.f32.mrf.mxu0  ;;  %v3429_v11 = vpop.f32.mrf.mxu1 }
 0x188   : > { %v2428_v13 = vpop.f32.mrf.mxu0  ;;  %v2575_v15 = vpop.f32.mrf.mxu1 }
 0x189   : > { %v2434_v16 = vadd.f32 %v2428_v13, %v2389_v12 }
 0x18a   : > { %v3422_v4 = vpop.f32.mrf.mxu0  ;;  %v3440_v19 = vpop.f32.mrf.mxu1 }
 0x18b   : > { %v2435_v20 = vmul.f32 %v3903_v10, %v2434_v16 }
 0x18c   : > { %v2431_v21 = vpop.f32.mrf.mxu0  ;;  %v2578_v22 = vpop.f32.mrf.mxu1 }
 0x18d   : > { %v2436_v17 = vadd.f32 %v3909_v14, %v2435_v20 }
 0x18e   : > { %v3423_v23 = vpop.f32.mrf.mxu0  ;;  %v3441_v2 = vpop.f32.mrf.mxu1 }
 0x18f   : > { %v2437_v28 = vmax.f32 %v2436_v17, 0.0 }
 0x190   : > { %v2531_v24 = vpop.f32.mrf.mxu0  ;;  %v2674_v25 = vpop.f32.mrf.mxu1 }
 0x191   : > { %3026 = vst.msk [vmem:[%s3916_s22 + $0x20] sm:$0x3f] %vm694_vm3, %v2437_v28  ;;  %v2532_v32 = vadd.f32 %v2531_v24, %v2488_v62 }
 0x192   : > { %v3434_v26 = vpop.f32.mrf.mxu0  ;;  %v3452_v6 = vpop.f32.mrf.mxu1 }
 0x193   : > { %v2581_v37 = vadd.f32 %v2575_v15, %v2532_v32 }
 0x194   : > { %v2534_v27 = vpop.f32.mrf.mxu0  ;;  %v2677_v39 = vpop.f32.mrf.mxu1 }
 0x196   : > { %v3435_v30 = vpop.f32.mrf.mxu0  ;;  %v3453_v31 = vpop.f32.mrf.mxu1 }
 0x198   : > { %v2620_v33 = vpop.f32.mrf.mxu0  ;;  %v2765_v34 = vpop.f32.mrf.mxu1 }
 0x199   : > { %v2626_v40 = vadd.f32 %v2620_v33, %v2581_v37 }
 0x19a   : > { %v3446_v35 = vpop.f32.mrf.mxu0  ;;  %v3464_v36 = vpop.f32.mrf.mxu1 }
 0x19b   : > { %v2680_v44 = vadd.f32 %v2674_v25, %v2626_v40 }
 0x19c   : > { %v2623_v18 = vpop.f32.mrf.mxu0  ;;  %v2768_v38 = vpop.f32.mrf.mxu1 }
 0x19e   : > { %v3447_v41 = vpop.f32.mrf.mxu0  ;;  %v3465_v45 = vpop.f32.mrf.mxu1 }
 0x1a0   : > { %v2719_v42 = vpop.f32.mrf.mxu0  ;;  %v2864_v43 = vpop.f32.mrf.mxu1 }
 0x1a1   : > { %v2725_v48 = vadd.f32 %v2719_v42, %v2680_v44 }
 0x1a2   : > { %v3458_v46 = vpop.f32.mrf.mxu0  ;;  %v3476_v47 = vpop.f32.mrf.mxu1 }
 0x1a3   : > { %v2771_v53 = vadd.f32 %v2765_v34, %v2725_v48 }
 0x1a4   : > { %v2722_v49 = vpop.f32.mrf.mxu0  ;;  %v2867_v50 = vpop.f32.mrf.mxu1 }
 0x1a6   : > { %v3459_v51 = vpop.f32.mrf.mxu0  ;;  %v3477_v52 = vpop.f32.mrf.mxu1 }
 0x1a8   : > { %v2819_v54 = vpop.f32.mrf.mxu0 }
 0x1a9   : > { %v2825_v55 = vadd.f32 %v2819_v54, %v2771_v53 }
 0x1aa   : > { %v3470_v29 = vpop.f32.mrf.mxu0 }
 0x1ab   : > { %v2870_v56 = vadd.f32 %v2864_v43, %v2825_v55 }
 0x1ac   : > { %v2822_v57 = vpop.f32.mrf.mxu0 }
 0x1ad   : > { %v2871_v1 = vmul.f32 %v3903_v10, %v2870_v56 }
 0x1ae   : > { %v3471_v58 = vpop.f32.mrf.mxu0 }
 0x1af   : > { %v2872_v59 = vadd.f32 %v3909_v14, %v2871_v1 }
 0x1b1   : > { %v2873_v60 = vmax.f32 %v2872_v59, 0.0 }
 0x1b3   : > { %3042 = vst.msk [vmem:[%s3916_s22 + $0x28] sm:$0x3f] %vm694_vm3, %v2873_v60 }
 0x1b4 PF: > { %s14_s15 = sadd.s32 1, %s3513_s15  }
 0x1b5   : > { %p11_p4 = scmp.ge.s32.totalorder %s14_s15, 4  }
 0x1b7   :  { %13 = sbr.rel (!%p11_p4) target bundleno = 1 (0x1), region = 86 }

// kernel: depthwise_rpn_forward.3
= control target key start
LH: loop header
LB: loop body
LE: loop exit
PB: predicated region body
PF: predicated region fallthrough
CT: control target
= control target key end

     0   :  { %s5420_s21 = smov 0   ;;  %s5422_s22 = smov 0   ;;  %s7997_s0 = inlined_call_operand.vmem [shape: bf16[2,16,26,4], index: 0, kind: input, shape index: {}]   ;;  %s7998_s1 = inlined_call_operand.vmem [shape: bf16[3,3,4,16], index: 1, kind: input, shape index: {}]   ;;  %s7999_s2 = inlined_call_operand.vmem [shape: f32[1,16], index: 2, kind: input, shape index: {}]   ;;  %s8000_s3 = inlined_call_operand.vmem [shape: f32[1,16], index: 3, kind: input, shape index: {}]   ;;  %s8001_s4 = inlined_call_operand.vmem [shape: f32[2,6,6,16], index: 4, kind: input, shape index: {}]   ;;  %s8002_s5 = inlined_call_operand.vmem [shape: bf16[8,8], index: 5, kind: input, shape index: {}]   ;;  %s8003_s6 = inlined_call_operand.vmem [shape: bf16[8,8], index: 6, kind: input, shape index: {}]   ;;  %s8004_s7 = inlined_call_operand.vmem [shape: f32[1,16], index: 7, kind: input, shape index: {}]   ;;  %s8005_s8 = inlined_call_operand.vmem [shape: f32[1,16], index: 8, kind: input, shape index: {}]   ;;  %s8006_s9 = inlined_call_operand.vmem [shape: bf16[8,128], index: 9, kind: input, shape index: {}]   ;;  %s8007_s10 = inlined_call_operand.vmem [shape: bf16[8,128], index: 10, kind: input, shape index: {}]   ;;  %s8008_s11 = inlined_call_operand.vmem [shape: f32[1,128], index: 11, kind: input, shape index: {}]   ;;  %s8009_s12 = inlined_call_operand.vmem [shape: f32[2,9,16,128], index: 12, kind: output, shape index: {}]  }
   0x1   :  { %s5424_s23 = smov 0   ;;  %s5426_s24 = smov 0  }
   0x2   :  { %s5428_s25 = smov 0  }
   0x3 LB: > { %s31_s26 = sadd.s32 1, %s5342_s23  ;;  %s34_s27 = sadd.s32 1, %s5346_s24  ;;  %s5350_s25 = sphi %s5428_s25, %s22_s25   ;;  %s5346_s24 = sphi %s5426_s24, %s8387_s24   ;;  %s5342_s23 = sphi %s5424_s23, %s8386_s23   ;;  %s5338_s22 = sphi %s5422_s22, %s8385_s22   ;;  %s5334_s21 = sphi %s5420_s21, %s8384_s21  }
   0x4   : > { %p32_p0 = scmp.ge.s32.totalorder %s31_s26, 3  ;;  %p4630_p1 = scmp.ge.s32.totalorder %s5350_s25, 1 }
   0x5   : > { %p386_p2 = scmp.lt.s32.totalorder %s5350_s25, 7 }
   0x6   : > { %s8389_s26 = smov (%p32_p0, %s31_s26), 0  ;;  %s8391_s27 = smov (!%p32_p0, %s34_s27), %s5346_s24 }
   0x7   : > { %p387_p3 = pnand %p4630_p1, %p386_p2  ;;  %p36_p4 = scmp.ge.s32.totalorder %s8391_s27, 2 }
   0x9   : > { %s8393_s27 = smov (%p36_p4, %s8391_s27), 0  ;;  %390 = sbr.rel (%p387_p3) target bundleno = 1215 (0x4bf), region = 68 }
   0xe   : > { %v4650_v0 = vld [vmem:[%s7998_s1 + $0x2] sm:$0x3]  ;;  %vm721_vm0 = vcmask 1041408   ;;  %v556_v1 = vld [vmem:[%s7998_s1] sm:$0x3]  ;;  %p438_p5 = scmp.lt.s32.totalorder %s5338_s22, 1 }
   0xf   : > { %5229 = vmatprep.subr.msk.bf16.mxu0 %vm721_vm0, %v4650_v0  ;;  %v723_v2 = vsel %vm721_vm0, %v4650_v0, 0  ;;  %5230 = vmatprep.subr.msk.bf16.mxu1 %vm721_vm0, %v556_v1  ;;  %v891_v3 = vsel %vm721_vm0, %v556_v1, 0  ;;  %s4805_s14 = smul.u32 48, %s5334_s21  ;;  %v4675_v4 = vld [vmem:[%s7998_s1 + $0x4] sm:$0x3]  ;;  %vm589_vm1 = vcmask 1046528  }
  0x10   : > { %4940 = vmatpush3.bf16.msra.mxu0 %v723_v2  ;;  %4966 = vmatpush3.bf16.msra.mxu1 %v891_v3  ;;  %s8395_s22 = smov (!%p438_p5, %s5338_s22), 1  ;;  %v4700_v5 = vld [vmem:[%s7998_s1 + $0x6] sm:$0x3]  ;;  %vm684_vm2 = vcmask 31744   ;;  %v5506_v19 = vld [vmem:[%s7998_s1 + $0xa] sm:$0x3] }
  0x11   : > { %5231 = vmatprep.subr.msk.bf16.mxu0 %vm721_vm0, %v4675_v4  ;;  %5232 = vmatprep.subr.msk.bf16.mxu1 %vm721_vm0, %v4700_v5  ;;  %s4804_s19 = sshll.u32 %s8395_s22, 8  ;;  %v1360_v9 = vsel %vm721_vm0, %v4700_v5, 0  ;;  %v1154_v35 = vsel %vm721_vm0, %v4675_v4, 0  ;;  %v5578_v51 = vld [vmem:[%s7998_s1 + $0x8] sm:$0x3]  ;;  %vm1022_vm3 = vcmask 1045504  }
  0x12   : > { %s442_s29 = scalar_lea.vmem %s7997_s0, %s4804_s19  ;;  %vm2653_vm4 = vcmask 1043456   ;;  %vm5353_vm5 = vmmov 0   ;;  %vm2633_vm6 = vcmask 1044480   ;;  %vm2673_vm7 = vcmask 1042432  }
  0x13   : > { %s5477_s30 = scalar_lea.vmem %s442_s29, %s4805_s14  ;;  %s5238_s14 = smul.u32 48, %s8395_s22  ;;  %vm4152_vm8 = vcmask 64512  }
  0x14   : > { %v5480_v6 = vld [vmem:[%s5477_s30] sm:$0xff]   ;;  %v5483_v7 = vld [vmem:[%s5477_s30 + $0x8] sm:$0xf]  ;;  %v5486_v8 = vld [vmem:[%s5477_s30 + $0xc] sm:$0x1]  ;;  %s5354_s29 = smov 120  }
  0x15   : > { %v8033_v10 = vunpack.c.l.bf16 %v5480_v6  ;;  %v8032_v11 = vunpack.c.h.bf16 %v5480_v6  ;;  %v8031_v12 = vunpack.c.l.bf16 %v5483_v7  ;;  %v5493_v13 = vld [vmem:[%s5477_s30 + $0x10] sm:$0xf]  ;;  %v5496_v14 = vld [vmem:[%s5477_s30 + $0x14] sm:$0xf]  ;;  %v8030_v15 = vunpack.c.l.bf16 %v5486_v8  ;;  %4967 = vmatprep.mubr.msk.bf16.mxu1 %vm684_vm2, %v5480_v6  ;;  %v5517_v23 = vld [vmem:[%s5477_s30 + $0x18] sm:$0xf]  ;;  %s6665_s17 = scalar_lea.vmem %s8001_s4, %s5238_s14 }
  0x16   : > { %v8027_v16 = vunpack.c.l.bf16 %v5493_v13  ;;  %v8026_v17 = vunpack.c.l.bf16 %v5496_v14  ;;  %v4639_v18 = vcombine.low %v5483_v7, %v5493_v13  ;;  %v5525_v26 = vld [vmem:[%s5477_s30 + $0x1c] sm:$0x1]  ;;  %v5528_v27 = vld [vmem:[%s5477_s30 + $0x20] sm:$0xf]  ;;  %v5535_v31 = vld [vmem:[%s5477_s30 + $0x24] sm:$0xf]  ;;  %v8025_v38 = vunpack.c.l.bf16 %v5517_v23 }
  0x17   : > { %v590_v20 = vrot.slane %v8033_v10, 1  ;;  %v591_v21 = vrot.slane %v8032_v11, 1  ;;  %v593_v22 = vrot.slane %v8031_v12, 1  ;;  %v595_v24 = vrot.slane %v8030_v15, 1  ;;  %v5538_v32 = vld [vmem:[%s5477_s30 + $0x28] sm:$0xf] }
  0x18   : > { %v597_v25 = vrot.slane %v8027_v16, 1  ;;  %4968 = vmatmul.mubr.msk.bf16.vlgmr.msra.gmra.mxu1 %vm684_vm2, %v4639_v18  ;;  %v598_v30 = vrot.slane %v8026_v17, 1  ;;  %v5543_v36 = vld [vmem:[%s5477_s30 + $0x2c] sm:$0x1]  ;;  %v8023_v39 = vunpack.c.l.bf16 %v5525_v26  ;;  %v4640_v40 = vcombine.low %v5496_v14, %v5517_v23  ;;  %v5555_v41 = vld [vmem:[%s5477_s30 + $0x30] sm:$0xf] }
  0x19   : > { %v592_v28 = vsel %vm589_vm1, %v590_v20, %v591_v21  ;;  %v594_v29 = vsel %vm589_vm1, %v591_v21, %v593_v22  ;;  %5018 = vmatpush3.bf16.msra.mxu1 %v1360_v9  ;;  %v596_v34 = vsel %vm589_vm1, %v593_v22, %v595_v24  ;;  %v8020_v43 = vunpack.c.l.bf16 %v5528_v27  ;;  %v5563_v46 = vld [vmem:[%s5477_s30 + $0x34] sm:$0xf]  ;;  %v5589_v56 = vld [vmem:[%s5477_s30 + $0x38] sm:$0xf]  ;;  %v5601_v61 = vld [vmem:[%s5477_s30 + $0x3c] sm:$0x1] }
  0x1a   : > { %v670_v33 = vpack.c.bf16 %v594_v29, %v592_v28  ;;  %5234 = vmatprep.subr.msk.bf16.mxu1 %vm721_vm0, %v5506_v19  ;;  %v5548_v37 = vsel %vm589_vm1, %v597_v25, %v598_v30  ;;  %v8019_v44 = vunpack.c.l.bf16 %v5535_v31  ;;  %v8018_v45 = vunpack.c.l.bf16 %v5538_v32  ;;  %4971 = vmatprep.mubr.msk.bf16.mxu1 %vm684_vm2, %v4640_v40  ;;  %v5604_v62 = vld [vmem:[%s5477_s30 + $0x40] sm:$0xf]  ;;  %v5619_v3 = vld [vmem:[%s5477_s30 + $0x44] sm:$0xf]  ;;  %v5622_v4 = vld [vmem:[%s5477_s30 + $0x48] sm:$0xf] }
  0x1b   : > { %v671_v42 = vpack.c.bf16 %v5548_v37, %v596_v34  ;;  %v600_v47 = vrot.slane %v8025_v38, 1  ;;  %v602_v48 = vrot.slane %v8023_v39, 1  ;;  %v5572_v49 = vcombine.low %v5528_v27, %v5535_v31  ;;  %v5654_v34 = vld [vmem:[%s5477_s30 + $0x50] sm:$0xf]  ;;  %v5743_v39 = vld [vmem:[%s5477_s30 + $0x68] sm:$0xf] }
  0x1c   : > { %4941 = vmatprep.mubr.msk.bf16.mxu0 %vm684_vm2, %v670_v33  ;;  %v8017_v50 = vunpack.c.l.bf16 %v5543_v36  ;;  %v604_v52 = vrot.slane %v8020_v43, 1  ;;  %v605_v53 = vrot.slane %v8019_v44, 1  ;;  %v607_v54 = vrot.slane %v8018_v45, 1  ;;  %v5651_v33 = vld [vmem:[%s5477_s30 + $0x4c] sm:$0x1] }
  0x1d   : > { %8128 = vst [vmem:[#allocation2_spill] sm:$0xff] %v5572_v49  ;;  %4942 = vmatmul.mubr.msk.bf16.vlgmr.msra.gmra.mxu0 %vm684_vm2, %v671_v42  ;;  %v8016_v55 = vunpack.c.l.bf16 %v5555_v41  ;;  %v5592_v57 = vsel %vm589_vm1, %v598_v30, %v600_v47  ;;  %v5595_v58 = vsel %vm589_vm1, %v600_v47, %v602_v48  ;;  %v8015_v59 = vunpack.c.l.bf16 %v5563_v46  ;;  %v5729_v45 = vld [vmem:[%s5477_s30 + $0x60] sm:$0xf]  ;;  %v5732_v44 = vld [vmem:[%s5477_s30 + $0x64] sm:$0xf] }
  0x1e   : > { %4992 = vmatpush3.bf16.msra.mxu0 %v1154_v35  ;;  %8129 = vst [vmem:[#allocation3_spill] sm:$0xff] %v5595_v58  ;;  %v609_v60 = vrot.slane %v8017_v50, 1  ;;  %v672_v63 = vpack.c.bf16 %v5595_v58, %v5592_v57  ;;  %v5609_v0 = vsel %vm589_vm1, %v604_v52, %v605_v53  ;;  %v5612_v1 = vsel %vm589_vm1, %v605_v53, %v607_v54  ;;  %v5657_v35 = vld [vmem:[%s5477_s30 + $0x54] sm:$0xf]  ;;  %v5753_v17 = vld [vmem:[%s5477_s30 + $0x70] sm:$0xf] }
  0x1f   : > { %8130 = vst [vmem:[#allocation4_spill] sm:$0xff] %v5609_v0  ;;  %v611_v2 = vrot.slane %v8016_v55, 1  ;;  %5233 = vmatprep.subr.msk.bf16.mxu0 %vm721_vm0, %v5578_v51  ;;  %v612_v18 = vrot.slane %v8015_v59, 1  ;;  %v5636_v20 = vpack.c.bf16 %v5612_v1, %v5609_v0  ;;  %v5640_v21 = vcombine.low %v5538_v32, %v5555_v41  ;;  %v5756_v16 = vld [vmem:[%s5477_s30 + $0x74] sm:$0xf] }
  0x20   : > { %4972 = vmatmul.mubr.msk.bf16.gmra.mxu1 %vm684_vm2, %v5572_v49  ;;  %v5629_v9 = vsel %vm589_vm1, %v607_v54, %v609_v60  ;;  %4945 = vmatprep.mubr.msk.bf16.mxu0 %vm684_vm2, %v672_v63  ;;  %v8014_v22 = vunpack.c.l.bf16 %v5589_v56  ;;  %v8013_v24 = vunpack.c.l.bf16 %v5601_v61  ;;  %v8010_v28 = vunpack.c.l.bf16 %v5604_v62 }
  0x21   : > { %8131 = vst [vmem:[#allocation5_spill] sm:$0xff] %v5636_v20  ;;  %8132 = vst [vmem:[#allocation6_spill] sm:$0xff] %v5640_v21  ;;  %v5645_v25 = vsel %vm589_vm1, %v611_v2, %v612_v18  ;;  %v8011_v29 = vunpack.c.l.bf16 %v5619_v3  ;;  %v8012_v30 = vunpack.c.l.bf16 %v5622_v4  ;;  %4975 = vmatprep.mubr.msk.bf16.mxu1 %vm684_vm2, %v5640_v21  ;;  %v5671_v48 = vcombine.low %v5563_v46, %v5589_v56 }
  0x22   : > { %v5661_v40 = vpack.c.bf16 %v5645_v25, %v5629_v9  ;;  %v614_v42 = vrot.slane %v8014_v22, 1  ;;  %v616_v47 = vrot.slane %v8013_v24, 1  ;;  %v618_v52 = vrot.slane %v8010_v28, 1  ;;  %v5689_v28 = vld [vmem:[%s5477_s30 + $0x58] sm:$0xf] }
  0x23   : > { %8134 = vst [vmem:[#allocation8_spill] sm:$0xff] %v5671_v48  ;;  %v619_v53 = vrot.slane %v8011_v29, 1  ;;  %v621_v54 = vrot.slane %v8012_v30, 1  ;;  %v5681_v60 = vcombine.low %v5604_v62, %v5619_v3  ;;  %v8021_v63 = vunpack.c.l.bf16 %v5651_v33  ;;  %v5692_v29 = vld [vmem:[%s5477_s30 + $0x5c] sm:$0x1] }
  0x24   : > { %8133 = vst [vmem:[#allocation7_spill] sm:$0xff] %v5661_v40  ;;  %v8022_v2 = vunpack.c.l.bf16 %v5654_v34  ;;  %v8024_v5 = vunpack.c.l.bf16 %v5657_v35  ;;  %v5697_v30 = vsel %vm589_vm1, %v612_v18, %v614_v42  ;;  %v5700_v24 = vsel %vm589_vm1, %v614_v42, %v616_v47 }
  0x25   : > { %8135 = vst [vmem:[#allocation9_spill] sm:$0xff] %v5681_v60  ;;  %4946 = vmatmul.mubr.msk.bf16.gmra.mxu0 %vm684_vm2, %v5636_v20  ;;  %v5705_v22 = vsel %vm589_vm1, %v618_v52, %v619_v53  ;;  %v5708_v59 = vsel %vm589_vm1, %v619_v53, %v621_v54  ;;  %v8028_v18 = vunpack.c.l.bf16 %v5689_v28  ;;  %v8029_v42 = vunpack.c.l.bf16 %v5692_v29 }
  0x26   : > { %4949 = vmatprep.mubr.msk.bf16.mxu0 %vm684_vm2, %v5661_v40  ;;  %v5716_v47 = vpack.c.bf16 %v5700_v24, %v5697_v30  ;;  %v623_v52 = vrot.slane %v8021_v63, 1  ;;  %v625_v53 = vrot.slane %v8022_v2, 1  ;;  %v626_v55 = vrot.slane %v8024_v5, 1  ;;  %v5746_v5 = vld [vmem:[%s5477_s30 + $0x6c] sm:$0x1] }
  0x27   : > { %v5726_v50 = vpack.c.bf16 %v5708_v59, %v5705_v22  ;;  %v5736_v43 = vcombine.low %v5622_v4, %v5654_v34  ;;  %v628_v63 = vrot.slane %v8028_v18, 1  ;;  %v630_v2 = vrot.slane %v8029_v42, 1  ;;  %v5812_v40 = vld [vmem:[%s5477_s30 + $0x7c] sm:$0x1] }
  0x28   : > { %4976 = vmatmul.mubr.msk.bf16.gmra.mxu1 %vm684_vm2, %v5671_v48  ;;  %8136 = vst [vmem:[#allocation10_spill] sm:$0xff] %v5716_v47  ;;  %v5750_v38 = vcombine.low %v5657_v35, %v5689_v28  ;;  %v5761_v18 = vsel %vm589_vm1, %v621_v54, %v623_v52  ;;  %v5764_v42 = vsel %vm589_vm1, %v625_v53, %v626_v55  ;;  %v8144_v53 = vunpack.c.l.bf16 %v5743_v39 }
  0x29   : > { %4979 = vmatprep.mubr.msk.bf16.mxu1 %vm684_vm2, %v5681_v60  ;;  %8137 = vst [vmem:[#allocation11_spill] sm:$0xff] %v5726_v50  ;;  %8138 = vst [vmem:[#allocation12_spill] sm:$0xff] %v5736_v43  ;;  %v5775_v54 = vsel %vm589_vm1, %v626_v55, %v628_v63  ;;  %v5778_v52 = vsel %vm589_vm1, %v628_v63, %v630_v2  ;;  %v5786_v10 = vpack.c.bf16 %v5764_v42, %v5761_v18 }
  0x2a   : > { %8139 = vst [vmem:[#allocation13_spill] sm:$0xff] %v5750_v38  ;;  %v5790_v11 = vpack.c.bf16 %v5778_v52, %v5775_v54  ;;  %v8142_v55 = vunpack.c.l.bf16 %v5729_v45  ;;  %v8143_v63 = vunpack.c.l.bf16 %v5732_v44  ;;  %v635_v15 = vrot.slane %v8144_v53, 1  ;;  %8150 = vst [vmem:[#allocation18_spill] sm:$0xff] %v5812_v40 }
  0x2b   : > { %8140 = vst [vmem:[#allocation14_spill] sm:$0xff] %v5786_v10  ;;  %v8147_v60 = vunpack.c.l.bf16 %v5746_v5  ;;  %v8148_v48 = vunpack.c.l.bf16 %v5753_v17  ;;  %v5816_v53 = vcombine.low %v5743_v39, %v5753_v17  ;;  %v8159_v20 = vunpack.c.l.bf16 %v5483_v7 }
  0x2c   : > { %8141 = vst [vmem:[#allocation15_spill] sm:$0xff] %v5790_v11  ;;  %v632_v12 = vrot.slane %v8142_v55, 1  ;;  %v633_v2 = vrot.slane %v8143_v63, 1  ;;  %v8149_v55 = vunpack.c.l.bf16 %v5756_v16  ;;  %v8163_v7 = vunpack.c.l.bf16 %v5496_v14 }
  0x2d   : > { %4950 = vmatmul.mubr.msk.bf16.gmra.mxu0 %vm684_vm2, %v5716_v47  ;;  %v639_v21 = vrot.slane %v8148_v48, 1  ;;  %8151 = vst [vmem:[#allocation19_spill] sm:$0xff] %v5816_v53  ;;  %v1026_v58 = vrot.slane %v8159_v20, 2 }
  0x2e   : > { %4953 = vmatprep.mubr.msk.bf16.mxu0 %vm684_vm2, %v5726_v50  ;;  %v637_v50 = vrot.slane %v8147_v60, 1  ;;  %v640_v47 = vrot.slane %v8149_v55, 1  ;;  %v5823_v60 = vsel %vm589_vm1, %v632_v12, %v633_v2  ;;  %v5826_v48 = vsel %vm589_vm1, %v633_v2, %v635_v15 }
  0x2f   : > { %8152 = vst [vmem:[#allocation20_spill] sm:$0xff] %v5826_v48  ;;  %v5842_v12 = vpack.c.bf16 %v5826_v48, %v5823_v60  ;;  %v1031_v20 = vrot.slane %v8163_v7, 2 }
  0x30   : > { %4980 = vmatmul.mubr.msk.bf16.gmra.mxu1 %vm684_vm2, %v5736_v43  ;;  %v5799_v43 = vld [vmem:[%s5477_s30 + $0x78] sm:$0xf]  ;;  %v5833_v49 = vsel %vm589_vm1, %v635_v15, %v637_v50  ;;  %v8156_v15 = vunpack.c.l.bf16 %v5812_v40  ;;  %v8161_v40 = vunpack.c.l.bf16 %v5486_v8 }
  0x31   : > { %4983 = vmatprep.mubr.msk.bf16.mxu1 %vm684_vm2, %v5750_v38  ;;  %8145 = vst [vmem:[#allocation16_spill] sm:$0xff] %v5799_v43  ;;  %v5803_v38 = vcombine.low %v5729_v45, %v5732_v44  ;;  %v8050_v63 = vunpack.c.l.bf16 %v5799_v43  ;;  %8154 = vst [vmem:[#allocation22_spill] sm:$0xff] %v5842_v12  ;;  %v5860_v0 = vcombine.low %v5756_v16, %v5799_v43 }
  0x32   : > { %v644_v50 = vrot.slane %v8156_v15, 1  ;;  %v1028_v15 = vrot.slane %v8161_v40, 2 }
  0x33   : > { %8146 = vst [vmem:[#allocation17_spill] sm:$0xff] %v5803_v38  ;;  %v642_v55 = vrot.slane %v8050_v63, 1  ;;  %8160 = vst [vmem:[#allocation24_spill] sm:$0xff] %v5860_v0  ;;  %v4688_v63 = vcombine.low %v5493_v13, %v5496_v14 }
  0x35   : > { %4954 = vmatmul.mubr.msk.bf16.gmra.mxu0 %vm684_vm2, %v5786_v10  ;;  %v5836_v10 = vsel %vm589_vm1, %v639_v21, %v640_v47  ;;  %v8157_v21 = vunpack.c.l.bf16 %v5480_v6  ;;  %v5878_v43 = vsel %vm589_vm1, %v642_v55, %v644_v50  ;;  %v8166_v50 = vunpack.c.l.bf16 %v5517_v23 }
  0x36   : > { %4957 = vmatprep.mubr.msk.bf16.mxu0 %vm684_vm2, %v5790_v11  ;;  %8153 = vst [vmem:[#allocation21_spill] sm:$0xff] %v5836_v10  ;;  %v5846_v2 = vpack.c.bf16 %v5836_v10, %v5833_v49  ;;  %v8158_v11 = vunpack.c.h.bf16 %v5480_v6  ;;  %v8162_v6 = vunpack.c.l.bf16 %v5493_v13 }
  0x38   : > { %4984 = vmatmul.mubr.msk.bf16.gmra.mxu1 %vm684_vm2, %v5803_v38  ;;  %8155 = vst [vmem:[#allocation23_spill] sm:$0xff] %v5846_v2  ;;  %v1023_v38 = vrot.slane %v8157_v21, 2  ;;  %v5875_v21 = vsel %vm589_vm1, %v640_v47, %v642_v55  ;;  %v1029_v47 = vsel %vm1022_vm3, %v1026_v58, %v1028_v15 }
  0x39   : > { %4987 = vmatprep.mubr.msk.bf16.mxu1 %vm684_vm2, %v5816_v53  ;;  %v1024_v53 = vrot.slane %v8158_v11, 2  ;;  %v1030_v11 = vrot.slane %v8162_v6, 2  ;;  %8164 = vst [vmem:[#allocation25_spill] sm:$0xff] %v5875_v21  ;;  %v5887_v14 = vpack.c.bf16 %v5878_v43, %v5875_v21  ;;  %v1033_v6 = vrot.slane %v8166_v50, 2 }
  0x3a   : > { %v4692_v21 = vcombine.low %v5589_v56, %v5604_v62 }
  0x3b   : > { %v1025_v8 = vsel %vm1022_vm3, %v1023_v38, %v1024_v53  ;;  %v1027_v13 = vsel %vm1022_vm3, %v1024_v53, %v1026_v58  ;;  %8165 = vst [vmem:[#allocation26_spill] sm:$0xff] %v5887_v14  ;;  %v5891_v55 = vsel %vm1022_vm3, %v1030_v11, %v1031_v20  ;;  %v4689_v38 = vcombine.low %v5517_v23, %v5528_v27 }
  0x3c   : > { %v1103_v40 = vpack.c.bf16 %v1027_v13, %v1025_v8  ;;  %v8167_v53 = vunpack.c.l.bf16 %v5525_v26  ;;  %v4690_v58 = vcombine.low %v5535_v31, %v5538_v32  ;;  %v1104_v11 = vpack.c.bf16 %v5891_v55, %v1029_v47  ;;  %v5911_v8 = vld [vmem:[%s5477_s30 + $0x84] sm:$0xf] }
  0x3d   : > { %4958 = vmatmul.mubr.msk.bf16.gmra.mxu0 %vm684_vm2, %v5842_v12  ;;  %v1796_v23 = vsel %vm721_vm0, %v5506_v19, 0  ;;  %v5921_v13 = vsel %vm1022_vm3, %v1031_v20, %v1033_v6  ;;  %v537_v50 = vunpack.c.l.bf16 %v5911_v8  ;;  %v8168_v20 = vunpack.c.l.bf16 %v5528_v27 }
  0x3e   : > { %4961 = vmatprep.mubr.msk.bf16.mxu0 %vm684_vm2, %v5846_v2  ;;  %v1035_v7 = vrot.slane %v8167_v53, 2  ;;  %v5931_v53 = vld [vmem:[%s7998_s1 + $0xe] sm:$0x3]  ;;  %v8169_v19 = vunpack.c.l.bf16 %v5535_v31  ;;  %v8170_v2 = vunpack.c.l.bf16 %v5538_v32  ;;  %v8173_v47 = vunpack.c.l.bf16 %v5555_v41 }
  0x3f   : > { %v8174_v31 = vunpack.c.l.bf16 %v5563_v46  ;;  %v1736_v48 = vrot.slane %v537_v50, 2 }
  0x40   : > { %4988 = vmatmul.mubr.msk.bf16.gmra.mxu1 %vm684_vm2, %v5860_v0  ;;  %v1580_v0 = vsel %vm721_vm0, %v5578_v51, 0  ;;  %v1037_v51 = vrot.slane %v8168_v20, 2  ;;  %v1040_v12 = vrot.slane %v8170_v2, 2  ;;  %v1044_v26 = vrot.slane %v8173_v47, 2 }
  0x41   : > { %5019 = vmatprep.mubr.msk.bf16.mxu1 %vm684_vm2, %v4688_v63  ;;  %v5900_v63 = vld [vmem:[%s5477_s30 + $0x80] sm:$0xf]  ;;  %v1045_v20 = vrot.slane %v8174_v31, 2 }
  0x42   : > { %v536_v15 = vunpack.c.l.bf16 %v5900_v63 }
  0x43   : > { %v6011_v31 = vsel %vm1022_vm3, %v1044_v26, %v1045_v20 }
  0x44   : > { %v1735_v27 = vrot.slane %v536_v15, 2 }
  0x45   : > { %4962 = vmatmul.mubr.msk.bf16.gmra.mxu0 %vm684_vm2, %v5887_v14  ;;  %v1038_v14 = vrot.slane %v8169_v19, 2  ;;  %v5966_v19 = vrot.slane %v537_v50, 1  ;;  %v8181_v50 = vunpack.c.l.bf16 %v5622_v4 }
  0x46   : > { %4993 = vmatprep.mubr.msk.bf16.mxu0 %vm684_vm2, %v1103_v40  ;;  %v5935_v40 = vsel %vm1022_vm3, %v1033_v6, %v1035_v7  ;;  %v1519_v6 = vrot.slane %v536_v15, 1  ;;  %v4691_v7 = vcombine.low %v5555_v41, %v5563_v46 }
  0x47   : > { %v1105_v2 = vpack.c.bf16 %v5935_v40, %v5921_v13  ;;  %8172 = vst [vmem:[#allocation27_spill] sm:$0xff] %v5966_v19  ;;  %v5989_v46 = vsel %vm1022_vm3, %v1037_v51, %v1038_v14  ;;  %v5997_v47 = vsel %vm1022_vm3, %v1038_v14, %v1040_v12  ;;  %v6018_v14 = vld [vmem:[%s5477_s30 + $0x90] sm:$0xf]  ;;  %v1054_v15 = vrot.slane %v8181_v50, 2 }
  0x48   : > { %5020 = vmatmul.mubr.msk.bf16.vlgmr.msra.gmra.mxu1 %vm684_vm2, %v4689_v38  ;;  %v5949_v38 = vld [vmem:[%s5477_s30 + $0x88] sm:$0xf]  ;;  %v5985_v41 = vsel %vm589_vm1, %v1519_v6, %v5966_v19  ;;  %v6000_v6 = vsel %vm1022_vm3, %v1735_v27, %v1736_v48  ;;  %v8177_v27 = vunpack.c.l.bf16 %v5589_v56  ;;  %v4694_v19 = vcombine.low %v5654_v34, %v5657_v35 }
  0x49   : > { %5023 = vmatprep.mubr.msk.bf16.mxu1 %vm684_vm2, %v4690_v58  ;;  %5070 = vmatpush3.bf16.msra.mxu1 %v1796_v23  ;;  %v8171_v58 = vunpack.c.l.bf16 %v5543_v36  ;;  %v8175_v32 = vunpack.c.l.bf16 %v5949_v38  ;;  %v5981_v36 = vld [vmem:[%s7998_s1 + $0xc] sm:$0x3]  ;;  %v8183_v50 = vunpack.c.l.bf16 %v5651_v33 }
  0x4a   : > { %5236 = vmatprep.subr.msk.bf16.mxu1 %vm721_vm0, %v5931_v53 }
  0x4b   : > { %v1042_v23 = vrot.slane %v8171_v58, 2  ;;  %v5974_v10 = vrot.slane %v8175_v32, 2  ;;  %v8178_v32 = vunpack.c.l.bf16 %v5601_v61  ;;  %v8179_v58 = vunpack.c.l.bf16 %v5604_v62 }
  0x4d   : > { %4994 = vmatmul.mubr.msk.bf16.vlgmr.msra.gmra.mxu0 %vm684_vm2, %v1104_v11  ;;  %v6004_v11 = vsel %vm1022_vm3, %v1736_v48, %v5974_v10  ;;  %v6008_v51 = vsel %vm1022_vm3, %v1040_v12, %v1042_v23  ;;  %v6025_v12 = vpack.c.bf16 %v5997_v47, %v5989_v46  ;;  %v1051_v23 = vrot.slane %v8179_v58, 2 }
  0x4e   : > { %5044 = vmatpush3.bf16.msra.mxu0 %v1580_v0  ;;  %4997 = vmatprep.mubr.msk.bf16.mxu0 %vm684_vm2, %v1105_v2  ;;  %v6029_v26 = vpack.c.bf16 %v6011_v31, %v6008_v51  ;;  %v1049_v2 = vrot.slane %v8178_v32, 2  ;;  %v8180_v0 = vunpack.c.l.bf16 %v5619_v3  ;;  %v8185_v32 = vunpack.c.l.bf16 %v5657_v35 }
  0x4f   : > { %5235 = vmatprep.subr.msk.bf16.mxu0 %vm721_vm0, %v5981_v36  ;;  %v8187_v58 = vunpack.c.l.bf16 %v5692_v29 }
  0x50   : > { %5024 = vmatmul.mubr.msk.bf16.gmra.mxu1 %vm684_vm2, %v4691_v7  ;;  %8176 = vst [vmem:[#allocation28_spill] sm:$0xff] %v6029_v26  ;;  %v1047_v7 = vrot.slane %v8177_v27, 2  ;;  %v1052_v48 = vrot.slane %v8180_v0, 2  ;;  %v1056_v0 = vrot.slane %v8183_v50, 2  ;;  %v8184_v27 = vunpack.c.l.bf16 %v5654_v34 }
  0x51   : > { %5027 = vmatprep.mubr.msk.bf16.mxu1 %vm684_vm2, %v4692_v21  ;;  %v4693_v21 = vcombine.low %v5619_v3, %v5622_v4  ;;  %v8188_v50 = vunpack.c.l.bf16 %v5729_v45 }
  0x52   : > { %v6050_v56 = vsel %vm1022_vm3, %v1045_v20, %v1047_v7  ;;  %v6053_v61 = vsel %vm1022_vm3, %v1047_v7, %v1049_v2  ;;  %v6057_v62 = vsel %vm1022_vm3, %v1051_v23, %v1052_v48  ;;  %v6060_v3 = vsel %vm1022_vm3, %v1052_v48, %v1054_v15 }
  0x53   : > { %v6065_v4 = vpack.c.bf16 %v6053_v61, %v6050_v56  ;;  %v6069_v20 = vpack.c.bf16 %v6060_v3, %v6057_v62  ;;  %v1058_v7 = vrot.slane %v8184_v27, 2  ;;  %v1059_v48 = vrot.slane %v8185_v32, 2 }
  0x54   : > { %v8186_v2 = vunpack.c.l.bf16 %v5689_v28  ;;  %v1063_v23 = vrot.slane %v8187_v58, 2  ;;  %v6090_v33 = vsel %vm1022_vm3, %v1054_v15, %v1056_v0  ;;  %v1065_v0 = vrot.slane %v8188_v50, 2 }
  0x55   : > { %4998 = vmatmul.mubr.msk.bf16.gmra.mxu0 %vm684_vm2, %v6025_v12  ;;  %8182 = vst [vmem:[#allocation29_spill] sm:$0xff] %v6069_v20  ;;  %v6093_v34 = vsel %vm1022_vm3, %v1058_v7, %v1059_v48  ;;  %v8189_v27 = vunpack.c.l.bf16 %v5732_v44  ;;  %v8190_v32 = vunpack.c.l.bf16 %v5743_v39 }
  0x56   : > { %5001 = vmatprep.mubr.msk.bf16.mxu0 %vm684_vm2, %v6029_v26  ;;  %v4696_v26 = vcombine.low %v5732_v44, %v5743_v39  ;;  %v6105_v35 = vpack.c.bf16 %v6093_v34, %v6090_v33 }
  0x57   : > { %v1066_v7 = vrot.slane %v8189_v27, 2 }
  0x58   : > { %5028 = vmatmul.mubr.msk.bf16.gmra.mxu1 %vm684_vm2, %v4693_v21  ;;  %v1061_v21 = vrot.slane %v8186_v2, 2 }
  0x59   : > { %5031 = vmatprep.mubr.msk.bf16.mxu1 %vm684_vm2, %v4694_v19  ;;  %v4695_v19 = vcombine.low %v5689_v28, %v5729_v45  ;;  %v8194_v45 = vld [vmem:[#allocation16_spill] sm:$0xff]  ;;  %v1067_v39 = vsel %vm1022_vm3, %v1065_v0, %v1066_v7 }
  0x5a   : > { %v6097_v28 = vsel %vm1022_vm3, %v1059_v48, %v1061_v21  ;;  %v6100_v29 = vsel %vm1022_vm3, %v1061_v21, %v1063_v23  ;;  %v1068_v48 = vrot.slane %v8190_v32, 2  ;;  %v8192_v21 = vunpack.c.l.bf16 %v5753_v17 }
  0x5b   : > { %v6109_v15 = vpack.c.bf16 %v6100_v29, %v6097_v28  ;;  %v8193_v23 = vunpack.c.l.bf16 %v5756_v16  ;;  %v4698_v50 = vcombine.low %v8194_v45, %v5900_v63  ;;  %v8195_v32 = vunpack.c.l.bf16 %v8194_v45 }
  0x5c   : > { %v1072_v58 = vrot.slane %v8192_v21, 2  ;;  %v1069_v44 = vsel %vm1022_vm3, %v1066_v7, %v1068_v48  ;;  %v8196_v21 = vld [vmem:[#allocation18_spill] sm:$0xff]  ;;  %v4699_v7 = vcombine.low %v5911_v8, %v5949_v38  ;;  %v8198_v45 = vpack.c.bf16 %v5592_v57, %v5548_v37 }
  0x5d   : > { %5002 = vmatmul.mubr.msk.bf16.gmra.mxu0 %vm684_vm2, %v6065_v4  ;;  %v1749_v57 = vpack.c.bf16 %v6057_v62, %v6053_v61 }
  0x5e   : > { %5005 = vmatprep.mubr.msk.bf16.mxu0 %vm684_vm2, %v6069_v20  ;;  %v1073_v20 = vrot.slane %v8193_v23, 2  ;;  %v8197_v23 = vunpack.c.l.bf16 %v8196_v21  ;;  %v8200_v21 = vld [vmem:[#allocation3_spill] sm:$0xff] }
  0x60   : > { %5032 = vmatmul.mubr.msk.bf16.gmra.mxu1 %vm684_vm2, %v4695_v19  ;;  %v8191_v19 = vunpack.c.l.bf16 %v5746_v5  ;;  %v6137_v5 = vpack.c.bf16 %v1069_v44, %v1067_v39  ;;  %v1077_v0 = vrot.slane %v8197_v23, 2 }
  0x61   : > { %5035 = vmatprep.mubr.msk.bf16.mxu1 %vm684_vm2, %v4696_v26  ;;  %v4697_v26 = vcombine.low %v5753_v17, %v5756_v16  ;;  %v1074_v16 = vsel %vm1022_vm3, %v1072_v58, %v1073_v20 }
  0x62   : > { %v1070_v2 = vrot.slane %v8191_v19, 2  ;;  %v1075_v19 = vrot.slane %v8195_v32, 2  ;;  %v4768_v32 = vld [vmem:[%s7998_s1 + $0x10] sm:$0x3] }
  0x64   : > { %v1071_v17 = vsel %vm1022_vm3, %v1068_v48, %v1070_v2  ;;  %v1745_v48 = vpack.c.bf16 %v5921_v13, %v5891_v55  ;;  %v1078_v2 = vsel %vm1022_vm3, %v1075_v19, %v1077_v0  ;;  %v1746_v55 = vpack.c.bf16 %v5989_v46, %v5935_v40  ;;  %v6175_v40 = vld [vmem:[%s5477_s30 + $0x94] sm:$0xff]  }
  0x65   : > { %5006 = vmatmul.mubr.msk.bf16.gmra.mxu0 %vm684_vm2, %v6105_v35  ;;  %v6139_v27 = vpack.c.bf16 %v1074_v16, %v1071_v17  ;;  %v1747_v13 = vpack.c.bf16 %v6008_v51, %v5997_v47  ;;  %v1966_v46 = vsel %vm721_vm0, %v5981_v36, 0  ;;  %v1748_v47 = vpack.c.bf16 %v6050_v56, %v6011_v31 }
  0x66   : > { %5009 = vmatprep.mubr.msk.bf16.mxu0 %vm684_vm2, %v6109_v15  ;;  %v540_v51 = vunpack.c.l.bf16 %v6018_v14  ;;  %v541_v37 = vunpack.c.l.bf16 %v6175_v40  ;;  %v8202_v56 = vpack.c.bf16 %v5629_v9, %v5612_v1  ;;  %v1750_v1 = vpack.c.bf16 %v6090_v33, %v6060_v3 }
  0x67   : > { %v1751_v9 = vpack.c.bf16 %v6097_v28, %v6093_v34  ;;  %v1753_v3 = vpack.c.bf16 %v1071_v17, %v1069_v44  ;;  %v8205_v33 = vpack.c.bf16 %v5761_v18, %v5708_v59  ;;  %v8208_v59 = vld [vmem:[#allocation20_spill] sm:$0xff] }
  0x68   : > { %5036 = vmatmul.mubr.msk.bf16.gmra.mxu1 %vm684_vm2, %v4697_v26  ;;  %v1076_v26 = vsel %vm1022_vm3, %v1073_v20, %v1075_v19  ;;  %v2150_v20 = vsel %vm721_vm0, %v5931_v53, 0  ;;  %v8199_v19 = vld [vmem:[#allocation4_spill] sm:$0xff]  ;;  %v2305_v0 = vrot.slane %v540_v51, 2  ;;  %v6192_v31 = vrot.slane %v541_v37, 2 }
  0x69   : > { %5039 = vmatprep.mubr.msk.bf16.mxu1 %vm684_vm2, %v4698_v50  ;;  %v6157_v58 = vpack.c.bf16 %v1078_v2, %v1076_v26  ;;  %v499_v50 = vld [vmem:[%s5477_s30 + $0x8c] sm:$0x1]  ;;  %v8201_v23 = vpack.c.bf16 %v8199_v19, %v8200_v21  ;;  %v8209_v18 = vpack.c.bf16 %v5833_v49, %v8208_v59  ;;  %v8214_v49 = vpack.c.bf16 %v5985_v41, %v5878_v43  ;;  %v8219_v43 = vld [vmem:[#allocation10_spill] sm:$0xff]  ;;  %v8228_v21 = vld [vmem:[#allocation13_spill] sm:$0xff] }
  0x6a   : > { %v539_v53 = vunpack.c.l.bf16 %v499_v50  ;;  %v6207_v62 = vsel %vm1022_vm3, %v2305_v0, %v6192_v31  ;;  %v8221_v50 = vld [vmem:[#allocation8_spill] sm:$0xff]  ;;  %v8227_v19 = vld [vmem:[#allocation22_spill] sm:$0xff]  ;;  %v6292_v0 = vld [vmem:[%s5477_s30 + $0x9c] sm:$0x1]  ;;  %v8234_v59 = vcombine.low %v5900_v63, %v5911_v8  ;;  %s5239_s30 = smul.u32 18, %s8395_s22 }
  0x6b   : > { %v8236_v63 = vld [vmem:[#allocation28_spill] sm:$0xff] }
  0x6c   : > { %v1740_v36 = vrot.slane %v539_v53, 2  ;;  %v1524_v34 = vrot.slane %v539_v53, 1  ;;  %v8224_v53 = vld [vmem:[#allocation9_spill] sm:$0xff] }
  0x6d   : > { %5010 = vmatmul.mubr.msk.bf16.gmra.mxu0 %vm684_vm2, %v6137_v5 }
  0x6e   : > { %5013 = vmatprep.mubr.msk.bf16.mxu0 %vm684_vm2, %v6139_v27  ;;  %v6203_v61 = vsel %vm1022_vm3, %v5974_v10, %v1740_v36  ;;  %v8204_v10 = vpack.c.bf16 %v5705_v22, %v5700_v24  ;;  %v1754_v22 = vpack.c.bf16 %v1076_v26, %v1074_v16  ;;  %v1755_v24 = vpack.c.bf16 %v6000_v6, %v1078_v2  ;;  %v8216_v16 = vld [vmem:[#allocation5_spill] sm:$0xff]  ;;  %v8217_v2 = vld [vmem:[#allocation2_spill] sm:$0xff] }
  0x6f   : > { %v1756_v28 = vpack.c.bf16 %v6203_v61, %v6004_v11  ;;  %v2126_v36 = vrot.slane %v541_v37, 1 }
  0x70   : > { %5040 = vmatmul.mubr.msk.bf16.gmra.mxu1 %vm684_vm2, %v4699_v7  ;;  %v2316_v7 = vpack.c.bf16 %v6207_v62, %v6203_v61 }
  0x71   : > { %5071 = vmatprep.mubr.msk.bf16.mxu1 %vm684_vm2, %v1745_v48  ;;  %v8203_v48 = vpack.c.bf16 %v5697_v30, %v5645_v25  ;;  %v8206_v25 = vpack.c.bf16 %v5775_v54, %v5764_v42  ;;  %v8207_v30 = vpack.c.bf16 %v5823_v60, %v5778_v52  ;;  %v8210_v42 = vunpack.c.l.bf16 %v5949_v38  ;;  %v8212_v52 = vld [vmem:[#allocation21_spill] sm:$0xff] }
  0x73   : > { %v1522_v54 = vrot.slane %v8210_v42, 1 }
  0x75   : > { %5014 = vmatmul.mubr.msk.bf16.gmra.mxu0 %vm684_vm2, %v6157_v58  ;;  %v1525_v17 = vsel %vm589_vm1, %v1522_v54, %v1524_v34 }
  0x76   : > { %5045 = vmatprep.mubr.msk.bf16.mxu0 %vm684_vm2, %v8198_v45  ;;  %v8220_v45 = vld [vmem:[#allocation6_spill] sm:$0xff] }
  0x78   : > { %5072 = vmatmul.mubr.msk.bf16.vlgmr.msra.gmra.mxu1 %vm684_vm2, %v1746_v55  ;;  %v1752_v55 = vpack.c.bf16 %v1067_v39, %v6100_v29  ;;  %v8211_v29 = vld [vmem:[#allocation25_spill] sm:$0xff]  ;;  %v8215_v39 = vld [vmem:[#allocation27_spill] sm:$0xff] }
  0x79   : > { %5075 = vmatprep.mubr.msk.bf16.mxu1 %vm684_vm2, %v1747_v13  ;;  %5122 = vmatpush3.bf16.msra.mxu1 %v2150_v20  ;;  %v8213_v60 = vpack.c.bf16 %v8211_v29, %v8212_v52  ;;  %v1523_v44 = vsel %vm589_vm1, %v8215_v39, %v1522_v54  ;;  %v8218_v13 = vld [vmem:[#allocation7_spill] sm:$0xff]  ;;  %v2330_v20 = vsel %vm721_vm0, %v4768_v32, 0 }
  0x7a   : > { %v1540_v26 = vpack.c.bf16 %v1525_v17, %v1523_v44 }
  0x7d   : > { %5046 = vmatmul.mubr.msk.bf16.vlgmr.msra.gmra.mxu0 %vm684_vm2, %v8201_v23  ;;  %v2125_v23 = vrot.slane %v540_v51, 1  ;;  %v2135_v51 = vpack.c.bf16 %v1523_v44, %v5985_v41 }
  0x7e   : > { %5096 = vmatpush3.bf16.msra.mxu0 %v1966_v46  ;;  %5049 = vmatprep.mubr.msk.bf16.mxu0 %vm684_vm2, %v8202_v56  ;;  %v8222_v46 = vld [vmem:[#allocation11_spill] sm:$0xff]  ;;  %v8229_v56 = vld [vmem:[#allocation17_spill] sm:$0xff] }
  0x7f   : > { %5237 = vmatprep.subr.msk.bf16.mxu0 %vm721_vm0, %v4768_v32  ;;  %v8226_v32 = vld [vmem:[#allocation15_spill] sm:$0xff] }
  0x80   : > { %5076 = vmatmul.mubr.msk.bf16.gmra.mxu1 %vm684_vm2, %v1748_v47  ;;  %v8223_v47 = vld [vmem:[#allocation14_spill] sm:$0xff] }
  0x81   : > { %5079 = vmatprep.mubr.msk.bf16.mxu1 %vm684_vm2, %v1749_v57  ;;  %v8225_v57 = vld [vmem:[#allocation12_spill] sm:$0xff] }
  0x85   : > { %5050 = vmatmul.mubr.msk.bf16.gmra.mxu0 %vm684_vm2, %v8203_v48  ;;  %v542_v48 = vunpack.c.h.bf16 %v6175_v40 }
  0x86   : > { %5053 = vmatprep.mubr.msk.bf16.mxu0 %vm684_vm2, %v8204_v10  ;;  %v543_v10 = vunpack.c.l.bf16 %v6292_v0 }
  0x87   : > { %v2128_v37 = vrot.slane %v542_v48, 1 }
  0x88   : > { %5080 = vmatmul.mubr.msk.bf16.gmra.mxu1 %vm684_vm2, %v1750_v1  ;;  %v8230_v1 = vld [vmem:[#allocation23_spill] sm:$0xff] }
  0x89   : > { %5083 = vmatprep.mubr.msk.bf16.mxu1 %vm684_vm2, %v1751_v9  ;;  %v8231_v9 = vld [vmem:[#allocation26_spill] sm:$0xff] }
  0x8d   : > { %5054 = vmatmul.mubr.msk.bf16.gmra.mxu0 %vm684_vm2, %v8205_v33  ;;  %v2130_v33 = vrot.slane %v543_v10, 1 }
  0x8e   : > { %5057 = vmatprep.mubr.msk.bf16.mxu0 %vm684_vm2, %v8206_v25  ;;  %v8232_v25 = vld [vmem:[#allocation19_spill] sm:$0xff] }
  0x8f   : > { %v2131_v41 = vsel %vm589_vm1, %v2128_v37, %v2130_v33 }
  0x90   : > { %5084 = vmatmul.mubr.msk.bf16.gmra.mxu1 %vm684_vm2, %v1752_v55  ;;  %v2127_v55 = vsel %vm589_vm1, %v2125_v23, %v2126_v36 }
  0x91   : > { %5087 = vmatprep.mubr.msk.bf16.mxu1 %vm684_vm2, %v1753_v3  ;;  %v2136_v3 = vpack.c.bf16 %v2127_v55, %v1525_v17 }
  0x95   : > { %5058 = vmatmul.mubr.msk.bf16.gmra.mxu0 %vm684_vm2, %v8207_v30 }
  0x96   : > { %5061 = vmatprep.mubr.msk.bf16.mxu0 %vm684_vm2, %v8209_v18  ;;  %v8235_v18 = vcombine.low %v5949_v38, %v6018_v14 }
  0x98   : > { %5088 = vmatmul.mubr.msk.bf16.gmra.mxu1 %vm684_vm2, %v1754_v22  ;;  %v8233_v22 = vld [vmem:[#allocation24_spill] sm:$0xff] }
  0x99   : > { %5091 = vmatprep.mubr.msk.bf16.mxu1 %vm684_vm2, %v1755_v24  ;;  %v2129_v24 = vsel %vm589_vm1, %v2126_v36, %v2128_v37 }
  0x9a   : > { %v2137_v30 = vpack.c.bf16 %v2131_v41, %v2129_v24  ;;  %v2310_v24 = vrot.slane %v543_v10, 2 }
  0x9d   : > { %5062 = vmatmul.mubr.msk.bf16.gmra.mxu0 %vm684_vm2, %v8213_v60 }
  0x9e   : > { %5065 = vmatprep.mubr.msk.bf16.mxu0 %vm684_vm2, %v8214_v49 }
  0xa0   : > { %5092 = vmatmul.mubr.msk.bf16.gmra.mxu1 %vm684_vm2, %v1756_v28 }
  0xa1   : > { %5123 = vmatprep.mubr.msk.bf16.mxu1 %vm684_vm2, %v8216_v16  ;;  %v8237_v16 = vld [vmem:[#allocation29_spill] sm:$0xff] }
  0xa5   : > { %5066 = vmatmul.mubr.msk.bf16.gmra.mxu0 %vm684_vm2, %v1540_v26 }
  0xa6   : > { %5097 = vmatprep.mubr.msk.bf16.mxu0 %vm684_vm2, %v8217_v2 }
  0xa8   : > { %5124 = vmatmul.mubr.msk.bf16.vlgmr.msra.gmra.mxu1 %vm684_vm2, %v8218_v13 }
  0xa9   : > { %5127 = vmatprep.mubr.msk.bf16.mxu1 %vm684_vm2, %v8219_v43 }
  0xad   : > { %5098 = vmatmul.mubr.msk.bf16.vlgmr.msra.gmra.mxu0 %vm684_vm2, %v8220_v45 }
  0xae   : > { %5148 = vmatpush3.bf16.msra.mxu0 %v2330_v20  ;;  %5101 = vmatprep.mubr.msk.bf16.mxu0 %vm684_vm2, %v8221_v50 }
  0xb0   : > { %5128 = vmatmul.mubr.msk.bf16.gmra.mxu1 %vm684_vm2, %v8222_v46 }
  0xb1   : > { %5131 = vmatprep.mubr.msk.bf16.mxu1 %vm684_vm2, %v8223_v47 }
  0xb5   : > { %5102 = vmatmul.mubr.msk.bf16.gmra.mxu0 %vm684_vm2, %v8224_v53 }
  0xb6   : > { %5105 = vmatprep.mubr.msk.bf16.mxu0 %vm684_vm2, %v8225_v57 }
  0xb8   : > { %5132 = vmatmul.mubr.msk.bf16.gmra.mxu1 %vm684_vm2, %v8226_v32 }
  0xb9   : > { %5135 = vmatprep.mubr.msk.bf16.mxu1 %vm684_vm2, %v8227_v19 }
  0xbd   : > { %5106 = vmatmul.mubr.msk.bf16.gmra.mxu0 %vm684_vm2, %v8228_v21 }
  0xbe   : > { %5109 = vmatprep.mubr.msk.bf16.mxu0 %vm684_vm2, %v8229_v56 }
  0xc0   : > { %5136 = vmatmul.mubr.msk.bf16.gmra.mxu1 %vm684_vm2, %v8230_v1 }
  0xc1   : > { %5139 = vmatprep.mubr.msk.bf16.mxu1 %vm684_vm2, %v8231_v9 }
  0xc5   : > { %5110 = vmatmul.mubr.msk.bf16.gmra.mxu0 %vm684_vm2, %v8232_v25 }
  0xc6   : > { %5113 = vmatprep.mubr.msk.bf16.mxu0 %vm684_vm2, %v8233_v22  ;;  %v2308_v22 = vrot.slane %v542_v48, 2 }
  0xc8   : > { %5140 = vmatmul.mubr.msk.bf16.gmra.mxu1 %vm684_vm2, %v2135_v51  ;;  %v2311_v0 = vsel %vm1022_vm3, %v2308_v22, %v2310_v24 }
  0xc9   : > { %5143 = vmatprep.mubr.msk.bf16.mxu1 %vm684_vm2, %v2136_v3 }
  0xcd   : > { %5114 = vmatmul.mubr.msk.bf16.gmra.mxu0 %vm684_vm2, %v8234_v59 }
  0xce   : > { %5117 = vmatprep.mubr.msk.bf16.mxu0 %vm684_vm2, %v8235_v18 }
  0xd0   : > { %5144 = vmatmul.mubr.msk.bf16.gmra.mxu1 %vm684_vm2, %v2137_v30 }
  0xd5   : > { %5118 = vmatmul.mubr.msk.bf16.gmra.mxu0 %vm684_vm2, %v6175_v40  ;;  %v2309_v40 = vsel %vm1022_vm3, %v6192_v31, %v2308_v22 }
  0xd6   : > { %5149 = vmatprep.mubr.msk.bf16.mxu0 %vm684_vm2, %v6025_v12 }
  0xd8   : > { %v4969_v42 = vpop.f32.mrf.mxu1 }
  0xda   : > { %v927_v54 = vpop.f32.mrf.mxu1 }
  0xdc   : > { %v4970_v34 = vpop.f32.mrf.mxu1 }
  0xdd   : > { %v4943_v28 = vpop.f32.mrf.mxu0  ;;  %5150 = vmatmul.mubr.msk.bf16.vlgmr.msra.gmra.mxu0 %vm684_vm2, %v8236_v63 }
  0xde   : > { %v6331_v8 = vpop.f32.mrf.mxu1  ;;  %v6333_v38 = vadd.f32 %v4969_v42, %v4943_v28  ;;  %5153 = vmatprep.mubr.msk.bf16.mxu0 %vm684_vm2, %v6065_v4 }
  0xdf   : > { %v759_v14 = vpop.f32.mrf.mxu0 }
  0xe0   : > { %v4973_v29 = vpop.f32.mrf.mxu1  ;;  %v6337_v52 = vadd.f32 %v927_v54, %v759_v14 }
  0xe1   : > { %v4944_v60 = vpop.f32.mrf.mxu0 }
  0xe2   : > { %v943_v12 = vpop.f32.mrf.mxu1  ;;  %v6339_v49 = vadd.f32 %v4970_v34, %v4944_v60 }
  0xe3   : > { %v6341_v39 = vpop.f32.mrf.mxu0 }
  0xe4   : > { %v4974_v44 = vpop.f32.mrf.mxu1 }
  0xe5   : > { %v4947_v17 = vpop.f32.mrf.mxu0  ;;  %5154 = vmatmul.mubr.msk.bf16.gmra.mxu0 %vm684_vm2, %v8237_v16 }
  0xe6   : > { %v6345_v26 = vpop.f32.mrf.mxu1  ;;  %v6347_v2 = vadd.f32 %v4973_v29, %v4947_v17  ;;  %5157 = vmatprep.mubr.msk.bf16.mxu0 %vm684_vm2, %v6105_v35 }
  0xe7   : > { %v775_v4 = vpop.f32.mrf.mxu0 }
  0xe8   : > { %v4977_v13 = vpop.f32.mrf.mxu1  ;;  %v6351_v43 = vadd.f32 %v943_v12, %v775_v4 }
  0xe9   : > { %v4948_v20 = vpop.f32.mrf.mxu0 }
  0xea   : > { %v959_v45 = vpop.f32.mrf.mxu1  ;;  %v6353_v50 = vadd.f32 %v4974_v44, %v4948_v20 }
  0xeb   : > { %v6355_v46 = vpop.f32.mrf.mxu0 }
  0xec   : > { %v4978_v47 = vpop.f32.mrf.mxu1 }
  0xed   : > { %v4951_v53 = vpop.f32.mrf.mxu0  ;;  %5158 = vmatmul.mubr.msk.bf16.gmra.mxu0 %vm684_vm2, %v6109_v15 }
  0xee   : > { %v6359_v57 = vpop.f32.mrf.mxu1  ;;  %v6361_v32 = vadd.f32 %v4977_v13, %v4951_v53  ;;  %5161 = vmatprep.mubr.msk.bf16.mxu0 %vm684_vm2, %v6137_v5 }
  0xef   : > { %v791_v35 = vpop.f32.mrf.mxu0 }
  0xf0   : > { %v4981_v19 = vpop.f32.mrf.mxu1  ;;  %v6365_v21 = vadd.f32 %v959_v45, %v791_v35 }
  0xf1   : > { %v4952_v23 = vpop.f32.mrf.mxu0 }
  0xf2   : > { %v975_v36 = vpop.f32.mrf.mxu1  ;;  %v6367_v56 = vadd.f32 %v4978_v47, %v4952_v23 }
  0xf3   : > { %v6369_v1 = vpop.f32.mrf.mxu0 }
  0xf4   : > { %v4982_v9 = vpop.f32.mrf.mxu1 }
  0xf5   : > { %v4955_v55 = vpop.f32.mrf.mxu0  ;;  %5162 = vmatmul.mubr.msk.bf16.gmra.mxu0 %vm684_vm2, %v6139_v27 }
  0xf6   : > { %v6373_v15 = vpop.f32.mrf.mxu1  ;;  %v6375_v51 = vadd.f32 %v4981_v19, %v4955_v55  ;;  %5165 = vmatprep.mubr.msk.bf16.mxu0 %vm684_vm2, %v6157_v58  ;;  %v8238_v58 = vpack.c.bf16 %v6004_v11, %v6000_v6  ;;  %v2317_v11 = vpack.c.bf16 %v2311_v0, %v2309_v40  ;;  %v931_v55 = vadd.f32 %v6331_v8, %v6341_v39 }
  0xf7   : > { %v807_v5 = vpop.f32.mrf.mxu0 }
  0xf8   : > { %v4985_v37 = vpop.f32.mrf.mxu1  ;;  %v6379_v3 = vadd.f32 %v975_v36, %v807_v5 }
  0xf9   : > { %v4956_v33 = vpop.f32.mrf.mxu0 }
  0xfa   : > { %v991_v25 = vpop.f32.mrf.mxu1  ;;  %v6385_v27 = vadd.f32 %v4982_v9, %v4956_v33 }
  0xfb   : > { %v6387_v41 = vpop.f32.mrf.mxu0 }
  0xfc   : > { %v4986_v30 = vpop.f32.mrf.mxu1 }
  0xfd   : > { %v4959_v59 = vpop.f32.mrf.mxu0  ;;  %5166 = vmatmul.mubr.msk.bf16.gmra.mxu0 %vm684_vm2, %v8238_v58 }
  0xfe   : > { %v6393_v18 = vpop.f32.mrf.mxu1  ;;  %v6395_v42 = vadd.f32 %v4985_v37, %v4959_v59  ;;  %5169 = vmatprep.mubr.msk.bf16.mxu0 %vm684_vm2, %v2316_v7 }
  0xff   : > { %v823_v48 = vpop.f32.mrf.mxu0 }
 0x100   : > { %v4989_v10 = vpop.f32.mrf.mxu1  ;;  %v6404_v54 = vadd.f32 %v991_v25, %v823_v48  ;;  %v947_v48 = vadd.f32 %v6345_v26, %v6355_v46 }
 0x101   : > { %v4960_v6 = vpop.f32.mrf.mxu0 }
 0x102   : > { %v1007_v34 = vpop.f32.mrf.mxu1  ;;  %v6406_v28 = vadd.f32 %v4986_v30, %v4960_v6 }
 0x103   : > { %v6408_v63 = vpop.f32.mrf.mxu0 }
 0x104   : > { %v4990_v14 = vpop.f32.mrf.mxu1 }
 0x105   : > { %v4963_v61 = vpop.f32.mrf.mxu0  ;;  %5170 = vmatmul.mubr.msk.bf16.gmra.mxu0 %vm684_vm2, %v2317_v11 }
 0x106   : > { %v1010_v62 = vpop.f32.mrf.mxu1  ;;  %v6411_v7 = vadd.f32 %v4989_v10, %v4963_v61 }
 0x107   : > { %v839_v31 = vpop.f32.mrf.mxu0 }
 0x108   : > { %v5021_v29 = vpop.f32.mrf.mxu1  ;;  %v6413_v60 = vadd.f32 %v1007_v34, %v839_v31 }
 0x109   : > { %v4964_v12 = vpop.f32.mrf.mxu0 }
 0x10a   : > { %v1396_v44 = vpop.f32.mrf.mxu1  ;;  %v6415_v17 = vadd.f32 %v4990_v14, %v4964_v12 }
 0x10b   : > { %v842_v16 = vpop.f32.mrf.mxu0 }
 0x10c   : > { %v5022_v4 = vpop.f32.mrf.mxu1  ;;  %v6417_v13 = vadd.f32 %v1010_v62, %v842_v16  ;;  %v963_v16 = vadd.f32 %v6359_v57, %v6369_v1 }
 0x10d   : > { %v4995_v20 = vpop.f32.mrf.mxu0 }
 0x10e   : > { %v1399_v45 = vpop.f32.mrf.mxu1  ;;  %v1287_v47 = vadd.f32 %v4995_v20, %v6333_v38 }
 0x10f   : > { %v1190_v53 = vpop.f32.mrf.mxu0 }
 0x110   : > { %v5025_v35 = vpop.f32.mrf.mxu1  ;;  %v1285_v19 = vadd.f32 %v1190_v53, %v6337_v52  ;;  %v6421_v23 = vadd.f32 %v5021_v29, %v1287_v47 }
 0x111   : > { %v4996_v36 = vpop.f32.mrf.mxu0 }
 0x112   : > { %v1412_v9 = vpop.f32.mrf.mxu1  ;;  %v1288_v5 = vadd.f32 %v4996_v36, %v6339_v49  ;;  %v6426_v37 = vadd.f32 %v1396_v44, %v1285_v19 }
 0x113   : > { %v1193_v33 = vpop.f32.mrf.mxu0 }
 0x114   : > { %v5026_v25 = vpop.f32.mrf.mxu1  ;;  %v1286_v22 = vadd.f32 %v1193_v33, %v931_v55  ;;  %v6428_v24 = vadd.f32 %v5022_v4, %v1288_v5  ;;  %v979_v33 = vadd.f32 %v6373_v15, %v6387_v41 }
 0x115   : > { %v4999_v38 = vpop.f32.mrf.mxu0 }
 0x116   : > { %v1415_v30 = vpop.f32.mrf.mxu1  ;;  %v1291_v52 = vadd.f32 %v4999_v38, %v6347_v2  ;;  %v6431_v59 = vadd.f32 %v1399_v45, %v1286_v22 }
 0x117   : > { %v1206_v58 = vpop.f32.mrf.mxu0 }
 0x118   : > { %v5029_v40 = vpop.f32.mrf.mxu1  ;;  %v1289_v0 = vadd.f32 %v1206_v58, %v6351_v43  ;;  %v6434_v8 = vadd.f32 %v5025_v35, %v1291_v52 }
 0x119   : > { %v5000_v49 = vpop.f32.mrf.mxu0 }
 0x11a   : > { %v1428_v39 = vpop.f32.mrf.mxu1  ;;  %v1292_v10 = vadd.f32 %v5000_v49, %v6353_v50  ;;  %v6439_v6 = vadd.f32 %v1412_v9, %v1289_v0 }
 0x11b   : > { %v1209_v11 = vpop.f32.mrf.mxu0 }
 0x11c   : > { %v5030_v34 = vpop.f32.mrf.mxu1  ;;  %v1290_v2 = vadd.f32 %v1209_v11, %v947_v48  ;;  %v6441_v14 = vadd.f32 %v5026_v25, %v1292_v10  ;;  %v995_v10 = vadd.f32 %v6393_v18, %v6408_v63 }
 0x11d   : > { %v5003_v61 = vpop.f32.mrf.mxu0 }
 0x11e   : > { %v1431_v62 = vpop.f32.mrf.mxu1  ;;  %v1295_v43 = vadd.f32 %v5003_v61, %v6361_v32  ;;  %v6444_v31 = vadd.f32 %v1415_v30, %v1290_v2 }
 0x11f   : > { %v1222_v29 = vpop.f32.mrf.mxu0 }
 0x120   : > { %v5033_v12 = vpop.f32.mrf.mxu1  ;;  %v1293_v44 = vadd.f32 %v1222_v29, %v6365_v21  ;;  %v6447_v26 = vadd.f32 %v5029_v40, %v1295_v43 }
 0x121   : > { %v5004_v50 = vpop.f32.mrf.mxu0 }
 0x122   : > { %v1444_v46 = vpop.f32.mrf.mxu1  ;;  %v1296_v4 = vadd.f32 %v5004_v50, %v6367_v56  ;;  %v6452_v20 = vadd.f32 %v1428_v39, %v1293_v44 }
 0x123   : > { %v1225_v45 = vpop.f32.mrf.mxu0 }
 0x124   : > { %v5034_v47 = vpop.f32.mrf.mxu1  ;;  %v1294_v32 = vadd.f32 %v1225_v45, %v963_v16  ;;  %v6454_v53 = vadd.f32 %v5030_v34, %v1296_v4 }
 0x125   : > { %v5007_v35 = vpop.f32.mrf.mxu0 }
 0x126   : > { %v1447_v19 = vpop.f32.mrf.mxu1  ;;  %v1299_v21 = vadd.f32 %v5007_v35, %v6375_v51  ;;  %v6457_v36 = vadd.f32 %v1431_v62, %v1294_v32 }
 0x127   : > { %v1238_v9 = vpop.f32.mrf.mxu0 }
 0x128   : > { %v5037_v55 = vpop.f32.mrf.mxu1  ;;  %v1297_v5 = vadd.f32 %v1238_v9, %v6379_v3  ;;  %v6460_v57 = vadd.f32 %v5033_v12, %v1299_v21 }
 0x129   : > { %v5008_v56 = vpop.f32.mrf.mxu0 }
 0x12a   : > { %v1460_v1 = vpop.f32.mrf.mxu1  ;;  %v1300_v25 = vadd.f32 %v5008_v56, %v6385_v27  ;;  %v6465_v22 = vadd.f32 %v1444_v46, %v1297_v5 }
 0x12b   : > { %v1241_v38 = vpop.f32.mrf.mxu0 }
 0x12c   : > { %v5038_v30 = vpop.f32.mrf.mxu1  ;;  %v1298_v51 = vadd.f32 %v1241_v38, %v979_v33  ;;  %v6467_v52 = vadd.f32 %v5034_v47, %v1300_v25 }
 0x12d   : > { %v5011_v58 = vpop.f32.mrf.mxu0 }
 0x12e   : > { %v1463_v40 = vpop.f32.mrf.mxu1  ;;  %v1303_v3 = vadd.f32 %v5011_v58, %v6395_v42  ;;  %v6470_v0 = vadd.f32 %v1447_v19, %v1298_v51 }
 0x12f   : > { %v1254_v49 = vpop.f32.mrf.mxu0 }
 0x130   : > { %v5041_v39 = vpop.f32.mrf.mxu1  ;;  %v1301_v48 = vadd.f32 %v1254_v49, %v6404_v54  ;;  %v6473_v15 = vadd.f32 %v5037_v55, %v1303_v3 }
 0x131   : > { %v5012_v27 = vpop.f32.mrf.mxu0 }
 0x132   : > { %v1476_v41 = vpop.f32.mrf.mxu1  ;;  %v1304_v11 = vadd.f32 %v5012_v27, %v6406_v28  ;;  %v6478_v34 = vadd.f32 %v1460_v1, %v1301_v48 }
 0x133   : > { %v1257_v2 = vpop.f32.mrf.mxu0 }
 0x134   : > { %v5042_v61 = vpop.f32.mrf.mxu1  ;;  %v1302_v42 = vadd.f32 %v1257_v2, %v995_v10  ;;  %v6480_v62 = vadd.f32 %v5038_v30, %v1304_v11 }
 0x135   : > { %v5015_v43 = vpop.f32.mrf.mxu0 }
 0x136   : > { %v1479_v29 = vpop.f32.mrf.mxu1  ;;  %v1307_v54 = vadd.f32 %v5015_v43, %v6411_v7  ;;  %v6483_v12 = vadd.f32 %v1463_v40, %v1302_v42 }
 0x137   : > { %v1270_v44 = vpop.f32.mrf.mxu0 }
 0x138   : > { %v6485_v50 = vpop.f32.mrf.mxu1  ;;  %v1305_v18 = vadd.f32 %v1270_v44, %v6413_v60  ;;  %v6488_v63 = vadd.f32 %v5041_v39, %v1307_v54 }
 0x139   : > { %v5016_v28 = vpop.f32.mrf.mxu0 }
 0x13a   : > { %v6490_v46 = vpop.f32.mrf.mxu1  ;;  %v1308_v16 = vadd.f32 %v5016_v28, %v6415_v17  ;;  %v6493_v4 = vadd.f32 %v1476_v41, %v1305_v18 }
 0x13b   : > { %v1273_v45 = vpop.f32.mrf.mxu0 }
 0x13c   : > { %v6495_v47 = vpop.f32.mrf.mxu1  ;;  %v1306_v7 = vadd.f32 %v1273_v45, %v6417_v13  ;;  %v6498_v32 = vadd.f32 %v5042_v61, %v1308_v16 }
 0x13d   : > { %v5047_v35 = vpop.f32.mrf.mxu0 }
 0x13e   : > { %v6500_v19 = vpop.f32.mrf.mxu1  ;;  %v6502_v60 = vadd.f32 %v1479_v29, %v1306_v7  ;;  %v6505_v21 = vadd.f32 %v5047_v35, %v6421_v23 }
 0x13f   : > { %v1616_v9 = vpop.f32.mrf.mxu0 }
 0x140   : > { %v5077_v55 = vpop.f32.mrf.mxu1  ;;  %v6508_v17 = vadd.f32 %v1616_v9, %v6426_v37 }
 0x141   : > { %v5048_v5 = vpop.f32.mrf.mxu0 }
 0x142   : > { %v6510_v56 = vpop.f32.mrf.mxu1  ;;  %v6513_v13 = vadd.f32 %v5048_v5, %v6428_v24 }
 0x143   : > { %v1619_v1 = vpop.f32.mrf.mxu0 }
 0x144   : > { %v6515_v33 = vpop.f32.mrf.mxu1  ;;  %v6518_v25 = vadd.f32 %v1619_v1, %v6431_v59 }
 0x145   : > { %v5051_v38 = vpop.f32.mrf.mxu0 }
 0x146   : > { %v6520_v23 = vpop.f32.mrf.mxu1  ;;  %v1717_v30 = vadd.f32 %v5051_v38, %v6434_v8 }
 0x147   : > { %v1632_v51 = vpop.f32.mrf.mxu0 }
 0x148   : > { %v5081_v37 = vpop.f32.mrf.mxu1  ;;  %v6524_v58 = vadd.f32 %v1632_v51, %v6439_v6  ;;  %v6526_v40 = vadd.f32 %v5077_v55, %v1717_v30 }
 0x149   : > { %v5052_v24 = vpop.f32.mrf.mxu0 }
 0x14a   : > { %v6528_v3 = vpop.f32.mrf.mxu1  ;;  %v6531_v49 = vadd.f32 %v5052_v24, %v6441_v14 }
 0x14b   : > { %v1635_v59 = vpop.f32.mrf.mxu0 }
 0x14c   : > { %v5082_v39 = vpop.f32.mrf.mxu1  ;;  %v6534_v48 = vadd.f32 %v1635_v59, %v6444_v31 }
 0x14d   : > { %v5055_v27 = vpop.f32.mrf.mxu0 }
 0x14e   : > { %v1867_v8 = vpop.f32.mrf.mxu1  ;;  %v1721_v41 = vadd.f32 %v5055_v27, %v6447_v26 }
 0x14f   : > { %v1648_v10 = vpop.f32.mrf.mxu0 }
 0x150   : > { %v5085_v6 = vpop.f32.mrf.mxu1  ;;  %v6538_v11 = vadd.f32 %v1648_v10, %v6452_v20  ;;  %v6540_v2 = vadd.f32 %v5081_v37, %v1721_v41 }
 0x151   : > { %v5056_v61 = vpop.f32.mrf.mxu0 }
 0x152   : > { %v1880_v42 = vpop.f32.mrf.mxu1  ;;  %v1722_v14 = vadd.f32 %v5056_v61, %v6454_v53 }
 0x153   : > { %v1651_v43 = vpop.f32.mrf.mxu0 }
 0x154   : > { %v5086_v29 = vpop.f32.mrf.mxu1  ;;  %v1720_v31 = vadd.f32 %v1651_v43, %v6457_v36  ;;  %v6544_v54 = vadd.f32 %v5082_v39, %v1722_v14 }
 0x155   : > { %v5059_v44 = vpop.f32.mrf.mxu0 }
 0x156   : > { %v1883_v18 = vpop.f32.mrf.mxu1  ;;  %v1725_v26 = vadd.f32 %v5059_v44, %v6460_v57  ;;  %v6547_v28 = vadd.f32 %v1867_v8, %v1720_v31  ;;  %v4151_v57 = vld [vmem:[%s8002_s5] sm:$0xf] }
 0x157   : > { %v1664_v20 = vpop.f32.mrf.mxu0  ;;  %v4163_v30 = vsel %vm2653_vm4, %v4151_v57, 0 }
 0x158   : > { %v5089_v16 = vpop.f32.mrf.mxu1  ;;  %v1723_v45 = vadd.f32 %v1664_v20, %v6465_v22  ;;  %v6550_v7 = vadd.f32 %v5085_v6, %v1725_v26  ;;  %v8064_v22 = vmov 0.0  }
 0x159   : > { %v5060_v35 = vpop.f32.mrf.mxu0  ;;  %5173 = vmatprep.subr.bf16.mxu1 %v8064_v22  ;;  %5175 = vmatprep.mubr.msk.bf16.mxu1 %vm5353_vm5, %v8064_v22 }
 0x15a   : > { %v1896_v53 = vpop.f32.mrf.mxu1  ;;  %v1726_v9 = vadd.f32 %v5060_v35, %v6467_v52  ;;  %v6553_v55 = vadd.f32 %v1880_v42, %v1723_v45  ;;  %5174 = vmatpush3.bf16.msra.mxu1 %v4163_v30  ;;  %5201 = vmatprep.subr.bf16.mxu0 %v8064_v22 }
 0x15b   : > { %v1667_v36 = vpop.f32.mrf.mxu0  ;;  %5187 = vmatprep.subr.bf16.mxu1 %v8064_v22  ;;  %5203 = vmatprep.mubr.msk.bf16.mxu0 %vm5353_vm5, %v8064_v22 }
 0x15c   : > { %v5090_v5 = vpop.f32.mrf.mxu1  ;;  %v1724_v1 = vadd.f32 %v1667_v36, %v6470_v0  ;;  %v6559_v38 = vadd.f32 %v5086_v29, %v1726_v9 }
 0x15d   : > { %v5063_v52 = vpop.f32.mrf.mxu0 }
 0x15e   : > { %v1899_v51 = vpop.f32.mrf.mxu1  ;;  %v1729_v37 = vadd.f32 %v5063_v52, %v6473_v15  ;;  %v6567_v24 = vadd.f32 %v1883_v18, %v1724_v1 }
 0x15f   : > { %v1680_v0 = vpop.f32.mrf.mxu0 }
 0x160   : > { %v5093_v59 = vpop.f32.mrf.mxu1  ;;  %v1727_v39 = vadd.f32 %v1680_v0, %v6478_v34  ;;  %v6573_v27 = vadd.f32 %v5089_v16, %v1729_v37 }
 0x161   : > { %v5064_v8 = vpop.f32.mrf.mxu0 }
 0x162   : > { %v1912_v41 = vpop.f32.mrf.mxu1  ;;  %v1730_v10 = vadd.f32 %v5064_v8, %v6480_v62  ;;  %v6576_v6 = vadd.f32 %v1896_v53, %v1727_v39 }
 0x163   : > { %v1683_v15 = vpop.f32.mrf.mxu0 }
 0x164   : > { %v5094_v61 = vpop.f32.mrf.mxu1  ;;  %v1728_v42 = vadd.f32 %v1683_v15, %v6483_v12  ;;  %v6579_v14 = vadd.f32 %v5090_v5, %v1730_v10 }
 0x165   : > { %v5067_v43 = vpop.f32.mrf.mxu0 }
 0x166   : > { %v1915_v29 = vpop.f32.mrf.mxu1  ;;  %v1733_v31 = vadd.f32 %v5067_v43, %v6488_v63  ;;  %v6582_v44 = vadd.f32 %v1899_v51, %v1728_v42 }
 0x167   : > { %v1696_v34 = vpop.f32.mrf.mxu0 }
 0x168   : > { %v6584_v18 = vpop.f32.mrf.mxu1  ;;  %v1731_v26 = vadd.f32 %v1696_v34, %v6493_v4  ;;  %v6587_v62 = vadd.f32 %v5093_v59, %v1733_v31 }
 0x169   : > { %v5068_v20 = vpop.f32.mrf.mxu0 }
 0x16a   : > { %v6589_v16 = vpop.f32.mrf.mxu1  ;;  %v1734_v12 = vadd.f32 %v5068_v20, %v6498_v32  ;;  %v6592_v45 = vadd.f32 %v1912_v41, %v1731_v26  ;;  %v2577_v20 = vlaneseq }
 0x16b   : > { %v1699_v35 = vpop.f32.mrf.mxu0 }
 0x16c   : > { %v6594_v53 = vpop.f32.mrf.mxu1  ;;  %v1732_v63 = vadd.f32 %v1699_v35, %v6502_v60  ;;  %v6597_v9 = vadd.f32 %v5094_v61, %v1734_v12  ;;  %v2578_v22 = vshrl.u32 %v2577_v20, 7 }
 0x16d   : > { %v6599_v36 = vpop.f32.mrf.mxu0 }
 0x16e   : > { %v6601_v5 = vpop.f32.mrf.mxu1  ;;  %v6603_v4 = vadd.f32 %v1915_v29, %v1732_v63 }
 0x16f   : > { %v6605_v57 = vpop.f32.mrf.mxu0 }
 0x170   : > { %v6607_v1 = vpop.f32.mrf.mxu1 }
 0x171   : > { %v6609_v32 = vpop.f32.mrf.mxu0 }
 0x172   : > { %v6611_v30 = vpop.f32.mrf.mxu1 }
 0x173   : > { %v6613_v52 = vpop.f32.mrf.mxu0 }
 0x174   : > { %v6615_v51 = vpop.f32.mrf.mxu1 }
 0x175   : > { %v5103_v60 = vpop.f32.mrf.mxu0 }
 0x176   : > { %v6617_v37 = vpop.f32.mrf.mxu1  ;;  %v6620_v0 = vadd.f32 %v5103_v60, %v6526_v40 }
 0x177   : > { %v6622_v59 = vpop.f32.mrf.mxu0 }
 0x178   : > { %v6624_v39 = vpop.f32.mrf.mxu1 }
 0x179   : > { %v6626_v8 = vpop.f32.mrf.mxu0 }
 0x17a   : > { %v6628_v41 = vpop.f32.mrf.mxu1 }
 0x17b   : > { %v6630_v10 = vpop.f32.mrf.mxu0 }
 0x17c   : > { %v6632_v15 = vpop.f32.mrf.mxu1 }
 0x17d   : > { %8239 = vst [vmem:[#allocation16_spill] sm:$0xff] %v6632_v15  ;;  %v5107_v61 = vpop.f32.mrf.mxu0 }
 0x17e   : > { %v6634_v42 = vpop.f32.mrf.mxu1  ;;  %v6637_v43 = vadd.f32 %v5107_v61, %v6540_v2 }
 0x17f   : > { %8240 = vst [vmem:[#allocation18_spill] sm:$0xff] %v6634_v42  ;;  %v6639_v40 = vpop.f32.mrf.mxu0 }
 0x180   : > { %v6641_v29 = vpop.f32.mrf.mxu1 }
 0x181   : > { %8241 = vst [vmem:[#allocation4_spill] sm:$0xff] %v6641_v29  ;;  %v5108_v31 = vpop.f32.mrf.mxu0 }
 0x182   : > { %v6643_v34 = vpop.f32.mrf.mxu1  ;;  %v6646_v26 = vadd.f32 %v5108_v31, %v6544_v54 }
 0x183   : > { %8242 = vst [vmem:[#allocation3_spill] sm:$0xff] %v6643_v34  ;;  %v2037_v12 = vpop.f32.mrf.mxu0 }
 0x184   : > { %8243 = vst [vmem:[#allocation20_spill] sm:$0xff] %v6646_v26  ;;  %v6648_v35 = vpop.f32.mrf.mxu1  ;;  %v6651_v63 = vadd.f32 %v2037_v12, %v6547_v28 }
 0x185   : > { %8244 = vst [vmem:[#allocation25_spill] sm:$0xff] %v6648_v35  ;;  %v5111_v2 = vpop.f32.mrf.mxu0  ;;  %v6681_v35 = vsub.s32 5, %v2578_v22 }
 0x186   : > { %8245 = vst [vmem:[#allocation21_spill] sm:$0xff] %v6651_v63  ;;  %v6654_v60 = vpop.f32.mrf.mxu1  ;;  %v6657_v61 = vadd.f32 %v5111_v2, %v6550_v7  ;;  %v6672_v7 = vsub.s32 1, %v2578_v22  ;;  %v2571_v2 = vld [vmem:[%s6665_s17] sm:$0x3f] }
 0x187   : > { %8246 = vst [vmem:[#allocation27_spill] sm:$0xff] %v6654_v60  ;;  %v2050_v29 = vpop.f32.mrf.mxu0  ;;  %v6675_v60 = vsub.s32 2, %v2578_v22 }
 0x188   : > { %8247 = vst [vmem:[#allocation5_spill] sm:$0xff] %v6657_v61  ;;  %v5141_v34 = vpop.f32.mrf.mxu1  ;;  %v6660_v54 = vadd.f32 %v2050_v29, %v6553_v55  ;;  %v6677_v55 = vsub.s32 3, %v2578_v22  ;;  %v6679_v29 = vsub.s32 4, %v2578_v22  ;;  %v6686_v61 = vsub.s32 0, %v2578_v22 }
 0x189   : > { %v5112_v28 = vpop.f32.mrf.mxu0  ;;  %v6691_v42 = vrot.slane %v2571_v2, %v6672_v7  ;;  %v6694_v15 = vrot.slane %v2571_v2, %v6675_v60  ;;  %v6703_v22 = vrot.slane %v2571_v2, %v6681_v35 }
 0x18a   : > { %8248 = vst [vmem:[#allocation2_spill] sm:$0xff] %v6660_v54  ;;  %v6667_v31 = vpop.f32.mrf.mxu1  ;;  %v6670_v12 = vadd.f32 %v5112_v28, %v6559_v38  ;;  %v2572_v28 = vld [vmem:[%s6665_s17 + $0x8] sm:$0x3f]  ;;  %v6697_v26 = vrot.slane %v2571_v2, %v6677_v55 }
 0x18b   : > { %8249 = vst [vmem:[#allocation7_spill] sm:$0xff] %v6667_v31  ;;  %v2053_v20 = vpop.f32.mrf.mxu0  ;;  %8252 = vst [vmem:[#allocation8_spill] sm:$0xff] %v6691_v42 }
 0x18c   : > { %8250 = vst [vmem:[#allocation10_spill] sm:$0xff] %v6670_v12  ;;  %v6684_v54 = vadd.f32 %v2053_v20, %v6567_v24  ;;  %v5142_v38 = vpop.f32.mrf.mxu1  ;;  %8253 = vst [vmem:[#allocation11_spill] sm:$0xff] %v6694_v15  ;;  %v6700_v24 = vrot.slane %v2571_v2, %v6679_v29  ;;  %v6714_v15 = vrot.slane %v2572_v28, %v6686_v61 }
 0x18d   : > { %v5115_v31 = vpop.f32.mrf.mxu0  ;;  %8254 = vst [vmem:[#allocation14_spill] sm:$0xff] %v6697_v26  ;;  %v1929_v26 = vadd.f32 %v6485_v50, %v6505_v21  ;;  %v6736_v50 = vrot.slane %v2572_v28, %v6681_v35  ;;  %v2573_v21 = vld [vmem:[%s6665_s17 + $0x10] sm:$0x3f] }
 0x18e   : > { %8251 = vst [vmem:[#allocation6_spill] sm:$0xff] %v6684_v54  ;;  %v2115_v12 = vadd.f32 %v5115_v31, %v6573_v27  ;;  %8255 = vst [vmem:[#allocation9_spill] sm:$0xff] %v6700_v24  ;;  %v6711_v31 = vrot.slane %v2571_v2, %v6686_v61  ;;  %v6718_v24 = vpop.f32.mrf.mxu1  ;;  %v6721_v54 = vrot.slane %v2572_v28, %v6672_v7 }
 0x18f   : > { %v2066_v63 = vpop.f32.mrf.mxu0  ;;  %v6733_v2 = vrot.slane %v2572_v28, %v6679_v29  ;;  %8260 = vst [vmem:[#allocation17_spill] sm:$0xff] %v6736_v50 }
 0x190   : > { %v6706_v20 = vadd.f32 %v2066_v63, %v6576_v6  ;;  %v6708_v27 = vadd.f32 %v5141_v34, %v2115_v12  ;;  %8257 = vst [vmem:[#allocation15_spill] sm:$0xff] %v6711_v31  ;;  %v6724_v6 = vrot.slane %v2572_v28, %v6675_v60  ;;  %v6727_v34 = vrot.slane %v2572_v28, %v6677_v55 }
 0x191   : > { %v5116_v42 = vpop.f32.mrf.mxu0  ;;  %v1927_v63 = vadd.f32 %v6490_v46, %v6508_v17  ;;  %v2099_v46 = vadd.f32 %v6599_v36, %v1929_v26 }
 0x192   : > { %8256 = vst [vmem:[#allocation12_spill] sm:$0xff] %v6708_v27  ;;  %8258 = vst [vmem:[#allocation22_spill] sm:$0xff] %v6724_v6  ;;  %v2116_v12 = vadd.f32 %v5116_v42, %v6579_v14  ;;  %v1930_v27 = vadd.f32 %v6495_v47, %v6513_v13  ;;  %v1928_v6 = vadd.f32 %v6500_v19, %v6518_v25  ;;  %v5145_v25 = vpop.f32.mrf.mxu1 }
 0x193   : > { %8259 = vst [vmem:[#allocation13_spill] sm:$0xff] %v6727_v34  ;;  %v1931_v34 = vadd.f32 %v6510_v56, %v6524_v58  ;;  %v2069_v17 = vpop.f32.mrf.mxu0  ;;  %v1934_v14 = vadd.f32 %v6515_v33, %v6531_v49  ;;  %v1932_v42 = vadd.f32 %v6520_v23, %v6534_v48  ;;  %v1935_v19 = vadd.f32 %v6528_v3, %v6538_v11  ;;  %v2574_v48 = vld [vmem:[%s6665_s17 + $0x18] sm:$0x3f] }
 0x194   : > { %v6751_v28 = vadd.f32 %v2069_v17, %v6582_v44  ;;  %v6753_v47 = vadd.f32 %v5142_v38, %v2116_v12  ;;  %v6758_v56 = vrot.slane %v2573_v21, %v6686_v61  ;;  %v6761_v58 = vrot.slane %v2573_v21, %v6672_v7 }
 0x195   : > { %v5119_v13 = vpop.f32.mrf.mxu0  ;;  %v6764_v33 = vrot.slane %v2573_v21, %v6675_v60  ;;  %v2097_v23 = vadd.f32 %v6605_v57, %v1927_v63  ;;  %v6770_v44 = vrot.slane %v2573_v21, %v6677_v55  ;;  %v6773_v3 = vrot.slane %v2573_v21, %v6679_v29 }
 0x196   : > { %8261 = vst [vmem:[#allocation23_spill] sm:$0xff] %v6758_v56  ;;  %8262 = vst [vmem:[#allocation26_spill] sm:$0xff] %v6761_v58  ;;  %v2119_v49 = vadd.f32 %v5119_v13, %v6587_v62  ;;  %v2283_v11 = vadd.f32 %v6584_v18, %v2099_v46  ;;  %v2100_v36 = vadd.f32 %v6609_v32, %v1930_v27 }
 0x197   : > { %8263 = vst [vmem:[#allocation19_spill] sm:$0xff] %v6764_v33  ;;  %8264 = vst [vmem:[#allocation24_spill] sm:$0xff] %v6770_v44  ;;  %v2098_v26 = vadd.f32 %v6613_v52, %v1928_v6  ;;  %v2082_v38 = vpop.f32.mrf.mxu0  ;;  %v6779_v12 = vrot.slane %v2573_v21, %v6681_v35  ;;  %v2101_v62 = vadd.f32 %v6622_v59, %v1931_v34  ;;  %v2575_v6 = vld [vmem:[%s6665_s17 + $0x20] sm:$0x3f] }
 0x198   : > { %8265 = vst [vmem:[#allocation28_spill] sm:$0xff] %v6773_v3  ;;  %v2104_v57 = vadd.f32 %v6626_v8, %v1934_v14  ;;  %v6784_v63 = vadd.f32 %v2082_v38, %v6592_v45  ;;  %v6786_v17 = vadd.f32 %v5145_v25, %v2119_v49  ;;  %v2102_v18 = vadd.f32 %v6630_v10, %v1932_v42  ;;  %v2266_v45 = vpop.f32.mrf.mxu1  ;;  %v2576_v49 = vld [vmem:[%s6665_s17 + $0x28] sm:$0x3f]  ;;  %v8279_v38 = vld [vmem:[#allocation20_spill] sm:$0xff] }
 0x199   : > { %8266 = vst [vmem:[#allocation29_spill] sm:$0xff] %v6779_v12  ;;  %v5120_v46 = vpop.f32.mrf.mxu0  ;;  %v6790_v32 = vrot.slane %v2574_v48, %v6686_v61  ;;  %v6793_v52 = vrot.slane %v2574_v48, %v6672_v7  ;;  %v6796_v27 = vrot.slane %v2574_v48, %v6675_v60  ;;  %v2281_v59 = vadd.f32 %v6589_v16, %v2097_v23 }
 0x19a   : > { %8267 = vst [vmem:[#allocation30_spill] sm:$0xff] %v6786_v17  ;;  %v2120_v8 = vadd.f32 %v5120_v46, %v6597_v9  ;;  %v6802_v34 = vrot.slane %v2574_v48, %v6677_v55  ;;  %v6805_v10 = vrot.slane %v2574_v48, %v6679_v29  ;;  %v2284_v21 = vadd.f32 %v6594_v53, %v2100_v36  ;;  %v8282_v46 = vld [vmem:[#allocation18_spill] sm:$0xff] }
 0x19b   : > { %8268 = vst [vmem:[#allocation31_spill] sm:$0xff] %v6790_v32  ;;  %8269 = vst [vmem:[#allocation32_spill] sm:$0xff] %v6793_v52  ;;  %v2282_v14 = vadd.f32 %v6601_v5, %v2098_v26  ;;  %v2105_v42 = vadd.f32 %v6639_v40, %v1935_v19  ;;  %v2085_v13 = vpop.f32.mrf.mxu0  ;;  %v6811_v16 = vrot.slane %v2574_v48, %v6681_v35  ;;  %v6830_v19 = vld [vmem:[%s7999_s2] ss:$0 sm:$0xff] }
 0x19c   : > { %8270 = vst [vmem:[#allocation33_spill] sm:$0xff] %v6796_v27  ;;  %8271 = vst [vmem:[#allocation34_spill] sm:$0xff] %v6802_v34  ;;  %v6815_v9 = vadd.f32 %v6607_v1, %v6620_v0  ;;  %v6818_v25 = vadd.f32 %v6611_v30, %v2101_v62  ;;  %v6821_v23 = vadd.f32 %v6615_v51, %v2104_v57  ;;  %v8280_v62 = vld [vmem:[#allocation16_spill] sm:$0xff] }
 0x19d   : > { %8272 = vst [vmem:[#allocation35_spill] sm:$0xff] %v6805_v10  ;;  %8273 = vst [vmem:[#allocation36_spill] sm:$0xff] %v6811_v16  ;;  %v2118_v53 = vadd.f32 %v2085_v13, %v6603_v4  ;;  %v6825_v5 = vadd.f32 %v6617_v37, %v2102_v18  ;;  %v5151_v40 = vpop.f32.mrf.mxu0  ;;  %v6834_v1 = vrot.slane %v2575_v6, %v6686_v61  ;;  %v5146_v37 = vpop.f32.mrf.mxu1  ;;  %v8281_v18 = vld [vmem:[#allocation21_spill] sm:$0xff] }
 0x19e   : > { %v6837_v30 = vrot.slane %v2575_v6, %v6672_v7  ;;  %v6840_v51 = vrot.slane %v2575_v6, %v6675_v60  ;;  %v6844_v4 = vadd.f32 %v6624_v39, %v6637_v43  ;;  %v2463_v0 = vadd.f32 %v5151_v40, %v2283_v11  ;;  %v6866_v39 = vld [vmem:[%s8000_s3] ss:$0 sm:$0xff]  ;;  %v8284_v40 = vld [vmem:[#allocation5_spill] sm:$0xff] }
 0x19f   : > { %8274 = vst [vmem:[#allocation37_spill] sm:$0xff] %v6834_v1  ;;  %v6847_v48 = vrot.slane %v2575_v6, %v6677_v55  ;;  %v6850_v36 = vrot.slane %v2575_v6, %v6679_v29  ;;  %v6853_v26 = vadd.f32 %v6628_v41, %v2105_v42  ;;  %v6857_v57 = vadd.f32 %v8280_v62, %v8279_v38  ;;  %v2366_v43 = vpop.f32.mrf.mxu0  ;;  %v8285_v41 = vld [vmem:[#allocation4_spill] sm:$0xff] }
 0x1a0   : > { %8275 = vst [vmem:[#allocation38_spill] sm:$0xff] %v6837_v30  ;;  %8276 = vst [vmem:[#allocation39_spill] sm:$0xff] %v6840_v51  ;;  %v6861_v13 = vadd.f32 %v8282_v46, %v8281_v18  ;;  %v6869_v11 = vrot.slane %v2575_v6, %v6681_v35  ;;  %v6873_v42 = vadd.f32 %v8285_v41, %v8284_v40  ;;  %v8287_v18 = vld [vmem:[#allocation2_spill] sm:$0xff]  ;;  %v8288_v46 = vld [vmem:[#allocation3_spill] sm:$0xff]  ;;  %v2269_v41 = vpop.f32.mrf.mxu1 }
 0x1a1   : > { %8277 = vst [vmem:[#allocation40_spill] sm:$0xff] %v6847_v48  ;;  %8278 = vst [vmem:[#allocation41_spill] sm:$0xff] %v6850_v36  ;;  %v2494_v38 = vmul.f32 %v6830_v19, %v2463_v0  ;;  %v2461_v62 = vadd.f32 %v2366_v43, %v2281_v59  ;;  %v6877_v36 = vrot.slane %v2576_v49, %v6686_v61  ;;  %v5152_v51 = vpop.f32.mrf.mxu0 }
 0x1a2   : > { %8283 = vst [vmem:[#allocation20_spill] sm:$0xff] %v6869_v11  ;;  %v6881_v48 = vadd.f32 %v8288_v46, %v8287_v18  ;;  %v6884_v30 = vrot.slane %v2576_v49, %v6672_v7  ;;  %v6887_v6 = vrot.slane %v2576_v49, %v6675_v60  ;;  %v6890_v40 = vrot.slane %v2576_v49, %v6677_v55  ;;  %v8293_v18 = vld [vmem:[#allocation10_spill] sm:$0xff]  ;;  %v8294_v46 = vld [vmem:[#allocation25_spill] sm:$0xff]  ;;  %v8297_v55 = vld [vmem:[#allocation7_spill] sm:$0xff] }
 0x1a3   : > { %8286 = vst [vmem:[#allocation16_spill] sm:$0xff] %v6877_v36  ;;  %v2525_v59 = vadd.f32 %v6866_v39, %v2494_v38  ;;  %v2492_v61 = vmul.f32 %v6830_v19, %v2461_v62  ;;  %v2464_v0 = vadd.f32 %v5152_v51, %v2284_v21  ;;  %v6895_v43 = vrot.slane %v2576_v49, %v6679_v29  ;;  %v8295_v7 = vld [vmem:[#allocation6_spill] sm:$0xff] }
 0x1a4   : > { %8289 = vst [vmem:[#allocation21_spill] sm:$0xff] %v6884_v30  ;;  %8290 = vst [vmem:[#allocation18_spill] sm:$0xff] %v6887_v6  ;;  %v6899_v36 = vadd.f32 %v8294_v46, %v8293_v18  ;;  %v8296_v30 = vld [vmem:[#allocation27_spill] sm:$0xff]  ;;  %v2369_v6 = vpop.f32.mrf.mxu0  ;;  %v6910_v38 = vrot.slane %v2576_v49, %v6681_v35  ;;  %v6916_v18 = vadd.f32 %v6718_v24, %v6751_v28  ;;  %v8302_v35 = vld [vmem:[#allocation8_spill] sm:$0xff] }
 0x1a5   : > { %8291 = vst [vmem:[#allocation5_spill] sm:$0xff] %v6890_v40  ;;  %8292 = vst [vmem:[#allocation4_spill] sm:$0xff] %v6895_v43  ;;  %v6903_v60 = vadd.f32 %v8296_v30, %v8295_v7  ;;  %v6907_v40 = vadd.f32 %v8297_v55, %v6706_v20  ;;  %v2549_v21 = vmax.f32 %v2525_v59, 0.0  ;;  %v2523_v29 = vadd.f32 %v6866_v39, %v2492_v61  ;;  %v8303_v59 = vld [vmem:[#allocation11_spill] sm:$0xff] }
 0x1a6   : > { %8298 = vst [vmem:[#allocation2_spill] sm:$0xff] %v6910_v38  ;;  %v2495_v51 = vmul.f32 %v6830_v19, %v2464_v0  ;;  %v2462_v62 = vadd.f32 %v2369_v6, %v2282_v14  ;;  %v6919_v30 = vadd.f32 %v2266_v45, %v6784_v63  ;;  %v6921_v46 = vadd.f32 %v5146_v37, %v2120_v8  ;;  %v5155_v7 = vpop.f32.mrf.mxu0  ;;  %v8304_v0 = vld [vmem:[#allocation14_spill] sm:$0xff]  ;;  %v8305_v6 = vld [vmem:[#allocation9_spill] sm:$0xff] }
 0x1a7   : > { %v6923_v20 = vadd.f32 %v2269_v41, %v2118_v53  ;;  %v6926_v49 = vmul.f32 %v8302_v35, %v2549_v21  ;;  %v6929_v61 = vmul.f32 %v8303_v59, %v2549_v21  ;;  %v6932_v14 = vmul.f32 %v8304_v0, %v2549_v21 }
 0x1a8   : > { %8299 = vst [vmem:[#allocation3_spill] sm:$0xff] %v6919_v30  ;;  %8300 = vst [vmem:[#allocation10_spill] sm:$0xff] %v6921_v46  ;;  %v6935_v24 = vmul.f32 %v8305_v6, %v2549_v21  ;;  %v6938_v28 = vmul.f32 %v6703_v22, %v2549_v21  ;;  %v2547_v63 = vmax.f32 %v2523_v29, 0.0  ;;  %v2526_v8 = vadd.f32 %v6866_v39, %v2495_v51  ;;  %v2382_v53 = vpop.f32.mrf.mxu0 }
 0x1a9   : > { %8301 = vst [vmem:[#allocation25_spill] sm:$0xff] %v6923_v20  ;;  %v2493_v45 = vmul.f32 %v6830_v19, %v2462_v62  ;;  %v2598_v37 = vrot.slane %v6926_v49, 1  ;;  %v2617_v41 = vrot.slane %v6929_v61, 2  ;;  %v2637_v55 = vrot.slane %v6932_v14, 3 }
 0x1aa   : > { %v2657_v38 = vrot.slane %v6935_v24, 4  ;;  %v2677_v43 = vrot.slane %v6938_v28, 5  ;;  %v2581_v11 = vmul.f32 %v6711_v31, %v2547_v63  ;;  %v2589_v21 = vmul.f32 %v8302_v35, %v2547_v63  ;;  %v5156_v51 = vpop.f32.mrf.mxu0 }
 0x1ab   : > { %v2608_v29 = vmul.f32 %v8303_v59, %v2547_v63  ;;  %v2627_v62 = vmul.f32 %v8304_v0, %v2547_v63  ;;  %v2647_v49 = vmul.f32 %v8305_v6, %v2547_v63  ;;  %v2667_v61 = vmul.f32 %v6703_v22, %v2547_v63 }
 0x1ac   : > { %v6953_v1 = vmax.f32 %v2526_v8, 0.0  ;;  %v2595_v14 = vrot.slane %v2589_v21, 1  ;;  %v2524_v28 = vadd.f32 %v6866_v39, %v2493_v45  ;;  %v2467_v16 = vadd.f32 %v5155_v7, %v6815_v9  ;;  %v2385_v10 = vpop.f32.mrf.mxu0 }
 0x1ad   : > { %v2614_v24 = vrot.slane %v2608_v29, 2  ;;  %v2634_v34 = vrot.slane %v2627_v62, 3  ;;  %v2654_v27 = vrot.slane %v2647_v49, 4  ;;  %v2674_v52 = vrot.slane %v2667_v61, 5 }
 0x1ae   : > { %v6959_v32 = vmul.f32 %v6714_v15, %v6953_v1  ;;  %v2548_v12 = vmax.f32 %v2524_v28, 0.0  ;;  %v2498_v63 = vmul.f32 %v6830_v19, %v2467_v16  ;;  %v2465_v8 = vadd.f32 %v2382_v53, %v6818_v25  ;;  %v6964_v29 = vpop.f32.mrf.mxu0 }
 0x1af   : > { %v2468_v21 = vadd.f32 %v5156_v51, %v6821_v23  ;;  %v2466_v45 = vadd.f32 %v2385_v10, %v6825_v5  ;;  %v6969_v9 = vmul.f32 %v6711_v31, %v6953_v1  ;;  %v6973_v7 = vmul.f32 %v8302_v35, %v6953_v1 }
 0x1b0   : > { %v6977_v62 = vmul.f32 %v8303_v59, %v6953_v1  ;;  %v2582_v16 = vmul.f32 %v6711_v31, %v2548_v12  ;;  %v2590_v25 = vmul.f32 %v8302_v35, %v2548_v12  ;;  %v2609_v23 = vmul.f32 %v8303_v59, %v2548_v12  ;;  %v6983_v5 = vpop.f32.mrf.mxu0 }
 0x1b1   : > { %v2628_v10 = vmul.f32 %v8304_v0, %v2548_v12  ;;  %v2648_v53 = vmul.f32 %v8305_v6, %v2548_v12  ;;  %v2668_v51 = vmul.f32 %v6703_v22, %v2548_v12  ;;  %v2529_v49 = vadd.f32 %v6866_v39, %v2498_v63 }
 0x1b2   : > { %v2496_v61 = vmul.f32 %v6830_v19, %v2465_v8  ;;  %v2596_v28 = vrot.slane %v2590_v25, 1  ;;  %v2615_v3 = vrot.slane %v2609_v23, 2  ;;  %v2499_v33 = vmul.f32 %v6830_v19, %v2468_v21  ;;  %v6990_v58 = vpop.f32.mrf.mxu0 }
 0x1b3   : > { %v2635_v44 = vrot.slane %v2628_v10, 3  ;;  %v2655_v56 = vrot.slane %v2648_v53, 4  ;;  %v2675_v20 = vrot.slane %v2668_v51, 5  ;;  %v6992_v46 = vmax.f32 %v2529_v49, 0.0 }
 0x1b4   : > { %v2527_v30 = vadd.f32 %v6866_v39, %v2496_v61  ;;  %v2597_v17 = vsel %vm589_vm1, %v2595_v14, %v2596_v28  ;;  %v2599_v12 = vsel %vm589_vm1, %v2596_v28, %v2598_v37  ;;  %v2616_v63 = vsel %vm1022_vm3, %v2614_v24, %v2615_v3  ;;  %v6999_v25 = vpop.f32.mrf.mxu0 }
 0x1b5   : > { %8306 = vst [vmem:[#allocation6_spill] sm:$0xff] %v6992_v46  ;;  %v2618_v8 = vsel %vm1022_vm3, %v2615_v3, %v2617_v41  ;;  %v2602_v23 = vadd.f32 %v2597_v17, %v2581_v11  ;;  %v2603_v21 = vadd.f32 %v2599_v12, %v2582_v16  ;;  %v2636_v10 = vsel %vm2633_vm6, %v2634_v34, %v2635_v44 }
 0x1b6   : > { %v2638_v53 = vsel %vm2633_vm6, %v2635_v44, %v2637_v55  ;;  %v2656_v51 = vsel %vm2653_vm4, %v2654_v27, %v2655_v56  ;;  %v2658_v49 = vsel %vm2653_vm4, %v2655_v56, %v2657_v38  ;;  %v2676_v14 = vsel %vm2673_vm7, %v2674_v52, %v2675_v20  ;;  %v7007_v61 = vpop.f32.mrf.mxu0 }
 0x1b7   : > { %v2678_v37 = vsel %vm2673_vm7, %v2675_v20, %v2677_v43  ;;  %v2621_v24 = vadd.f32 %v2616_v63, %v2602_v23  ;;  %v2622_v3 = vadd.f32 %v2618_v8, %v2603_v21  ;;  %v7009_v41 = vmax.f32 %v2527_v30, 0.0 }
 0x1b8   : > { %v2530_v17 = vadd.f32 %v6866_v39, %v2499_v33  ;;  %v2497_v34 = vmul.f32 %v6830_v19, %v2466_v45  ;;  %v3208_v44 = vrot.slane %v6973_v7, 1  ;;  %v3223_v27 = vrot.slane %v6977_v62, 2  ;;  %v7017_v52 = vpop.f32.mrf.mxu0 }
 0x1b9   : > { %v3232_v56 = vmul.f32 %v8304_v0, %v6953_v1  ;;  %v2641_v11 = vadd.f32 %v2636_v10, %v2621_v24  ;;  %v2642_v43 = vadd.f32 %v2638_v53, %v2622_v3  ;;  %v7023_v30 = vmul.f32 %v6721_v54, %v7009_v41 }
 0x1ba   : > { %v7019_v38 = vmax.f32 %v2530_v17, 0.0  ;;  %v2528_v33 = vadd.f32 %v6866_v39, %v2497_v34  ;;  %v3199_v20 = vmul.f32 %v6711_v31, %v7009_v41  ;;  %v3203_v55 = vmul.f32 %v8302_v35, %v7009_v41  ;;  %v7032_v7 = vpop.f32.mrf.mxu0 }
 0x1bb   : > { %v3218_v45 = vmul.f32 %v8303_v59, %v7009_v41  ;;  %v2661_v62 = vadd.f32 %v2656_v51, %v2641_v11  ;;  %v2662_v16 = vadd.f32 %v2658_v49, %v2642_v43  ;;  %v3233_v12 = vmul.f32 %v8304_v0, %v7009_v41  ;;  %v8307_v49 = vld [vmem:[#allocation22_spill] sm:$0xff]  ;;  %v8308_v11 = vld [vmem:[#allocation13_spill] sm:$0xff] }
 0x1bc   : > { %v2552_v63 = vmax.f32 %v2528_v33, 0.0  ;;  %v3209_v8 = vrot.slane %v3203_v55, 1  ;;  %v3238_v21 = vrot.slane %v3232_v56, 3  ;;  %v7037_v10 = vpop.f32.mrf.mxu0  ;;  %v7043_v17 = vmul.f32 %v8305_v6, %v7009_v41 }
 0x1bd   : > { %v3224_v23 = vrot.slane %v3218_v45, 2  ;;  %v2681_v53 = vadd.f32 %v2676_v14, %v2661_v62  ;;  %v7039_v24 = vadd.f32 %v2678_v37, %v2662_v16  ;;  %v3239_v3 = vrot.slane %v3233_v12, 3 }
 0x1be   : > { %v2697_v51 = vmul.f32 %v6721_v54, %v2552_v63  ;;  %v7047_v34 = vmul.f32 %v8307_v49, %v2552_v63  ;;  %v7050_v43 = vmul.f32 %v8308_v11, %v2552_v63  ;;  %v7053_v56 = vmul.f32 %v6733_v2, %v2552_v63  ;;  %v7055_v33 = vpop.f32.mrf.mxu0 }
 0x1bf   : > { %v7058_v14 = vadd.f32 %v6959_v32, %v2681_v53  ;;  %v7061_v37 = vmul.f32 %v6736_v50, %v2552_v63  ;;  %v3204_v55 = vmul.f32 %v8302_v35, %v2552_v63  ;;  %v3210_v45 = vsel %vm589_vm1, %v3208_v44, %v3209_v8 }
 0x1c0   : > { %v2704_v62 = vrot.slane %v2697_v51, 1  ;;  %v7068_v31 = vpop.f32.mrf.mxu0  ;;  %v3215_v53 = vadd.f32 %v3210_v45, %v6969_v9  ;;  %v3219_v50 = vmul.f32 %v8303_v59, %v2552_v63  ;;  %v8310_v35 = vrot.slane %v7023_v30, 1 }
 0x1c1   : > { %8309 = vst [vmem:[#allocation27_spill] sm:$0xff] %v7061_v37  ;;  %v3211_v32 = vrot.slane %v3204_v55, 1  ;;  %v3225_v51 = vsel %vm1022_vm3, %v3223_v27, %v3224_v23  ;;  %v3234_v12 = vmul.f32 %v8304_v0, %v2552_v63  ;;  %v7081_v28 = vsel %vm2633_vm6, %v3238_v21, %v3239_v3 }
 0x1c2   : > { %v7076_v44 = vsel %vm589_vm1, %v8310_v35, %v2704_v62  ;;  %8311 = vst [vmem:[#allocation7_spill] sm:$0xff] %v7081_v28  ;;  %v5168_v16 = vpop.f32.mrf.mxu0  ;;  %v3226_v55 = vrot.slane %v3219_v50, 2  ;;  %v7084_v37 = vadd.f32 %v3225_v51, %v3215_v53  ;;  %v3249_v9 = vmul.f32 %v8305_v6, %v2552_v63 }
 0x1c3   : > { %v3212_v46 = vsel %vm589_vm1, %v3209_v8, %v3211_v32  ;;  %v3241_v59 = vrot.slane %v3234_v12, 3  ;;  %v8106_v35 = vrot.slane %v7043_v17, 4  ;;  %v7090_v27 = vmul.f32 %v6703_v22, %v7009_v41 }
 0x1c4   : > { %v3216_v45 = vadd.f32 %v3212_v46, %v3199_v20  ;;  %v2433_v62 = vpop.f32.mrf.mxu0  ;;  %v3227_v21 = vsel %vm1022_vm3, %v3224_v23, %v3226_v55  ;;  %v3256_v0 = vrot.slane %v3249_v9, 4  ;;  %v3264_v28 = vmul.f32 %v6703_v22, %v2552_v63 }
 0x1c5   : > { %v3278_v50 = vmul.f32 %v6714_v15, %v7019_v38  ;;  %v3242_v32 = vsel %vm2633_vm6, %v3239_v3, %v3241_v59  ;;  %v8105_v46 = vrot.slane %v7090_v27, 5  ;;  %v2471_v20 = vadd.f32 %v6964_v29, %v6844_v4 }
 0x1c6   : > { %v3231_v8 = vadd.f32 %v3227_v21, %v3216_v45  ;;  %v3257_v12 = vsel %vm2653_vm4, %v8106_v35, %v3256_v0  ;;  %v3271_v53 = vrot.slane %v3264_v28, 5  ;;  %v2469_v23 = vadd.f32 %v6983_v5, %v6853_v26  ;;  %v5171_v51 = vpop.f32.mrf.mxu0 }
 0x1c7   : > { %v2472_v63 = vadd.f32 %v6990_v58, %v6857_v57  ;;  %v2502_v59 = vmul.f32 %v6830_v19, %v2471_v20  ;;  %v2470_v3 = vadd.f32 %v6999_v25, %v6861_v13  ;;  %v2475_v4 = vadd.f32 %v7007_v61, %v6873_v42 }
 0x1c8   : > { %v3246_v55 = vadd.f32 %v3242_v32, %v3231_v8  ;;  %v3272_v0 = vsel %vm2673_vm7, %v8105_v46, %v3271_v53  ;;  %v2500_v29 = vmul.f32 %v6830_v19, %v2469_v23  ;;  %v2473_v58 = vadd.f32 %v7017_v52, %v6881_v48  ;;  %v2446_v45 = vpop.f32.mrf.mxu0 }
 0x1c9   : > { %v2503_v26 = vmul.f32 %v6830_v19, %v2472_v63  ;;  %v2533_v5 = vadd.f32 %v6866_v39, %v2502_v59  ;;  %v2501_v28 = vmul.f32 %v6830_v19, %v2470_v3  ;;  %v2506_v13 = vmul.f32 %v6830_v19, %v2475_v4  ;;  %v8312_v3 = vld [vmem:[#allocation12_spill] sm:$0xff] }
 0x1ca   : > { %v3261_v57 = vadd.f32 %v3257_v12, %v3246_v55  ;;  %v2531_v42 = vadd.f32 %v6866_v39, %v2500_v29  ;;  %v2504_v61 = vmul.f32 %v6830_v19, %v2473_v58  ;;  %v2476_v9 = vadd.f32 %v7032_v7, %v6899_v36  ;;  %v5172_v29 = vpop.f32.mrf.mxu0 }
 0x1cb   : > { %v2534_v25 = vadd.f32 %v6866_v39, %v2503_v26  ;;  %v7127_v8 = vmax.f32 %v2533_v5, 0.0  ;;  %v2532_v48 = vadd.f32 %v6866_v39, %v2501_v28  ;;  %v2537_v52 = vadd.f32 %v6866_v39, %v2506_v13  ;;  %v8314_v13 = vld [vmem:[#allocation3_spill] sm:$0xff] }
 0x1cc   : > { %v3276_v21 = vadd.f32 %v3272_v0, %v3261_v57  ;;  %v7131_v32 = vmax.f32 %v2531_v42, 0.0  ;;  %v2535_v12 = vadd.f32 %v6866_v39, %v2504_v61  ;;  %v2507_v53 = vmul.f32 %v6830_v19, %v2476_v9  ;;  %v8313_v57 = vld [vmem:[#allocation30_spill] sm:$0xff]  ;;  %v2449_v61 = vpop.f32.mrf.mxu0 }
 0x1cd   : > { %v7133_v20 = vmax.f32 %v2534_v25, 0.0  ;;  %v7139_v63 = vmax.f32 %v2532_v48, 0.0  ;;  %v7141_v36 = vmax.f32 %v2537_v52, 0.0  ;;  %v2474_v7 = vadd.f32 %v7037_v10, %v6903_v60 }
 0x1ce   : > { %v7137_v23 = vadd.f32 %v3278_v50, %v3276_v21  ;;  %v7145_v55 = vmax.f32 %v2535_v12, 0.0  ;;  %v2538_v59 = vadd.f32 %v6866_v39, %v2507_v53  ;;  %v2479_v4 = vadd.f32 %v7055_v33, %v8312_v3 }
 0x1cf   : > { %v2477_v0 = vadd.f32 %v7068_v31, %v6907_v40  ;;  %v2505_v50 = vmul.f32 %v6830_v19, %v2474_v7  ;;  %v2480_v26 = vadd.f32 %v5168_v16, %v6753_v47  ;;  %v2478_v58 = vadd.f32 %v2433_v62, %v6916_v18 }
 0x1d0   : > { %v2483_v5 = vadd.f32 %v5171_v51, %v8313_v57  ;;  %v7156_v60 = vmax.f32 %v2538_v59, 0.0  ;;  %v2510_v10 = vmul.f32 %v6830_v19, %v2479_v4  ;;  %v2481_v33 = vadd.f32 %v2446_v45, %v8314_v13  ;;  %v8315_v51 = vld [vmem:[#allocation10_spill] sm:$0xff] }
 0x1d1   : > { %v2508_v28 = vmul.f32 %v6830_v19, %v2477_v0  ;;  %v2536_v42 = vadd.f32 %v6866_v39, %v2505_v50  ;;  %v2511_v31 = vmul.f32 %v6830_v19, %v2480_v26  ;;  %v2509_v40 = vmul.f32 %v6830_v19, %v2478_v58  ;;  %v8319_v0 = vld [vmem:[#allocation25_spill] sm:$0xff] }
 0x1d2   : > { %v2514_v47 = vmul.f32 %v6830_v19, %v2483_v5  ;;  %v2541_v18 = vadd.f32 %v6866_v39, %v2510_v10  ;;  %v2512_v62 = vmul.f32 %v6830_v19, %v2481_v33  ;;  %v2484_v25 = vadd.f32 %v5172_v29, %v8315_v51 }
 0x1d3   : > { %v2539_v16 = vadd.f32 %v6866_v39, %v2508_v28  ;;  %v7169_v9 = vmax.f32 %v2536_v42, 0.0  ;;  %v2542_v45 = vadd.f32 %v6866_v39, %v2511_v31  ;;  %v2540_v21 = vadd.f32 %v6866_v39, %v2509_v40 }
 0x1d4   : > { %v2545_v48 = vadd.f32 %v6866_v39, %v2514_v47  ;;  %v7174_v52 = vmax.f32 %v2541_v18, 0.0  ;;  %v2543_v53 = vadd.f32 %v6866_v39, %v2512_v62  ;;  %v2515_v7 = vmul.f32 %v6830_v19, %v2484_v25 }
 0x1d5   : > { %v7176_v12 = vmax.f32 %v2539_v16, 0.0  ;;  %v7180_v59 = vmax.f32 %v2542_v45, 0.0  ;;  %v7182_v3 = vmax.f32 %v2540_v21, 0.0  ;;  %v2482_v29 = vadd.f32 %v2449_v61, %v8319_v0 }
 0x1d6   : > { %8316 = vst [vmem:[#allocation9_spill] sm:$0xff] %v7174_v52  ;;  %v7184_v4 = vmax.f32 %v2545_v48, 0.0  ;;  %v7187_v50 = vmax.f32 %v2543_v53, 0.0  ;;  %v2546_v26 = vadd.f32 %v6866_v39, %v2515_v7  ;;  %v2688_v58 = vmul.f32 %v6714_v15, %v7009_v41 }
 0x1d7   : > { %8317 = vst [vmem:[#allocation22_spill] sm:$0xff] %v7180_v59  ;;  %v2695_v57 = vmul.f32 %v6721_v54, %v6953_v1  ;;  %v2513_v5 = vmul.f32 %v6830_v19, %v2482_v29  ;;  %v2714_v10 = vmul.f32 %v8307_v49, %v6953_v1  ;;  %v2715_v28 = vmul.f32 %v8307_v49, %v7009_v41  ;;  %v8346_v59 = vld [vmem:[#allocation40_spill] sm:$0xff] }
 0x1d8   : > { %8318 = vst [vmem:[#allocation13_spill] sm:$0xff] %v7184_v4  ;;  %8320 = vst [vmem:[#allocation12_spill] sm:$0xff] %v7187_v50  ;;  %v2733_v13 = vmul.f32 %v8308_v11, %v6953_v1  ;;  %v7201_v33 = vmax.f32 %v2546_v26, 0.0  ;;  %v2690_v42 = vadd.f32 %v2688_v58, %v7039_v24  ;;  %v2734_v40 = vmul.f32 %v8308_v11, %v7009_v41 }
 0x1d9   : > { %v2701_v31 = vrot.slane %v2695_v57, 1  ;;  %v2544_v47 = vadd.f32 %v6866_v39, %v2513_v5  ;;  %v2720_v19 = vrot.slane %v2714_v10, 2  ;;  %v2721_v18 = vrot.slane %v2715_v28, 2  ;;  %v8327_v28 = vld [vmem:[#allocation6_spill] sm:$0xff] }
 0x1da   : > { %8321 = vst [vmem:[#allocation30_spill] sm:$0xff] %v7201_v33  ;;  %v2739_v16 = vrot.slane %v2733_v13, 3  ;;  %v8322_v62 = vrot.slane %v7023_v30, 1  ;;  %v2709_v25 = vadd.f32 %v7076_v44, %v2690_v42  ;;  %v2740_v61 = vrot.slane %v2734_v40, 3  ;;  %v8328_v13 = vld [vmem:[#allocation23_spill] sm:$0xff] }
 0x1db   : > { %v2752_v45 = vmul.f32 %v6733_v2, %v6953_v1  ;;  %v7213_v24 = vmax.f32 %v2544_v47, 0.0  ;;  %v2722_v48 = vsel %vm1022_vm3, %v2720_v19, %v2721_v18  ;;  %v8324_v39 = vrot.slane %v7047_v34, 2  ;;  %v8329_v19 = vld [vmem:[#allocation26_spill] sm:$0xff] }
 0x1dc   : > { %v2703_v51 = vsel %vm589_vm1, %v2701_v31, %v8322_v62  ;;  %v2741_v30 = vsel %vm2633_vm6, %v2739_v16, %v2740_v61  ;;  %v8325_v0 = vrot.slane %v7050_v43, 3  ;;  %v2753_v29 = vmul.f32 %v6733_v2, %v7009_v41 }
 0x1dd   : > { %8323 = vst [vmem:[#allocation3_spill] sm:$0xff] %v7213_v24  ;;  %v2708_v21 = vadd.f32 %v2703_v51, %v7058_v14  ;;  %v2724_v53 = vsel %vm1022_vm3, %v2721_v18, %v8324_v39  ;;  %v2758_v58 = vrot.slane %v2752_v45, 4  ;;  %v8326_v14 = vld [vmem:[#allocation17_spill] sm:$0xff]  ;;  %v2790_v42 = vmul.f32 %v8328_v13, %v8327_v28 }
 0x1de   : > { %v2728_v7 = vadd.f32 %v2724_v53, %v2709_v25  ;;  %v2743_v44 = vsel %vm2633_vm6, %v2740_v61, %v8325_v0  ;;  %v2771_v57 = vmul.f32 %v8326_v14, %v6953_v1  ;;  %v2772_v34 = vmul.f32 %v8326_v14, %v7009_v41 }
 0x1df   : > { %v2727_v26 = vadd.f32 %v2722_v48, %v2708_v21  ;;  %v2759_v10 = vrot.slane %v2753_v29, 4  ;;  %v2791_v43 = vmul.f32 %v8328_v13, %v7019_v38  ;;  %v2798_v18 = vmul.f32 %v8329_v19, %v8327_v28  ;;  %v8331_v48 = vld [vmem:[#allocation27_spill] sm:$0xff] }
 0x1e0   : > { %v2747_v5 = vadd.f32 %v2743_v44, %v2728_v7  ;;  %v2777_v40 = vrot.slane %v2771_v57, 5  ;;  %v2778_v47 = vrot.slane %v2772_v34, 5  ;;  %v8330_v62 = vrot.slane %v7053_v56, 4  ;;  %v8333_v56 = vld [vmem:[#allocation19_spill] sm:$0xff] }
 0x1e1   : > { %v2746_v31 = vadd.f32 %v2741_v30, %v2727_v26  ;;  %v2760_v16 = vsel %vm2653_vm4, %v2758_v58, %v2759_v10  ;;  %v2799_v51 = vmul.f32 %v8329_v19, %v7019_v38  ;;  %v2800_v25 = vmul.f32 %v8329_v19, %v7131_v32 }
 0x1e2   : > { %v2762_v41 = vsel %vm2653_vm4, %v2759_v10, %v8330_v62  ;;  %v2779_v21 = vsel %vm2673_vm7, %v2777_v40, %v2778_v47  ;;  %v8332_v39 = vrot.slane %v8331_v48, 5  ;;  %v2804_v7 = vrot.slane %v2798_v18, 1 }
 0x1e3   : > { %v2765_v61 = vadd.f32 %v2760_v16, %v2746_v31  ;;  %v2766_v45 = vadd.f32 %v2762_v41, %v2747_v5  ;;  %v2805_v30 = vrot.slane %v2799_v51, 1  ;;  %v2807_v0 = vrot.slane %v2800_v25, 1  ;;  %v8334_v31 = vld [vmem:[#allocation24_spill] sm:$0xff] }
 0x1e4   : > { %v2781_v53 = vsel %vm2673_vm7, %v2778_v47, %v8332_v39  ;;  %v2817_v44 = vmul.f32 %v8333_v56, %v8327_v28  ;;  %v2818_v58 = vmul.f32 %v8333_v56, %v7019_v38  ;;  %v2819_v57 = vmul.f32 %v8333_v56, %v7131_v32 }
 0x1e5   : > { %v2784_v29 = vadd.f32 %v2779_v21, %v2765_v61  ;;  %v2785_v26 = vadd.f32 %v2781_v53, %v2766_v45  ;;  %v2806_v34 = vsel %vm589_vm1, %v2804_v7, %v2805_v30  ;;  %v2808_v5 = vsel %vm589_vm1, %v2805_v30, %v2807_v0  ;;  %v8335_v61 = vld [vmem:[#allocation28_spill] sm:$0xff] }
 0x1e6   : > { %v2823_v10 = vrot.slane %v2817_v44, 2  ;;  %v2836_v40 = vmul.f32 %v8334_v31, %v8327_v28  ;;  %v2824_v16 = vrot.slane %v2818_v58, 2  ;;  %v2826_v62 = vrot.slane %v2819_v57, 2 }
 0x1e7   : > { %v2792_v47 = vadd.f32 %v2790_v42, %v2784_v29  ;;  %v2793_v18 = vadd.f32 %v2791_v43, %v2785_v26  ;;  %v2837_v41 = vmul.f32 %v8334_v31, %v7019_v38  ;;  %v2838_v51 = vmul.f32 %v8334_v31, %v7131_v32  ;;  %v8336_v26 = vld [vmem:[#allocation29_spill] sm:$0xff] }
 0x1e8   : > { %v2842_v25 = vrot.slane %v2836_v40, 3  ;;  %v2855_v45 = vmul.f32 %v8335_v61, %v8327_v28  ;;  %v2825_v39 = vsel %vm1022_vm3, %v2823_v10, %v2824_v16  ;;  %v2827_v53 = vsel %vm1022_vm3, %v2824_v16, %v2826_v62 }
 0x1e9   : > { %v2811_v21 = vadd.f32 %v2806_v34, %v2792_v47  ;;  %v2812_v48 = vadd.f32 %v2808_v5, %v2793_v18  ;;  %v2843_v42 = vrot.slane %v2837_v41, 3  ;;  %v2845_v43 = vrot.slane %v2838_v51, 3 }
 0x1ea   : > { %v2856_v7 = vmul.f32 %v8335_v61, %v7019_v38  ;;  %v2857_v30 = vmul.f32 %v8335_v61, %v7131_v32  ;;  %v2861_v29 = vrot.slane %v2855_v45, 4  ;;  %v2874_v58 = vmul.f32 %v8336_v26, %v8327_v28  ;;  %v8337_v45 = vld [vmem:[#allocation31_spill] sm:$0xff] }
 0x1eb   : > { %v2830_v0 = vadd.f32 %v2825_v39, %v2811_v21  ;;  %v2831_v44 = vadd.f32 %v2827_v53, %v2812_v48  ;;  %v2844_v57 = vsel %vm2633_vm6, %v2842_v25, %v2843_v42  ;;  %v2846_v34 = vsel %vm2633_vm6, %v2843_v42, %v2845_v43  ;;  %v8338_v43 = vld [vmem:[#allocation32_spill] sm:$0xff] }
 0x1ec   : > { %v2862_v5 = vrot.slane %v2856_v7, 4  ;;  %v2864_v10 = vrot.slane %v2857_v30, 4  ;;  %v2875_v18 = vmul.f32 %v8336_v26, %v7019_v38  ;;  %v2876_v16 = vmul.f32 %v8336_v26, %v7131_v32 }
 0x1ed   : > { %v2849_v40 = vadd.f32 %v2844_v57, %v2830_v0  ;;  %v2850_v47 = vadd.f32 %v2846_v34, %v2831_v44  ;;  %v2880_v51 = vrot.slane %v2874_v58, 5  ;;  %v2893_v25 = vmul.f32 %v8337_v45, %v7139_v63  ;;  %v8339_v58 = vld [vmem:[#allocation33_spill] sm:$0xff] }
 0x1ee   : > { %v2863_v62 = vsel %vm2653_vm4, %v2861_v29, %v2862_v5  ;;  %v2865_v41 = vsel %vm2653_vm4, %v2862_v5, %v2864_v10  ;;  %v2881_v39 = vrot.slane %v2875_v18, 5  ;;  %v2883_v53 = vrot.slane %v2876_v16, 5 }
 0x1ef   : > { %v2868_v21 = vadd.f32 %v2863_v62, %v2849_v40  ;;  %v2869_v48 = vadd.f32 %v2865_v41, %v2850_v47  ;;  %v2894_v42 = vmul.f32 %v8337_v45, %v7127_v8  ;;  %v2901_v7 = vmul.f32 %v8338_v43, %v7139_v63 }
 0x1f0   : > { %v2902_v30 = vmul.f32 %v8338_v43, %v7127_v8  ;;  %v2903_v0 = vmul.f32 %v8338_v43, %v7133_v20  ;;  %v2882_v44 = vsel %vm2673_vm7, %v2880_v51, %v2881_v39  ;;  %v2884_v29 = vsel %vm2673_vm7, %v2881_v39, %v2883_v53  ;;  %v8340_v53 = vld [vmem:[#allocation34_spill] sm:$0xff] }
 0x1f1   : > { %v2920_v57 = vmul.f32 %v8339_v58, %v7139_v63  ;;  %v2921_v34 = vmul.f32 %v8339_v58, %v7127_v8  ;;  %v2887_v5 = vadd.f32 %v2882_v44, %v2868_v21  ;;  %v2888_v10 = vadd.f32 %v2884_v29, %v2869_v48 }
 0x1f2   : > { %v2907_v40 = vrot.slane %v2901_v7, 1  ;;  %v2908_v47 = vrot.slane %v2902_v30, 1  ;;  %v2910_v18 = vrot.slane %v2903_v0, 1  ;;  %v2922_v16 = vmul.f32 %v8339_v58, %v7133_v20 }
 0x1f3   : > { %v2926_v62 = vrot.slane %v2920_v57, 2  ;;  %v2927_v41 = vrot.slane %v2921_v34, 2  ;;  %v2895_v46 = vadd.f32 %v2893_v25, %v2887_v5  ;;  %v2896_v51 = vadd.f32 %v2894_v42, %v2888_v10  ;;  %v8341_v57 = vld [vmem:[#allocation35_spill] sm:$0xff] }
 0x1f4   : > { %v2909_v39 = vsel %vm589_vm1, %v2907_v40, %v2908_v47  ;;  %v2939_v35 = vmul.f32 %v8340_v53, %v7139_v63  ;;  %v2911_v33 = vsel %vm589_vm1, %v2908_v47, %v2910_v18  ;;  %v2929_v48 = vrot.slane %v2922_v16, 2 }
 0x1f5   : > { %v2928_v21 = vsel %vm1022_vm3, %v2926_v62, %v2927_v41  ;;  %v2940_v7 = vmul.f32 %v8340_v53, %v7127_v8  ;;  %v2914_v30 = vadd.f32 %v2909_v39, %v2895_v46  ;;  %v2915_v0 = vadd.f32 %v2911_v33, %v2896_v51 }
 0x1f6   : > { %v2941_v44 = vmul.f32 %v8340_v53, %v7133_v20  ;;  %v2945_v25 = vrot.slane %v2939_v35, 3  ;;  %v2930_v42 = vsel %vm1022_vm3, %v2927_v41, %v2929_v48  ;;  %v2958_v34 = vmul.f32 %v8341_v57, %v7139_v63  ;;  %v8342_v35 = vld [vmem:[#allocation36_spill] sm:$0xff] }
 0x1f7   : > { %v2946_v29 = vrot.slane %v2940_v7, 3  ;;  %v2959_v5 = vmul.f32 %v8341_v57, %v7127_v8  ;;  %v2933_v10 = vadd.f32 %v2928_v21, %v2914_v30  ;;  %v2934_v40 = vadd.f32 %v2930_v42, %v2915_v0 }
 0x1f8   : > { %v2948_v47 = vrot.slane %v2941_v44, 3  ;;  %v2960_v46 = vmul.f32 %v8341_v57, %v7133_v20  ;;  %v2964_v18 = vrot.slane %v2958_v34, 4  ;;  %v2977_v62 = vmul.f32 %v8342_v35, %v7139_v63  ;;  %v8343_v34 = vld [vmem:[#allocation37_spill] sm:$0xff] }
 0x1f9   : > { %v2947_v33 = vsel %vm2633_vm6, %v2945_v25, %v2946_v29  ;;  %v2965_v16 = vrot.slane %v2959_v5, 4  ;;  %v2978_v48 = vmul.f32 %v8342_v35, %v7127_v8  ;;  %v2979_v30 = vmul.f32 %v8342_v35, %v7133_v20 }
 0x1fa   : > { %v2949_v41 = vsel %vm2633_vm6, %v2946_v29, %v2948_v47  ;;  %v2952_v51 = vadd.f32 %v2947_v33, %v2933_v10  ;;  %v2967_v39 = vrot.slane %v2960_v46, 4  ;;  %v2983_v0 = vrot.slane %v2977_v62, 5  ;;  %v8345_v62 = vld [vmem:[#allocation39_spill] sm:$0xff] }
 0x1fb   : > { %v2953_v21 = vadd.f32 %v2949_v41, %v2934_v40  ;;  %v2966_v7 = vsel %vm2653_vm4, %v2964_v18, %v2965_v16  ;;  %v2984_v42 = vrot.slane %v2978_v48, 5  ;;  %v2996_v5 = vmul.f32 %v8343_v34, %v7145_v55  ;;  %v8344_v40 = vld [vmem:[#allocation38_spill] sm:$0xff] }
 0x1fc   : > { %v2968_v44 = vsel %vm2653_vm4, %v2965_v16, %v2967_v39  ;;  %v2971_v25 = vadd.f32 %v2966_v7, %v2952_v51  ;;  %v2986_v10 = vrot.slane %v2979_v30, 5  ;;  %v2997_v47 = vmul.f32 %v8343_v34, %v7169_v9 }
 0x1fd   : > { %v2972_v29 = vadd.f32 %v2968_v44, %v2953_v21  ;;  %v3004_v46 = vmul.f32 %v8344_v40, %v7145_v55  ;;  %v2985_v33 = vsel %vm2673_vm7, %v2983_v0, %v2984_v42  ;;  %v3005_v18 = vmul.f32 %v8344_v40, %v7169_v9 }
 0x1fe   : > { %v3006_v16 = vmul.f32 %v8344_v40, %v7141_v36  ;;  %v3023_v41 = vmul.f32 %v8345_v62, %v7145_v55  ;;  %v2987_v51 = vsel %vm2673_vm7, %v2984_v42, %v2986_v10  ;;  %v2990_v39 = vadd.f32 %v2985_v33, %v2971_v25 }
 0x1ff   : > { %v3010_v48 = vrot.slane %v3004_v46, 1  ;;  %v3024_v21 = vmul.f32 %v8345_v62, %v7169_v9  ;;  %v2991_v7 = vadd.f32 %v2987_v51, %v2972_v29  ;;  %v3011_v30 = vrot.slane %v3005_v18, 1 }
 0x200   : > { %v3013_v44 = vrot.slane %v3006_v16, 1  ;;  %v3025_v0 = vmul.f32 %v8345_v62, %v7141_v36  ;;  %v2998_v4 = vadd.f32 %v2996_v5, %v2990_v39  ;;  %v3029_v24 = vrot.slane %v3023_v41, 2 }
 0x201   : > { %v3030_v50 = vrot.slane %v3024_v21, 2  ;;  %v3042_v52 = vmul.f32 %v8346_v59, %v7145_v55  ;;  %v2999_v40 = vadd.f32 %v2997_v47, %v2991_v7  ;;  %v3012_v42 = vsel %vm589_vm1, %v3010_v48, %v3011_v30  ;;  %v8347_v47 = vld [vmem:[#allocation41_spill] sm:$0xff] }
 0x202   : > { %v3014_v25 = vsel %vm589_vm1, %v3011_v30, %v3013_v44  ;;  %v3032_v10 = vrot.slane %v3025_v0, 2  ;;  %v3017_v46 = vadd.f32 %v3012_v42, %v2998_v4  ;;  %v3043_v33 = vmul.f32 %v8346_v59, %v7169_v9  ;;  %v8348_v44 = vld [vmem:[#allocation20_spill] sm:$0xff] }
 0x203   : > { %v3031_v29 = vsel %vm1022_vm3, %v3029_v24, %v3030_v50  ;;  %v3044_v5 = vmul.f32 %v8346_v59, %v7141_v36  ;;  %v3018_v18 = vadd.f32 %v3014_v25, %v2999_v40  ;;  %v3048_v41 = vrot.slane %v3042_v52, 3 }
 0x204   : > { %v3033_v16 = vsel %vm1022_vm3, %v3030_v50, %v3032_v10  ;;  %v3061_v51 = vmul.f32 %v8347_v47, %v7145_v55  ;;  %v3036_v39 = vadd.f32 %v3031_v29, %v3017_v46  ;;  %v3049_v48 = vrot.slane %v3043_v33, 3 }
 0x205   : > { %v3051_v21 = vrot.slane %v3044_v5, 3  ;;  %v3062_v4 = vmul.f32 %v8347_v47, %v7169_v9  ;;  %v3037_v24 = vadd.f32 %v3033_v16, %v3018_v18  ;;  %v3063_v7 = vmul.f32 %v8347_v47, %v7141_v36  ;;  %v8349_v16 = vld [vmem:[#allocation16_spill] sm:$0xff] }
 0x206   : > { %v3067_v30 = vrot.slane %v3061_v51, 4  ;;  %v3080_v40 = vmul.f32 %v8348_v44, %v7145_v55  ;;  %v3050_v50 = vsel %vm2633_vm6, %v3048_v41, %v3049_v48  ;;  %v3081_v42 = vmul.f32 %v8348_v44, %v7169_v9 }
 0x207   : > { %v3052_v52 = vsel %vm2633_vm6, %v3049_v48, %v3051_v21  ;;  %v3068_v0 = vrot.slane %v3062_v4, 4  ;;  %v3055_v25 = vadd.f32 %v3050_v50, %v3036_v39  ;;  %v3070_v46 = vrot.slane %v3063_v7, 4  ;;  %v8350_v7 = vld [vmem:[#allocation21_spill] sm:$0xff] }
 0x208   : > { %v3056_v10 = vadd.f32 %v3052_v52, %v3037_v24  ;;  %v3082_v29 = vmul.f32 %v8348_v44, %v7141_v36  ;;  %v3086_v5 = vrot.slane %v3080_v40, 5  ;;  %v3087_v18 = vrot.slane %v3081_v42, 5  ;;  %v8351_v42 = vld [vmem:[#allocation18_spill] sm:$0xff] }
 0x209   : > { %v3069_v33 = vsel %vm2653_vm4, %v3067_v30, %v3068_v0  ;;  %v3099_v51 = vmul.f32 %v8349_v16, %v7156_v60  ;;  %v3071_v41 = vsel %vm2653_vm4, %v3068_v0, %v3070_v46  ;;  %v3100_v4 = vmul.f32 %v8349_v16, %v7176_v12 }
 0x20a   : > { %v3074_v48 = vadd.f32 %v3069_v33, %v3055_v25  ;;  %v3089_v21 = vrot.slane %v3082_v29, 5  ;;  %v3075_v39 = vadd.f32 %v3071_v41, %v3056_v10  ;;  %v3088_v24 = vsel %vm2673_vm7, %v3086_v5, %v3087_v18 }
 0x20b   : > { %v3107_v50 = vmul.f32 %v8350_v7, %v7156_v60  ;;  %v3108_v30 = vmul.f32 %v8350_v7, %v7176_v12  ;;  %v3109_v0 = vmul.f32 %v8350_v7, %v7182_v3  ;;  %v3126_v25 = vmul.f32 %v8351_v42, %v7156_v60 }
 0x20c   : > { %v3090_v40 = vsel %vm2673_vm7, %v3087_v18, %v3089_v21  ;;  %v3093_v52 = vadd.f32 %v3088_v24, %v3074_v48  ;;  %v3127_v33 = vmul.f32 %v8351_v42, %v7176_v12  ;;  %v3128_v16 = vmul.f32 %v8351_v42, %v7182_v3  ;;  %v8352_v24 = vld [vmem:[#allocation5_spill] sm:$0xff] }
 0x20d   : > { %v3094_v46 = vadd.f32 %v3090_v40, %v3075_v39  ;;  %v3113_v29 = vrot.slane %v3107_v50, 1  ;;  %v3114_v10 = vrot.slane %v3108_v30, 1  ;;  %v3116_v41 = vrot.slane %v3109_v0, 1 }
 0x20e   : > { %v3101_v5 = vadd.f32 %v3099_v51, %v3093_v52  ;;  %v3132_v44 = vrot.slane %v3126_v25, 2  ;;  %v3133_v21 = vrot.slane %v3127_v33, 2  ;;  %v3145_v7 = vmul.f32 %v8352_v24, %v7156_v60  ;;  %v8353_v33 = vld [vmem:[#allocation4_spill] sm:$0xff] }
 0x20f   : > { %v3102_v18 = vadd.f32 %v3100_v4, %v3094_v46  ;;  %v3115_v48 = vsel %vm589_vm1, %v3113_v29, %v3114_v10  ;;  %v3117_v39 = vsel %vm589_vm1, %v3114_v10, %v3116_v41  ;;  %v3135_v30 = vrot.slane %v3128_v16, 2 }
 0x210   : > { %v3120_v50 = vadd.f32 %v3115_v48, %v3101_v5  ;;  %v3146_v40 = vmul.f32 %v8352_v24, %v7176_v12  ;;  %v3134_v52 = vsel %vm1022_vm3, %v3132_v44, %v3133_v21  ;;  %v3147_v0 = vmul.f32 %v8352_v24, %v7182_v3 }
 0x211   : > { %v3121_v51 = vadd.f32 %v3117_v39, %v3102_v18  ;;  %v3151_v4 = vrot.slane %v3145_v7, 3  ;;  %v3136_v25 = vsel %vm1022_vm3, %v3133_v21, %v3135_v30  ;;  %v3164_v42 = vmul.f32 %v8353_v33, %v7156_v60  ;;  %v8354_v7 = vld [vmem:[#allocation2_spill] sm:$0xff] }
 0x212   : > { %v3139_v46 = vadd.f32 %v3134_v52, %v3120_v50  ;;  %v3152_v29 = vrot.slane %v3146_v40, 3  ;;  %v3154_v5 = vrot.slane %v3147_v0, 3  ;;  %v3165_v16 = vmul.f32 %v8353_v33, %v7176_v12 }
 0x213   : > { %v3140_v10 = vadd.f32 %v3136_v25, %v3121_v51  ;;  %v3166_v41 = vmul.f32 %v8353_v33, %v7182_v3  ;;  %v3170_v18 = vrot.slane %v3164_v42, 4  ;;  %v3183_v48 = vmul.f32 %v8354_v7, %v7156_v60  ;;  %v8355_v33 = vld [vmem:[#allocation7_spill] sm:$0xff] }
 0x214   : > { %v3153_v44 = vsel %vm2633_vm6, %v3151_v4, %v3152_v29  ;;  %v3184_v21 = vmul.f32 %v8354_v7, %v7176_v12  ;;  %v3155_v39 = vsel %vm2633_vm6, %v3152_v29, %v3154_v5  ;;  %v3171_v30 = vrot.slane %v3165_v16, 4 }
 0x215   : > { %v3158_v50 = vadd.f32 %v3153_v44, %v3139_v46  ;;  %v3173_v40 = vrot.slane %v3166_v41, 4  ;;  %v3159_v51 = vadd.f32 %v3155_v39, %v3140_v10  ;;  %v3185_v52 = vmul.f32 %v8354_v7, %v7182_v3 }
 0x216   : > { %v3189_v0 = vrot.slane %v3183_v48, 5  ;;  %v3190_v25 = vrot.slane %v3184_v21, 5  ;;  %v3172_v42 = vsel %vm2653_vm4, %v3170_v18, %v3171_v30  ;;  %v3245_v24 = vadd.f32 %v8355_v33, %v7084_v37 }
 0x217   : > { %v3174_v4 = vsel %vm2653_vm4, %v3171_v30, %v3173_v40  ;;  %v3247_v47 = vmul.f32 %v8305_v6, %v6953_v1  ;;  %v3177_v29 = vadd.f32 %v3172_v42, %v3158_v50  ;;  %v3192_v10 = vrot.slane %v3185_v52, 5 }
 0x218   : > { %v3178_v46 = vadd.f32 %v3174_v4, %v3159_v51  ;;  %v3191_v5 = vsel %vm2673_vm7, %v3189_v0, %v3190_v25  ;;  %v3262_v41 = vmul.f32 %v6703_v22, %v6953_v1  ;;  %v3277_v44 = vmul.f32 %v6714_v15, %v8327_v28 }
 0x219   : > { %v3253_v16 = vrot.slane %v3247_v47, 4  ;;  %v3281_v18 = vmul.f32 %v6721_v54, %v8327_v28  ;;  %v3193_v37 = vsel %vm2673_vm7, %v3190_v25, %v3192_v10  ;;  %v3196_v33 = vadd.f32 %v3191_v5, %v3177_v29 }
 0x21a   : > { %v3282_v48 = vmul.f32 %v6721_v54, %v7019_v38  ;;  %v3283_v21 = vmul.f32 %v6721_v54, %v7131_v32  ;;  %v3197_v39 = vadd.f32 %v3193_v37, %v3178_v46  ;;  %v8356_v47 = vrot.slane %v7043_v17, 4 }
 0x21b   : > { %v3268_v50 = vrot.slane %v3262_v41, 5  ;;  %v3287_v30 = vrot.slane %v3281_v18, 1  ;;  %v3296_v0 = vmul.f32 %v8307_v49, %v8327_v28  ;;  %v8357_v42 = vrot.slane %v7090_v27, 5 }
 0x21c   : > { %v3255_v1 = vsel %vm2653_vm4, %v3253_v16, %v8356_v47  ;;  %v3288_v51 = vrot.slane %v3282_v48, 1  ;;  %v3290_v52 = vrot.slane %v3283_v21, 1  ;;  %v4148_v25 = vpack.c.bf16 %v3197_v39, %v3196_v33 }
 0x21d   : > { %v3260_v40 = vadd.f32 %v3255_v1, %v3245_v24  ;;  %v3270_v4 = vsel %vm2673_vm7, %v3268_v50, %v8357_v42  ;;  %v3297_v29 = vmul.f32 %v8307_v49, %v7019_v38  ;;  %v3298_v17 = vmul.f32 %v8307_v49, %v7131_v32 }
 0x21e   : > { %v3289_v5 = vsel %vm589_vm1, %v3287_v30, %v3288_v51  ;;  %v3291_v24 = vsel %vm589_vm1, %v3288_v51, %v3290_v52  ;;  %v3302_v10 = vrot.slane %v3296_v0, 2  ;;  %4256 = vrot.lane.b32.xlu0 %v4148_v25, %s5354_s29  ;;  %5176 = vmatmul.mubr.msk.bf16.vlgmr.msra.gmra.mxu1 %vm4152_vm8, %v4148_v25  ;;  %v3311_v18 = vmul.f32 %v8308_v11, %v8327_v28 }
 0x21f   : > { %v3275_v46 = vadd.f32 %v3270_v4, %v3260_v40  ;;  %v3295_v27 = vadd.f32 %v3291_v24, %v7137_v23  ;;  %v3303_v16 = vrot.slane %v3297_v29, 2  ;;  %v3305_v41 = vrot.slane %v3298_v17, 2 }
 0x220   : > { %v8358_v37 = vmov 0.0   ;;  %v3312_v48 = vmul.f32 %v8308_v11, %v7019_v38  ;;  %v3313_v21 = vmul.f32 %v8308_v11, %v7131_v32  ;;  %v3326_v39 = vmul.f32 %v6733_v2, %v8327_v28 }
 0x221   : > { %5179 = vmatprep.mubr.msk.bf16.mxu1 %vm5353_vm5, %v8358_v37  ;;  %v3279_v33 = vadd.f32 %v3277_v44, %v3275_v46  ;;  %v3304_v23 = vsel %vm1022_vm3, %v3302_v10, %v3303_v16  ;;  %v3306_v47 = vsel %vm1022_vm3, %v3303_v16, %v3305_v41  ;;  %v3317_v1 = vrot.slane %v3311_v18, 3 }
 0x222   : > { %v3327_v50 = vmul.f32 %v6733_v2, %v7019_v38  ;;  %v3310_v40 = vadd.f32 %v3306_v47, %v3295_v27  ;;  %v3318_v44 = vrot.slane %v3312_v48, 3  ;;  %v3320_v51 = vrot.slane %v3313_v21, 3 }
 0x223   : > { %v3294_v30 = vadd.f32 %v3289_v5, %v3279_v33  ;;  %v3328_v52 = vmul.f32 %v6733_v2, %v7131_v32  ;;  %v3332_v0 = vrot.slane %v3326_v39, 4  ;;  %v3341_v42 = vmul.f32 %v8326_v14, %v8327_v28 }
 0x224   : > { %v3333_v25 = vrot.slane %v3327_v50, 4  ;;  %v3319_v29 = vsel %vm2633_vm6, %v3317_v1, %v3318_v44  ;;  %v3321_v17 = vsel %vm2633_vm6, %v3318_v44, %v3320_v51  ;;  %v3342_v46 = vmul.f32 %v8326_v14, %v7019_v38 }
 0x225   : > { %v3309_v4 = vadd.f32 %v3304_v23, %v3294_v30  ;;  %v3325_v5 = vadd.f32 %v3321_v17, %v3310_v40  ;;  %v3335_v10 = vrot.slane %v3328_v52, 4  ;;  %v3343_v27 = vmul.f32 %v8326_v14, %v7131_v32 }
 0x226   : > { %v3334_v24 = vsel %vm2653_vm4, %v3332_v0, %v3333_v25  ;;  %v3347_v41 = vrot.slane %v3341_v42, 5  ;;  %v3348_v18 = vrot.slane %v3342_v46, 5  ;;  %v3356_v33 = vmul.f32 %v8328_v13, %v7139_v63 }
 0x227   : > { %v3324_v16 = vadd.f32 %v3319_v29, %v3309_v4  ;;  %v3336_v48 = vsel %vm2653_vm4, %v3333_v25, %v3335_v10  ;;  %v3350_v21 = vrot.slane %v3343_v27, 5  ;;  %v3357_v39 = vmul.f32 %v8328_v13, %v7127_v8 }
 0x228   : > { %v3360_v23 = vmul.f32 %v8329_v19, %v7139_v63  ;;  %v3340_v1 = vadd.f32 %v3336_v48, %v3325_v5  ;;  %v3349_v50 = vsel %vm2673_vm7, %v3347_v41, %v3348_v18  ;;  %v3361_v30 = vmul.f32 %v8329_v19, %v7127_v8 }
 0x229   : > { %v3339_v47 = vadd.f32 %v3334_v24, %v3324_v16  ;;  %v3351_v40 = vsel %vm2673_vm7, %v3348_v18, %v3350_v21  ;;  %v3362_v44 = vmul.f32 %v8329_v19, %v7133_v20  ;;  %v3375_v52 = vmul.f32 %v8333_v56, %v7139_v63 }
 0x22a   : > { %v3366_v51 = vrot.slane %v3360_v23, 1  ;;  %v3355_v25 = vadd.f32 %v3351_v40, %v3340_v1  ;;  %v3367_v42 = vrot.slane %v3361_v30, 1  ;;  %v3376_v4 = vmul.f32 %v8333_v56, %v7127_v8 }
 0x22b   : > { %v3354_v0 = vadd.f32 %v3349_v50, %v3339_v47  ;;  %v3369_v29 = vrot.slane %v3362_v44, 1  ;;  %v3377_v17 = vmul.f32 %v8333_v56, %v7133_v20  ;;  %v3381_v46 = vrot.slane %v3375_v52, 2 }
 0x22c   : > { %v3390_v5 = vmul.f32 %v8334_v31, %v7139_v63  ;;  %v3359_v10 = vadd.f32 %v3357_v39, %v3355_v25  ;;  %v3368_v27 = vsel %vm589_vm1, %v3366_v51, %v3367_v42  ;;  %v3382_v16 = vrot.slane %v3376_v4, 2 }
 0x22d   : > { %v3358_v24 = vadd.f32 %v3356_v33, %v3354_v0  ;;  %v3370_v41 = vsel %vm589_vm1, %v3367_v42, %v3369_v29  ;;  %v3384_v18 = vrot.slane %v3377_v17, 2  ;;  %v3391_v48 = vmul.f32 %v8334_v31, %v7127_v8 }
 0x22e   : > { %v3392_v21 = vmul.f32 %v8334_v31, %v7133_v20  ;;  %v3374_v47 = vadd.f32 %v3370_v41, %v3359_v10  ;;  %v3383_v1 = vsel %vm1022_vm3, %v3381_v46, %v3382_v16  ;;  %v3396_v50 = vrot.slane %v3390_v5, 3 }
 0x22f   : > { %v3373_v23 = vadd.f32 %v3368_v27, %v3358_v24  ;;  %v3385_v33 = vsel %vm1022_vm3, %v3382_v16, %v3384_v18  ;;  %v3397_v39 = vrot.slane %v3391_v48, 3  ;;  %v3405_v40 = vmul.f32 %v8335_v61, %v7139_v63 }
 0x230   : > { %v3399_v30 = vrot.slane %v3392_v21, 3  ;;  %v3389_v51 = vadd.f32 %v3385_v33, %v3374_v47  ;;  %v3406_v52 = vmul.f32 %v8335_v61, %v7127_v8  ;;  %v3407_v0 = vmul.f32 %v8335_v61, %v7133_v20 }
 0x231   : > { %v3388_v44 = vadd.f32 %v3383_v1, %v3373_v23  ;;  %v3398_v25 = vsel %vm2633_vm6, %v3396_v50, %v3397_v39  ;;  %v3411_v4 = vrot.slane %v3405_v40, 4  ;;  %v3420_v29 = vmul.f32 %v8336_v26, %v7139_v63 }
 0x232   : > { %v3400_v42 = vsel %vm2633_vm6, %v3397_v39, %v3399_v30  ;;  %v3412_v5 = vrot.slane %v3406_v52, 4  ;;  %v3414_v24 = vrot.slane %v3407_v0, 4  ;;  %v3421_v10 = vmul.f32 %v8336_v26, %v7127_v8 }
 0x233   : > { %v3403_v17 = vadd.f32 %v3398_v25, %v3388_v44  ;;  %v3404_v46 = vadd.f32 %v3400_v42, %v3389_v51  ;;  %v3422_v27 = vmul.f32 %v8336_v26, %v7133_v20  ;;  %v3426_v16 = vrot.slane %v3420_v29, 5 }
 0x234   : > { %v3435_v41 = vmul.f32 %v8337_v45, %v7145_v55  ;;  %v3413_v18 = vsel %vm2653_vm4, %v3411_v4, %v3412_v5  ;;  %v3415_v48 = vsel %vm2653_vm4, %v3412_v5, %v3414_v24  ;;  %v3436_v21 = vmul.f32 %v8337_v45, %v7169_v9 }
 0x235   : > { %v3439_v23 = vmul.f32 %v8338_v43, %v7145_v55  ;;  %v3418_v47 = vadd.f32 %v3413_v18, %v3403_v17  ;;  %v3419_v1 = vadd.f32 %v3415_v48, %v3404_v46  ;;  %v3427_v50 = vrot.slane %v3421_v10, 5 }
 0x236   : > { %v3429_v33 = vrot.slane %v3422_v27, 5  ;;  %v3440_v39 = vmul.f32 %v8338_v43, %v7169_v9  ;;  %v3441_v30 = vmul.f32 %v8338_v43, %v7141_v36  ;;  %v3454_v44 = vmul.f32 %v8339_v58, %v7145_v55 }
 0x237   : > { %v3445_v40 = vrot.slane %v3439_v23, 1  ;;  %v3428_v51 = vsel %vm2673_vm7, %v3426_v16, %v3427_v50  ;;  %v3455_v0 = vmul.f32 %v8339_v58, %v7169_v9  ;;  %v3456_v25 = vmul.f32 %v8339_v58, %v7141_v36 }
 0x238   : > { %v3430_v52 = vsel %vm2673_vm7, %v3427_v50, %v3429_v33  ;;  %v3433_v42 = vadd.f32 %v3428_v51, %v3418_v47  ;;  %v3446_v29 = vrot.slane %v3440_v39, 1  ;;  %v3448_v17 = vrot.slane %v3441_v30, 1 }
 0x239   : > { %v3434_v4 = vadd.f32 %v3430_v52, %v3419_v1  ;;  %v3460_v46 = vrot.slane %v3454_v44, 2  ;;  %v3461_v5 = vrot.slane %v3455_v0, 2  ;;  %v3463_v24 = vrot.slane %v3456_v25, 2 }
 0x23a   : > { %v3469_v10 = vmul.f32 %v8340_v53, %v7145_v55  ;;  %v3437_v27 = vadd.f32 %v3435_v41, %v3433_v42  ;;  %v3447_v18 = vsel %vm589_vm1, %v3445_v40, %v3446_v29  ;;  %v3449_v48 = vsel %vm589_vm1, %v3446_v29, %v3448_v17 }
 0x23b   : > { %v3438_v16 = vadd.f32 %v3436_v21, %v3434_v4  ;;  %v3462_v23 = vsel %vm1022_vm3, %v3460_v46, %v3461_v5  ;;  %v3464_v50 = vsel %vm1022_vm3, %v3461_v5, %v3463_v24  ;;  %v3470_v47 = vmul.f32 %v8340_v53, %v7169_v9 }
 0x23c   : > { %v3471_v1 = vmul.f32 %v8340_v53, %v7141_v36  ;;  %v3452_v33 = vadd.f32 %v3447_v18, %v3437_v27  ;;  %v3475_v30 = vrot.slane %v3469_v10, 3  ;;  %v3484_v41 = vmul.f32 %v8341_v57, %v7145_v55 }
 0x23d   : > { %v3453_v39 = vadd.f32 %v3449_v48, %v3438_v16  ;;  %v3476_v21 = vrot.slane %v3470_v47, 3  ;;  %v3485_v44 = vmul.f32 %v8341_v57, %v7169_v9  ;;  %v3486_v51 = vmul.f32 %v8341_v57, %v7141_v36 }
 0x23e   : > { %v3478_v40 = vrot.slane %v3471_v1, 3  ;;  %v3467_v52 = vadd.f32 %v3462_v23, %v3452_v33  ;;  %v3490_v25 = vrot.slane %v3484_v41, 4  ;;  %v3499_v42 = vmul.f32 %v8342_v35, %v7145_v55 }
 0x23f   : > { %v3468_v0 = vadd.f32 %v3464_v50, %v3453_v39  ;;  %v3477_v4 = vsel %vm2633_vm6, %v3475_v30, %v3476_v21  ;;  %v3491_v17 = vrot.slane %v3485_v44, 4  ;;  %v3493_v46 = vrot.slane %v3486_v51, 4  ;;  %v8359_v30 = vld [vmem:[#allocation38_spill] sm:$0xff] }
 0x240   : > { %v3479_v29 = vsel %vm2633_vm6, %v3476_v21, %v3478_v40  ;;  %v3482_v5 = vadd.f32 %v3477_v4, %v3467_v52  ;;  %v3500_v10 = vmul.f32 %v8342_v35, %v7169_v9  ;;  %v3501_v27 = vmul.f32 %v8342_v35, %v7141_v36 }
 0x241   : > { %v3483_v24 = vadd.f32 %v3479_v29, %v3468_v0  ;;  %v3492_v16 = vsel %vm2653_vm4, %v3490_v25, %v3491_v17  ;;  %v3494_v18 = vsel %vm2653_vm4, %v3491_v17, %v3493_v46  ;;  %v3505_v48 = vrot.slane %v3499_v42, 5 }
 0x242   : > { %v3514_v23 = vmul.f32 %v8343_v34, %v7156_v60  ;;  %v3497_v50 = vadd.f32 %v3492_v16, %v3482_v5  ;;  %v3506_v1 = vrot.slane %v3500_v10, 5  ;;  %v3508_v33 = vrot.slane %v3501_v27, 5 }
 0x243   : > { %v3498_v47 = vadd.f32 %v3494_v18, %v3483_v24  ;;  %v3515_v39 = vmul.f32 %v8343_v34, %v7176_v12  ;;  %v3518_v41 = vmul.f32 %v8359_v30, %v7156_v60  ;;  %v3519_v21 = vmul.f32 %v8359_v30, %v7176_v12 }
 0x244   : > { %v3520_v40 = vmul.f32 %v8359_v30, %v7182_v3  ;;  %v3507_v44 = vsel %vm2673_vm7, %v3505_v48, %v3506_v1  ;;  %v3509_v51 = vsel %vm2673_vm7, %v3506_v1, %v3508_v33  ;;  %v3533_v52 = vmul.f32 %v8345_v62, %v7156_v60 }
 0x245   : > { %v3534_v0 = vmul.f32 %v8345_v62, %v7176_v12  ;;  %v3512_v25 = vadd.f32 %v3507_v44, %v3497_v50  ;;  %v3513_v42 = vadd.f32 %v3509_v51, %v3498_v47  ;;  %v3524_v4 = vrot.slane %v3518_v41, 1  ;;  %v8360_v44 = vld [vmem:[#allocation41_spill] sm:$0xff] }
 0x246   : > { %v3525_v29 = vrot.slane %v3519_v21, 1  ;;  %v3527_v17 = vrot.slane %v3520_v40, 1  ;;  %v3535_v46 = vmul.f32 %v8345_v62, %v7182_v3  ;;  %v3539_v5 = vrot.slane %v3533_v52, 2 }
 0x247   : > { %v3540_v24 = vrot.slane %v3534_v0, 2  ;;  %v3516_v10 = vadd.f32 %v3514_v23, %v3512_v25  ;;  %v3517_v27 = vadd.f32 %v3515_v39, %v3513_v42  ;;  %v3548_v18 = vmul.f32 %v8346_v59, %v7156_v60 }
 0x248   : > { %v3526_v16 = vsel %vm589_vm1, %v3524_v4, %v3525_v29  ;;  %v3528_v48 = vsel %vm589_vm1, %v3525_v29, %v3527_v17  ;;  %v3542_v47 = vrot.slane %v3535_v46, 2  ;;  %v3549_v1 = vmul.f32 %v8346_v59, %v7176_v12 }
 0x249   : > { %v3541_v50 = vsel %vm1022_vm3, %v3539_v5, %v3540_v24  ;;  %v3531_v33 = vadd.f32 %v3526_v16, %v3516_v10  ;;  %v3532_v41 = vadd.f32 %v3528_v48, %v3517_v27  ;;  %v3550_v21 = vmul.f32 %v8346_v59, %v7182_v3  ;;  %v8361_v5 = vld [vmem:[#allocation20_spill] sm:$0xff] }
 0x24a   : > { %v3554_v23 = vrot.slane %v3548_v18, 3  ;;  %v3543_v39 = vsel %vm1022_vm3, %v3540_v24, %v3542_v47  ;;  %v3555_v40 = vrot.slane %v3549_v1, 3  ;;  %v3563_v51 = vmul.f32 %v8360_v44, %v7156_v60 }
 0x24b   : > { %v3564_v52 = vmul.f32 %v8360_v44, %v7176_v12  ;;  %v3546_v0 = vadd.f32 %v3541_v50, %v3531_v33  ;;  %v3547_v25 = vadd.f32 %v3543_v39, %v3532_v41  ;;  %v3557_v42 = vrot.slane %v3550_v21, 3  ;;  %v8363_v39 = vld [vmem:[#allocation16_spill] sm:$0xff] }
 0x24c   : > { %v3565_v4 = vmul.f32 %v8360_v44, %v7182_v3  ;;  %v3556_v29 = vsel %vm2633_vm6, %v3554_v23, %v3555_v40  ;;  %v3569_v17 = vrot.slane %v3563_v51, 4  ;;  %v3578_v24 = vmul.f32 %v8361_v5, %v7156_v60  ;;  %v8362_v23 = vld [vmem:[#allocation9_spill] sm:$0xff] }
 0x24d   : > { %v3570_v46 = vrot.slane %v3564_v52, 4  ;;  %v3558_v10 = vsel %vm2633_vm6, %v3555_v40, %v3557_v42  ;;  %v3561_v27 = vadd.f32 %v3556_v29, %v3546_v0  ;;  %v3579_v18 = vmul.f32 %v8361_v5, %v7176_v12  ;;  %v8364_v0 = vld [vmem:[#allocation22_spill] sm:$0xff] }
 0x24e   : > { %v3572_v16 = vrot.slane %v3565_v4, 4  ;;  %v3562_v48 = vadd.f32 %v3558_v10, %v3547_v25  ;;  %v3580_v47 = vmul.f32 %v8361_v5, %v7182_v3  ;;  %v3584_v1 = vrot.slane %v3578_v24, 5  ;;  %v8365_v25 = vld [vmem:[#allocation21_spill] sm:$0xff]  ;;  %v8366_v24 = vld [vmem:[#allocation12_spill] sm:$0xff]  ;;  %v8367_v10 = vld [vmem:[#allocation18_spill] sm:$0xff] }
 0x24f   : > { %v3571_v50 = vsel %vm2653_vm4, %v3569_v17, %v3570_v46  ;;  %v3585_v21 = vrot.slane %v3579_v18, 5  ;;  %v3593_v51 = vmul.f32 %v8363_v39, %v8362_v23  ;;  %v3594_v42 = vmul.f32 %v8363_v39, %v8364_v0 }
 0x250   : > { %v3573_v33 = vsel %vm2653_vm4, %v3570_v46, %v3572_v16  ;;  %v3576_v41 = vadd.f32 %v3571_v50, %v3561_v27  ;;  %v3587_v52 = vrot.slane %v3580_v47, 5  ;;  %v3597_v4 = vmul.f32 %v8365_v25, %v8362_v23 }
 0x251   : > { %v3577_v40 = vadd.f32 %v3573_v33, %v3562_v48  ;;  %v3586_v29 = vsel %vm2673_vm7, %v3584_v1, %v3585_v21  ;;  %v3598_v17 = vmul.f32 %v8365_v25, %v8364_v0  ;;  %v3599_v46 = vmul.f32 %v8365_v25, %v8366_v24  ;;  %v8368_v25 = vld [vmem:[#allocation5_spill] sm:$0xff] }
 0x252   : > { %v3612_v27 = vmul.f32 %v8367_v10, %v8362_v23  ;;  %v3588_v16 = vsel %vm2673_vm7, %v3585_v21, %v3587_v52  ;;  %v3591_v18 = vadd.f32 %v3586_v29, %v3576_v41  ;;  %v3603_v48 = vrot.slane %v3597_v4, 1 }
 0x253   : > { %v3613_v50 = vmul.f32 %v8367_v10, %v8364_v0  ;;  %v3592_v47 = vadd.f32 %v3588_v16, %v3577_v40  ;;  %v3604_v33 = vrot.slane %v3598_v17, 1  ;;  %v3606_v39 = vrot.slane %v3599_v46, 1 }
 0x254   : > { %v3614_v1 = vmul.f32 %v8367_v10, %v8366_v24  ;;  %v3595_v5 = vadd.f32 %v3593_v51, %v3591_v18  ;;  %v3618_v44 = vrot.slane %v3612_v27, 2  ;;  %v3627_v62 = vmul.f32 %v8368_v25, %v8362_v23 }
 0x255   : > { %v3619_v59 = vrot.slane %v3613_v50, 2  ;;  %v3596_v30 = vadd.f32 %v3594_v42, %v3592_v47  ;;  %v3605_v21 = vsel %vm589_vm1, %v3603_v48, %v3604_v33  ;;  %v3607_v41 = vsel %vm589_vm1, %v3604_v33, %v3606_v39  ;;  %v8369_v42 = vld [vmem:[#allocation4_spill] sm:$0xff] }
 0x256   : > { %v3621_v52 = vrot.slane %v3614_v1, 2  ;;  %v3610_v4 = vadd.f32 %v3605_v21, %v3595_v5  ;;  %v3628_v29 = vmul.f32 %v8368_v25, %v8364_v0  ;;  %v3629_v51 = vmul.f32 %v8368_v25, %v8366_v24 }
 0x257   : > { %v3620_v40 = vsel %vm1022_vm3, %v3618_v44, %v3619_v59  ;;  %v3611_v17 = vadd.f32 %v3607_v41, %v3596_v30  ;;  %v3633_v27 = vrot.slane %v3627_v62, 3  ;;  %v3642_v16 = vmul.f32 %v8369_v42, %v8362_v23 }
 0x258   : > { %v3622_v46 = vsel %vm1022_vm3, %v3619_v59, %v3621_v52  ;;  %v3625_v18 = vadd.f32 %v3620_v40, %v3610_v4  ;;  %v3634_v48 = vrot.slane %v3628_v29, 3  ;;  %v3636_v39 = vrot.slane %v3629_v51, 3 }
 0x259   : > { %v3643_v5 = vmul.f32 %v8369_v42, %v8364_v0  ;;  %v3626_v44 = vadd.f32 %v3622_v46, %v3611_v17  ;;  %v3644_v50 = vmul.f32 %v8369_v42, %v8366_v24  ;;  %v3648_v47 = vrot.slane %v3642_v16, 4  ;;  %v8370_v17 = vld [vmem:[#allocation15_spill] sm:$0xff] }
 0x25a   : > { %v3657_v30 = vmul.f32 %v8354_v7, %v8362_v23  ;;  %v3635_v59 = vsel %vm2633_vm6, %v3633_v27, %v3634_v48  ;;  %v3637_v62 = vsel %vm2633_vm6, %v3634_v48, %v3636_v39  ;;  %v3658_v1 = vmul.f32 %v8354_v7, %v8364_v0 }
 0x25b   : > { %v3649_v33 = vrot.slane %v3643_v5, 4  ;;  %v3640_v21 = vadd.f32 %v3635_v59, %v3625_v18  ;;  %v3641_v41 = vadd.f32 %v3637_v62, %v3626_v44  ;;  %v3651_v52 = vrot.slane %v3644_v50, 4  ;;  %v8371_v44 = vld [vmem:[#allocation8_spill] sm:$0xff] }
 0x25c   : > { %v3659_v4 = vmul.f32 %v8354_v7, %v8366_v24  ;;  %v3663_v29 = vrot.slane %v3657_v30, 5  ;;  %v3664_v51 = vrot.slane %v3658_v1, 5  ;;  %v3672_v46 = vmul.f32 %v8370_v17, %v8327_v28 }
 0x25d   : > { %v3650_v40 = vsel %vm2653_vm4, %v3648_v47, %v3649_v33  ;;  %v3652_v27 = vsel %vm2653_vm4, %v3649_v33, %v3651_v52  ;;  %v3673_v39 = vmul.f32 %v8370_v17, %v7019_v38  ;;  %v3676_v50 = vmul.f32 %v8371_v44, %v8327_v28  ;;  %v8372_v33 = vld [vmem:[#allocation11_spill] sm:$0xff] }
 0x25e   : > { %v3655_v16 = vadd.f32 %v3650_v40, %v3640_v21  ;;  %v3666_v48 = vrot.slane %v3659_v4, 5  ;;  %v3656_v18 = vadd.f32 %v3652_v27, %v3641_v41  ;;  %v3665_v5 = vsel %vm2673_vm7, %v3663_v29, %v3664_v51 }
 0x25f   : > { %v3677_v47 = vmul.f32 %v8371_v44, %v7019_v38  ;;  %v3678_v62 = vmul.f32 %v8371_v44, %v7131_v32  ;;  %v3691_v1 = vmul.f32 %v8372_v33, %v8327_v28  ;;  %v3682_v52 = vrot.slane %v3676_v50, 1 }
 0x260   : > { %v3667_v30 = vsel %vm2673_vm7, %v3664_v51, %v3666_v48  ;;  %v3670_v59 = vadd.f32 %v3665_v5, %v3655_v16  ;;  %v3692_v4 = vmul.f32 %v8372_v33, %v7019_v38  ;;  %v3693_v29 = vmul.f32 %v8372_v33, %v7131_v32  ;;  %v8373_v51 = vld [vmem:[#allocation14_spill] sm:$0xff] }
 0x261   : > { %v3671_v21 = vadd.f32 %v3667_v30, %v3656_v18  ;;  %v3683_v41 = vrot.slane %v3677_v47, 1  ;;  %v3685_v40 = vrot.slane %v3678_v62, 1  ;;  %v3697_v17 = vrot.slane %v3691_v1, 2 }
 0x262   : > { %v3706_v27 = vmul.f32 %v8373_v51, %v8327_v28  ;;  %v3698_v5 = vrot.slane %v3692_v4, 2  ;;  %v3707_v18 = vmul.f32 %v8373_v51, %v7019_v38  ;;  %v3700_v47 = vrot.slane %v3693_v29, 2 }
 0x263   : > { %v4149_v16 = vpack.c.bf16 %v3671_v21, %v3670_v59  ;;  %v3684_v48 = vsel %vm589_vm1, %v3682_v52, %v3683_v41  ;;  %v3686_v44 = vsel %vm589_vm1, %v3683_v41, %v3685_v40  ;;  %v3708_v30 = vmul.f32 %v8373_v51, %v7131_v32 }
 0x264   : > { %v3689_v50 = vadd.f32 %v3684_v48, %v3672_v46  ;;  %v3690_v62 = vadd.f32 %v3686_v44, %v3673_v39  ;;  %v3699_v59 = vsel %vm1022_vm3, %v3697_v17, %v3698_v5  ;;  %v3712_v33 = vrot.slane %v3706_v27, 3 }
 0x265   : > { %4258 = vrot.lane.b32.xlu0 %v4149_v16, %s5354_s29  ;;  %5180 = vmatmul.mubr.msk.bf16.gmra.mxu1 %vm4152_vm8, %v4149_v16  ;;  %v3713_v1 = vrot.slane %v3707_v18, 3  ;;  %v3701_v21 = vsel %vm1022_vm3, %v3698_v5, %v3700_v47  ;;  %v3715_v4 = vrot.slane %v3708_v30, 3  ;;  %v3721_v46 = vmul.f32 %v8305_v6, %v8327_v28 }
 0x266   : > { %v3704_v52 = vadd.f32 %v3699_v59, %v3689_v50  ;;  %5183 = vmatprep.mubr.msk.bf16.mxu1 %vm5353_vm5, %v8358_v37  ;;  %v3705_v41 = vadd.f32 %v3701_v21, %v3690_v62  ;;  %v3722_v39 = vmul.f32 %v8305_v6, %v7019_v38  ;;  %v3723_v29 = vmul.f32 %v8305_v6, %v7131_v32 }
 0x267   : > { %v3714_v40 = vsel %vm2633_vm6, %v3712_v33, %v3713_v1  ;;  %v3716_v17 = vsel %vm2633_vm6, %v3713_v1, %v3715_v4  ;;  %v3727_v27 = vrot.slane %v3721_v46, 4  ;;  %v3736_v16 = vmul.f32 %v6703_v22, %v8327_v28 }
 0x268   : > { %v3719_v51 = vadd.f32 %v3714_v40, %v3704_v52  ;;  %v3720_v48 = vadd.f32 %v3716_v17, %v3705_v41  ;;  %v3728_v5 = vrot.slane %v3722_v39, 4  ;;  %v3730_v18 = vrot.slane %v3723_v29, 4 }
 0x269   : > { %v3737_v44 = vmul.f32 %v6703_v22, %v7019_v38  ;;  %v3738_v50 = vmul.f32 %v6703_v22, %v7131_v32  ;;  %v3742_v47 = vrot.slane %v3736_v16, 5  ;;  %v3751_v6 = vmul.f32 %v6714_v15, %v7139_v63 }
 0x26a   : > { %v3752_v30 = vmul.f32 %v6714_v15, %v7127_v8  ;;  %v3729_v62 = vsel %vm2653_vm4, %v3727_v27, %v3728_v5  ;;  %v3731_v28 = vsel %vm2653_vm4, %v3728_v5, %v3730_v18  ;;  %v3755_v33 = vmul.f32 %v6721_v54, %v7139_v63 }
 0x26b   : > { %v3743_v59 = vrot.slane %v3737_v44, 5  ;;  %v3734_v1 = vadd.f32 %v3729_v62, %v3719_v51  ;;  %v3735_v38 = vadd.f32 %v3731_v28, %v3720_v48  ;;  %v3745_v21 = vrot.slane %v3738_v50, 5 }
 0x26c   : > { %v3756_v22 = vmul.f32 %v6721_v54, %v7127_v8  ;;  %v3757_v52 = vmul.f32 %v6721_v54, %v7133_v20  ;;  %v3761_v15 = vrot.slane %v3755_v33, 1  ;;  %v3770_v4 = vmul.f32 %v8307_v49, %v7139_v63 }
 0x26d   : > { %v3744_v32 = vsel %vm2673_vm7, %v3742_v47, %v3743_v59  ;;  %v3746_v46 = vsel %vm2673_vm7, %v3743_v59, %v3745_v21  ;;  %v3771_v39 = vmul.f32 %v8307_v49, %v7127_v8  ;;  %v3772_v51 = vmul.f32 %v8307_v49, %v7133_v20 }
 0x26e   : > { %v3749_v41 = vadd.f32 %v3744_v32, %v3734_v1  ;;  %v3762_v40 = vrot.slane %v3756_v22, 1  ;;  %v3750_v29 = vadd.f32 %v3746_v46, %v3735_v38  ;;  %v3764_v17 = vrot.slane %v3757_v52, 1 }
 0x26f   : > { %v3776_v27 = vrot.slane %v3770_v4, 2  ;;  %v3777_v48 = vrot.slane %v3771_v39, 2  ;;  %v3785_v5 = vmul.f32 %v8308_v11, %v7139_v63  ;;  %v3779_v50 = vrot.slane %v3772_v51, 2 }
 0x270   : > { %v3753_v16 = vadd.f32 %v3751_v6, %v3749_v41  ;;  %v3763_v54 = vsel %vm589_vm1, %v3761_v15, %v3762_v40  ;;  %v3754_v18 = vadd.f32 %v3752_v30, %v3750_v29  ;;  %v3765_v44 = vsel %vm589_vm1, %v3762_v40, %v3764_v17 }
 0x271   : > { %v3786_v47 = vmul.f32 %v8308_v11, %v7127_v8  ;;  %v3778_v28 = vsel %vm1022_vm3, %v3776_v27, %v3777_v48  ;;  %v3787_v49 = vmul.f32 %v8308_v11, %v7133_v20  ;;  %v3791_v6 = vrot.slane %v3785_v5, 3 }
 0x272   : > { %v3768_v62 = vadd.f32 %v3763_v54, %v3753_v16  ;;  %v3769_v59 = vadd.f32 %v3765_v44, %v3754_v18  ;;  %v3780_v33 = vsel %vm1022_vm3, %v3777_v48, %v3779_v50  ;;  %v3800_v30 = vmul.f32 %v6733_v2, %v7139_v63 }
 0x273   : > { %v3792_v1 = vrot.slane %v3786_v47, 3  ;;  %v3794_v21 = vrot.slane %v3787_v49, 3  ;;  %v3801_v22 = vmul.f32 %v6733_v2, %v7127_v8  ;;  %v3802_v32 = vmul.f32 %v6733_v2, %v7133_v20 }
 0x274   : > { %v3783_v38 = vadd.f32 %v3778_v28, %v3768_v62  ;;  %v3784_v52 = vadd.f32 %v3780_v33, %v3769_v59  ;;  %v3806_v11 = vrot.slane %v3800_v30, 4  ;;  %v3815_v4 = vmul.f32 %v8326_v14, %v7139_v63 }
 0x275   : > { %v3793_v15 = vsel %vm2633_vm6, %v3791_v6, %v3792_v1  ;;  %v3795_v46 = vsel %vm2633_vm6, %v3792_v1, %v3794_v21  ;;  %v3807_v40 = vrot.slane %v3801_v22, 4  ;;  %v3809_v39 = vrot.slane %v3802_v32, 4 }
 0x276   : > { %v3798_v41 = vadd.f32 %v3793_v15, %v3783_v38  ;;  %v3799_v29 = vadd.f32 %v3795_v46, %v3784_v52  ;;  %v3816_v17 = vmul.f32 %v8326_v14, %v7127_v8  ;;  %v3817_v51 = vmul.f32 %v8326_v14, %v7133_v20 }
 0x277   : > { %v3821_v2 = vrot.slane %v3815_v4, 5  ;;  %v3808_v27 = vsel %vm2653_vm4, %v3806_v11, %v3807_v40  ;;  %v3810_v16 = vsel %vm2653_vm4, %v3807_v40, %v3809_v39  ;;  %v3830_v63 = vmul.f32 %v8328_v13, %v7145_v55 }
 0x278   : > { %v3831_v54 = vmul.f32 %v8328_v13, %v7169_v9  ;;  %v3813_v48 = vadd.f32 %v3808_v27, %v3798_v41  ;;  %v3814_v5 = vadd.f32 %v3810_v16, %v3799_v29  ;;  %v3822_v18 = vrot.slane %v3816_v17, 5 }
 0x279   : > { %v3824_v44 = vrot.slane %v3817_v51, 5  ;;  %v3834_v8 = vmul.f32 %v8329_v19, %v7145_v55  ;;  %v3835_v20 = vmul.f32 %v8329_v19, %v7169_v9  ;;  %v3836_v14 = vmul.f32 %v8329_v19, %v7141_v36 }
 0x27a   : > { %v3849_v50 = vmul.f32 %v8333_v56, %v7145_v55  ;;  %v3823_v47 = vsel %vm2673_vm7, %v3821_v2, %v3822_v18  ;;  %v3850_v62 = vmul.f32 %v8333_v56, %v7169_v9  ;;  %v3851_v28 = vmul.f32 %v8333_v56, %v7141_v36 }
 0x27b   : > { %v3825_v13 = vsel %vm2673_vm7, %v3822_v18, %v3824_v44  ;;  %v3828_v49 = vadd.f32 %v3823_v47, %v3813_v48  ;;  %v3840_v59 = vrot.slane %v3834_v8, 1  ;;  %v3841_v33 = vrot.slane %v3835_v20, 1 }
 0x27c   : > { %v3829_v6 = vadd.f32 %v3825_v13, %v3814_v5  ;;  %v3843_v1 = vrot.slane %v3836_v14, 1  ;;  %v3855_v30 = vrot.slane %v3849_v50, 2  ;;  %v3856_v19 = vrot.slane %v3850_v62, 2 }
 0x27d   : > { %v3858_v38 = vrot.slane %v3851_v28, 2  ;;  %v3832_v21 = vadd.f32 %v3830_v63, %v3828_v49  ;;  %v3842_v32 = vsel %vm589_vm1, %v3840_v59, %v3841_v33  ;;  %v3864_v52 = vmul.f32 %v8334_v31, %v7145_v55 }
 0x27e   : > { %v3833_v22 = vadd.f32 %v3831_v54, %v3829_v6  ;;  %v3844_v15 = vsel %vm589_vm1, %v3841_v33, %v3843_v1  ;;  %v3857_v11 = vsel %vm1022_vm3, %v3855_v30, %v3856_v19  ;;  %v3865_v4 = vmul.f32 %v8334_v31, %v7169_v9 }
 0x27f   : > { %v3859_v56 = vsel %vm1022_vm3, %v3856_v19, %v3858_v38  ;;  %v3847_v46 = vadd.f32 %v3842_v32, %v3832_v21  ;;  %v3866_v40 = vmul.f32 %v8334_v31, %v7141_v36  ;;  %v3870_v39 = vrot.slane %v3864_v52, 3 }
 0x280   : > { %v3848_v41 = vadd.f32 %v3844_v15, %v3833_v22  ;;  %v3871_v29 = vrot.slane %v3865_v4, 3  ;;  %v3879_v17 = vmul.f32 %v8335_v61, %v7145_v55  ;;  %v3880_v51 = vmul.f32 %v8335_v61, %v7169_v9 }
 0x281   : > { %v3881_v2 = vmul.f32 %v8335_v61, %v7141_v36  ;;  %v3862_v27 = vadd.f32 %v3857_v11, %v3847_v46  ;;  %v3873_v63 = vrot.slane %v3866_v40, 3  ;;  %v3894_v54 = vmul.f32 %v8336_v26, %v7145_v55 }
 0x282   : > { %v3863_v16 = vadd.f32 %v3859_v56, %v3848_v41  ;;  %v3872_v48 = vsel %vm2633_vm6, %v3870_v39, %v3871_v29  ;;  %v3885_v31 = vrot.slane %v3879_v17, 4  ;;  %v3886_v5 = vrot.slane %v3880_v51, 4 }
 0x283   : > { %v3888_v18 = vrot.slane %v3881_v2, 4  ;;  %v3874_v44 = vsel %vm2633_vm6, %v3871_v29, %v3873_v63  ;;  %v3877_v8 = vadd.f32 %v3872_v48, %v3862_v27  ;;  %v3895_v20 = vmul.f32 %v8336_v26, %v7169_v9 }
 0x284   : > { %v3896_v61 = vmul.f32 %v8336_v26, %v7141_v36  ;;  %v3878_v14 = vadd.f32 %v3874_v44, %v3863_v16  ;;  %v3887_v50 = vsel %vm2653_vm4, %v3885_v31, %v3886_v5  ;;  %v3900_v55 = vrot.slane %v3894_v54, 5 }
 0x285   : > { %v3889_v47 = vsel %vm2653_vm4, %v3886_v5, %v3888_v18  ;;  %v3892_v13 = vadd.f32 %v3887_v50, %v3877_v8  ;;  %v3901_v62 = vrot.slane %v3895_v20, 5  ;;  %v3909_v49 = vmul.f32 %v8337_v45, %v7156_v60 }
 0x286   : > { %v3903_v28 = vrot.slane %v3896_v61, 5  ;;  %v3893_v6 = vadd.f32 %v3889_v47, %v3878_v14  ;;  %v3910_v59 = vmul.f32 %v8337_v45, %v7176_v12  ;;  %v3913_v9 = vmul.f32 %v8338_v43, %v7156_v60 }
 0x287   : > { %v3914_v36 = vmul.f32 %v8338_v43, %v7176_v12  ;;  %v3902_v26 = vsel %vm2673_vm7, %v3900_v55, %v3901_v62  ;;  %v3915_v1 = vmul.f32 %v8338_v43, %v7182_v3  ;;  %v3928_v30 = vmul.f32 %v8339_v58, %v7156_v60 }
 0x288   : > { %v3904_v33 = vsel %vm2673_vm7, %v3901_v62, %v3903_v28  ;;  %v3907_v19 = vadd.f32 %v3902_v26, %v3892_v13  ;;  %v3919_v21 = vrot.slane %v3913_v9, 1  ;;  %v3929_v32 = vmul.f32 %v8339_v58, %v7176_v12 }
 0x289   : > { %v3908_v38 = vadd.f32 %v3904_v33, %v3893_v6  ;;  %v3920_v45 = vrot.slane %v3914_v36, 1  ;;  %v3922_v22 = vrot.slane %v3915_v1, 1  ;;  %v3930_v52 = vmul.f32 %v8339_v58, %v7182_v3 }
 0x28a   : > { %v3934_v15 = vrot.slane %v3928_v30, 2  ;;  %v3911_v11 = vadd.f32 %v3909_v49, %v3907_v19  ;;  %v3943_v43 = vmul.f32 %v8340_v53, %v7156_v60  ;;  %v3935_v41 = vrot.slane %v3929_v32, 2  ;;  %v8375_v19 = vld [vmem:[#allocation39_spill] sm:$0xff] }
 0x28b   : > { %v3912_v56 = vadd.f32 %v3910_v59, %v3908_v38  ;;  %v3921_v4 = vsel %vm589_vm1, %v3919_v21, %v3920_v45  ;;  %v3923_v46 = vsel %vm589_vm1, %v3920_v45, %v3922_v22  ;;  %v3937_v40 = vrot.slane %v3930_v52, 2 }
 0x28c   : > { %v3944_v39 = vmul.f32 %v8340_v53, %v7176_v12  ;;  %v3926_v29 = vadd.f32 %v3921_v4, %v3911_v11  ;;  %v3945_v58 = vmul.f32 %v8340_v53, %v7182_v3  ;;  %v3949_v51 = vrot.slane %v3943_v43, 3 }
 0x28d   : > { %v3927_v17 = vadd.f32 %v3923_v46, %v3912_v56  ;;  %v3936_v2 = vsel %vm1022_vm3, %v3934_v15, %v3935_v41  ;;  %v3938_v27 = vsel %vm1022_vm3, %v3935_v41, %v3937_v40  ;;  %v3958_v63 = vmul.f32 %v8341_v57, %v7156_v60  ;;  %v8376_v56 = vld [vmem:[#allocation40_spill] sm:$0xff] }
 0x28e   : > { %v3950_v16 = vrot.slane %v3944_v39, 3  ;;  %v3941_v54 = vadd.f32 %v3936_v2, %v3926_v29  ;;  %v3952_v31 = vrot.slane %v3945_v58, 3  ;;  %v3959_v5 = vmul.f32 %v8341_v57, %v7176_v12 }
 0x28f   : > { %v3942_v48 = vadd.f32 %v3938_v27, %v3927_v17  ;;  %v3960_v53 = vmul.f32 %v8341_v57, %v7182_v3  ;;  %v3964_v44 = vrot.slane %v3958_v63, 4  ;;  %v3973_v8 = vmul.f32 %v8342_v35, %v7156_v60 }
 0x290   : > { %v3951_v18 = vsel %vm2633_vm6, %v3949_v51, %v3950_v16  ;;  %v3953_v20 = vsel %vm2633_vm6, %v3950_v16, %v3952_v31  ;;  %v3965_v14 = vrot.slane %v3959_v5, 4  ;;  %v3974_v50 = vmul.f32 %v8342_v35, %v7176_v12  ;;  %v8374_v12 = vld [vmem:[#allocation38_spill] sm:$0xff]  ;;  %v8377_v16 = vld [vmem:[#allocation41_spill] sm:$0xff] }
 0x291   : > { %v3956_v61 = vadd.f32 %v3951_v18, %v3941_v54  ;;  %v3957_v47 = vadd.f32 %v3953_v20, %v3942_v48  ;;  %v3967_v55 = vrot.slane %v3960_v53, 4  ;;  %v3975_v13 = vmul.f32 %v8342_v35, %v7182_v3 }
 0x292   : > { %v3979_v62 = vrot.slane %v3973_v8, 5  ;;  %v3966_v28 = vsel %vm2653_vm4, %v3964_v44, %v3965_v14  ;;  %v3980_v57 = vrot.slane %v3974_v50, 5  ;;  %v3988_v49 = vmul.f32 %v8343_v34, %v8362_v23 }
 0x293   : > { %v3989_v60 = vmul.f32 %v8343_v34, %v8364_v0  ;;  %v3968_v6 = vsel %vm2653_vm4, %v3965_v14, %v3967_v55  ;;  %v3971_v59 = vadd.f32 %v3966_v28, %v3956_v61  ;;  %v3982_v9 = vrot.slane %v3975_v13, 5  ;;  %v8378_v14 = vld [vmem:[#allocation20_spill] sm:$0xff] }
 0x294   : > { %v3992_v36 = vmul.f32 %v8374_v12, %v8362_v23  ;;  %v3972_v26 = vadd.f32 %v3968_v6, %v3957_v47  ;;  %v3981_v3 = vsel %vm2673_vm7, %v3979_v62, %v3980_v57  ;;  %v3993_v35 = vmul.f32 %v8374_v12, %v8364_v0  ;;  %v8379_v6 = vld [vmem:[#allocation3_spill] sm:$0xff] }
 0x295   : > { %v3994_v33 = vmul.f32 %v8374_v12, %v8366_v24  ;;  %v3983_v1 = vsel %vm2673_vm7, %v3980_v57, %v3982_v9  ;;  %v3986_v30 = vadd.f32 %v3981_v3, %v3971_v59  ;;  %v4007_v38 = vmul.f32 %v8375_v19, %v8362_v23  ;;  %v8380_v59 = vld [vmem:[#allocation16_spill] sm:$0xff] }
 0x296   : > { %v3998_v34 = vrot.slane %v3992_v36, 1  ;;  %v3987_v21 = vadd.f32 %v3983_v1, %v3972_v26  ;;  %v3999_v45 = vrot.slane %v3993_v35, 1  ;;  %v4008_v32 = vmul.f32 %v8375_v19, %v8364_v0 }
 0x297   : > { %v4001_v22 = vrot.slane %v3994_v33, 1  ;;  %v3990_v52 = vadd.f32 %v3988_v49, %v3986_v30  ;;  %v4009_v15 = vmul.f32 %v8375_v19, %v8366_v24  ;;  %v4013_v11 = vrot.slane %v4007_v38, 2 }
 0x298   : > { %v4022_v4 = vmul.f32 %v8376_v56, %v8362_v23  ;;  %v3991_v43 = vadd.f32 %v3989_v60, %v3987_v21  ;;  %v4000_v46 = vsel %vm589_vm1, %v3998_v34, %v3999_v45  ;;  %v4014_v40 = vrot.slane %v4008_v32, 2  ;;  %v8383_v34 = vld [vmem:[#allocation30_spill] sm:$0xff] }
 0x299   : > { %v4002_v41 = vsel %vm589_vm1, %v3999_v45, %v4001_v22  ;;  %v4005_v39 = vadd.f32 %v4000_v46, %v3990_v52  ;;  %v4016_v29 = vrot.slane %v4009_v15, 2  ;;  %v4023_v17 = vmul.f32 %v8376_v56, %v8364_v0 }
 0x29a   : > { %v4024_v58 = vmul.f32 %v8376_v56, %v8366_v24  ;;  %v4006_v51 = vadd.f32 %v4002_v41, %v3991_v43  ;;  %v4015_v2 = vsel %vm1022_vm3, %v4013_v11, %v4014_v40  ;;  %v4028_v27 = vrot.slane %v4022_v4, 3 }
 0x29b   : > { %v4037_v63 = vmul.f32 %v8377_v16, %v8362_v23  ;;  %v4017_v54 = vsel %vm1022_vm3, %v4014_v40, %v4016_v29  ;;  %v4020_v48 = vadd.f32 %v4015_v2, %v4005_v39  ;;  %v4029_v31 = vrot.slane %v4023_v17, 3 }
 0x29c   : > { %v4031_v5 = vrot.slane %v4024_v58, 3  ;;  %v4021_v18 = vadd.f32 %v4017_v54, %v4006_v51  ;;  %v4038_v53 = vmul.f32 %v8377_v16, %v8364_v0  ;;  %v4039_v44 = vmul.f32 %v8377_v16, %v8366_v24 }
 0x29d   : > { %v4043_v8 = vrot.slane %v4037_v63, 4  ;;  %v4030_v20 = vsel %vm2633_vm6, %v4028_v27, %v4029_v31  ;;  %v4052_v50 = vmul.f32 %v8378_v14, %v8362_v23  ;;  %v4053_v47 = vmul.f32 %v8378_v14, %v8364_v0  ;;  %v8381_v23 = vld [vmem:[#allocation13_spill] sm:$0xff] }
 0x29e   : > { %v4032_v61 = vsel %vm2633_vm6, %v4029_v31, %v4031_v5  ;;  %v4035_v55 = vadd.f32 %v4030_v20, %v4020_v48  ;;  %v4044_v62 = vrot.slane %v4038_v53, 4  ;;  %v4046_v28 = vrot.slane %v4039_v44, 4  ;;  %v8382_v0 = vld [vmem:[#allocation21_spill] sm:$0xff]  ;;  %v7904_v31 = vld [vmem:[%s8005_s8] ss:$0 sm:$0xff] }
 0x29f   : > { %v4036_v13 = vadd.f32 %v4032_v61, %v4021_v18  ;;  %v4054_v57 = vmul.f32 %v8378_v14, %v8366_v24  ;;  %v4058_v49 = vrot.slane %v4052_v50, 5  ;;  %v4059_v60 = vrot.slane %v4053_v47, 5  ;;  %4340 = vrot.lane.b32.xlu0 %v7904_v31, %s5354_s29  ;;  %v4252_v14 = vld [vmem:[%s8003_s6] sm:$0xf] }
 0x2a0   : > { %v4067_v9 = vmul.f32 %v8380_v59, %v8379_v6  ;;  %v4045_v12 = vsel %vm2653_vm4, %v4043_v8, %v4044_v62  ;;  %v4047_v36 = vsel %vm2653_vm4, %v4044_v62, %v4046_v28  ;;  %v4068_v26 = vmul.f32 %v8380_v59, %v8381_v23 }
 0x2a1   : > { %v4071_v3 = vmul.f32 %v8382_v0, %v8379_v6  ;;  %v4050_v35 = vadd.f32 %v4045_v12, %v4035_v55  ;;  %v4051_v33 = vadd.f32 %v4047_v36, %v4036_v13  ;;  %v4060_v1 = vsel %vm2673_vm7, %v4058_v49, %v4059_v60 }
 0x2a2   : > { %v4061_v24 = vrot.slane %v4054_v57, 5  ;;  %v4072_v30 = vmul.f32 %v8382_v0, %v8381_v23  ;;  %v4073_v19 = vmul.f32 %v8382_v0, %v8383_v34  ;;  %v4086_v21 = vmul.f32 %v8367_v10, %v8379_v6 }
 0x2a3   : > { %v4077_v38 = vrot.slane %v4071_v3, 1  ;;  %v4065_v22 = vadd.f32 %v4060_v1, %v4050_v35  ;;  %v4087_v32 = vmul.f32 %v8367_v10, %v8381_v23  ;;  %v4088_v52 = vmul.f32 %v8367_v10, %v8383_v34  ;;  %v4786_v35 = vld [vmem:[%s8004_s7] ss:$0 sm:$0xff]  ;;  %v4257_v1 = vpop.permute.xlu0 %4256 }
 0x2a4   : > { %v4062_v45 = vsel %vm2673_vm7, %v4059_v60, %v4061_v24  ;;  %v4078_v11 = vrot.slane %v4072_v30, 1  ;;  %v4080_v56 = vrot.slane %v4073_v19, 1  ;;  %v4092_v4 = vrot.slane %v4086_v21, 2 }
 0x2a5   : > { %v4066_v15 = vadd.f32 %v4062_v45, %v4051_v33  ;;  %v4069_v43 = vadd.f32 %v4067_v9, %v4065_v22  ;;  %v4093_v46 = vrot.slane %v4087_v32, 2  ;;  %v4095_v41 = vrot.slane %v4088_v52, 2  ;;  %v4358_v33 = vld [vmem:[%s8006_s9] sm:$0xf] }
 0x2a6   : > { %v4101_v40 = vmul.f32 %v8368_v25, %v8379_v6  ;;  %v4079_v29 = vsel %vm589_vm1, %v4077_v38, %v4078_v11  ;;  %v4081_v17 = vsel %vm589_vm1, %v4078_v11, %v4080_v56  ;;  %v4102_v58 = vmul.f32 %v8368_v25, %v8381_v23 }
 0x2a7   : > { %v4070_v39 = vadd.f32 %v4068_v26, %v4066_v15  ;;  %v4084_v51 = vadd.f32 %v4079_v29, %v4069_v43  ;;  %v4094_v10 = vsel %vm1022_vm3, %v4092_v4, %v4093_v46  ;;  %v4096_v2 = vsel %vm1022_vm3, %v4093_v46, %v4095_v41  ;;  %v4362_v4 = vld [vmem:[%s8007_s10] sm:$0xf] }
 0x2a8   : > { %v4103_v27 = vmul.f32 %v8368_v25, %v8383_v34  ;;  %v4107_v63 = vrot.slane %v4101_v40, 3  ;;  %v4108_v54 = vrot.slane %v4102_v58, 3  ;;  %v4116_v48 = vmul.f32 %v8369_v42, %v8379_v6 }
 0x2a9   : > { %v4085_v16 = vadd.f32 %v4081_v17, %v4070_v39  ;;  %v4099_v5 = vadd.f32 %v4094_v10, %v4084_v51  ;;  %v4117_v53 = vmul.f32 %v8369_v42, %v8381_v23  ;;  %v4118_v44 = vmul.f32 %v8369_v42, %v8383_v34 }
 0x2aa   : > { %v4110_v18 = vrot.slane %v4103_v27, 3  ;;  %v4109_v8 = vsel %vm2633_vm6, %v4107_v63, %v4108_v54  ;;  %v4122_v20 = vrot.slane %v4116_v48, 4  ;;  %v4131_v61 = vmul.f32 %v8354_v7, %v8379_v6 }
 0x2ab   : > { %v4100_v25 = vadd.f32 %v4096_v2, %v4085_v16  ;;  %v4114_v47 = vadd.f32 %v4109_v8, %v4099_v5  ;;  %v4123_v55 = vrot.slane %v4117_v53, 4  ;;  %v4125_v13 = vrot.slane %v4118_v44, 4 }
 0x2ac   : > { %v4111_v50 = vsel %vm2633_vm6, %v4108_v54, %v4110_v18  ;;  %v4132_v62 = vmul.f32 %v8354_v7, %v8381_v23  ;;  %v4133_v28 = vmul.f32 %v8354_v7, %v8383_v34  ;;  %v4137_v57 = vrot.slane %v4131_v61, 5 }
 0x2ad   : > { %v4115_v42 = vadd.f32 %v4111_v50, %v4100_v25  ;;  %v4124_v49 = vsel %vm2653_vm4, %v4122_v20, %v4123_v55  ;;  %v4126_v60 = vsel %vm2653_vm4, %v4123_v55, %v4125_v13  ;;  %v4272_v6 = vsel %vm2653_vm4, %v4252_v14, 0 }
 0x2ae   : > { %v4129_v59 = vadd.f32 %v4124_v49, %v4114_v47  ;;  %v4138_v12 = vrot.slane %v4132_v62, 5  ;;  %v4140_v36 = vrot.slane %v4133_v28, 5  ;;  %5188 = vmatpush3.bf16.msra.mxu1 %v4272_v6  ;;  %v4442_v24 = vsel %vm2653_vm4, %v4358_v33, 0 }
 0x2af   : > { %v4130_v9 = vadd.f32 %v4126_v60, %v4115_v42  ;;  %5215 = vmatprep.subr.bf16.mxu1 %v8358_v37  ;;  %v4373_v43 = vsel %vm2653_vm4, %v4362_v4, 0 }
 0x2b0   : > { %v4139_v26 = vsel %vm2673_vm7, %v4137_v57, %v4138_v12  ;;  %v4141_v23 = vsel %vm2673_vm7, %v4138_v12, %v4140_v36  ;;  %5202 = vmatpush3.bf16.msra.mxu0 %v4373_v43 }
 0x2b1   : > { %v4144_v0 = vadd.f32 %v4139_v26, %v4129_v59  ;;  %v4145_v7 = vadd.f32 %v4141_v23, %v4130_v9 }
 0x2b3   : > { %v4150_v3 = vpack.c.bf16 %v4145_v7, %v4144_v0 }
 0x2b5   : > { %4260 = vrot.lane.b32.xlu1 %v4150_v3, %s5354_s29  ;;  %5184 = vmatmul.mubr.msk.bf16.gmra.mxu1 %vm4152_vm8, %v4150_v3 }
 0x2b6   : > { %5189 = vmatprep.mubr.msk.bf16.mxu1 %vm5353_vm5, %v8358_v37 }
 0x2b9   : > { %4331 = vrot.lane.b32.xlu1 %v4786_v35, %s5354_s29  ;;  %s448_s29 = smul.u32 3, %s5334_s21 }
 0x2bb   : > { %p451_p6 = scmp.lt.s32.totalorder %s448_s29, 8 }
 0x2bd   : > { %5190 = vmatmul.mubr.msk.bf16.vlgmr.msra.gmra.mxu1 %vm4152_vm8, %v4257_v1  ;;  %s8397_s29 = smov (!%p451_p6, %s448_s29), 8 }
 0x2be   : > { %5193 = vmatprep.mubr.msk.bf16.mxu1 %vm5353_vm5, %v8358_v37  ;;  %5216 = vmatpush3.bf16.msra.mxu1 %v4442_v24  ;;  %s4634_s13 = sshll.u32 %s8397_s29, 1 }
 0x2bf   : > { %s455_s14 = sadd.s32 %s5239_s30, %s4634_s13 }
 0x2c0   : > { %s4635_s15 = sshll.u32 %s455_s14, 3 }
 0x2c1   : > { %s457_s21 = scalar_lea.vmem %s8009_s12, %s4635_s15 }
 0x2d7   : > { %v4259_v30 = vpop.permute.xlu0 %4258 }
 0x2d8   : > { %5194 = vmatmul.mubr.msk.bf16.gmra.mxu1 %vm4152_vm8, %v4259_v30 }
 0x2d9   : > { %5197 = vmatprep.mubr.msk.bf16.mxu1 %vm5353_vm5, %v8358_v37 }
 0x2de   : > { %v4199_v34 = vpop.f32.mrf.mxu1 }
 0x2df   : > { %v4228_v19 = vmul.f32 %v4786_v35, %v4199_v34 }
 0x2e0   : > { %v5177_v38 = vpop.f32.mrf.mxu1 }
 0x2e1   : > { %v4240_v45 = vadd.f32 %v7904_v31, %v4228_v19 }
 0x2e2   : > { %v4202_v21 = vpop.f32.mrf.mxu1 }
 0x2e3   : > { %v4229_v22 = vmul.f32 %v4786_v35, %v4202_v21  ;;  %v4246_v15 = vmax.f32 %v4240_v45, 0.0 }
 0x2e4   : > { %v5178_v32 = vpop.f32.mrf.mxu1 }
 0x2e5   : > { %v4241_v52 = vadd.f32 %v7904_v31, %v4229_v22 }
 0x2e7   : > { %v4247_v11 = vmax.f32 %v4241_v52, 0.0 }
 0x2e9   : > { %v4355_v56 = vpack.c.bf16 %v4247_v11, %v4246_v15 }
 0x311   : > { %v4341_v47 = vpop.permute.xlu0 %4340 }
 0x325   : > { %v4207_v46 = vpop.f32.mrf.mxu1 }
 0x326   : > { %v4230_v17 = vmul.f32 %v4786_v35, %v4207_v46 }
 0x327   : > { %v5181_v41 = vpop.f32.mrf.mxu1  ;;  %v4261_v40 = vpop.permute.xlu1 %4260 }
 0x328   : > { %5198 = vmatmul.mubr.msk.bf16.gmra.mxu1 %vm4152_vm8, %v4261_v40  ;;  %v4242_v10 = vadd.f32 %v7904_v31, %v4230_v17 }
 0x329   : > { %v4210_v39 = vpop.f32.mrf.mxu1  ;;  %5217 = vmatprep.mubr.msk.bf16.mxu1 %vm5353_vm5, %v8358_v37 }
 0x32a   : > { %v4231_v29 = vmul.f32 %v4786_v35, %v4210_v39  ;;  %v4248_v27 = vmax.f32 %v4242_v10, 0.0 }
 0x32b   : > { %v5182_v58 = vpop.f32.mrf.mxu1  ;;  %v4332_v25 = vpop.permute.xlu1 %4331 }
 0x32c   : > { %v4243_v51 = vadd.f32 %v7904_v31, %v4231_v29 }
 0x32e   : > { %v4249_v2 = vmax.f32 %v4243_v51, 0.0  ;;  %v4797_v51 = vld [vmem:[%s8008_s11] ss:$0 sm:$0xff] }
 0x330   : > { %5218 = vmatmul.mubr.msk.bf16.vlgmr.msra.gmra.mxu1 %vm4152_vm8, %v4355_v56  ;;  %v4356_v16 = vpack.c.bf16 %v4249_v2, %v4248_v27 }
 0x331   : > { %5221 = vmatprep.mubr.msk.bf16.mxu1 %vm5353_vm5, %v8358_v37 }
 0x338   : > { %5222 = vmatmul.mubr.msk.bf16.gmra.mxu1 %vm4152_vm8, %v4356_v16 }
 0x339   : > { %5225 = vmatprep.mubr.msk.bf16.mxu1 %vm5353_vm5, %v8358_v37 }
 0x375   : > { %v4215_v63 = vpop.f32.mrf.mxu1 }
 0x376   : > { %v4232_v54 = vmul.f32 %v4786_v35, %v4215_v63 }
 0x377   : > { %v5185_v48 = vpop.f32.mrf.mxu1 }
 0x378   : > { %v4244_v18 = vadd.f32 %v7904_v31, %v4232_v54 }
 0x379   : > { %v4218_v5 = vpop.f32.mrf.mxu1 }
 0x37a   : > { %v4233_v53 = vmul.f32 %v4786_v35, %v4218_v5  ;;  %v4250_v61 = vmax.f32 %v4244_v18, 0.0 }
 0x37b   : > { %v5186_v44 = vpop.f32.mrf.mxu1 }
 0x37c   : > { %v4245_v8 = vadd.f32 %v7904_v31, %v4233_v53 }
 0x37d   : > { %v4308_v20 = vpop.f32.mrf.mxu1 }
 0x37e   : > { %v4251_v14 = vmax.f32 %v4245_v8, 0.0  ;;  %v4334_v50 = vmul.f32 %v4332_v25, %v4308_v20 }
 0x37f   : > { %v5191_v55 = vpop.f32.mrf.mxu1 }
 0x380   : > { %v4357_v13 = vpack.c.bf16 %v4251_v14, %v4250_v61  ;;  %v4343_v28 = vadd.f32 %v4341_v47, %v4334_v50 }
 0x381   : > { %v4311_v42 = vpop.f32.mrf.mxu1 }
 0x382   : > { %5226 = vmatmul.mubr.msk.bf16.gmra.mxu1 %vm4152_vm8, %v4357_v13  ;;  %v4335_v62 = vmul.f32 %v4332_v25, %v4311_v42  ;;  %v4349_v60 = vmax.f32 %v4343_v28, 0.0 }
 0x383   : > { %v5192_v57 = vpop.f32.mrf.mxu1 }
 0x384   : > { %v4344_v49 = vadd.f32 %v4341_v47, %v4335_v62 }
 0x386   : > { %v4350_v6 = vmax.f32 %v4344_v49, 0.0 }
 0x388   : > { %v4359_v59 = vpack.c.bf16 %v4350_v6, %v4349_v60 }
 0x38a   : > { %5204 = vmatmul.mubr.msk.bf16.vlgmr.msra.gmra.mxu0 %vm4152_vm8, %v4359_v59 }
 0x38b   : > { %5207 = vmatprep.mubr.msk.bf16.mxu0 %vm5353_vm5, %v8358_v37 }
 0x398   : > { %v4316_v31 = vpop.f32.mrf.mxu1 }
 0x399   : > { %v4336_v9 = vmul.f32 %v4332_v25, %v4316_v31 }
 0x39a   : > { %v5195_v12 = vpop.f32.mrf.mxu1 }
 0x39b   : > { %v4345_v26 = vadd.f32 %v4341_v47, %v4336_v9 }
 0x39c   : > { %v4319_v36 = vpop.f32.mrf.mxu1 }
 0x39d   : > { %v4337_v23 = vmul.f32 %v4332_v25, %v4319_v36  ;;  %v4351_v3 = vmax.f32 %v4345_v26, 0.0 }
 0x39e   : > { %v5196_v0 = vpop.f32.mrf.mxu1 }
 0x39f   : > { %v4346_v7 = vadd.f32 %v4341_v47, %v4337_v23 }
 0x3a1   : > { %v4352_v35 = vmax.f32 %v4346_v7, 0.0 }
 0x3a3   : > { %v4360_v33 = vpack.c.bf16 %v4352_v35, %v4351_v3 }
 0x3a5   : > { %5208 = vmatmul.mubr.msk.bf16.gmra.mxu0 %vm4152_vm8, %v4360_v33 }
 0x3a6   : > { %5211 = vmatprep.mubr.msk.bf16.mxu0 %vm5353_vm5, %v8358_v37 }
 0x3e8   : > { %v4324_v1 = vpop.f32.mrf.mxu1 }
 0x3e9   : > { %v4338_v24 = vmul.f32 %v4332_v25, %v4324_v1 }
 0x3ea   : > { %v5199_v30 = vpop.f32.mrf.mxu1 }
 0x3eb   : > { %v4347_v19 = vadd.f32 %v4341_v47, %v4338_v24 }
 0x3ec   : > { %v4327_v34 = vpop.f32.mrf.mxu1 }
 0x3ed   : > { %v4339_v38 = vmul.f32 %v4332_v25, %v4327_v34  ;;  %v4353_v32 = vmax.f32 %v4347_v19, 0.0 }
 0x3ee   : > { %v5200_v21 = vpop.f32.mrf.mxu1 }
 0x3ef   : > { %v4348_v45 = vadd.f32 %v4341_v47, %v4339_v38 }
 0x3f0   : > { %v4478_v22 = vpop.f32.mrf.mxu1 }
 0x3f1   : > { %v4354_v52 = vmax.f32 %v4348_v45, 0.0 }
 0x3f2   : > { %v5219_v15 = vpop.f32.mrf.mxu1 }
 0x3f3   : > { %v4361_v11 = vpack.c.bf16 %v4354_v52, %v4353_v32 }
 0x3f4   : > { %v4481_v56 = vpop.f32.mrf.mxu1 }
 0x3f5   : > { %5212 = vmatmul.mubr.msk.bf16.gmra.mxu0 %vm4152_vm8, %v4361_v11 }
 0x3f6   : > { %v5220_v4 = vpop.f32.mrf.mxu1 }
 0x3f8   : > { %v4486_v37 = vpop.f32.mrf.mxu1 }
 0x3fa   : > { %v5223_v43 = vpop.f32.mrf.mxu1 }
 0x3fc   : > { %v4489_v46 = vpop.f32.mrf.mxu1 }
 0x3fe   : > { %v5224_v41 = vpop.f32.mrf.mxu1 }
 0x442   : > { %v4494_v40 = vpop.f32.mrf.mxu1 }
 0x444   : > { %v5227_v39 = vpop.f32.mrf.mxu1 }
 0x446   : > { %v4497_v29 = vpop.f32.mrf.mxu1 }
 0x448   : > { %v5228_v17 = vpop.f32.mrf.mxu1 }
 0x44a   : > { %v4409_v58 = vpop.f32.mrf.mxu0 }
 0x44b   : > { %v4479_v10 = vadd.f32 %v4478_v22, %v4409_v58 }
 0x44c   : > { %v5205_v2 = vpop.f32.mrf.mxu0 }
 0x44d   : > { %v4508_v27 = vadd.f32 %v4797_v51, %v4479_v10 }
 0x44e   : > { %v4412_v16 = vpop.f32.mrf.mxu0 }
 0x44f   : > { %4514 = vst [vmem:[%s457_s21] sm:$0xff] %v4508_v27  ;;  %v4482_v63 = vadd.f32 %v4481_v56, %v4412_v16 }
 0x450   : > { %v5206_v54 = vpop.f32.mrf.mxu0 }
 0x451   : > { %v4509_v48 = vadd.f32 %v4797_v51, %v4482_v63 }
 0x453   : > { %4515 = vst [vmem:[%s457_s21 + $0x8] sm:$0xff] %v4509_v48 }
 0x465   : > { %v4417_v5 = vpop.f32.mrf.mxu0 }
 0x466   : > { %v4487_v18 = vadd.f32 %v4486_v37, %v4417_v5 }
 0x467   : > { %v5209_v53 = vpop.f32.mrf.mxu0 }
 0x468   : > { %v4510_v44 = vadd.f32 %v4797_v51, %v4487_v18 }
 0x469   : > { %v4420_v25 = vpop.f32.mrf.mxu0 }
 0x46a   : > { %4798 = vst [vmem:[%s457_s21 + $0x10] sm:$0xff] %v4510_v44  ;;  %v4490_v8 = vadd.f32 %v4489_v46, %v4420_v25 }
 0x46b   : > { %v5210_v20 = vpop.f32.mrf.mxu0 }
 0x46c   : > { %v4511_v61 = vadd.f32 %v4797_v51, %v4490_v8 }
 0x46e   : > { %4799 = vst [vmem:[%s457_s21 + $0x18] sm:$0xff] %v4511_v61 }
 0x4b5   : > { %v4425_v14 = vpop.f32.mrf.mxu0 }
 0x4b6   : > { %v4495_v50 = vadd.f32 %v4494_v40, %v4425_v14 }
 0x4b7   : > { %v5213_v47 = vpop.f32.mrf.mxu0 }
 0x4b8   : > { %v4512_v55 = vadd.f32 %v4797_v51, %v4495_v50 }
 0x4b9   : > { %v4428_v13 = vpop.f32.mrf.mxu0 }
 0x4ba   : > { %4800 = vst [vmem:[%s457_s21 + $0x20] sm:$0xff] %v4512_v55  ;;  %v4498_v42 = vadd.f32 %v4497_v29, %v4428_v13 }
 0x4bb   : > { %v5214_v62 = vpop.f32.mrf.mxu0 }
 0x4bc   : > { %v4513_v28 = vadd.f32 %v4797_v51, %v4498_v42 }
 0x4be   : > { %4801 = vst [vmem:[%s457_s21 + $0x28] sm:$0xff] %v4513_v28 }
 0x4bf PF: > { %s22_s25 = sadd.s32 1, %s5350_s25   ;;  %s8384_s21 = smov %s5342_s23 }
 0x4c0   : > { %p19_p7 = scmp.ge.s32.totalorder %s22_s25, 8   ;;  %s8385_s22 = smov %s5346_s24 }
 0x4c1   : > { %s8386_s23 = smov %s8389_s26  ;;  %s8387_s24 = smov %s8393_s27 }
 0x4c2   :  { %21 = sbr.rel (!%p19_p7) target bundleno = 3 (0x3), region = 112 }

</bundles_post_ra>
